<compile_context>
chip_gen: v7x
topology: tpu7x:2x2x1
jax: 0.10.0
libtpu: 0.0.40
codegen_flags: <defaults>
</compile_context>

<pallas_src>
import functools

import numpy as np
import jax
import jax.numpy as jnp
from jax.experimental import pallas as pl
from jax.experimental.pallas import tpu as pltpu

GR = 8                      # growth rate
BLOCK_LIST = (1, 1, 1, 1)   # one bottleneck per dense block (small config)
N_CLASSES = 10
BN_EPS = 1e-5
VMEM_LIMIT = 32 * 1024 * 1024


# ----------------------------------------------------------------------------
# In-kernel helpers (pure value ops; no scratch refs needed)
# ----------------------------------------------------------------------------
def _flat_shift(a, off):
    """out[p] = a[p + off] over the flattened spatial axis, zero out of range.

    `off` is a static Python int; only |off| border rows are zero-filled."""
    if off == 0:
        return a
    n, c = a.shape
    z = jnp.zeros((abs(off), c), a.dtype)
    if off > 0:
        return jnp.concatenate([a[off:, :], z], axis=0)
    return jnp.concatenate([z, a[:off, :]], axis=0)


def _col_masks(HW, W, dtype=jnp.float32):
    """(HW,1) masks: the horizontal neighbour at w-1 / w+1 is inside the row."""
    col = jax.lax.broadcasted_iota(jnp.int32, (HW, 1), 0) % W
    m_left = (col >= 1).astype(dtype)
    m_right = (col <= W - 2).astype(dtype)
    return m_left, m_right


def _conv3x3_cols(a, H, W):
    """Stack the nine shifted/masked copies of `a` (HW, C) -> (HW, 9*C).

    Flat shifts with zero fill handle the vertical padding; horizontal masks
    handle row wrap-around, so the stacked columns implement exact zero-pad
    3x3 convolution when matmul'ed with the (9*C, Cout) tap-flattened weight."""
    HW, _ = a.shape
    m_left, m_right = _col_masks(HW, W, a.dtype)
    parts = []
    for dy in (-1, 0, 1):
        for dx in (-1, 0, 1):
            v = _flat_shift(a, dy * W + dx)
            if dx == -1:
                v = v * m_left
            elif dx == 1:
                v = v * m_right
            parts.append(v)
    return jnp.concatenate(parts, axis=-1)


# ----------------------------------------------------------------------------
# Pallas kernels
# ----------------------------------------------------------------------------
def stem_kernel(cols_ref, w_ref, s_ref, b_ref, o_ref, *, Hp, Wp, Cs):
    """Stem for one image, emitted at the final (Hp, Wp) = (H/4, W/4) grid.

    cols_ref : (1, Hp*Wp, 243) 9x9/stride-4 patches of the padded input.
    w_ref    : (243, 4*Cs) parity weights -> conv output at the four stride-2
               parities (EE, EO, OE, OO) of each output cell.
    Fused: conv7x7/s2 (one matmul) + folded BN + ReLU + 3x3/s2 max-pool
    (max over the 9 neighbours, expressed via parity grids + flat shifts)."""
    HW = Hp * Wp
    y = jnp.dot(cols_ref[0], w_ref[...], preferred_element_type=jnp.float32)
    y = jnp.maximum(y * s_ref[...] + b_ref[...], 0.0)        # (HW, 4*Cs), >= 0
    ee = y[:, 0 * Cs:1 * Cs]          # conv at (2h,   2w  )
    eo = y[:, 1 * Cs:2 * Cs]          # conv at (2h,   2w+1)
    oe = y[:, 2 * Cs:3 * Cs]          # conv at (2h+1, 2w  )
    oo = y[:, 3 * Cs:4 * Cs]          # conv at (2h+1, 2w+1)
    m_left, _ = _col_masks(HW, Wp)
    # Max over the 3x3 window centred at (2h, 2w).  Out-of-range neighbours are
    # replaced by 0, which never wins because the in-range centre `ee` is >= 0.
    m = jnp.maximum(ee, eo)                                   # (0, 0), (0,+1)
    m = jnp.maximum(m, _flat_shift(eo, -1) * m_left)          # (0,-1)
    m = jnp.maximum(m, oe)                                    # (+1, 0)
    m = jnp.maximum(m, _flat_shift(oe, -Wp))                  # (-1, 0)
    m = jnp.maximum(m, oo)                                    # (+1,+1)
    m = jnp.maximum(m, _flat_shift(oo, -1) * m_left)          # (+1,-1)
    m = jnp.maximum(m, _flat_shift(oo, -Wp))                  # (-1,+1)
    m = jnp.maximum(m, _flat_shift(oo, -Wp - 1) * m_left)     # (-1,-1)
    o_ref[0] = m


def rest_kernel(x_ref, *args, block_list, H0, W0, n_blocks=4):
    """Everything after the stem, for one image, fully VMEM-resident.

    4 dense blocks (BN1+ReLU -> 1x1 conv -> BN2+ReLU -> 3x3 conv -> concat),
    3 transitions (BN+ReLU -> 1x1 conv -> 2x2/s2 avg-pool), trans4 BN+ReLU,
    global average pool and the Linear classifier."""
    o_ref = args[-1]
    it = iter(args[:-1])
    nxt = lambda: next(it)[...]

    x = x_ref[0]                                              # (H0*W0, 2*GR)
    H, W = H0, W0
    for bi in range(n_blocks):
        for _ in range(block_list[bi]):
            s1, b1, w1, s2, b2, w3 = nxt(), nxt(), nxt(), nxt(), nxt(), nxt()
            h = jnp.maximum(x * s1 + b1, 0.0)                 # BN1 + ReLU
            a = jnp.dot(h, w1, preferred_element_type=jnp.float32)   # 1x1 conv
            a = jnp.maximum(a * s2 + b2, 0.0)                 # BN2 + ReLU
            cols = _conv3x3_cols(a, H, W)                     # (HW, 9*4*GR)
            g = jnp.dot(cols, w3, preferred_element_type=jnp.float32)  # 3x3 conv
            x = jnp.concatenate([x, g], axis=-1)              # DenseNet concat
        if bi < n_blocks - 1:
            ts, tb, tw, pool = nxt(), nxt(), nxt(), nxt()
            h = jnp.maximum(x * ts + tb, 0.0)
            y = jnp.dot(h, tw, preferred_element_type=jnp.float32)    # 1x1 conv
            x = jnp.dot(pool, y, preferred_element_type=jnp.float32)  # 2x2 avg
            H, W = H // 2, W // 2
        else:
            ts, tb, wc, bc = nxt(), nxt(), nxt(), nxt()
            h = jnp.maximum(x * ts + tb, 0.0)                 # trans_block4
            pooled = jnp.mean(h, axis=0, keepdims=True)       # global avg pool
            o_ref[0] = jnp.dot(pooled, wc,
                               preferred_element_type=jnp.float32) + bc


# ----------------------------------------------------------------------------
# pallas_call wrappers
# ----------------------------------------------------------------------------
def _cparams():
    return pltpu.CompilerParams(dimension_semantics=("parallel",),
                                vmem_limit_bytes=VMEM_LIMIT)


def stem_call(cols, w, s, b, Hp, Wp):
    N, HW, K = cols.shape
    Cs = w.shape[1] // 4
    kern = functools.partial(stem_kernel, Hp=Hp, Wp=Wp, Cs=Cs)
    return pl.pallas_call(
        kern,
        out_shape=jax.ShapeDtypeStruct((N, HW, Cs), jnp.float32),
        grid=(N,),
        in_specs=[
            pl.BlockSpec((1, HW, K), lambda n: (n, 0, 0)),
            pl.BlockSpec(w.shape, lambda n: (0, 0)),
            pl.BlockSpec(s.shape, lambda n: (0, 0)),
            pl.BlockSpec(b.shape, lambda n: (0, 0)),
        ],
        out_specs=pl.BlockSpec((1, HW, Cs), lambda n: (n, 0, 0)),
        compiler_params=_cparams(),
    )(cols, w, s, b)


def rest_call(x, flat_params, block_list, H0, W0, n_classes):
    N, HW, C0 = x.shape
    in_specs = [pl.BlockSpec((1, HW, C0), lambda n: (n, 0, 0))]
    for p in flat_params:
        in_specs.append(pl.BlockSpec(p.shape, lambda n, nd=p.ndim: (0,) * nd))
    kern = functools.partial(rest_kernel, block_list=tuple(block_list),
                             H0=H0, W0=W0)
    out = pl.pallas_call(
        kern,
        out_shape=jax.ShapeDtypeStruct((N, 1, n_classes), jnp.float32),
        grid=(N,),
        in_specs=in_specs,
        out_specs=pl.BlockSpec((1, 1, n_classes), lambda n: (n, 0, 0)),
        compiler_params=_cparams(),
    )(x, *flat_params)
    return out.reshape(N, n_classes)


# ----------------------------------------------------------------------------
# Wrapper glue: stem patch extraction + one-time weight / BN preparation
# ----------------------------------------------------------------------------
def stem_patches(x_nhwc):
    """9x9 patches at stride 4 (pad 3): exactly the inputs needed by the four
    stride-2 conv-output parities of each stride-4 output cell.
    # TODO(synk): the stride-4 patch extraction itself stays as XLA glue
    # (no clean in-kernel form for the overlapping strided conv windows)."""
    N, H, W, C = x_nhwc.shape
    Hp, Wp = H // 4, W // 4
    xp = jnp.pad(x_nhwc, ((0, 0), (3, 3), (3, 3), (0, 0)))
    slices = []
    for dy in range(9):
        for dx in range(9):
            slices.append(xp[:, dy:dy + 4 * Hp:4, dx:dx + 4 * Wp:4, :])
    cols = jnp.concatenate(slices, axis=-1)                   # (N, Hp, Wp, 243)
    return cols.reshape(N, Hp * Wp, 9 * 9 * C)


def stem_parity_weight(w_oihw):
    """(Cout, 3, 7, 7) -> (243, 4*Cout): the 7x7 weight scattered into the 9x9
    patch at the four (row, col) parity offsets, parity order EE, EO, OE, OO."""
    cout, cin, kh, kw = w_oihw.shape
    w7 = jnp.transpose(w_oihw, (2, 3, 1, 0))                  # (7, 7, cin, cout)
    mats = []
    for pi in range(2):
        for pj in range(2):
            w9 = jnp.zeros((9, 9, cin, cout), w_oihw.dtype)
            w9 = w9.at[2 * pi:2 * pi + 7, 2 * pj:2 * pj + 7].set(w7)
            mats.append(w9.reshape(81 * cin, cout))
    return jnp.concatenate(mats, axis=-1)


def conv1x1_w(w_oihw):
    """(Cout, Cin, 1, 1) -> (Cin, Cout)."""
    return jnp.transpose(w_oihw[:, :, 0, 0], (1, 0))


def conv3x3_w(w_oihw):
    """(Cout, Cin, 3, 3) -> (9*Cin, Cout), rows ordered (ky, kx, cin) to match
    the in-kernel shifted-column stacking order."""
    cout, cin, kh, kw = w_oihw.shape
    return jnp.transpose(w_oihw, (2, 3, 1, 0)).reshape(kh * kw * cin, cout)


def bn_scale_bias(bn):
    s = bn["gamma"] / jnp.sqrt(bn["rv"] + BN_EPS)
    b = bn["beta"] - bn["rm"] * s
    return s.reshape(1, -1), b.reshape(1, -1)


def make_avgpool_matrix(H, W):
    """(Hp*Wp, H*W) selector implementing AvgPool2d(kernel=2, stride=2)."""
    Hp, Wp = H // 2, W // 2
    m = np.zeros((Hp * Wp, H * W), np.float32)
    for i in range(Hp):
        for j in range(Wp):
            for di in range(2):
                for dj in range(2):
                    m[i * Wp + j, (2 * i + di) * W + (2 * j + dj)] = 0.25
    return jnp.asarray(m)


def prepare_params(raw, H_in, W_in):
    """One-time prep (outside jit): fold BN, reshape weights, pool selectors."""
    assert H_in % 32 == 0 and W_in % 32 == 0
    s, b = bn_scale_bias(raw["stem"]["bn"])
    stem = {"w": stem_parity_weight(raw["stem"]["conv_w"]),
            "s": jnp.tile(s, (1, 4)), "b": jnp.tile(b, (1, 4))}

    H, W = H_in // 4, W_in // 4          # spatial after fused stem
    flat = []
    n_blocks = len(raw["dense_blocks"])
    for i, layers_raw in enumerate(raw["dense_blocks"]):
        for lr in layers_raw:
            s1, b1 = bn_scale_bias(lr["bn1"])
            s2, b2 = bn_scale_bias(lr["bn2"])
            flat += [s1, b1, conv1x1_w(lr["conv1_w"]),
                     s2, b2, conv3x3_w(lr["conv3_w"])]
        tr = raw["trans_blocks"][i]
        ts, tb = bn_scale_bias(tr["bn"])
        if i < n_blocks - 1:
            flat += [ts, tb, conv1x1_w(tr["conv_w"]), make_avgpool_matrix(H, W)]
            H, W = H // 2, W // 2
        else:
            flat += [ts, tb, raw["classifier"]["w"],
                     raw["classifier"]["b"].reshape(1, -1)]
    return {"stem": stem, "rest": tuple(flat)}


# ----------------------------------------------------------------------------
# Parameter initialization (deterministic, mirrors the PyTorch module shapes)
# ----------------------------------------------------------------------------
class KeyGen:
    def __init__(self, seed):
        self.key = jax.random.PRNGKey(seed)

    def __call__(self):
        self.key, k = jax.random.split(self.key)
        return k


def init_bn(kg, c):
    return {
        "gamma": 1.0 + 0.1 * jax.random.normal(kg(), (c,), jnp.float32),
        "beta": 0.1 * jax.random.normal(kg(), (c,), jnp.float32),
        "rm": 0.1 * jax.random.normal(kg(), (c,), jnp.float32),
        "rv": 1.0 + 0.1 * jnp.abs(jax.random.normal(kg(), (c,), jnp.float32)),
    }


def init_conv(kg, cout, cin, k):
    fan = cin * k * k
    return jax.random.normal(kg(), (cout, cin, k, k), jnp.float32) * (2.0 / fan) ** 0.5


def init_params(seed, block_list, gr, n_classes):
    kg = KeyGen(seed)
    params = {
        "stem": {"conv_w": init_conv(kg, 2 * gr, 3, 7), "bn": init_bn(kg, 2 * gr)}
    }
    dense_ch = 2 * gr
    trans_ch_list = []
    dense_blocks = []
    for nb in block_list:
        ch = dense_ch
        layers = []
        for _ in range(nb):
            layers.append({
                "bn1": init_bn(kg, ch),
                "conv1_w": init_conv(kg, 4 * gr, ch, 1),
                "bn2": init_bn(kg, 4 * gr),
                "conv3_w": init_conv(kg, gr, 4 * gr, 3),
            })
            ch += gr
        dense_blocks.append(layers)
        trans_ch_list.append(ch)
        dense_ch = ch // 2
    params["dense_blocks"] = dense_blocks

    trans = []
    for tc in trans_ch_list[:-1]:
        trans.append({"bn": init_bn(kg, tc), "conv_w": init_conv(kg, tc // 2, tc, 1)})
    trans.append({"bn": init_bn(kg, trans_ch_list[-1])})   # trans_block4: BN+ReLU
    params["trans_blocks"] = trans

    params["classifier"] = {
        "w": 0.1 * jax.random.normal(kg(), (trans_ch_list[-1], n_classes), jnp.float32),
        "b": 0.1 * jax.random.normal(kg(), (n_classes,), jnp.float32),
    }
    return params


# ----------------------------------------------------------------------------
# DenseNet forward (2 pallas_calls total)
# ----------------------------------------------------------------------------
def densenet_forward(prep, x_nchw):
    x = jnp.transpose(x_nchw, (0, 2, 3, 1)).astype(jnp.float32)   # NCHW -> NHWC
    _, H_in, W_in, _ = x.shape
    Hp, Wp = H_in // 4, W_in // 4

    cols = stem_patches(x)                                        # XLA glue
    st = prep["stem"]
    y = stem_call(cols, st["w"], st["s"], st["b"], Hp, Wp)        # (N, Hp*Wp, 16)
    return rest_call(y, prep["rest"], BLOCK_LIST, Hp, Wp, N_CLASSES)


if __name__ == "__main__":
    N, H_in, W_in = 2, 64, 64          # spatial must be a multiple of 32
    raw_params = init_params(42, BLOCK_LIST, GR, N_CLASSES)
    prep = prepare_params(raw_params, H_in, W_in)  # hoisted out of the forward
    x = jax.random.normal(jax.random.PRNGKey(0), (N, 3, H_in, W_in), jnp.float32)
    fwd = jax.jit(densenet_forward)
    logits = fwd(prep, x)
    jax.block_until_ready(logits)
    assert logits.shape == (N, N_CLASSES), logits.shape
    assert bool(jnp.all(jnp.isfinite(logits)))
    print("KERNEL_OK")
</pallas_src>

<mosaic_0001>
module attributes {stable_mosaic.version = 11 : i64} {
  func.func @stem_kernel(%arg0: i32, %arg1: memref<1x256x243xf32, #tpu.memory_space<vmem>>, %arg2: memref<243x64xf32, #tpu.memory_space<vmem>>, %arg3: memref<1x64xf32, #tpu.memory_space<vmem>>, %arg4: memref<1x64xf32, #tpu.memory_space<vmem>>, %arg5: memref<1x256x16xf32, #tpu.memory_space<vmem>>) attributes {dimension_semantics = [#tpu.dimension_semantics<parallel>], iteration_bounds = array<i64: 2>, scalar_prefetch = 0 : i64, scratch_operands = 0 : i64, tpu.core_type = #tpu.core_type<tc>, window_params = [{transform_indices = @transform_0, window_bounds = array<i64: 1, 256, 243>}, {pipeline_mode = #tpu.pipeline_mode<synchronous>, transform_indices = @transform_1, window_bounds = array<i64: 243, 64>}, {pipeline_mode = #tpu.pipeline_mode<synchronous>, transform_indices = @transform_2, window_bounds = array<i64: 1, 64>}, {pipeline_mode = #tpu.pipeline_mode<synchronous>, transform_indices = @transform_3, window_bounds = array<i64: 1, 64>}, {transform_indices = @transform_4, window_bounds = array<i64: 1, 256, 16>}]} {
    %c0 = arith.constant 0 : index
    %c0_0 = arith.constant 0 : index
    %c0_1 = arith.constant 0 : index
    %0 = vector.load %arg1[%c0, %c0_0, %c0_1] : memref<1x256x243xf32, #tpu.memory_space<vmem>>, vector<1x256x243xf32>
    %1 = vector.shape_cast %0 : vector<1x256x243xf32> to vector<256x243xf32>
    %c0_2 = arith.constant 0 : index
    %c0_3 = arith.constant 0 : index
    %2 = vector.load %arg2[%c0_2, %c0_3] : memref<243x64xf32, #tpu.memory_space<vmem>>, vector<243x64xf32>
    %cst = arith.constant dense<0.000000e+00> : vector<256x64xf32>
    %3 = tpu.matmul %1, %2, %cst {dimension_numbers = #tpu.dot_dimension_numbers<[1], [0], [0], [1], [0, 0, 1, 1], [], []>} : vector<256x243xf32>, vector<243x64xf32>, vector<256x64xf32> -> vector<256x64xf32>
    %c0_4 = arith.constant 0 : index
    %c0_5 = arith.constant 0 : index
    %4 = vector.load %arg3[%c0_4, %c0_5] : memref<1x64xf32, #tpu.memory_space<vmem>>, vector<1x64xf32>
    %5 = vector.broadcast %4 : vector<1x64xf32> to vector<256x64xf32>
    %6 = arith.mulf %3, %5 : vector<256x64xf32>
    %c0_6 = arith.constant 0 : index
    %c0_7 = arith.constant 0 : index
    %7 = vector.load %arg4[%c0_6, %c0_7] : memref<1x64xf32, #tpu.memory_space<vmem>>, vector<1x64xf32>
    %8 = vector.broadcast %7 : vector<1x64xf32> to vector<256x64xf32>
    %9 = arith.addf %6, %8 : vector<256x64xf32>
    %cst_8 = arith.constant 0.000000e+00 : f32
    %10 = vector.broadcast %cst_8 : f32 to vector<256x64xf32>
    %11 = arith.maximumf %9, %10 : vector<256x64xf32>
    %12 = vector.extract_strided_slice %11 {offsets = [0, 0], sizes = [256, 16], strides = [1, 1]} : vector<256x64xf32> to vector<256x16xf32>
    %13 = vector.extract_strided_slice %11 {offsets = [0, 16], sizes = [256, 16], strides = [1, 1]} : vector<256x64xf32> to vector<256x16xf32>
    %14 = vector.extract_strided_slice %11 {offsets = [0, 32], sizes = [256, 16], strides = [1, 1]} : vector<256x64xf32> to vector<256x16xf32>
    %15 = vector.extract_strided_slice %11 {offsets = [0, 48], sizes = [256, 16], strides = [1, 1]} : vector<256x64xf32> to vector<256x16xf32>
    %16 = tpu.iota {dimensions = array<i32: 0>} : vector<256x1xi32>
    %c16_i32 = arith.constant 16 : i32
    %c0_i32 = arith.constant 0 : i32
    %17 = arith.cmpi eq, %c16_i32, %c0_i32 : i32
    %c1_i32 = arith.constant 1 : i32
    %18 = arith.select %17, %c1_i32, %c16_i32 : i32
    %19 = vector.broadcast %18 : i32 to vector<256x1xi32>
    %20 = arith.remsi %16, %19 : vector<256x1xi32>
    %c0_i32_9 = arith.constant 0 : i32
    %21 = vector.broadcast %c0_i32_9 : i32 to vector<256x1xi32>
    %22 = arith.cmpi ne, %20, %21 : vector<256x1xi32>
    %c0_i32_10 = arith.constant 0 : i32
    %23 = vector.broadcast %c0_i32_10 : i32 to vector<256x1xi32>
    %24 = arith.cmpi slt, %20, %23 : vector<256x1xi32>
    %c0_i32_11 = arith.constant 0 : i32
    %25 = arith.cmpi slt, %18, %c0_i32_11 : i32
    %26 = vector.broadcast %25 : i1 to vector<256x1xi1>
    %27 = vector.broadcast %26 : vector<256x1xi1> to vector<256x1xi1>
    %28 = arith.xori %24, %27 : vector<256x1xi1>
    %29 = arith.andi %28, %22 : vector<256x1xi1>
    %30 = vector.broadcast %18 : i32 to vector<256x1xi32>
    %31 = arith.addi %20, %30 : vector<256x1xi32>
    %32 = arith.select %29, %31, %20 : vector<256x1xi1>, vector<256x1xi32>
    %c1_i32_12 = arith.constant 1 : i32
    %33 = vector.broadcast %c1_i32_12 : i32 to vector<256x1xi32>
    %34 = arith.cmpi sge, %32, %33 : vector<256x1xi32>
    %35 = arith.extui %34 : vector<256x1xi1> to vector<256x1xi32>
    %36 = arith.sitofp %35 : vector<256x1xi32> to vector<256x1xf32>
    %37 = arith.maximumf %12, %13 : vector<256x16xf32>
    %cst_13 = arith.constant 0.000000e+00 : f32
    %38 = vector.broadcast %cst_13 : f32 to vector<1x16xf32>
    %39 = vector.extract_strided_slice %13 {offsets = [0, 0], sizes = [255, 16], strides = [1, 1]} : vector<256x16xf32> to vector<255x16xf32>
    %40 = tpu.concatenate %38, %39 in 0 : vector<1x16xf32>, vector<255x16xf32> -> vector<256x16xf32>
    %41 = vector.broadcast %36 : vector<256x1xf32> to vector<256x16xf32>
    %42 = arith.mulf %40, %41 : vector<256x16xf32>
    %43 = arith.maximumf %37, %42 : vector<256x16xf32>
    %44 = arith.maximumf %43, %14 : vector<256x16xf32>
    %cst_14 = arith.constant 0.000000e+00 : f32
    %45 = vector.broadcast %cst_14 : f32 to vector<16x16xf32>
    %46 = vector.extract_strided_slice %14 {offsets = [0, 0], sizes = [240, 16], strides = [1, 1]} : vector<256x16xf32> to vector<240x16xf32>
    %47 = tpu.concatenate %45, %46 in 0 : vector<16x16xf32>, vector<240x16xf32> -> vector<256x16xf32>
    %48 = arith.maximumf %44, %47 : vector<256x16xf32>
    %49 = arith.maximumf %48, %15 : vector<256x16xf32>
    %cst_15 = arith.constant 0.000000e+00 : f32
    %50 = vector.broadcast %cst_15 : f32 to vector<1x16xf32>
    %51 = vector.extract_strided_slice %15 {offsets = [0, 0], sizes = [255, 16], strides = [1, 1]} : vector<256x16xf32> to vector<255x16xf32>
    %52 = tpu.concatenate %50, %51 in 0 : vector<1x16xf32>, vector<255x16xf32> -> vector<256x16xf32>
    %53 = vector.broadcast %36 : vector<256x1xf32> to vector<256x16xf32>
    %54 = arith.mulf %52, %53 : vector<256x16xf32>
    %55 = arith.maximumf %49, %54 : vector<256x16xf32>
    %cst_16 = arith.constant 0.000000e+00 : f32
    %56 = vector.broadcast %cst_16 : f32 to vector<16x16xf32>
    %57 = vector.extract_strided_slice %15 {offsets = [0, 0], sizes = [240, 16], strides = [1, 1]} : vector<256x16xf32> to vector<240x16xf32>
    %58 = tpu.concatenate %56, %57 in 0 : vector<16x16xf32>, vector<240x16xf32> -> vector<256x16xf32>
    %59 = arith.maximumf %55, %58 : vector<256x16xf32>
    %cst_17 = arith.constant 0.000000e+00 : f32
    %60 = vector.broadcast %cst_17 : f32 to vector<17x16xf32>
    %61 = vector.extract_strided_slice %15 {offsets = [0, 0], sizes = [239, 16], strides = [1, 1]} : vector<256x16xf32> to vector<239x16xf32>
    %62 = tpu.concatenate %60, %61 in 0 : vector<17x16xf32>, vector<239x16xf32> -> vector<256x16xf32>
    %63 = vector.broadcast %36 : vector<256x1xf32> to vector<256x16xf32>
    %64 = arith.mulf %62, %63 : vector<256x16xf32>
    %65 = arith.maximumf %59, %64 : vector<256x16xf32>
    %c0_18 = arith.constant 0 : index
    %c0_19 = arith.constant 0 : index
    %c0_20 = arith.constant 0 : index
    %66 = vector.load %arg5[%c0_18, %c0_19, %c0_20] : memref<1x256x16xf32, #tpu.memory_space<vmem>>, vector<1x256x16xf32>
    %67 = vector.shape_cast %66 : vector<1x256x16xf32> to vector<256x16xf32>
    %68 = vector.shape_cast %65 : vector<256x16xf32> to vector<1x256x16xf32>
    tpu.vector_store %arg5[%c0_18, %c0_19, %c0_20], %68 {strides = array<i32>} : memref<1x256x16xf32, #tpu.memory_space<vmem>>, vector<1x256x16xf32>,
    return
  }
  func.func @transform_0(%arg0: i32) -> (i32, i32, i32) {
    %c0_i32 = arith.constant 0 : i32
    %c0_i32_0 = arith.constant 0 : i32
    %c0_i32_1 = arith.constant 0 : i32
    return %arg0, %c0_i32, %c0_i32_0 : i32, i32, i32
  }
  func.func @transform_1(%arg0: i32) -> (i32, i32) {
    %c0_i32 = arith.constant 0 : i32
    %c0_i32_0 = arith.constant 0 : i32
    %c0_i32_1 = arith.constant 0 : i32
    return %c0_i32, %c0_i32_0 : i32, i32
  }
  func.func @transform_2(%arg0: i32) -> (i32, i32) {
    %c0_i32 = arith.constant 0 : i32
    %c0_i32_0 = arith.constant 0 : i32
    %c0_i32_1 = arith.constant 0 : i32
    return %c0_i32, %c0_i32_0 : i32, i32
  }
  func.func @transform_3(%arg0: i32) -> (i32, i32) {
    %c0_i32 = arith.constant 0 : i32
    %c0_i32_0 = arith.constant 0 : i32
    %c0_i32_1 = arith.constant 0 : i32
    return %c0_i32, %c0_i32_0 : i32, i32
  }
  func.func @transform_4(%arg0: i32) -> (i32, i32, i32) {
    %c0_i32 = arith.constant 0 : i32
    %c0_i32_0 = arith.constant 0 : i32
    %c0_i32_1 = arith.constant 0 : i32
    return %arg0, %c0_i32, %c0_i32_0 : i32, i32, i32
  }
}

module attributes {stable_mosaic.version = 11 : i64} {
  func.func @rest_kernel(%arg0: i32, %arg1: memref<1x256x16xf32, #tpu.memory_space<vmem>>, %arg2: memref<1x16xf32, #tpu.memory_space<vmem>>, %arg3: memref<1x16xf32, #tpu.memory_space<vmem>>, %arg4: memref<16x32xf32, #tpu.memory_space<vmem>>, %arg5: memref<1x32xf32, #tpu.memory_space<vmem>>, %arg6: memref<1x32xf32, #tpu.memory_space<vmem>>, %arg7: memref<288x8xf32, #tpu.memory_space<vmem>>, %arg8: memref<1x24xf32, #tpu.memory_space<vmem>>, %arg9: memref<1x24xf32, #tpu.memory_space<vmem>>, %arg10: memref<24x12xf32, #tpu.memory_space<vmem>>, %arg11: memref<64x256xf32, #tpu.memory_space<vmem>>, %arg12: memref<1x12xf32, #tpu.memory_space<vmem>>, %arg13: memref<1x12xf32, #tpu.memory_space<vmem>>, %arg14: memref<12x32xf32, #tpu.memory_space<vmem>>, %arg15: memref<1x32xf32, #tpu.memory_space<vmem>>, %arg16: memref<1x32xf32, #tpu.memory_space<vmem>>, %arg17: memref<288x8xf32, #tpu.memory_space<vmem>>, %arg18: memref<1x20xf32, #tpu.memory_space<vmem>>, %arg19: memref<1x20xf32, #tpu.memory_space<vmem>>, %arg20: memref<20x10xf32, #tpu.memory_space<vmem>>, %arg21: memref<16x64xf32, #tpu.memory_space<vmem>>, %arg22: memref<1x10xf32, #tpu.memory_space<vmem>>, %arg23: memref<1x10xf32, #tpu.memory_space<vmem>>, %arg24: memref<10x32xf32, #tpu.memory_space<vmem>>, %arg25: memref<1x32xf32, #tpu.memory_space<vmem>>, %arg26: memref<1x32xf32, #tpu.memory_space<vmem>>, %arg27: memref<288x8xf32, #tpu.memory_space<vmem>>, %arg28: memref<1x18xf32, #tpu.memory_space<vmem>>, %arg29: memref<1x18xf32, #tpu.memory_space<vmem>>, %arg30: memref<18x9xf32, #tpu.memory_space<vmem>>, %arg31: memref<4x16xf32, #tpu.memory_space<vmem>>, %arg32: memref<1x9xf32, #tpu.memory_space<vmem>>, %arg33: memref<1x9xf32, #tpu.memory_space<vmem>>, %arg34: memref<9x32xf32, #tpu.memory_space<vmem>>, %arg35: memref<1x32xf32, #tpu.memory_space<vmem>>, %arg36: memref<1x32xf32, #tpu.memory_space<vmem>>, %arg37: memref<288x8xf32, #tpu.memory_space<vmem>>, %arg38: memref<1x17xf32, #tpu.memory_space<vmem>>, %arg39: memref<1x17xf32, #tpu.memory_space<vmem>>, %arg40: memref<17x10xf32, #tpu.memory_space<vmem>>, %arg41: memref<1x10xf32, #tpu.memory_space<vmem>>, %arg42: memref<1x1x10xf32, #tpu.memory_space<vmem>>) attributes {dimension_semantics = [#tpu.dimension_semantics<parallel>], iteration_bounds = array<i64: 2>, scalar_prefetch = 0 : i64, scratch_operands = 0 : i64, tpu.core_type = #tpu.core_type<tc>, window_params = [{transform_indices = @transform_0, window_bounds = array<i64: 1, 256, 16>}, {pipeline_mode = #tpu.pipeline_mode<synchronous>, transform_indices = @transform_1, window_bounds = array<i64: 1, 16>}, {pipeline_mode = #tpu.pipeline_mode<synchronous>, transform_indices = @transform_2, window_bounds = array<i64: 1, 16>}, {pipeline_mode = #tpu.pipeline_mode<synchronous>, transform_indices = @transform_3, window_bounds = array<i64: 16, 32>}, {pipeline_mode = #tpu.pipeline_mode<synchronous>, transform_indices = @transform_4, window_bounds = array<i64: 1, 32>}, {pipeline_mode = #tpu.pipeline_mode<synchronous>, transform_indices = @transform_5, window_bounds = array<i64: 1, 32>}, {pipeline_mode = #tpu.pipeline_mode<synchronous>, transform_indices = @transform_6, window_bounds = array<i64: 288, 8>}, {pipeline_mode = #tpu.pipeline_mode<synchronous>, transform_indices = @transform_7, window_bounds = array<i64: 1, 24>}, {pipeline_mode = #tpu.pipeline_mode<synchronous>, transform_indices = @transform_8, window_bounds = array<i64: 1, 24>}, {pipeline_mode = #tpu.pipeline_mode<synchronous>, transform_indices = @transform_9, window_bounds = array<i64: 24, 12>}, {pipeline_mode = #tpu.pipeline_mode<synchronous>, transform_indices = @transform_10, window_bounds = array<i64: 64, 256>}, {pipeline_mode = #tpu.pipeline_mode<synchronous>, transform_indices = @transform_11, window_bounds = array<i64: 1, 12>}, {pipeline_mode = #tpu.pipeline_mode<synchronous>, transform_indices = @transform_12, window_bounds = array<i64: 1, 12>}, {pipeline_mode = #tpu.pipeline_mode<synchronous>, transform_indices = @transform_13, window_bounds = array<i64: 12, 32>}, {pipeline_mode = #tpu.pipeline_mode<synchronous>, transform_indices = @transform_14, window_bounds = array<i64: 1, 32>}, {pipeline_mode = #tpu.pipeline_mode<synchronous>, transform_indices = @transform_15, window_bounds = array<i64: 1, 32>}, {pipeline_mode = #tpu.pipeline_mode<synchronous>, transform_indices = @transform_16, window_bounds = array<i64: 288, 8>}, {pipeline_mode = #tpu.pipeline_mode<synchronous>, transform_indices = @transform_17, window_bounds = array<i64: 1, 20>}, {pipeline_mode = #tpu.pipeline_mode<synchronous>, transform_indices = @transform_18, window_bounds = array<i64: 1, 20>}, {pipeline_mode = #tpu.pipeline_mode<synchronous>, transform_indices = @transform_19, window_bounds = array<i64: 20, 10>}, {pipeline_mode = #tpu.pipeline_mode<synchronous>, transform_indices = @transform_20, window_bounds = array<i64: 16, 64>}, {pipeline_mode = #tpu.pipeline_mode<synchronous>, transform_indices = @transform_21, window_bounds = array<i64: 1, 10>}, {pipeline_mode = #tpu.pipeline_mode<synchronous>, transform_indices = @transform_22, window_bounds = array<i64: 1, 10>}, {pipeline_mode = #tpu.pipeline_mode<synchronous>, transform_indices = @transform_23, window_bounds = array<i64: 10, 32>}, {pipeline_mode = #tpu.pipeline_mode<synchronous>, transform_indices = @transform_24, window_bounds = array<i64: 1, 32>}, {pipeline_mode = #tpu.pipeline_mode<synchronous>, transform_indices = @transform_25, window_bounds = array<i64: 1, 32>}, {pipeline_mode = #tpu.pipeline_mode<synchronous>, transform_indices = @transform_26, window_bounds = array<i64: 288, 8>}, {pipeline_mode = #tpu.pipeline_mode<synchronous>, transform_indices = @transform_27, window_bounds = array<i64: 1, 18>}, {pipeline_mode = #tpu.pipeline_mode<synchronous>, transform_indices = @transform_28, window_bounds = array<i64: 1, 18>}, {pipeline_mode = #tpu.pipeline_mode<synchronous>, transform_indices = @transform_29, window_bounds = array<i64: 18, 9>}, {pipeline_mode = #tpu.pipeline_mode<synchronous>, transform_indices = @transform_30, window_bounds = array<i64: 4, 16>}, {pipeline_mode = #tpu.pipeline_mode<synchronous>, transform_indices = @transform_31, window_bounds = array<i64: 1, 9>}, {pipeline_mode = #tpu.pipeline_mode<synchronous>, transform_indices = @transform_32, window_bounds = array<i64: 1, 9>}, {pipeline_mode = #tpu.pipeline_mode<synchronous>, transform_indices = @transform_33, window_bounds = array<i64: 9, 32>}, {pipeline_mode = #tpu.pipeline_mode<synchronous>, transform_indices = @transform_34, window_bounds = array<i64: 1, 32>}, {pipeline_mode = #tpu.pipeline_mode<synchronous>, transform_indices = @transform_35, window_bounds = array<i64: 1, 32>}, {pipeline_mode = #tpu.pipeline_mode<synchronous>, transform_indices = @transform_36, window_bounds = array<i64: 288, 8>}, {pipeline_mode = #tpu.pipeline_mode<synchronous>, transform_indices = @transform_37, window_bounds = array<i64: 1, 17>}, {pipeline_mode = #tpu.pipeline_mode<synchronous>, transform_indices = @transform_38, window_bounds = array<i64: 1, 17>}, {pipeline_mode = #tpu.pipeline_mode<synchronous>, transform_indices = @transform_39, window_bounds = array<i64: 17, 10>}, {pipeline_mode = #tpu.pipeline_mode<synchronous>, transform_indices = @transform_40, window_bounds = array<i64: 1, 10>}, {transform_indices = @transform_41, window_bounds = array<i64: 1, 1, 10>}]} {
    %c0 = arith.constant 0 : index
    %c0_0 = arith.constant 0 : index
    %c0_1 = arith.constant 0 : index
    %0 = vector.load %arg1[%c0, %c0_0, %c0_1] : memref<1x256x16xf32, #tpu.memory_space<vmem>>, vector<1x256x16xf32>
    %1 = vector.shape_cast %0 : vector<1x256x16xf32> to vector<256x16xf32>
    %c0_2 = arith.constant 0 : index
    %c0_3 = arith.constant 0 : index
    %2 = vector.load %arg2[%c0_2, %c0_3] : memref<1x16xf32, #tpu.memory_space<vmem>>, vector<1x16xf32>
    %c0_4 = arith.constant 0 : index
    %c0_5 = arith.constant 0 : index
    %3 = vector.load %arg3[%c0_4, %c0_5] : memref<1x16xf32, #tpu.memory_space<vmem>>, vector<1x16xf32>
    %c0_6 = arith.constant 0 : index
    %c0_7 = arith.constant 0 : index
    %4 = vector.load %arg4[%c0_6, %c0_7] : memref<16x32xf32, #tpu.memory_space<vmem>>, vector<16x32xf32>
    %c0_8 = arith.constant 0 : index
    %c0_9 = arith.constant 0 : index
    %5 = vector.load %arg5[%c0_8, %c0_9] : memref<1x32xf32, #tpu.memory_space<vmem>>, vector<1x32xf32>
    %c0_10 = arith.constant 0 : index
    %c0_11 = arith.constant 0 : index
    %6 = vector.load %arg6[%c0_10, %c0_11] : memref<1x32xf32, #tpu.memory_space<vmem>>, vector<1x32xf32>
    %c0_12 = arith.constant 0 : index
    %c0_13 = arith.constant 0 : index
    %7 = vector.load %arg7[%c0_12, %c0_13] : memref<288x8xf32, #tpu.memory_space<vmem>>, vector<288x8xf32>
    %8 = vector.broadcast %2 : vector<1x16xf32> to vector<256x16xf32>
    %9 = arith.mulf %1, %8 : vector<256x16xf32>
    %10 = vector.broadcast %3 : vector<1x16xf32> to vector<256x16xf32>
    %11 = arith.addf %9, %10 : vector<256x16xf32>
    %cst = arith.constant 0.000000e+00 : f32
    %12 = vector.broadcast %cst : f32 to vector<256x16xf32>
    %13 = arith.maximumf %11, %12 : vector<256x16xf32>
    %cst_14 = arith.constant dense<0.000000e+00> : vector<256x32xf32>
    %14 = tpu.matmul %13, %4, %cst_14 {dimension_numbers = #tpu.dot_dimension_numbers<[1], [0], [0], [1], [0, 0, 1, 1], [], []>} : vector<256x16xf32>, vector<16x32xf32>, vector<256x32xf32> -> vector<256x32xf32>
    %15 = vector.broadcast %5 : vector<1x32xf32> to vector<256x32xf32>
    %16 = arith.mulf %14, %15 : vector<256x32xf32>
    %17 = vector.broadcast %6 : vector<1x32xf32> to vector<256x32xf32>
    %18 = arith.addf %16, %17 : vector<256x32xf32>
    %cst_15 = arith.constant 0.000000e+00 : f32
    %19 = vector.broadcast %cst_15 : f32 to vector<256x32xf32>
    %20 = arith.maximumf %18, %19 : vector<256x32xf32>
    %21 = tpu.iota {dimensions = array<i32: 0>} : vector<256x1xi32>
    %c16_i32 = arith.constant 16 : i32
    %c0_i32 = arith.constant 0 : i32
    %22 = arith.cmpi eq, %c16_i32, %c0_i32 : i32
    %c1_i32 = arith.constant 1 : i32
    %23 = arith.select %22, %c1_i32, %c16_i32 : i32
    %24 = vector.broadcast %23 : i32 to vector<256x1xi32>
    %25 = arith.remsi %21, %24 : vector<256x1xi32>
    %c0_i32_16 = arith.constant 0 : i32
    %26 = vector.broadcast %c0_i32_16 : i32 to vector<256x1xi32>
    %27 = arith.cmpi ne, %25, %26 : vector<256x1xi32>
    %c0_i32_17 = arith.constant 0 : i32
    %28 = vector.broadcast %c0_i32_17 : i32 to vector<256x1xi32>
    %29 = arith.cmpi slt, %25, %28 : vector<256x1xi32>
    %c0_i32_18 = arith.constant 0 : i32
    %30 = arith.cmpi slt, %23, %c0_i32_18 : i32
    %31 = vector.broadcast %30 : i1 to vector<256x1xi1>
    %32 = vector.broadcast %31 : vector<256x1xi1> to vector<256x1xi1>
    %33 = arith.xori %29, %32 : vector<256x1xi1>
    %34 = arith.andi %33, %27 : vector<256x1xi1>
    %35 = vector.broadcast %23 : i32 to vector<256x1xi32>
    %36 = arith.addi %25, %35 : vector<256x1xi32>
    %37 = arith.select %34, %36, %25 : vector<256x1xi1>, vector<256x1xi32>
    %c1_i32_19 = arith.constant 1 : i32
    %38 = vector.broadcast %c1_i32_19 : i32 to vector<256x1xi32>
    %39 = arith.cmpi sge, %37, %38 : vector<256x1xi32>
    %40 = arith.extui %39 : vector<256x1xi1> to vector<256x1xi32>
    %41 = arith.sitofp %40 : vector<256x1xi32> to vector<256x1xf32>
    %c14_i32 = arith.constant 14 : i32
    %42 = vector.broadcast %c14_i32 : i32 to vector<256x1xi32>
    %43 = arith.cmpi sle, %37, %42 : vector<256x1xi32>
    %44 = arith.extui %43 : vector<256x1xi1> to vector<256x1xi32>
    %45 = arith.sitofp %44 : vector<256x1xi32> to vector<256x1xf32>
    %cst_20 = arith.constant 0.000000e+00 : f32
    %46 = vector.broadcast %cst_20 : f32 to vector<17x32xf32>
    %47 = vector.extract_strided_slice %20 {offsets = [0, 0], sizes = [239, 32], strides = [1, 1]} : vector<256x32xf32> to vector<239x32xf32>
    %48 = tpu.concatenate %46, %47 in 0 : vector<17x32xf32>, vector<239x32xf32> -> vector<256x32xf32>
    %49 = vector.broadcast %41 : vector<256x1xf32> to vector<256x32xf32>
    %50 = arith.mulf %48, %49 : vector<256x32xf32>
    %cst_21 = arith.constant 0.000000e+00 : f32
    %51 = vector.broadcast %cst_21 : f32 to vector<16x32xf32>
    %52 = vector.extract_strided_slice %20 {offsets = [0, 0], sizes = [240, 32], strides = [1, 1]} : vector<256x32xf32> to vector<240x32xf32>
    %53 = tpu.concatenate %51, %52 in 0 : vector<16x32xf32>, vector<240x32xf32> -> vector<256x32xf32>
    %cst_22 = arith.constant 0.000000e+00 : f32
    %54 = vector.broadcast %cst_22 : f32 to vector<15x32xf32>
    %55 = vector.extract_strided_slice %20 {offsets = [0, 0], sizes = [241, 32], strides = [1, 1]} : vector<256x32xf32> to vector<241x32xf32>
    %56 = tpu.concatenate %54, %55 in 0 : vector<15x32xf32>, vector<241x32xf32> -> vector<256x32xf32>
    %57 = vector.broadcast %45 : vector<256x1xf32> to vector<256x32xf32>
    %58 = arith.mulf %56, %57 : vector<256x32xf32>
    %cst_23 = arith.constant 0.000000e+00 : f32
    %59 = vector.broadcast %cst_23 : f32 to vector<1x32xf32>
    %60 = vector.extract_strided_slice %20 {offsets = [0, 0], sizes = [255, 32], strides = [1, 1]} : vector<256x32xf32> to vector<255x32xf32>
    %61 = tpu.concatenate %59, %60 in 0 : vector<1x32xf32>, vector<255x32xf32> -> vector<256x32xf32>
    %62 = vector.broadcast %41 : vector<256x1xf32> to vector<256x32xf32>
    %63 = arith.mulf %61, %62 : vector<256x32xf32>
    %cst_24 = arith.constant 0.000000e+00 : f32
    %64 = vector.broadcast %cst_24 : f32 to vector<1x32xf32>
    %65 = vector.extract_strided_slice %20 {offsets = [1, 0], sizes = [255, 32], strides = [1, 1]} : vector<256x32xf32> to vector<255x32xf32>
    %66 = tpu.concatenate %65, %64 in 0 : vector<255x32xf32>, vector<1x32xf32> -> vector<256x32xf32>
    %67 = vector.broadcast %45 : vector<256x1xf32> to vector<256x32xf32>
    %68 = arith.mulf %66, %67 : vector<256x32xf32>
    %cst_25 = arith.constant 0.000000e+00 : f32
    %69 = vector.broadcast %cst_25 : f32 to vector<15x32xf32>
    %70 = vector.extract_strided_slice %20 {offsets = [15, 0], sizes = [241, 32], strides = [1, 1]} : vector<256x32xf32> to vector<241x32xf32>
    %71 = tpu.concatenate %70, %69 in 0 : vector<241x32xf32>, vector<15x32xf32> -> vector<256x32xf32>
    %72 = vector.broadcast %41 : vector<256x1xf32> to vector<256x32xf32>
    %73 = arith.mulf %71, %72 : vector<256x32xf32>
    %cst_26 = arith.constant 0.000000e+00 : f32
    %74 = vector.broadcast %cst_26 : f32 to vector<16x32xf32>
    %75 = vector.extract_strided_slice %20 {offsets = [16, 0], sizes = [240, 32], strides = [1, 1]} : vector<256x32xf32> to vector<240x32xf32>
    %76 = tpu.concatenate %75, %74 in 0 : vector<240x32xf32>, vector<16x32xf32> -> vector<256x32xf32>
    %cst_27 = arith.constant 0.000000e+00 : f32
    %77 = vector.broadcast %cst_27 : f32 to vector<17x32xf32>
    %78 = vector.extract_strided_slice %20 {offsets = [17, 0], sizes = [239, 32], strides = [1, 1]} : vector<256x32xf32> to vector<239x32xf32>
    %79 = tpu.concatenate %78, %77 in 0 : vector<239x32xf32>, vector<17x32xf32> -> vector<256x32xf32>
    %80 = vector.broadcast %45 : vector<256x1xf32> to vector<256x32xf32>
    %81 = arith.mulf %79, %80 : vector<256x32xf32>
    %82 = tpu.concatenate %50, %53, %58, %63, %20, %68, %73, %76, %81 in 1 : vector<256x32xf32>, vector<256x32xf32>, vector<256x32xf32>, vector<256x32xf32>, vector<256x32xf32>, vector<256x32xf32>, vector<256x32xf32>, vector<256x32xf32>, vector<256x32xf32> -> vector<256x288xf32>
    %cst_28 = arith.constant dense<0.000000e+00> : vector<256x8xf32>
    %83 = tpu.matmul %82, %7, %cst_28 {dimension_numbers = #tpu.dot_dimension_numbers<[1], [0], [0], [1], [0, 0, 1, 1], [], []>} : vector<256x288xf32>, vector<288x8xf32>, vector<256x8xf32> -> vector<256x8xf32>
    %84 = tpu.concatenate %1, %83 in 1 : vector<256x16xf32>, vector<256x8xf32> -> vector<256x24xf32>
    %c0_29 = arith.constant 0 : index
    %c0_30 = arith.constant 0 : index
    %85 = vector.load %arg8[%c0_29, %c0_30] : memref<1x24xf32, #tpu.memory_space<vmem>>, vector<1x24xf32>
    %c0_31 = arith.constant 0 : index
    %c0_32 = arith.constant 0 : index
    %86 = vector.load %arg9[%c0_31, %c0_32] : memref<1x24xf32, #tpu.memory_space<vmem>>, vector<1x24xf32>
    %c0_33 = arith.constant 0 : index
    %c0_34 = arith.constant 0 : index
    %87 = vector.load %arg10[%c0_33, %c0_34] : memref<24x12xf32, #tpu.memory_space<vmem>>, vector<24x12xf32>
    %c0_35 = arith.constant 0 : index
    %c0_36 = arith.constant 0 : index
    %88 = vector.load %arg11[%c0_35, %c0_36] : memref<64x256xf32, #tpu.memory_space<vmem>>, vector<64x256xf32>
    %89 = vector.broadcast %85 : vector<1x24xf32> to vector<256x24xf32>
    %90 = arith.mulf %84, %89 : vector<256x24xf32>
    %91 = vector.broadcast %86 : vector<1x24xf32> to vector<256x24xf32>
    %92 = arith.addf %90, %91 : vector<256x24xf32>
    %cst_37 = arith.constant 0.000000e+00 : f32
    %93 = vector.broadcast %cst_37 : f32 to vector<256x24xf32>
    %94 = arith.maximumf %92, %93 : vector<256x24xf32>
    %cst_38 = arith.constant dense<0.000000e+00> : vector<256x12xf32>
    %95 = tpu.matmul %94, %87, %cst_38 {dimension_numbers = #tpu.dot_dimension_numbers<[1], [0], [0], [1], [0, 0, 1, 1], [], []>} : vector<256x24xf32>, vector<24x12xf32>, vector<256x12xf32> -> vector<256x12xf32>
    %cst_39 = arith.constant dense<0.000000e+00> : vector<64x12xf32>
    %96 = tpu.matmul %88, %95, %cst_39 {dimension_numbers = #tpu.dot_dimension_numbers<[1], [0], [0], [1], [0, 0, 1, 1], [], []>} : vector<64x256xf32>, vector<256x12xf32>, vector<64x12xf32> -> vector<64x12xf32>
    %c0_40 = arith.constant 0 : index
    %c0_41 = arith.constant 0 : index
    %97 = vector.load %arg12[%c0_40, %c0_41] : memref<1x12xf32, #tpu.memory_space<vmem>>, vector<1x12xf32>
    %c0_42 = arith.constant 0 : index
    %c0_43 = arith.constant 0 : index
    %98 = vector.load %arg13[%c0_42, %c0_43] : memref<1x12xf32, #tpu.memory_space<vmem>>, vector<1x12xf32>
    %c0_44 = arith.constant 0 : index
    %c0_45 = arith.constant 0 : index
    %99 = vector.load %arg14[%c0_44, %c0_45] : memref<12x32xf32, #tpu.memory_space<vmem>>, vector<12x32xf32>
    %c0_46 = arith.constant 0 : index
    %c0_47 = arith.constant 0 : index
    %100 = vector.load %arg15[%c0_46, %c0_47] : memref<1x32xf32, #tpu.memory_space<vmem>>, vector<1x32xf32>
    %c0_48 = arith.constant 0 : index
    %c0_49 = arith.constant 0 : index
    %101 = vector.load %arg16[%c0_48, %c0_49] : memref<1x32xf32, #tpu.memory_space<vmem>>, vector<1x32xf32>
    %c0_50 = arith.constant 0 : index
    %c0_51 = arith.constant 0 : index
    %102 = vector.load %arg17[%c0_50, %c0_51] : memref<288x8xf32, #tpu.memory_space<vmem>>, vector<288x8xf32>
    %103 = vector.broadcast %97 : vector<1x12xf32> to vector<64x12xf32>
    %104 = arith.mulf %96, %103 : vector<64x12xf32>
    %105 = vector.broadcast %98 : vector<1x12xf32> to vector<64x12xf32>
    %106 = arith.addf %104, %105 : vector<64x12xf32>
    %cst_52 = arith.constant 0.000000e+00 : f32
    %107 = vector.broadcast %cst_52 : f32 to vector<64x12xf32>
    %108 = arith.maximumf %106, %107 : vector<64x12xf32>
    %cst_53 = arith.constant dense<0.000000e+00> : vector<64x32xf32>
    %109 = tpu.matmul %108, %99, %cst_53 {dimension_numbers = #tpu.dot_dimension_numbers<[1], [0], [0], [1], [0, 0, 1, 1], [], []>} : vector<64x12xf32>, vector<12x32xf32>, vector<64x32xf32> -> vector<64x32xf32>
    %110 = vector.broadcast %100 : vector<1x32xf32> to vector<64x32xf32>
    %111 = arith.mulf %109, %110 : vector<64x32xf32>
    %112 = vector.broadcast %101 : vector<1x32xf32> to vector<64x32xf32>
    %113 = arith.addf %111, %112 : vector<64x32xf32>
    %cst_54 = arith.constant 0.000000e+00 : f32
    %114 = vector.broadcast %cst_54 : f32 to vector<64x32xf32>
    %115 = arith.maximumf %113, %114 : vector<64x32xf32>
    %116 = tpu.iota {dimensions = array<i32: 0>} : vector<64x1xi32>
    %c8_i32 = arith.constant 8 : i32
    %c0_i32_55 = arith.constant 0 : i32
    %117 = arith.cmpi eq, %c8_i32, %c0_i32_55 : i32
    %c1_i32_56 = arith.constant 1 : i32
    %118 = arith.select %117, %c1_i32_56, %c8_i32 : i32
    %119 = vector.broadcast %118 : i32 to vector<64x1xi32>
    %120 = arith.remsi %116, %119 : vector<64x1xi32>
    %c0_i32_57 = arith.constant 0 : i32
    %121 = vector.broadcast %c0_i32_57 : i32 to vector<64x1xi32>
    %122 = arith.cmpi ne, %120, %121 : vector<64x1xi32>
    %c0_i32_58 = arith.constant 0 : i32
    %123 = vector.broadcast %c0_i32_58 : i32 to vector<64x1xi32>
    %124 = arith.cmpi slt, %120, %123 : vector<64x1xi32>
    %c0_i32_59 = arith.constant 0 : i32
    %125 = arith.cmpi slt, %118, %c0_i32_59 : i32
    %126 = vector.broadcast %125 : i1 to vector<64x1xi1>
    %127 = vector.broadcast %126 : vector<64x1xi1> to vector<64x1xi1>
    %128 = arith.xori %124, %127 : vector<64x1xi1>
    %129 = arith.andi %128, %122 : vector<64x1xi1>
    %130 = vector.broadcast %118 : i32 to vector<64x1xi32>
    %131 = arith.addi %120, %130 : vector<64x1xi32>
    %132 = arith.select %129, %131, %120 : vector<64x1xi1>, vector<64x1xi32>
    %c1_i32_60 = arith.constant 1 : i32
    %133 = vector.broadcast %c1_i32_60 : i32 to vector<64x1xi32>
    %134 = arith.cmpi sge, %132, %133 : vector<64x1xi32>
    %135 = arith.extui %134 : vector<64x1xi1> to vector<64x1xi32>
    %136 = arith.sitofp %135 : vector<64x1xi32> to vector<64x1xf32>
    %c6_i32 = arith.constant 6 : i32
    %137 = vector.broadcast %c6_i32 : i32 to vector<64x1xi32>
    %138 = arith.cmpi sle, %132, %137 : vector<64x1xi32>
    %139 = arith.extui %138 : vector<64x1xi1> to vector<64x1xi32>
    %140 = arith.sitofp %139 : vector<64x1xi32> to vector<64x1xf32>
    %cst_61 = arith.constant 0.000000e+00 : f32
    %141 = vector.broadcast %cst_61 : f32 to vector<9x32xf32>
    %142 = vector.extract_strided_slice %115 {offsets = [0, 0], sizes = [55, 32], strides = [1, 1]} : vector<64x32xf32> to vector<55x32xf32>
    %143 = tpu.concatenate %141, %142 in 0 : vector<9x32xf32>, vector<55x32xf32> -> vector<64x32xf32>
    %144 = vector.broadcast %136 : vector<64x1xf32> to vector<64x32xf32>
    %145 = arith.mulf %143, %144 : vector<64x32xf32>
    %cst_62 = arith.constant 0.000000e+00 : f32
    %146 = vector.broadcast %cst_62 : f32 to vector<8x32xf32>
    %147 = vector.extract_strided_slice %115 {offsets = [0, 0], sizes = [56, 32], strides = [1, 1]} : vector<64x32xf32> to vector<56x32xf32>
    %148 = tpu.concatenate %146, %147 in 0 : vector<8x32xf32>, vector<56x32xf32> -> vector<64x32xf32>
    %cst_63 = arith.constant 0.000000e+00 : f32
    %149 = vector.broadcast %cst_63 : f32 to vector<7x32xf32>
    %150 = vector.extract_strided_slice %115 {offsets = [0, 0], sizes = [57, 32], strides = [1, 1]} : vector<64x32xf32> to vector<57x32xf32>
    %151 = tpu.concatenate %149, %150 in 0 : vector<7x32xf32>, vector<57x32xf32> -> vector<64x32xf32>
    %152 = vector.broadcast %140 : vector<64x1xf32> to vector<64x32xf32>
    %153 = arith.mulf %151, %152 : vector<64x32xf32>
    %cst_64 = arith.constant 0.000000e+00 : f32
    %154 = vector.broadcast %cst_64 : f32 to vector<1x32xf32>
    %155 = vector.extract_strided_slice %115 {offsets = [0, 0], sizes = [63, 32], strides = [1, 1]} : vector<64x32xf32> to vector<63x32xf32>
    %156 = tpu.concatenate %154, %155 in 0 : vector<1x32xf32>, vector<63x32xf32> -> vector<64x32xf32>
    %157 = vector.broadcast %136 : vector<64x1xf32> to vector<64x32xf32>
    %158 = arith.mulf %156, %157 : vector<64x32xf32>
    %cst_65 = arith.constant 0.000000e+00 : f32
    %159 = vector.broadcast %cst_65 : f32 to vector<1x32xf32>
    %160 = vector.extract_strided_slice %115 {offsets = [1, 0], sizes = [63, 32], strides = [1, 1]} : vector<64x32xf32> to vector<63x32xf32>
    %161 = tpu.concatenate %160, %159 in 0 : vector<63x32xf32>, vector<1x32xf32> -> vector<64x32xf32>
    %162 = vector.broadcast %140 : vector<64x1xf32> to vector<64x32xf32>
    %163 = arith.mulf %161, %162 : vector<64x32xf32>
    %cst_66 = arith.constant 0.000000e+00 : f32
    %164 = vector.broadcast %cst_66 : f32 to vector<7x32xf32>
    %165 = vector.extract_strided_slice %115 {offsets = [7, 0], sizes = [57, 32], strides = [1, 1]} : vector<64x32xf32> to vector<57x32xf32>
    %166 = tpu.concatenate %165, %164 in 0 : vector<57x32xf32>, vector<7x32xf32> -> vector<64x32xf32>
    %167 = vector.broadcast %136 : vector<64x1xf32> to vector<64x32xf32>
    %168 = arith.mulf %166, %167 : vector<64x32xf32>
    %cst_67 = arith.constant 0.000000e+00 : f32
    %169 = vector.broadcast %cst_67 : f32 to vector<8x32xf32>
    %170 = vector.extract_strided_slice %115 {offsets = [8, 0], sizes = [56, 32], strides = [1, 1]} : vector<64x32xf32> to vector<56x32xf32>
    %171 = tpu.concatenate %170, %169 in 0 : vector<56x32xf32>, vector<8x32xf32> -> vector<64x32xf32>
    %cst_68 = arith.constant 0.000000e+00 : f32
    %172 = vector.broadcast %cst_68 : f32 to vector<9x32xf32>
    %173 = vector.extract_strided_slice %115 {offsets = [9, 0], sizes = [55, 32], strides = [1, 1]} : vector<64x32xf32> to vector<55x32xf32>
    %174 = tpu.concatenate %173, %172 in 0 : vector<55x32xf32>, vector<9x32xf32> -> vector<64x32xf32>
    %175 = vector.broadcast %140 : vector<64x1xf32> to vector<64x32xf32>
    %176 = arith.mulf %174, %175 : vector<64x32xf32>
    %177 = tpu.concatenate %145, %148, %153, %158, %115, %163, %168, %171, %176 in 1 : vector<64x32xf32>, vector<64x32xf32>, vector<64x32xf32>, vector<64x32xf32>, vector<64x32xf32>, vector<64x32xf32>, vector<64x32xf32>, vector<64x32xf32>, vector<64x32xf32> -> vector<64x288xf32>
    %cst_69 = arith.constant dense<0.000000e+00> : vector<64x8xf32>
    %178 = tpu.matmul %177, %102, %cst_69 {dimension_numbers = #tpu.dot_dimension_numbers<[1], [0], [0], [1], [0, 0, 1, 1], [], []>} : vector<64x288xf32>, vector<288x8xf32>, vector<64x8xf32> -> vector<64x8xf32>
    %179 = tpu.concatenate %96, %178 in 1 : vector<64x12xf32>, vector<64x8xf32> -> vector<64x20xf32>
    %c0_70 = arith.constant 0 : index
    %c0_71 = arith.constant 0 : index
    %180 = vector.load %arg18[%c0_70, %c0_71] : memref<1x20xf32, #tpu.memory_space<vmem>>, vector<1x20xf32>
    %c0_72 = arith.constant 0 : index
    %c0_73 = arith.constant 0 : index
    %181 = vector.load %arg19[%c0_72, %c0_73] : memref<1x20xf32, #tpu.memory_space<vmem>>, vector<1x20xf32>
    %c0_74 = arith.constant 0 : index
    %c0_75 = arith.constant 0 : index
    %182 = vector.load %arg20[%c0_74, %c0_75] : memref<20x10xf32, #tpu.memory_space<vmem>>, vector<20x10xf32>
    %c0_76 = arith.constant 0 : index
    %c0_77 = arith.constant 0 : index
    %183 = vector.load %arg21[%c0_76, %c0_77] : memref<16x64xf32, #tpu.memory_space<vmem>>, vector<16x64xf32>
    %184 = vector.broadcast %180 : vector<1x20xf32> to vector<64x20xf32>
    %185 = arith.mulf %179, %184 : vector<64x20xf32>
    %186 = vector.broadcast %181 : vector<1x20xf32> to vector<64x20xf32>
    %187 = arith.addf %185, %186 : vector<64x20xf32>
    %cst_78 = arith.constant 0.000000e+00 : f32
    %188 = vector.broadcast %cst_78 : f32 to vector<64x20xf32>
    %189 = arith.maximumf %187, %188 : vector<64x20xf32>
    %cst_79 = arith.constant dense<0.000000e+00> : vector<64x10xf32>
    %190 = tpu.matmul %189, %182, %cst_79 {dimension_numbers = #tpu.dot_dimension_numbers<[1], [0], [0], [1], [0, 0, 1, 1], [], []>} : vector<64x20xf32>, vector<20x10xf32>, vector<64x10xf32> -> vector<64x10xf32>
    %cst_80 = arith.constant dense<0.000000e+00> : vector<16x10xf32>
    %191 = tpu.matmul %183, %190, %cst_80 {dimension_numbers = #tpu.dot_dimension_numbers<[1], [0], [0], [1], [0, 0, 1, 1], [], []>} : vector<16x64xf32>, vector<64x10xf32>, vector<16x10xf32> -> vector<16x10xf32>
    %c0_81 = arith.constant 0 : index
    %c0_82 = arith.constant 0 : index
    %192 = vector.load %arg22[%c0_81, %c0_82] : memref<1x10xf32, #tpu.memory_space<vmem>>, vector<1x10xf32>
    %c0_83 = arith.constant 0 : index
    %c0_84 = arith.constant 0 : index
    %193 = vector.load %arg23[%c0_83, %c0_84] : memref<1x10xf32, #tpu.memory_space<vmem>>, vector<1x10xf32>
    %c0_85 = arith.constant 0 : index
    %c0_86 = arith.constant 0 : index
    %194 = vector.load %arg24[%c0_85, %c0_86] : memref<10x32xf32, #tpu.memory_space<vmem>>, vector<10x32xf32>
    %c0_87 = arith.constant 0 : index
    %c0_88 = arith.constant 0 : index
    %195 = vector.load %arg25[%c0_87, %c0_88] : memref<1x32xf32, #tpu.memory_space<vmem>>, vector<1x32xf32>
    %c0_89 = arith.constant 0 : index
    %c0_90 = arith.constant 0 : index
    %196 = vector.load %arg26[%c0_89, %c0_90] : memref<1x32xf32, #tpu.memory_space<vmem>>, vector<1x32xf32>
    %c0_91 = arith.constant 0 : index
    %c0_92 = arith.constant 0 : index
    %197 = vector.load %arg27[%c0_91, %c0_92] : memref<288x8xf32, #tpu.memory_space<vmem>>, vector<288x8xf32>
    %198 = vector.broadcast %192 : vector<1x10xf32> to vector<16x10xf32>
    %199 = arith.mulf %191, %198 : vector<16x10xf32>
    %200 = vector.broadcast %193 : vector<1x10xf32> to vector<16x10xf32>
    %201 = arith.addf %199, %200 : vector<16x10xf32>
    %cst_93 = arith.constant 0.000000e+00 : f32
    %202 = vector.broadcast %cst_93 : f32 to vector<16x10xf32>
    %203 = arith.maximumf %201, %202 : vector<16x10xf32>
    %cst_94 = arith.constant dense<0.000000e+00> : vector<16x32xf32>
    %204 = tpu.matmul %203, %194, %cst_94 {dimension_numbers = #tpu.dot_dimension_numbers<[1], [0], [0], [1], [0, 0, 1, 1], [], []>} : vector<16x10xf32>, vector<10x32xf32>, vector<16x32xf32> -> vector<16x32xf32>
    %205 = vector.broadcast %195 : vector<1x32xf32> to vector<16x32xf32>
    %206 = arith.mulf %204, %205 : vector<16x32xf32>
    %207 = vector.broadcast %196 : vector<1x32xf32> to vector<16x32xf32>
    %208 = arith.addf %206, %207 : vector<16x32xf32>
    %cst_95 = arith.constant 0.000000e+00 : f32
    %209 = vector.broadcast %cst_95 : f32 to vector<16x32xf32>
    %210 = arith.maximumf %208, %209 : vector<16x32xf32>
    %211 = tpu.iota {dimensions = array<i32: 0>} : vector<16x1xi32>
    %c4_i32 = arith.constant 4 : i32
    %c0_i32_96 = arith.constant 0 : i32
    %212 = arith.cmpi eq, %c4_i32, %c0_i32_96 : i32
    %c1_i32_97 = arith.constant 1 : i32
    %213 = arith.select %212, %c1_i32_97, %c4_i32 : i32
    %214 = vector.broadcast %213 : i32 to vector<16x1xi32>
    %215 = arith.remsi %211, %214 : vector<16x1xi32>
    %c0_i32_98 = arith.constant 0 : i32
    %216 = vector.broadcast %c0_i32_98 : i32 to vector<16x1xi32>
    %217 = arith.cmpi ne, %215, %216 : vector<16x1xi32>
    %c0_i32_99 = arith.constant 0 : i32
    %218 = vector.broadcast %c0_i32_99 : i32 to vector<16x1xi32>
    %219 = arith.cmpi slt, %215, %218 : vector<16x1xi32>
    %c0_i32_100 = arith.constant 0 : i32
    %220 = arith.cmpi slt, %213, %c0_i32_100 : i32
    %221 = vector.broadcast %220 : i1 to vector<16x1xi1>
    %222 = vector.broadcast %221 : vector<16x1xi1> to vector<16x1xi1>
    %223 = arith.xori %219, %222 : vector<16x1xi1>
    %224 = arith.andi %223, %217 : vector<16x1xi1>
    %225 = vector.broadcast %213 : i32 to vector<16x1xi32>
    %226 = arith.addi %215, %225 : vector<16x1xi32>
    %227 = arith.select %224, %226, %215 : vector<16x1xi1>, vector<16x1xi32>
    %c1_i32_101 = arith.constant 1 : i32
    %228 = vector.broadcast %c1_i32_101 : i32 to vector<16x1xi32>
    %229 = arith.cmpi sge, %227, %228 : vector<16x1xi32>
    %230 = arith.extui %229 : vector<16x1xi1> to vector<16x1xi32>
    %231 = arith.sitofp %230 : vector<16x1xi32> to vector<16x1xf32>
    %c2_i32 = arith.constant 2 : i32
    %232 = vector.broadcast %c2_i32 : i32 to vector<16x1xi32>
    %233 = arith.cmpi sle, %227, %232 : vector<16x1xi32>
    %234 = arith.extui %233 : vector<16x1xi1> to vector<16x1xi32>
    %235 = arith.sitofp %234 : vector<16x1xi32> to vector<16x1xf32>
    %cst_102 = arith.constant 0.000000e+00 : f32
    %236 = vector.broadcast %cst_102 : f32 to vector<5x32xf32>
    %237 = vector.extract_strided_slice %210 {offsets = [0, 0], sizes = [11, 32], strides = [1, 1]} : vector<16x32xf32> to vector<11x32xf32>
    %238 = tpu.concatenate %236, %237 in 0 : vector<5x32xf32>, vector<11x32xf32> -> vector<16x32xf32>
    %239 = vector.broadcast %231 : vector<16x1xf32> to vector<16x32xf32>
    %240 = arith.mulf %238, %239 : vector<16x32xf32>
    %cst_103 = arith.constant 0.000000e+00 : f32
    %241 = vector.broadcast %cst_103 : f32 to vector<4x32xf32>
    %242 = vector.extract_strided_slice %210 {offsets = [0, 0], sizes = [12, 32], strides = [1, 1]} : vector<16x32xf32> to vector<12x32xf32>
    %243 = tpu.concatenate %241, %242 in 0 : vector<4x32xf32>, vector<12x32xf32> -> vector<16x32xf32>
    %cst_104 = arith.constant 0.000000e+00 : f32
    %244 = vector.broadcast %cst_104 : f32 to vector<3x32xf32>
    %245 = vector.extract_strided_slice %210 {offsets = [0, 0], sizes = [13, 32], strides = [1, 1]} : vector<16x32xf32> to vector<13x32xf32>
    %246 = tpu.concatenate %244, %245 in 0 : vector<3x32xf32>, vector<13x32xf32> -> vector<16x32xf32>
    %247 = vector.broadcast %235 : vector<16x1xf32> to vector<16x32xf32>
    %248 = arith.mulf %246, %247 : vector<16x32xf32>
    %cst_105 = arith.constant 0.000000e+00 : f32
    %249 = vector.broadcast %cst_105 : f32 to vector<1x32xf32>
    %250 = vector.extract_strided_slice %210 {offsets = [0, 0], sizes = [15, 32], strides = [1, 1]} : vector<16x32xf32> to vector<15x32xf32>
    %251 = tpu.concatenate %249, %250 in 0 : vector<1x32xf32>, vector<15x32xf32> -> vector<16x32xf32>
    %252 = vector.broadcast %231 : vector<16x1xf32> to vector<16x32xf32>
    %253 = arith.mulf %251, %252 : vector<16x32xf32>
    %cst_106 = arith.constant 0.000000e+00 : f32
    %254 = vector.broadcast %cst_106 : f32 to vector<1x32xf32>
    %255 = vector.extract_strided_slice %210 {offsets = [1, 0], sizes = [15, 32], strides = [1, 1]} : vector<16x32xf32> to vector<15x32xf32>
    %256 = tpu.concatenate %255, %254 in 0 : vector<15x32xf32>, vector<1x32xf32> -> vector<16x32xf32>
    %257 = vector.broadcast %235 : vector<16x1xf32> to vector<16x32xf32>
    %258 = arith.mulf %256, %257 : vector<16x32xf32>
    %cst_107 = arith.constant 0.000000e+00 : f32
    %259 = vector.broadcast %cst_107 : f32 to vector<3x32xf32>
    %260 = vector.extract_strided_slice %210 {offsets = [3, 0], sizes = [13, 32], strides = [1, 1]} : vector<16x32xf32> to vector<13x32xf32>
    %261 = tpu.concatenate %260, %259 in 0 : vector<13x32xf32>, vector<3x32xf32> -> vector<16x32xf32>
    %262 = vector.broadcast %231 : vector<16x1xf32> to vector<16x32xf32>
    %263 = arith.mulf %261, %262 : vector<16x32xf32>
    %cst_108 = arith.constant 0.000000e+00 : f32
    %264 = vector.broadcast %cst_108 : f32 to vector<4x32xf32>
    %265 = vector.extract_strided_slice %210 {offsets = [4, 0], sizes = [12, 32], strides = [1, 1]} : vector<16x32xf32> to vector<12x32xf32>
    %266 = tpu.concatenate %265, %264 in 0 : vector<12x32xf32>, vector<4x32xf32> -> vector<16x32xf32>
    %cst_109 = arith.constant 0.000000e+00 : f32
    %267 = vector.broadcast %cst_109 : f32 to vector<5x32xf32>
    %268 = vector.extract_strided_slice %210 {offsets = [5, 0], sizes = [11, 32], strides = [1, 1]} : vector<16x32xf32> to vector<11x32xf32>
    %269 = tpu.concatenate %268, %267 in 0 : vector<11x32xf32>, vector<5x32xf32> -> vector<16x32xf32>
    %270 = vector.broadcast %235 : vector<16x1xf32> to vector<16x32xf32>
    %271 = arith.mulf %269, %270 : vector<16x32xf32>
    %272 = tpu.concatenate %240, %243, %248, %253, %210, %258, %263, %266, %271 in 1 : vector<16x32xf32>, vector<16x32xf32>, vector<16x32xf32>, vector<16x32xf32>, vector<16x32xf32>, vector<16x32xf32>, vector<16x32xf32>, vector<16x32xf32>, vector<16x32xf32> -> vector<16x288xf32>
    %cst_110 = arith.constant dense<0.000000e+00> : vector<16x8xf32>
    %273 = tpu.matmul %272, %197, %cst_110 {dimension_numbers = #tpu.dot_dimension_numbers<[1], [0], [0], [1], [0, 0, 1, 1], [], []>} : vector<16x288xf32>, vector<288x8xf32>, vector<16x8xf32> -> vector<16x8xf32>
    %274 = tpu.concatenate %191, %273 in 1 : vector<16x10xf32>, vector<16x8xf32> -> vector<16x18xf32>
    %c0_111 = arith.constant 0 : index
    %c0_112 = arith.constant 0 : index
    %275 = vector.load %arg28[%c0_111, %c0_112] : memref<1x18xf32, #tpu.memory_space<vmem>>, vector<1x18xf32>
    %c0_113 = arith.constant 0 : index
    %c0_114 = arith.constant 0 : index
    %276 = vector.load %arg29[%c0_113, %c0_114] : memref<1x18xf32, #tpu.memory_space<vmem>>, vector<1x18xf32>
    %c0_115 = arith.constant 0 : index
    %c0_116 = arith.constant 0 : index
    %277 = vector.load %arg30[%c0_115, %c0_116] : memref<18x9xf32, #tpu.memory_space<vmem>>, vector<18x9xf32>
    %c0_117 = arith.constant 0 : index
    %c0_118 = arith.constant 0 : index
    %278 = vector.load %arg31[%c0_117, %c0_118] : memref<4x16xf32, #tpu.memory_space<vmem>>, vector<4x16xf32>
    %279 = vector.broadcast %275 : vector<1x18xf32> to vector<16x18xf32>
    %280 = arith.mulf %274, %279 : vector<16x18xf32>
    %281 = vector.broadcast %276 : vector<1x18xf32> to vector<16x18xf32>
    %282 = arith.addf %280, %281 : vector<16x18xf32>
    %cst_119 = arith.constant 0.000000e+00 : f32
    %283 = vector.broadcast %cst_119 : f32 to vector<16x18xf32>
    %284 = arith.maximumf %282, %283 : vector<16x18xf32>
    %cst_120 = arith.constant dense<0.000000e+00> : vector<16x9xf32>
    %285 = tpu.matmul %284, %277, %cst_120 {dimension_numbers = #tpu.dot_dimension_numbers<[1], [0], [0], [1], [0, 0, 1, 1], [], []>} : vector<16x18xf32>, vector<18x9xf32>, vector<16x9xf32> -> vector<16x9xf32>
    %cst_121 = arith.constant dense<0.000000e+00> : vector<4x9xf32>
    %286 = tpu.matmul %278, %285, %cst_121 {dimension_numbers = #tpu.dot_dimension_numbers<[1], [0], [0], [1], [0, 0, 1, 1], [], []>} : vector<4x16xf32>, vector<16x9xf32>, vector<4x9xf32> -> vector<4x9xf32>
    %c0_122 = arith.constant 0 : index
    %c0_123 = arith.constant 0 : index
    %287 = vector.load %arg32[%c0_122, %c0_123] : memref<1x9xf32, #tpu.memory_space<vmem>>, vector<1x9xf32>
    %c0_124 = arith.constant 0 : index
    %c0_125 = arith.constant 0 : index
    %288 = vector.load %arg33[%c0_124, %c0_125] : memref<1x9xf32, #tpu.memory_space<vmem>>, vector<1x9xf32>
    %c0_126 = arith.constant 0 : index
    %c0_127 = arith.constant 0 : index
    %289 = vector.load %arg34[%c0_126, %c0_127] : memref<9x32xf32, #tpu.memory_space<vmem>>, vector<9x32xf32>
    %c0_128 = arith.constant 0 : index
    %c0_129 = arith.constant 0 : index
    %290 = vector.load %arg35[%c0_128, %c0_129] : memref<1x32xf32, #tpu.memory_space<vmem>>, vector<1x32xf32>
    %c0_130 = arith.constant 0 : index
    %c0_131 = arith.constant 0 : index
    %291 = vector.load %arg36[%c0_130, %c0_131] : memref<1x32xf32, #tpu.memory_space<vmem>>, vector<1x32xf32>
    %c0_132 = arith.constant 0 : index
    %c0_133 = arith.constant 0 : index
    %292 = vector.load %arg37[%c0_132, %c0_133] : memref<288x8xf32, #tpu.memory_space<vmem>>, vector<288x8xf32>
    %293 = vector.broadcast %287 : vector<1x9xf32> to vector<4x9xf32>
    %294 = arith.mulf %286, %293 : vector<4x9xf32>
    %295 = vector.broadcast %288 : vector<1x9xf32> to vector<4x9xf32>
    %296 = arith.addf %294, %295 : vector<4x9xf32>
    %cst_134 = arith.constant 0.000000e+00 : f32
    %297 = vector.broadcast %cst_134 : f32 to vector<4x9xf32>
    %298 = arith.maximumf %296, %297 : vector<4x9xf32>
    %cst_135 = arith.constant dense<0.000000e+00> : vector<4x32xf32>
    %299 = tpu.matmul %298, %289, %cst_135 {dimension_numbers = #tpu.dot_dimension_numbers<[1], [0], [0], [1], [0, 0, 1, 1], [], []>} : vector<4x9xf32>, vector<9x32xf32>, vector<4x32xf32> -> vector<4x32xf32>
    %300 = vector.broadcast %290 : vector<1x32xf32> to vector<4x32xf32>
    %301 = arith.mulf %299, %300 : vector<4x32xf32>
    %302 = vector.broadcast %291 : vector<1x32xf32> to vector<4x32xf32>
    %303 = arith.addf %301, %302 : vector<4x32xf32>
    %cst_136 = arith.constant 0.000000e+00 : f32
    %304 = vector.broadcast %cst_136 : f32 to vector<4x32xf32>
    %305 = arith.maximumf %303, %304 : vector<4x32xf32>
    %306 = tpu.iota {dimensions = array<i32: 0>} : vector<4x1xi32>
    %c2_i32_137 = arith.constant 2 : i32
    %c0_i32_138 = arith.constant 0 : i32
    %307 = arith.cmpi eq, %c2_i32_137, %c0_i32_138 : i32
    %c1_i32_139 = arith.constant 1 : i32
    %308 = arith.select %307, %c1_i32_139, %c2_i32_137 : i32
    %309 = vector.broadcast %308 : i32 to vector<4x1xi32>
    %310 = arith.remsi %306, %309 : vector<4x1xi32>
    %c0_i32_140 = arith.constant 0 : i32
    %311 = vector.broadcast %c0_i32_140 : i32 to vector<4x1xi32>
    %312 = arith.cmpi ne, %310, %311 : vector<4x1xi32>
    %c0_i32_141 = arith.constant 0 : i32
    %313 = vector.broadcast %c0_i32_141 : i32 to vector<4x1xi32>
    %314 = arith.cmpi slt, %310, %313 : vector<4x1xi32>
    %c0_i32_142 = arith.constant 0 : i32
    %315 = arith.cmpi slt, %308, %c0_i32_142 : i32
    %316 = vector.broadcast %315 : i1 to vector<4x1xi1>
    %317 = vector.broadcast %316 : vector<4x1xi1> to vector<4x1xi1>
    %318 = arith.xori %314, %317 : vector<4x1xi1>
    %319 = arith.andi %318, %312 : vector<4x1xi1>
    %320 = vector.broadcast %308 : i32 to vector<4x1xi32>
    %321 = arith.addi %310, %320 : vector<4x1xi32>
    %322 = arith.select %319, %321, %310 : vector<4x1xi1>, vector<4x1xi32>
    %c1_i32_143 = arith.constant 1 : i32
    %323 = vector.broadcast %c1_i32_143 : i32 to vector<4x1xi32>
    %324 = arith.cmpi sge, %322, %323 : vector<4x1xi32>
    %325 = arith.extui %324 : vector<4x1xi1> to vector<4x1xi32>
    %326 = arith.sitofp %325 : vector<4x1xi32> to vector<4x1xf32>
    %c0_i32_144 = arith.constant 0 : i32
    %327 = vector.broadcast %c0_i32_144 : i32 to vector<4x1xi32>
    %328 = arith.cmpi sle, %322, %327 : vector<4x1xi32>
    %329 = arith.extui %328 : vector<4x1xi1> to vector<4x1xi32>
    %330 = arith.sitofp %329 : vector<4x1xi32> to vector<4x1xf32>
    %cst_145 = arith.constant 0.000000e+00 : f32
    %331 = vector.broadcast %cst_145 : f32 to vector<3x32xf32>
    %332 = vector.extract_strided_slice %305 {offsets = [0, 0], sizes = [1, 32], strides = [1, 1]} : vector<4x32xf32> to vector<1x32xf32>
    %333 = tpu.concatenate %331, %332 in 0 : vector<3x32xf32>, vector<1x32xf32> -> vector<4x32xf32>
    %334 = vector.broadcast %326 : vector<4x1xf32> to vector<4x32xf32>
    %335 = arith.mulf %333, %334 : vector<4x32xf32>
    %cst_146 = arith.constant 0.000000e+00 : f32
    %336 = vector.broadcast %cst_146 : f32 to vector<2x32xf32>
    %337 = vector.extract_strided_slice %305 {offsets = [0, 0], sizes = [2, 32], strides = [1, 1]} : vector<4x32xf32> to vector<2x32xf32>
    %338 = tpu.concatenate %336, %337 in 0 : vector<2x32xf32>, vector<2x32xf32> -> vector<4x32xf32>
    %cst_147 = arith.constant 0.000000e+00 : f32
    %339 = vector.broadcast %cst_147 : f32 to vector<1x32xf32>
    %340 = vector.extract_strided_slice %305 {offsets = [0, 0], sizes = [3, 32], strides = [1, 1]} : vector<4x32xf32> to vector<3x32xf32>
    %341 = tpu.concatenate %339, %340 in 0 : vector<1x32xf32>, vector<3x32xf32> -> vector<4x32xf32>
    %342 = vector.broadcast %330 : vector<4x1xf32> to vector<4x32xf32>
    %343 = arith.mulf %341, %342 : vector<4x32xf32>
    %cst_148 = arith.constant 0.000000e+00 : f32
    %344 = vector.broadcast %cst_148 : f32 to vector<1x32xf32>
    %345 = vector.extract_strided_slice %305 {offsets = [0, 0], sizes = [3, 32], strides = [1, 1]} : vector<4x32xf32> to vector<3x32xf32>
    %346 = tpu.concatenate %344, %345 in 0 : vector<1x32xf32>, vector<3x32xf32> -> vector<4x32xf32>
    %347 = vector.broadcast %326 : vector<4x1xf32> to vector<4x32xf32>
    %348 = arith.mulf %346, %347 : vector<4x32xf32>
    %cst_149 = arith.constant 0.000000e+00 : f32
    %349 = vector.broadcast %cst_149 : f32 to vector<1x32xf32>
    %350 = vector.extract_strided_slice %305 {offsets = [1, 0], sizes = [3, 32], strides = [1, 1]} : vector<4x32xf32> to vector<3x32xf32>
    %351 = tpu.concatenate %350, %349 in 0 : vector<3x32xf32>, vector<1x32xf32> -> vector<4x32xf32>
    %352 = vector.broadcast %330 : vector<4x1xf32> to vector<4x32xf32>
    %353 = arith.mulf %351, %352 : vector<4x32xf32>
    %cst_150 = arith.constant 0.000000e+00 : f32
    %354 = vector.broadcast %cst_150 : f32 to vector<1x32xf32>
    %355 = vector.extract_strided_slice %305 {offsets = [1, 0], sizes = [3, 32], strides = [1, 1]} : vector<4x32xf32> to vector<3x32xf32>
    %356 = tpu.concatenate %355, %354 in 0 : vector<3x32xf32>, vector<1x32xf32> -> vector<4x32xf32>
    %357 = vector.broadcast %326 : vector<4x1xf32> to vector<4x32xf32>
    %358 = arith.mulf %356, %357 : vector<4x32xf32>
    %cst_151 = arith.constant 0.000000e+00 : f32
    %359 = vector.broadcast %cst_151 : f32 to vector<2x32xf32>
    %360 = vector.extract_strided_slice %305 {offsets = [2, 0], sizes = [2, 32], strides = [1, 1]} : vector<4x32xf32> to vector<2x32xf32>
    %361 = tpu.concatenate %360, %359 in 0 : vector<2x32xf32>, vector<2x32xf32> -> vector<4x32xf32>
    %cst_152 = arith.constant 0.000000e+00 : f32
    %362 = vector.broadcast %cst_152 : f32 to vector<3x32xf32>
    %363 = vector.extract_strided_slice %305 {offsets = [3, 0], sizes = [1, 32], strides = [1, 1]} : vector<4x32xf32> to vector<1x32xf32>
    %364 = tpu.concatenate %363, %362 in 0 : vector<1x32xf32>, vector<3x32xf32> -> vector<4x32xf32>
    %365 = vector.broadcast %330 : vector<4x1xf32> to vector<4x32xf32>
    %366 = arith.mulf %364, %365 : vector<4x32xf32>
    %367 = tpu.concatenate %335, %338, %343, %348, %305, %353, %358, %361, %366 in 1 : vector<4x32xf32>, vector<4x32xf32>, vector<4x32xf32>, vector<4x32xf32>, vector<4x32xf32>, vector<4x32xf32>, vector<4x32xf32>, vector<4x32xf32>, vector<4x32xf32> -> vector<4x288xf32>
    %cst_153 = arith.constant dense<0.000000e+00> : vector<4x8xf32>
    %368 = tpu.matmul %367, %292, %cst_153 {dimension_numbers = #tpu.dot_dimension_numbers<[1], [0], [0], [1], [0, 0, 1, 1], [], []>} : vector<4x288xf32>, vector<288x8xf32>, vector<4x8xf32> -> vector<4x8xf32>
    %369 = tpu.concatenate %286, %368 in 1 : vector<4x9xf32>, vector<4x8xf32> -> vector<4x17xf32>
    %c0_154 = arith.constant 0 : index
    %c0_155 = arith.constant 0 : index
    %370 = vector.load %arg38[%c0_154, %c0_155] : memref<1x17xf32, #tpu.memory_space<vmem>>, vector<1x17xf32>
    %c0_156 = arith.constant 0 : index
    %c0_157 = arith.constant 0 : index
    %371 = vector.load %arg39[%c0_156, %c0_157] : memref<1x17xf32, #tpu.memory_space<vmem>>, vector<1x17xf32>
    %c0_158 = arith.constant 0 : index
    %c0_159 = arith.constant 0 : index
    %372 = vector.load %arg40[%c0_158, %c0_159] : memref<17x10xf32, #tpu.memory_space<vmem>>, vector<17x10xf32>
    %c0_160 = arith.constant 0 : index
    %c0_161 = arith.constant 0 : index
    %373 = vector.load %arg41[%c0_160, %c0_161] : memref<1x10xf32, #tpu.memory_space<vmem>>, vector<1x10xf32>
    %374 = vector.broadcast %370 : vector<1x17xf32> to vector<4x17xf32>
    %375 = arith.mulf %369, %374 : vector<4x17xf32>
    %376 = vector.broadcast %371 : vector<1x17xf32> to vector<4x17xf32>
    %377 = arith.addf %375, %376 : vector<4x17xf32>
    %cst_162 = arith.constant 0.000000e+00 : f32
    %378 = vector.broadcast %cst_162 : f32 to vector<4x17xf32>
    %379 = arith.maximumf %377, %378 : vector<4x17xf32>
    %cst_163 = arith.constant dense<0.000000e+00> : vector<17xf32>
    %380 = vector.multi_reduction <add>, %379, %cst_163 [0] : vector<4x17xf32> to vector<17xf32>
    %381 = vector.shape_cast %380 : vector<17xf32> to vector<1x17xf32>
    %cst_164 = arith.constant 4.000000e+00 : f32
    %382 = vector.broadcast %cst_164 : f32 to vector<1x17xf32>
    %383 = arith.divf %381, %382 : vector<1x17xf32>
    %cst_165 = arith.constant dense<0.000000e+00> : vector<1x10xf32>
    %384 = tpu.matmul %383, %372, %cst_165 {dimension_numbers = #tpu.dot_dimension_numbers<[1], [0], [0], [1], [0, 0, 1, 1], [], []>} : vector<1x17xf32>, vector<17x10xf32>, vector<1x10xf32> -> vector<1x10xf32>
    %385 = arith.addf %384, %373 : vector<1x10xf32>
    %c0_166 = arith.constant 0 : index
    %c0_167 = arith.constant 0 : index
    %c0_168 = arith.constant 0 : index
    %386 = vector.load %arg42[%c0_166, %c0_167, %c0_168] : memref<1x1x10xf32, #tpu.memory_space<vmem>>, vector<1x1x10xf32>
    %387 = vector.shape_cast %386 : vector<1x1x10xf32> to vector<1x10xf32>
    %388 = vector.shape_cast %385 : vector<1x10xf32> to vector<1x1x10xf32>
    tpu.vector_store %arg42[%c0_166, %c0_167, %c0_168], %388 {strides = array<i32>} : memref<1x1x10xf32, #tpu.memory_space<vmem>>, vector<1x1x10xf32>,
    return
  }
  func.func @transform_0(%arg0: i32) -> (i32, i32, i32) {
    %c0_i32 = arith.constant 0 : i32
    %c0_i32_0 = arith.constant 0 : i32
    %c0_i32_1 = arith.constant 0 : i32
    return %arg0, %c0_i32, %c0_i32_0 : i32, i32, i32
  }
  func.func @transform_1(%arg0: i32) -> (i32, i32) {
    %c0_i32 = arith.constant 0 : i32
    %c0_i32_0 = arith.constant 0 : i32
    %c0_i32_1 = arith.constant 0 : i32
    return %c0_i32, %c0_i32_0 : i32, i32
  }
  func.func @transform_2(%arg0: i32) -> (i32, i32) {
    %c0_i32 = arith.constant 0 : i32
    %c0_i32_0 = arith.constant 0 : i32
    %c0_i32_1 = arith.constant 0 : i32
    return %c0_i32, %c0_i32_0 : i32, i32
  }
  func.func @transform_3(%arg0: i32) -> (i32, i32) {
    %c0_i32 = arith.constant 0 : i32
    %c0_i32_0 = arith.constant 0 : i32
    %c0_i32_1 = arith.constant 0 : i32
    return %c0_i32, %c0_i32_0 : i32, i32
  }
  func.func @transform_4(%arg0: i32) -> (i32, i32) {
    %c0_i32 = arith.constant 0 : i32
    %c0_i32_0 = arith.constant 0 : i32
    %c0_i32_1 = arith.constant 0 : i32
    return %c0_i32, %c0_i32_0 : i32, i32
  }
  func.func @transform_5(%arg0: i32) -> (i32, i32) {
    %c0_i32 = arith.constant 0 : i32
    %c0_i32_0 = arith.constant 0 : i32
    %c0_i32_1 = arith.constant 0 : i32
    return %c0_i32, %c0_i32_0 : i32, i32
  }
  func.func @transform_6(%arg0: i32) -> (i32, i32) {
    %c0_i32 = arith.constant 0 : i32
    %c0_i32_0 = arith.constant 0 : i32
    %c0_i32_1 = arith.constant 0 : i32
    return %c0_i32, %c0_i32_0 : i32, i32
  }
  func.func @transform_7(%arg0: i32) -> (i32, i32) {
    %c0_i32 = arith.constant 0 : i32
    %c0_i32_0 = arith.constant 0 : i32
    %c0_i32_1 = arith.constant 0 : i32
    return %c0_i32, %c0_i32_0 : i32, i32
  }
  func.func @transform_8(%arg0: i32) -> (i32, i32) {
    %c0_i32 = arith.constant 0 : i32
    %c0_i32_0 = arith.constant 0 : i32
    %c0_i32_1 = arith.constant 0 : i32
    return %c0_i32, %c0_i32_0 : i32, i32
  }
  func.func @transform_9(%arg0: i32) -> (i32, i32) {
    %c0_i32 = arith.constant 0 : i32
    %c0_i32_0 = arith.constant 0 : i32
    %c0_i32_1 = arith.constant 0 : i32
    return %c0_i32, %c0_i32_0 : i32, i32
  }
  func.func @transform_10(%arg0: i32) -> (i32, i32) {
    %c0_i32 = arith.constant 0 : i32
    %c0_i32_0 = arith.constant 0 : i32
    %c0_i32_1 = arith.constant 0 : i32
    return %c0_i32, %c0_i32_0 : i32, i32
  }
  func.func @transform_11(%arg0: i32) -> (i32, i32) {
    %c0_i32 = arith.constant 0 : i32
    %c0_i32_0 = arith.constant 0 : i32
    %c0_i32_1 = arith.constant 0 : i32
    return %c0_i32, %c0_i32_0 : i32, i32
  }
  func.func @transform_12(%arg0: i32) -> (i32, i32) {
    %c0_i32 = arith.constant 0 : i32
    %c0_i32_0 = arith.constant 0 : i32
    %c0_i32_1 = arith.constant 0 : i32
    return %c0_i32, %c0_i32_0 : i32, i32
  }
  func.func @transform_13(%arg0: i32) -> (i32, i32) {
    %c0_i32 = arith.constant 0 : i32
    %c0_i32_0 = arith.constant 0 : i32
    %c0_i32_1 = arith.constant 0 : i32
    return %c0_i32, %c0_i32_0 : i32, i32
  }
  func.func @transform_14(%arg0: i32) -> (i32, i32) {
    %c0_i32 = arith.constant 0 : i32
    %c0_i32_0 = arith.constant 0 : i32
    %c0_i32_1 = arith.constant 0 : i32
    return %c0_i32, %c0_i32_0 : i32, i32
  }
  func.func @transform_15(%arg0: i32) -> (i32, i32) {
    %c0_i32 = arith.constant 0 : i32
    %c0_i32_0 = arith.constant 0 : i32
    %c0_i32_1 = arith.constant 0 : i32
    return %c0_i32, %c0_i32_0 : i32, i32
  }
  func.func @transform_16(%arg0: i32) -> (i32, i32) {
    %c0_i32 = arith.constant 0 : i32
    %c0_i32_0 = arith.constant 0 : i32
    %c0_i32_1 = arith.constant 0 : i32
    return %c0_i32, %c0_i32_0 : i32, i32
  }
  func.func @transform_17(%arg0: i32) -> (i32, i32) {
    %c0_i32 = arith.constant 0 : i32
    %c0_i32_0 = arith.constant 0 : i32
    %c0_i32_1 = arith.constant 0 : i32
    return %c0_i32, %c0_i32_0 : i32, i32
  }
  func.func @transform_18(%arg0: i32) -> (i32, i32) {
    %c0_i32 = arith.constant 0 : i32
    %c0_i32_0 = arith.constant 0 : i32
    %c0_i32_1 = arith.constant 0 : i32
    return %c0_i32, %c0_i32_0 : i32, i32
  }
  func.func @transform_19(%arg0: i32) -> (i32, i32) {
    %c0_i32 = arith.constant 0 : i32
    %c0_i32_0 = arith.constant 0 : i32
    %c0_i32_1 = arith.constant 0 : i32
    return %c0_i32, %c0_i32_0 : i32, i32
  }
  func.func @transform_20(%arg0: i32) -> (i32, i32) {
    %c0_i32 = arith.constant 0 : i32
    %c0_i32_0 = arith.constant 0 : i32
    %c0_i32_1 = arith.constant 0 : i32
    return %c0_i32, %c0_i32_0 : i32, i32
  }
  func.func @transform_21(%arg0: i32) -> (i32, i32) {
    %c0_i32 = arith.constant 0 : i32
    %c0_i32_0 = arith.constant 0 : i32
    %c0_i32_1 = arith.constant 0 : i32
    return %c0_i32, %c0_i32_0 : i32, i32
  }
  func.func @transform_22(%arg0: i32) -> (i32, i32) {
    %c0_i32 = arith.constant 0 : i32
    %c0_i32_0 = arith.constant 0 : i32
    %c0_i32_1 = arith.constant 0 : i32
    return %c0_i32, %c0_i32_0 : i32, i32
  }
  func.func @transform_23(%arg0: i32) -> (i32, i32) {
    %c0_i32 = arith.constant 0 : i32
    %c0_i32_0 = arith.constant 0 : i32
    %c0_i32_1 = arith.constant 0 : i32
    return %c0_i32, %c0_i32_0 : i32, i32
  }
  func.func @transform_24(%arg0: i32) -> (i32, i32) {
    %c0_i32 = arith.constant 0 : i32
    %c0_i32_0 = arith.constant 0 : i32
    %c0_i32_1 = arith.constant 0 : i32
    return %c0_i32, %c0_i32_0 : i32, i32
  }
  func.func @transform_25(%arg0: i32) -> (i32, i32) {
    %c0_i32 = arith.constant 0 : i32
    %c0_i32_0 = arith.constant 0 : i32
    %c0_i32_1 = arith.constant 0 : i32
    return %c0_i32, %c0_i32_0 : i32, i32
  }
  func.func @transform_26(%arg0: i32) -> (i32, i32) {
    %c0_i32 = arith.constant 0 : i32
    %c0_i32_0 = arith.constant 0 : i32
    %c0_i32_1 = arith.constant 0 : i32
    return %c0_i32, %c0_i32_0 : i32, i32
  }
  func.func @transform_27(%arg0: i32) -> (i32, i32) {
    %c0_i32 = arith.constant 0 : i32
    %c0_i32_0 = arith.constant 0 : i32
    %c0_i32_1 = arith.constant 0 : i32
    return %c0_i32, %c0_i32_0 : i32, i32
  }
  func.func @transform_28(%arg0: i32) -> (i32, i32) {
    %c0_i32 = arith.constant 0 : i32
    %c0_i32_0 = arith.constant 0 : i32
    %c0_i32_1 = arith.constant 0 : i32
    return %c0_i32, %c0_i32_0 : i32, i32
  }
  func.func @transform_29(%arg0: i32) -> (i32, i32) {
    %c0_i32 = arith.constant 0 : i32
    %c0_i32_0 = arith.constant 0 : i32
    %c0_i32_1 = arith.constant 0 : i32
    return %c0_i32, %c0_i32_0 : i32, i32
  }
  func.func @transform_30(%arg0: i32) -> (i32, i32) {
    %c0_i32 = arith.constant 0 : i32
    %c0_i32_0 = arith.constant 0 : i32
    %c0_i32_1 = arith.constant 0 : i32
    return %c0_i32, %c0_i32_0 : i32, i32
  }
  func.func @transform_31(%arg0: i32) -> (i32, i32) {
    %c0_i32 = arith.constant 0 : i32
    %c0_i32_0 = arith.constant 0 : i32
    %c0_i32_1 = arith.constant 0 : i32
    return %c0_i32, %c0_i32_0 : i32, i32
  }
  func.func @transform_32(%arg0: i32) -> (i32, i32) {
    %c0_i32 = arith.constant 0 : i32
    %c0_i32_0 = arith.constant 0 : i32
    %c0_i32_1 = arith.constant 0 : i32
    return %c0_i32, %c0_i32_0 : i32, i32
  }
  func.func @transform_33(%arg0: i32) -> (i32, i32) {
    %c0_i32 = arith.constant 0 : i32
    %c0_i32_0 = arith.constant 0 : i32
    %c0_i32_1 = arith.constant 0 : i32
    return %c0_i32, %c0_i32_0 : i32, i32
  }
  func.func @transform_34(%arg0: i32) -> (i32, i32) {
    %c0_i32 = arith.constant 0 : i32
    %c0_i32_0 = arith.constant 0 : i32
    %c0_i32_1 = arith.constant 0 : i32
    return %c0_i32, %c0_i32_0 : i32, i32
  }
  func.func @transform_35(%arg0: i32) -> (i32, i32) {
    %c0_i32 = arith.constant 0 : i32
    %c0_i32_0 = arith.constant 0 : i32
    %c0_i32_1 = arith.constant 0 : i32
    return %c0_i32, %c0_i32_0 : i32, i32
  }
  func.func @transform_36(%arg0: i32) -> (i32, i32) {
    %c0_i32 = arith.constant 0 : i32
    %c0_i32_0 = arith.constant 0 : i32
    %c0_i32_1 = arith.constant 0 : i32
    return %c0_i32, %c0_i32_0 : i32, i32
  }
  func.func @transform_37(%arg0: i32) -> (i32, i32) {
    %c0_i32 = arith.constant 0 : i32
    %c0_i32_0 = arith.constant 0 : i32
    %c0_i32_1 = arith.constant 0 : i32
    return %c0_i32, %c0_i32_0 : i32, i32
  }
  func.func @transform_38(%arg0: i32) -> (i32, i32) {
    %c0_i32 = arith.constant 0 : i32
    %c0_i32_0 = arith.constant 0 : i32
    %c0_i32_1 = arith.constant 0 : i32
    return %c0_i32, %c0_i32_0 : i32, i32
  }
  func.func @transform_39(%arg0: i32) -> (i32, i32) {
    %c0_i32 = arith.constant 0 : i32
    %c0_i32_0 = arith.constant 0 : i32
    %c0_i32_1 = arith.constant 0 : i32
    return %c0_i32, %c0_i32_0 : i32, i32
  }
  func.func @transform_40(%arg0: i32) -> (i32, i32) {
    %c0_i32 = arith.constant 0 : i32
    %c0_i32_0 = arith.constant 0 : i32
    %c0_i32_1 = arith.constant 0 : i32
    return %c0_i32, %c0_i32_0 : i32, i32
  }
  func.func @transform_41(%arg0: i32) -> (i32, i32, i32) {
    %c0_i32 = arith.constant 0 : i32
    %c0_i32_0 = arith.constant 0 : i32
    %c0_i32_1 = arith.constant 0 : i32
    return %arg0, %c0_i32, %c0_i32_0 : i32, i32, i32
  }
}

</mosaic_0001>

<bundles_post_ra>
// kernel: densenet_forward.2
= control target key start
LH: loop header
LB: loop body
LE: loop exit
PB: predicated region body
PF: predicated region fallthrough
CT: control target
= control target key end

     0   :  { %s2454_s15 = smov 0   ;;  %s3834_s0 = inlined_call_operand.vmem [shape: f32[2,256,243], index: 0, kind: input, shape index: {}]   ;;  %s3835_s1 = inlined_call_operand.vmem [shape: f32[243,64], index: 1, kind: input, shape index: {}]   ;;  %s3836_s2 = inlined_call_operand.vmem [shape: f32[1,64], index: 2, kind: input, shape index: {}]   ;;  %s3837_s3 = inlined_call_operand.vmem [shape: f32[1,64], index: 3, kind: input, shape index: {}]   ;;  %s3838_s4 = inlined_call_operand.vmem [shape: f32[2,256,16], index: 4, kind: output, shape index: {}]  }
   0x1 LB: > { %s2260_s16 = sadd.s32 4294967295, %s2422_s15   ;;  %p2264_p0 = scmp.ge.s32.totalorder %s2422_s15, 1  ;;  %s2422_s15 = sphi %s2454_s15, %s14_s15  }
   0x2   : > { %p162_p1 = scmp.lt.s32.totalorder %s2422_s15, 3 }
   0x4   : > { %p163_p2 = pnand %p2264_p0, %p162_p1 }
   0x6   : > { %166 = sbr.rel (%p163_p2) target bundleno = 735 (0x2df), region = 36 }
   0xd   : > { %v262_v0 = vld [vmem:[%s3835_s1] sm:$0xff]  ;;  %v263_v1 = vld [vmem:[%s3835_s1 + $0x8] sm:$0xff]  ;;  %v264_v2 = vld [vmem:[%s3835_s1 + $0x10] sm:$0xff]  ;;  %v2424_v3 = vmov 0.0|0.0   ;;  %p188_p3 = scmp.lt.s32.totalorder %s2260_s16, 1  ;;  %vm293_vm0 = vcmask 941056  }
   0xe   : > { %2324 = vmatprep.subr.bf16.mxu0 %v2424_v3  ;;  %2369 = vmatprep.subr.bf16.mxu1 %v2424_v3  ;;  %v2325_v4 = vpack.c.bf16 %v263_v1, %v262_v0  ;;  %v265_v5 = vld [vmem:[%s3835_s1 + $0x18] sm:$0xff]  ;;  %v266_v7 = vld [vmem:[%s3835_s1 + $0x20] sm:$0xff]  ;;  %v267_v8 = vld [vmem:[%s3835_s1 + $0x28] sm:$0xff]  ;;  %v3840_v48 = vmov 0.0   ;;  %vm390_vm1 = vcmask 1042432   ;;  %s2427_s17 = smov 80  }
   0xf   : > { %v2328_v6 = vpack.c.bf16 %v265_v5, %v264_v2  ;;  %s3900_s16 = smov (!%p188_p3, %s2260_s16), 1  ;;  %v2331_v9 = vpack.c.bf16 %v267_v8, %v266_v7  ;;  %v268_v10 = vld [vmem:[%s3835_s1 + $0x30] sm:$0xff]  ;;  %v269_v11 = vld [vmem:[%s3835_s1 + $0x38] sm:$0xff]  ;;  %v270_v15 = vld [vmem:[%s3835_s1 + $0x40] sm:$0xff]  ;;  %s2428_s18 = smov 96   ;;  %vm1402_vm2 = vcmask 1040384  }
  0x10   : > { %2326 = vmatpush1.bf16.msra.mxu0 %v2325_v4  ;;  %2385 = vmatpush1.bf16.msra.mxu1 %v2325_v4  ;;  %s2322_s29 = sshll.u32 %s3900_s16, 9  ;;  %v2334_v14 = vpack.c.bf16 %v269_v11, %v268_v10  ;;  %v271_v16 = vld [vmem:[%s3835_s1 + $0x48] sm:$0xff]  ;;  %v272_v18 = vld [vmem:[%s3835_s1 + $0x50] sm:$0xff]  ;;  %v273_v19 = vld [vmem:[%s3835_s1 + $0x58] sm:$0xff]  ;;  %s2323_s19 = sshll.u32 %s3900_s16, 8  ;;  %vm2172_vm4 = vcmask 130048  }
  0x11   : > { %2327 = vmatprep.subr.bf16.mxu0 %v2424_v3  ;;  %2370 = vmatprep.subr.bf16.mxu1 %v2424_v3  ;;  %s2490_s6 = scalar_lea.vmem %s3834_s0, %s2322_s29  ;;  %v2337_v17 = vpack.c.bf16 %v271_v16, %v270_v15  ;;  %v2340_v20 = vpack.c.bf16 %v273_v19, %v272_v18  ;;  %v274_v21 = vld [vmem:[%s3835_s1 + $0x60] sm:$0xff]  ;;  %v275_v22 = vld [vmem:[%s3835_s1 + $0x68] sm:$0xff]  ;;  %v276_v24 = vld [vmem:[%s3835_s1 + $0x70] sm:$0xff]  ;;  %s3047_s22 = scalar_lea.vmem %s3838_s4, %s2323_s19 }
  0x12   : > { %v199_v12 = vld [vmem:[%s2490_s6 + $0x8] sm:$0xff]  ;;  %v2343_v23 = vpack.c.bf16 %v275_v22, %v274_v21  ;;  %v277_v25 = vld [vmem:[%s3835_s1 + $0x78] sm:$0xff]  ;;  %v278_v27 = vld [vmem:[%s3835_s1 + $0x80] sm:$0xff] }
  0x13   : > { %v231_v13 = vld [vmem:[%s2490_s6 + $0x108] sm:$0xff]  ;;  %2270 = vmatprep.mubr.msk.f32.mxu0 %vm293_vm0, %v199_v12  ;;  %v2346_v26 = vpack.c.bf16 %v277_v25, %v276_v24  ;;  %v280_v30 = vld [vmem:[%s3835_s1 + $0x90] sm:$0xff]  ;;  %v281_v31 = vld [vmem:[%s3835_s1 + $0x98] sm:$0xff] }
  0x14   : > { %2329 = vmatpush1.bf16.msra.mxu0 %v2328_v6  ;;  %2386 = vmatpush1.bf16.msra.mxu1 %v2328_v6  ;;  %v279_v28 = vld [vmem:[%s3835_s1 + $0x88] sm:$0xff]  ;;  %v2352_v32 = vpack.c.bf16 %v281_v31, %v280_v30  ;;  %v282_v33 = vld [vmem:[%s3835_s1 + $0xa0] sm:$0xff]  ;;  %v284_v36 = vld [vmem:[%s3835_s1 + $0xb0] sm:$0xff] }
  0x15   : > { %2330 = vmatprep.subr.bf16.mxu0 %v2424_v3  ;;  %2371 = vmatprep.subr.bf16.mxu1 %v2424_v3  ;;  %v2349_v29 = vpack.c.bf16 %v279_v28, %v278_v27  ;;  %v283_v34 = vld [vmem:[%s3835_s1 + $0xa8] sm:$0xff]  ;;  %v285_v37 = vld [vmem:[%s3835_s1 + $0xb8] sm:$0xff]  ;;  %v286_v39 = vld [vmem:[%s3835_s1 + $0xc0] sm:$0xff] }
  0x16   : > { %2286 = vmatprep.mubr.msk.f32.mxu1 %vm293_vm0, %v231_v13  ;;  %v2355_v35 = vpack.c.bf16 %v283_v34, %v282_v33  ;;  %v2358_v38 = vpack.c.bf16 %v285_v37, %v284_v36  ;;  %v287_v40 = vld [vmem:[%s3835_s1 + $0xc8] sm:$0xff]  ;;  %v288_v42 = vld [vmem:[%s3835_s1 + $0xd0] sm:$0xff]  ;;  %v289_v43 = vld [vmem:[%s3835_s1 + $0xd8] sm:$0xff] }
  0x17   : > { %v2361_v41 = vpack.c.bf16 %v287_v40, %v286_v39  ;;  %v2364_v44 = vpack.c.bf16 %v289_v43, %v288_v42  ;;  %v290_v45 = vld [vmem:[%s3835_s1 + $0xe0] sm:$0xff]  ;;  %v291_v46 = vld [vmem:[%s3835_s1 + $0xe8] sm:$0xff]  ;;  %v292_v49 = vld [vmem:[%s3835_s1 + $0xf0] sm:$0x7] }
  0x18   : > { %2332 = vmatpush1.bf16.msra.mxu0 %v2331_v9  ;;  %2387 = vmatpush1.bf16.msra.mxu1 %v2331_v9  ;;  %v2367_v47 = vpack.c.bf16 %v291_v46, %v290_v45  ;;  %v198_v50 = vld [vmem:[%s2490_s6] sm:$0xff]  ;;  %v201_v52 = vld [vmem:[%s2490_s6 + $0x18] sm:$0xff]  ;;  %v200_v54 = vld [vmem:[%s2490_s6 + $0x10] sm:$0xff] }
  0x19   : > { %2333 = vmatprep.subr.bf16.mxu0 %v2424_v3  ;;  %2372 = vmatprep.subr.bf16.mxu1 %v2424_v3  ;;  %v230_v51 = vld [vmem:[%s2490_s6 + $0x100] sm:$0xff]  ;;  %v233_v53 = vld [vmem:[%s2490_s6 + $0x118] sm:$0xff]  ;;  %v232_v55 = vld [vmem:[%s2490_s6 + $0x110] sm:$0xff] }
  0x1a   : > { %v203_v56 = vld [vmem:[%s2490_s6 + $0x28] sm:$0xff]  ;;  %v202_v58 = vld [vmem:[%s2490_s6 + $0x20] sm:$0xff]  ;;  %v205_v60 = vld [vmem:[%s2490_s6 + $0x38] sm:$0xff] }
  0x1b   : > { %v235_v57 = vld [vmem:[%s2490_s6 + $0x128] sm:$0xff]  ;;  %v234_v59 = vld [vmem:[%s2490_s6 + $0x120] sm:$0xff]  ;;  %v237_v61 = vld [vmem:[%s2490_s6 + $0x138] sm:$0xff] }
  0x1c   : > { %2335 = vmatpush1.bf16.msra.mxu0 %v2334_v14  ;;  %2388 = vmatpush1.bf16.msra.mxu1 %v2334_v14  ;;  %v204_v62 = vld [vmem:[%s2490_s6 + $0x30] sm:$0xff]  ;;  %v207_v0 = vld [vmem:[%s2490_s6 + $0x48] sm:$0xff]  ;;  %v206_v2 = vld [vmem:[%s2490_s6 + $0x40] sm:$0xff] }
  0x1d   : > { %2336 = vmatprep.subr.bf16.mxu0 %v2424_v3  ;;  %2373 = vmatprep.subr.bf16.mxu1 %v2424_v3  ;;  %v236_v63 = vld [vmem:[%s2490_s6 + $0x130] sm:$0xff]  ;;  %v239_v1 = vld [vmem:[%s2490_s6 + $0x148] sm:$0xff]  ;;  %v209_v4 = vld [vmem:[%s2490_s6 + $0x58] sm:$0xff] }
  0x1e   : > { %v241_v5 = vld [vmem:[%s2490_s6 + $0x158] sm:$0xff]  ;;  %v208_v6 = vld [vmem:[%s2490_s6 + $0x50] sm:$0xff]  ;;  %v211_v8 = vld [vmem:[%s2490_s6 + $0x68] sm:$0xff] }
  0x1f   : > { %v240_v7 = vld [vmem:[%s2490_s6 + $0x150] sm:$0xff]  ;;  %v243_v9 = vld [vmem:[%s2490_s6 + $0x168] sm:$0xff]  ;;  %v210_v10 = vld [vmem:[%s2490_s6 + $0x60] sm:$0xff] }
  0x20   : > { %2338 = vmatpush1.bf16.msra.mxu0 %v2337_v17  ;;  %2389 = vmatpush1.bf16.msra.mxu1 %v2337_v17  ;;  %v242_v11 = vld [vmem:[%s2490_s6 + $0x160] sm:$0xff]  ;;  %v213_v12 = vld [vmem:[%s2490_s6 + $0x78] sm:$0xff]  ;;  %v212_v14 = vld [vmem:[%s2490_s6 + $0x70] sm:$0xff] }
  0x21   : > { %2339 = vmatprep.subr.bf16.mxu0 %v2424_v3  ;;  %2374 = vmatprep.subr.bf16.mxu1 %v2424_v3  ;;  %v245_v13 = vld [vmem:[%s2490_s6 + $0x178] sm:$0xff]  ;;  %v244_v15 = vld [vmem:[%s2490_s6 + $0x170] sm:$0xff]  ;;  %v215_v16 = vld [vmem:[%s2490_s6 + $0x88] sm:$0xff] }
  0x22   : > { %v247_v17 = vld [vmem:[%s2490_s6 + $0x188] sm:$0xff]  ;;  %v214_v18 = vld [vmem:[%s2490_s6 + $0x80] sm:$0xff]  ;;  %v249_v21 = vld [vmem:[%s2490_s6 + $0x198] sm:$0xff] }
  0x23   : > { %v246_v19 = vld [vmem:[%s2490_s6 + $0x180] sm:$0xff]  ;;  %v216_v22 = vld [vmem:[%s2490_s6 + $0x90] sm:$0xff]  ;;  %v219_v24 = vld [vmem:[%s2490_s6 + $0xa8] sm:$0xff] }
  0x24   : > { %2341 = vmatpush1.bf16.msra.mxu0 %v2340_v20  ;;  %2390 = vmatpush1.bf16.msra.mxu1 %v2340_v20  ;;  %v217_v20 = vld [vmem:[%s2490_s6 + $0x98] sm:$0xff]  ;;  %v251_v25 = vld [vmem:[%s2490_s6 + $0x1a8] sm:$0xff]  ;;  %v250_v27 = vld [vmem:[%s2490_s6 + $0x1a0] sm:$0xff] }
  0x25   : > { %2342 = vmatprep.subr.bf16.mxu0 %v2424_v3  ;;  %2375 = vmatprep.subr.bf16.mxu1 %v2424_v3  ;;  %v221_v28 = vld [vmem:[%s2490_s6 + $0xb8] sm:$0xff]  ;;  %v220_v30 = vld [vmem:[%s2490_s6 + $0xb0] sm:$0xff]  ;;  %v255_v33 = vld [vmem:[%s2490_s6 + $0x1c8] sm:$0xff] }
  0x26   : > { %v252_v31 = vld [vmem:[%s2490_s6 + $0x1b0] sm:$0xff]  ;;  %v222_v34 = vld [vmem:[%s2490_s6 + $0xc0] sm:$0xff]  ;;  %v225_v36 = vld [vmem:[%s2490_s6 + $0xd8] sm:$0xff] }
  0x27   : > { %v224_v37 = vld [vmem:[%s2490_s6 + $0xd0] sm:$0xff]  ;;  %v226_v39 = vld [vmem:[%s2490_s6 + $0xe0] sm:$0xff]  ;;  %v229_v40 = vld [vmem:[%s2490_s6 + $0xf8] sm:$0xff] }
  0x28   : > { %2344 = vmatpush1.bf16.msra.mxu0 %v2343_v23  ;;  %2391 = vmatpush1.bf16.msra.mxu1 %v2343_v23  ;;  %v248_v23 = vld [vmem:[%s2490_s6 + $0x190] sm:$0xff]  ;;  %v257_v42 = vld [vmem:[%s2490_s6 + $0x1d8] sm:$0xff]  ;;  %v258_v45 = vld [vmem:[%s2490_s6 + $0x1e0] sm:$0xff] }
  0x29   : > { %2345 = vmatprep.subr.bf16.mxu0 %v2424_v3  ;;  %2376 = vmatprep.subr.bf16.mxu1 %v2424_v3  ;;  %v256_v43 = vld [vmem:[%s2490_s6 + $0x1d0] sm:$0xff]  ;;  %v261_v46 = vld [vmem:[%s2490_s6 + $0x1f8] sm:$0xff] }
  0x2c   : > { %2347 = vmatpush1.bf16.msra.mxu0 %v2346_v26  ;;  %2392 = vmatpush1.bf16.msra.mxu1 %v2346_v26  ;;  %v218_v26 = vld [vmem:[%s2490_s6 + $0xa0] sm:$0xff] }
  0x2d   : > { %2348 = vmatprep.subr.bf16.mxu0 %v2424_v3  ;;  %2377 = vmatprep.subr.bf16.mxu1 %v2424_v3 }
  0x30   : > { %2350 = vmatpush1.bf16.msra.mxu0 %v2349_v29  ;;  %2393 = vmatpush1.bf16.msra.mxu1 %v2349_v29  ;;  %v253_v29 = vld [vmem:[%s2490_s6 + $0x1b8] sm:$0xff] }
  0x31   : > { %2351 = vmatprep.subr.bf16.mxu0 %v2424_v3  ;;  %2378 = vmatprep.subr.bf16.mxu1 %v2424_v3 }
  0x34   : > { %2353 = vmatpush1.bf16.msra.mxu0 %v2352_v32  ;;  %2394 = vmatpush1.bf16.msra.mxu1 %v2352_v32  ;;  %v223_v32 = vld [vmem:[%s2490_s6 + $0xc8] sm:$0xff] }
  0x35   : > { %2354 = vmatprep.subr.bf16.mxu0 %v2424_v3  ;;  %2379 = vmatprep.subr.bf16.mxu1 %v2424_v3 }
  0x38   : > { %2356 = vmatpush1.bf16.msra.mxu0 %v2355_v35  ;;  %2395 = vmatpush1.bf16.msra.mxu1 %v2355_v35  ;;  %v254_v35 = vld [vmem:[%s2490_s6 + $0x1c0] sm:$0xff] }
  0x39   : > { %2357 = vmatprep.subr.bf16.mxu0 %v2424_v3  ;;  %2380 = vmatprep.subr.bf16.mxu1 %v2424_v3 }
  0x3c   : > { %2359 = vmatpush1.bf16.msra.mxu0 %v2358_v38  ;;  %2396 = vmatpush1.bf16.msra.mxu1 %v2358_v38  ;;  %v227_v38 = vld [vmem:[%s2490_s6 + $0xe8] sm:$0xff] }
  0x3d   : > { %2360 = vmatprep.subr.bf16.mxu0 %v2424_v3  ;;  %2381 = vmatprep.subr.bf16.mxu1 %v2424_v3 }
  0x40   : > { %2362 = vmatpush1.bf16.msra.mxu0 %v2361_v41  ;;  %2397 = vmatpush1.bf16.msra.mxu1 %v2361_v41  ;;  %v228_v41 = vld [vmem:[%s2490_s6 + $0xf0] sm:$0xff] }
  0x41   : > { %2363 = vmatprep.subr.bf16.mxu0 %v2424_v3  ;;  %2382 = vmatprep.subr.bf16.mxu1 %v2424_v3 }
  0x44   : > { %2365 = vmatpush1.bf16.msra.mxu0 %v2364_v44  ;;  %2398 = vmatpush1.bf16.msra.mxu1 %v2364_v44  ;;  %v259_v44 = vld [vmem:[%s2490_s6 + $0x1e8] sm:$0xff] }
  0x45   : > { %2366 = vmatprep.subr.bf16.mxu0 %v2424_v3  ;;  %2383 = vmatprep.subr.bf16.mxu1 %v2424_v3  ;;  %v238_v3 = vld [vmem:[%s2490_s6 + $0x140] sm:$0xff] }
  0x48   : > { %2368 = vmatpush1.bf16.msra.mxu0 %v2367_v47  ;;  %2399 = vmatpush1.bf16.msra.mxu1 %v2367_v47  ;;  %v260_v47 = vld [vmem:[%s2490_s6 + $0x1f0] sm:$0xff]  ;;  %s2426_s6 = smov 112  }
  0x49   : > { %454 = vmatprep.subr.mxu0 %v3840_v48  ;;  %2384 = vmatprep.subr.mxu1 %v3840_v48 }
  0x4c   : > { %2269 = vmatpush1.msk.msra.mxu0 %vm390_vm1, %v292_v49  ;;  %2400 = vmatpush1.msk.msra.mxu1 %vm390_vm1, %v292_v49  ;;  %v2694_v49 = vld [vmem:[%s3836_s2] ss:$0 sm:$0xff] }
  0x4d   : > { %459 = vmatmul.mubr.f32.vlgmr.msra.gmra.mrb[0].mxu0 %v198_v50  ;;  %539 = vmatmul.mubr.f32.vlgmr.msra.gmra.mrb[0].mxu1 %v230_v51  ;;  %v2699_v51 = vld [vmem:[%s3837_s3] ss:$0 sm:$0xff] }
  0x4e   : > { %2271 = vmatprep.mubr.msk.f32.mxu0 %vm293_vm0, %v201_v52  ;;  %2287 = vmatprep.mubr.msk.f32.mxu1 %vm293_vm0, %v233_v53 }
  0x51   : > { %464 = vmatmul.mubr.f32.gmra.mrb[2].mxu0 %v200_v54  ;;  %544 = vmatmul.mubr.f32.gmra.mrb[2].mxu1 %v232_v55 }
  0x52   : > { %2272 = vmatprep.mubr.msk.f32.mxu0 %vm293_vm0, %v203_v56  ;;  %2288 = vmatprep.mubr.msk.f32.mxu1 %vm293_vm0, %v235_v57 }
  0x55   : > { %469 = vmatmul.mubr.f32.gmra.mrb[4].mxu0 %v202_v58  ;;  %549 = vmatmul.mubr.f32.gmra.mrb[4].mxu1 %v234_v59 }
  0x56   : > { %2273 = vmatprep.mubr.msk.f32.mxu0 %vm293_vm0, %v205_v60  ;;  %2289 = vmatprep.mubr.msk.f32.mxu1 %vm293_vm0, %v237_v61 }
  0x59   : > { %474 = vmatmul.mubr.f32.gmra.mrb[6].mxu0 %v204_v62  ;;  %554 = vmatmul.mubr.f32.gmra.mrb[6].mxu1 %v236_v63 }
  0x5a   : > { %2274 = vmatprep.mubr.msk.f32.mxu0 %vm293_vm0, %v207_v0  ;;  %2290 = vmatprep.mubr.msk.f32.mxu1 %vm293_vm0, %v239_v1 }
  0x5d   : > { %479 = vmatmul.mubr.f32.gmra.mrb[8].mxu0 %v206_v2  ;;  %559 = vmatmul.mubr.f32.gmra.mrb[8].mxu1 %v238_v3 }
  0x5e   : > { %2275 = vmatprep.mubr.msk.f32.mxu0 %vm293_vm0, %v209_v4  ;;  %2291 = vmatprep.mubr.msk.f32.mxu1 %vm293_vm0, %v241_v5 }
  0x61   : > { %484 = vmatmul.mubr.f32.gmra.mrb[10].mxu0 %v208_v6  ;;  %564 = vmatmul.mubr.f32.gmra.mrb[10].mxu1 %v240_v7 }
  0x62   : > { %2276 = vmatprep.mubr.msk.f32.mxu0 %vm293_vm0, %v211_v8  ;;  %2292 = vmatprep.mubr.msk.f32.mxu1 %vm293_vm0, %v243_v9 }
  0x65   : > { %489 = vmatmul.mubr.f32.gmra.mrb[12].mxu0 %v210_v10  ;;  %569 = vmatmul.mubr.f32.gmra.mrb[12].mxu1 %v242_v11 }
  0x66   : > { %2277 = vmatprep.mubr.msk.f32.mxu0 %vm293_vm0, %v213_v12  ;;  %2293 = vmatprep.mubr.msk.f32.mxu1 %vm293_vm0, %v245_v13 }
  0x69   : > { %494 = vmatmul.mubr.f32.gmra.mrb[14].mxu0 %v212_v14  ;;  %574 = vmatmul.mubr.f32.gmra.mrb[14].mxu1 %v244_v15 }
  0x6a   : > { %2278 = vmatprep.mubr.msk.f32.mxu0 %vm293_vm0, %v215_v16  ;;  %2294 = vmatprep.mubr.msk.f32.mxu1 %vm293_vm0, %v247_v17 }
  0x6d   : > { %499 = vmatmul.mubr.f32.gmra.mrb[16].mxu0 %v214_v18  ;;  %579 = vmatmul.mubr.f32.gmra.mrb[16].mxu1 %v246_v19 }
  0x6e   : > { %2279 = vmatprep.mubr.msk.f32.mxu0 %vm293_vm0, %v217_v20  ;;  %2295 = vmatprep.mubr.msk.f32.mxu1 %vm293_vm0, %v249_v21 }
  0x71   : > { %504 = vmatmul.mubr.f32.gmra.mrb[18].mxu0 %v216_v22  ;;  %584 = vmatmul.mubr.f32.gmra.mrb[18].mxu1 %v248_v23 }
  0x72   : > { %2280 = vmatprep.mubr.msk.f32.mxu0 %vm293_vm0, %v219_v24  ;;  %2296 = vmatprep.mubr.msk.f32.mxu1 %vm293_vm0, %v251_v25 }
  0x75   : > { %509 = vmatmul.mubr.f32.gmra.mrb[20].mxu0 %v218_v26  ;;  %589 = vmatmul.mubr.f32.gmra.mrb[20].mxu1 %v250_v27 }
  0x76   : > { %2281 = vmatprep.mubr.msk.f32.mxu0 %vm293_vm0, %v221_v28  ;;  %2297 = vmatprep.mubr.msk.f32.mxu1 %vm293_vm0, %v253_v29 }
  0x79   : > { %514 = vmatmul.mubr.f32.gmra.mrb[22].mxu0 %v220_v30  ;;  %594 = vmatmul.mubr.f32.gmra.mrb[22].mxu1 %v252_v31 }
  0x7a   : > { %2282 = vmatprep.mubr.msk.f32.mxu0 %vm293_vm0, %v223_v32  ;;  %2298 = vmatprep.mubr.msk.f32.mxu1 %vm293_vm0, %v255_v33 }
  0x7d   : > { %519 = vmatmul.mubr.f32.gmra.mrb[24].mxu0 %v222_v34  ;;  %599 = vmatmul.mubr.f32.gmra.mrb[24].mxu1 %v254_v35 }
  0x7e   : > { %2283 = vmatprep.mubr.msk.f32.mxu0 %vm293_vm0, %v225_v36  ;;  %2299 = vmatprep.mubr.msk.f32.mxu1 %vm293_vm0, %v257_v42 }
  0x81   : > { %524 = vmatmul.mubr.f32.gmra.mrb[26].mxu0 %v224_v37  ;;  %604 = vmatmul.mubr.f32.gmra.mrb[26].mxu1 %v256_v43 }
  0x82   : > { %2284 = vmatprep.mubr.msk.f32.mxu0 %vm293_vm0, %v227_v38  ;;  %2300 = vmatprep.mubr.msk.f32.mxu1 %vm293_vm0, %v259_v44 }
  0x85   : > { %529 = vmatmul.mubr.f32.gmra.mrb[28].mxu0 %v226_v39  ;;  %609 = vmatmul.mubr.f32.gmra.mrb[28].mxu1 %v258_v45 }
  0x86   : > { %2285 = vmatprep.mubr.msk.f32.mxu0 %vm293_vm0, %v229_v40  ;;  %2301 = vmatprep.mubr.msk.f32.mxu1 %vm293_vm0, %v261_v46 }
  0x89   : > { %534 = vmatmul.mubr.f32.gmra.mrb[30].mxu0 %v228_v41  ;;  %614 = vmatmul.mubr.f32.gmra.mrb[30].mxu1 %v260_v47 }
 0x120   : > { %v460_v50 = vpop.f32.mrb[0].mxu0  ;;  %v540_v52 = vpop.f32.mrb[0].mxu1 }
 0x121   : > { %v626_v53 = vmul.f32 %v2694_v49, %v460_v50  ;;  %v462_v54 = vpop.f32.mrb[1].mxu0  ;;  %v642_v55 = vmul.f32 %v2694_v49, %v540_v52  ;;  %v542_v56 = vpop.f32.mrb[1].mxu1 }
 0x123   : > { %v665_v57 = vadd.f32 %v2699_v51, %v626_v53  ;;  %v681_v61 = vadd.f32 %v2699_v51, %v642_v55 }
 0x124   : > { %v465_v58 = vpop.f32.mrb[2].mxu0  ;;  %v545_v59 = vpop.f32.mrb[2].mxu1 }
 0x125   : > { %v2704_v60 = vmax.f32 %v665_v57, 0.0  ;;  %v643_v62 = vmul.f32 %v2694_v49, %v545_v59  ;;  %v547_v63 = vpop.f32.mrb[3].mxu1  ;;  %v467_v0 = vpop.f32.mrb[3].mxu0  ;;  %v627_v1 = vmul.f32 %v2694_v49, %v465_v58  ;;  %v2713_v6 = vmax.f32 %v681_v61, 0.0 }
 0x127   : > { %v682_v2 = vadd.f32 %v2699_v51, %v643_v62  ;;  %1274 = vrot.lane.b32.xlu0 %v2704_v60, %s2426_s6  ;;  %v1403_v3 = vrot.slane %v2704_v60, 7  ;;  %3858 = vst [vmem:[#allocation2_spill] sm:$0xff] %v2713_v6  ;;  %v666_v9 = vadd.f32 %v2699_v51, %v627_v1  ;;  %v3839_v42 = vrot.slane %v2713_v6, 7 }
 0x128   : > { %v550_v4 = vpop.f32.mrb[4].mxu1  ;;  %v470_v5 = vpop.f32.mrb[4].mxu0 }
 0x129   : > { %1915 = vrot.lane.b32.xlu1 %v1403_v3, %s2427_s17  ;;  %v472_v7 = vpop.f32.mrb[5].mxu0  ;;  %v552_v8 = vpop.f32.mrb[5].mxu1  ;;  %v2717_v10 = vmax.f32 %v682_v2, 0.0  ;;  %v2725_v15 = vmax.f32 %v666_v9, 0.0  ;;  %v628_v28 = vmul.f32 %v2694_v49, %v470_v5  ;;  %v644_v34 = vmul.f32 %v2694_v49, %v550_v4 }
 0x12b   : > { %3859 = vst [vmem:[#allocation3_spill] sm:$0xff] %v2717_v10  ;;  %1306 = vrot.lane.b32.xlu0 %v2713_v6, %s2426_s6  ;;  %v1404_v29 = vrot.slane %v2725_v15, 7  ;;  %v667_v35 = vadd.f32 %v2699_v51, %v628_v28  ;;  %v1436_v37 = vrot.slane %v2717_v10, 7  ;;  %v683_v43 = vadd.f32 %v2699_v51, %v644_v34 }
 0x12c   : > { %v475_v11 = vpop.f32.mrb[6].mxu0  ;;  %v2721_v12 = vpop.f32.mrb[6].mxu1 }
 0x12d   : > { %1308 = vrot.lane.b32.xlu1 %v2717_v10, %s2426_s6  ;;  %v477_v13 = vpop.f32.mrb[7].mxu0  ;;  %v557_v14 = vpop.f32.mrb[7].mxu1  ;;  %v1405_v36 = vsel %vm1402_vm2, %v1403_v3, %v1404_v29  ;;  %v2775_v44 = vmax.f32 %v667_v35, 0.0  ;;  %v1437_v45 = vsel %vm1402_vm2, %v3839_v42, %v1436_v37  ;;  %v2786_v53 = vmax.f32 %v683_v43, 0.0 }
 0x12e   : > { %v629_v59 = vmul.f32 %v2694_v49, %v475_v11  ;;  %v645_v2 = vmul.f32 %v2694_v49, %v2721_v12 }
 0x12f   : > { %1627 = vrot.lane.b32.xlu0 %v2704_v60, %s2428_s18  ;;  %3860 = vst [vmem:[#allocation4_spill] sm:$0xff] %v2786_v53  ;;  %v1406_v54 = vrot.slane %v2775_v44, 7  ;;  %v1438_v62 = vrot.slane %v2786_v53, 7 }
 0x130   : > { %v2729_v16 = vpop.f32.mrb[8].mxu0  ;;  %v2731_v17 = vpop.f32.mrb[8].mxu1  ;;  %v668_v1 = vadd.f32 %v2699_v51, %v629_v59  ;;  %v684_v8 = vadd.f32 %v2699_v51, %v645_v2 }
 0x131   : > { %1629 = vrot.lane.b32.xlu1 %v2725_v15, %s2428_s18  ;;  %v482_v18 = vpop.f32.mrb[9].mxu0  ;;  %v562_v19 = vpop.f32.mrb[9].mxu1  ;;  %v1407_v61 = vsel %vm1402_vm2, %v1404_v29, %v1406_v54 }
 0x132   : > { %v2811_v7 = vmax.f32 %v668_v1, 0.0  ;;  %v2820_v12 = vmax.f32 %v684_v8, 0.0 }
 0x133   : > { %1659 = vrot.lane.b32.xlu0 %v2713_v6, %s2428_s18 }
 0x134   : > { %v2737_v20 = vpop.f32.mrb[10].mxu0  ;;  %v2739_v21 = vpop.f32.mrb[10].mxu1  ;;  %v1408_v28 = vrot.slane %v2811_v7, 7 }
 0x135   : > { %1661 = vrot.lane.b32.xlu1 %v2717_v10, %s2428_s18  ;;  %v487_v22 = vpop.f32.mrb[11].mxu0  ;;  %v567_v23 = vpop.f32.mrb[11].mxu1  ;;  %v647_v43 = vmul.f32 %v2694_v49, %v2739_v21 }
 0x136   : > { %v630_v22 = vmul.f32 %v2694_v49, %v2729_v16 }
 0x137   : > { %1787 = vrot.lane.b32.xlu0 %v2704_v60, %s2427_s17 }
 0x138   : > { %v2745_v24 = vpop.f32.mrb[12].mxu0  ;;  %v2747_v25 = vpop.f32.mrb[12].mxu1  ;;  %v669_v23 = vadd.f32 %v2699_v51, %v630_v22 }
 0x139   : > { %1789 = vrot.lane.b32.xlu1 %v2725_v15, %s2427_s17  ;;  %v492_v26 = vpop.f32.mrb[13].mxu0  ;;  %v572_v27 = vpop.f32.mrb[13].mxu1  ;;  %v648_v1 = vmul.f32 %v2694_v49, %v2747_v25 }
 0x13a   : > { %v646_v26 = vmul.f32 %v2694_v49, %v2731_v17  ;;  %v2850_v29 = vmax.f32 %v669_v23, 0.0  ;;  %v1409_v17 = vsel %vm1402_vm2, %v1406_v54, %v1408_v28 }
 0x13b   : > { %1819 = vrot.lane.b32.xlu0 %v2713_v6, %s2427_s17 }
 0x13c   : > { %v2755_v30 = vpop.f32.mrb[14].mxu0  ;;  %v2757_v31 = vpop.f32.mrb[14].mxu1 }
 0x13d   : > { %1821 = vrot.lane.b32.xlu1 %v2717_v10, %s2427_s17  ;;  %v497_v32 = vpop.f32.mrb[15].mxu0  ;;  %v577_v33 = vpop.f32.mrb[15].mxu1  ;;  %v633_v23 = vmul.f32 %v2694_v49, %v2755_v30 }
 0x13e   : > { %v685_v32 = vadd.f32 %v2699_v51, %v646_v26  ;;  %v1440_v33 = vrot.slane %v2820_v12, 7 }
 0x13f   : > { %1466 = vrot.lane.b32.xlu0 %v1403_v3, %s2426_s6  ;;  %v1439_v3 = vsel %vm1402_vm2, %v1436_v37, %v1438_v62  ;;  %v631_v37 = vmul.f32 %v2694_v49, %v2737_v20  ;;  %v686_v20 = vadd.f32 %v2699_v51, %v647_v43 }
 0x140   : > { %v2766_v38 = vpop.f32.mrb[16].mxu0  ;;  %v2768_v39 = vpop.f32.mrb[16].mxu1  ;;  %v2859_v34 = vmax.f32 %v685_v32, 0.0  ;;  %v1441_v35 = vsel %vm1402_vm2, %v1438_v62, %v1440_v33 }
 0x141   : > { %1468 = vrot.lane.b32.xlu1 %v1405_v36, %s2426_s6  ;;  %v502_v40 = vpop.f32.mrb[17].mxu0  ;;  %v582_v41 = vpop.f32.mrb[17].mxu1 }
 0x142   : > { %v670_v41 = vadd.f32 %v2699_v51, %v631_v37  ;;  %v1442_v54 = vrot.slane %v2859_v34, 7 }
 0x143   : > { %1276 = vrot.lane.b32.xlu0 %v2725_v15, %s2426_s6 }
 0x144   : > { %v2780_v46 = vpop.f32.mrb[18].mxu0  ;;  %v2782_v47 = vpop.f32.mrb[18].mxu1 }
 0x145   : > { %1500 = vrot.lane.b32.xlu1 %v1437_v45, %s2426_s6  ;;  %v507_v50 = vpop.f32.mrb[19].mxu0  ;;  %v587_v52 = vpop.f32.mrb[19].mxu1 }
 0x146   : > { %v1410_v50 = vrot.slane %v2850_v29, 7  ;;  %v2887_v52 = vmax.f32 %v686_v20, 0.0 }
 0x147   : > { %1917 = vrot.lane.b32.xlu0 %v1405_v36, %s2427_s17 }
 0x148   : > { %v2789_v55 = vpop.f32.mrb[20].mxu0  ;;  %v2793_v57 = vpop.f32.mrb[20].mxu1  ;;  %v1411_v21 = vsel %vm1402_vm2, %v1408_v28, %v1410_v50 }
 0x149   : > { %1278 = vrot.lane.b32.xlu1 %v2775_v44, %s2426_s6  ;;  %v512_v56 = vpop.f32.mrb[21].mxu0  ;;  %v592_v58 = vpop.f32.mrb[21].mxu1 }
 0x14a   : > { %v1443_v56 = vsel %vm1402_vm2, %v1440_v33, %v1442_v54  ;;  %v649_v33 = vmul.f32 %v2694_v49, %v2757_v31  ;;  %v729_v31 = vlaneseq }
 0x14b   : > { %1949 = vrot.lane.b32.xlu0 %v1437_v45, %s2427_s17  ;;  %v2879_v45 = vmax.f32 %v670_v41, 0.0 }
 0x14c   : > { %v2799_v63 = vpop.f32.mrb[22].mxu0  ;;  %v2847_v27 = vpop.f32.mrb[22].mxu1  ;;  %v688_v41 = vadd.f32 %v2699_v51, %v649_v33 }
 0x14d   : > { %1919 = vrot.lane.b32.xlu1 %v1407_v61, %s2427_s17  ;;  %v517_v0 = vpop.f32.mrb[23].mxu0  ;;  %v597_v16 = vpop.f32.mrb[23].mxu1  ;;  %v1412_v62 = vrot.slane %v2879_v45, 7 }
 0x14f   : > { %1310 = vrot.lane.b32.xlu0 %v2786_v53, %s2426_s6  ;;  %v1413_v2 = vsel %vm1402_vm2, %v1410_v50, %v1412_v62  ;;  %v2966_v50 = vmax.f32 %v688_v41, 0.0 }
 0x150   : > { %v2808_v4 = vpop.f32.mrb[24].mxu0  ;;  %v2866_v36 = vpop.f32.mrb[24].mxu1 }
 0x151   : > { %1951 = vrot.lane.b32.xlu1 %v1439_v3, %s2427_s17  ;;  %v522_v5 = vpop.f32.mrb[25].mxu0  ;;  %v602_v40 = vpop.f32.mrb[25].mxu1 }
 0x152   : > { %v687_v5 = vadd.f32 %v2699_v51, %v648_v1  ;;  %v634_v1 = vmul.f32 %v2694_v49, %v2766_v38  ;;  %v650_v38 = vmul.f32 %v2694_v49, %v2768_v39 }
 0x153   : > { %1631 = vrot.lane.b32.xlu0 %v2775_v44, %s2428_s18 }
 0x154   : > { %v2816_v9 = vpop.f32.mrb[26].mxu0  ;;  %v2900_v58 = vpop.f32.mrb[26].mxu1  ;;  %v673_v41 = vadd.f32 %v2699_v51, %v634_v1 }
 0x155   : > { %1280 = vrot.lane.b32.xlu1 %v2811_v7, %s2426_s6  ;;  %v527_v11 = vpop.f32.mrb[27].mxu0  ;;  %v607_v59 = vpop.f32.mrb[27].mxu1 }
 0x156   : > { %v2927_v11 = vmax.f32 %v687_v5, 0.0  ;;  %v3015_v39 = vmax.f32 %v673_v41, 0.0 }
 0x157   : > { %1663 = vrot.lane.b32.xlu0 %v2786_v53, %s2428_s18 }
 0x158   : > { %v2824_v13 = vpop.f32.mrb[28].mxu0  ;;  %v2925_v25 = vpop.f32.mrb[28].mxu1  ;;  %v1446_v16 = vrot.slane %v2927_v11, 7  ;;  %3867 = vst [vmem:[#allocation11_spill] sm:$0xff] %v3015_v39 }
 0x159   : > { %1312 = vrot.lane.b32.xlu1 %v2820_v12, %s2426_s6  ;;  %v532_v14 = vpop.f32.mrb[29].mxu0 }
 0x15b   : > { %1791 = vrot.lane.b32.xlu0 %v2775_v44, %s2427_s17 }
 0x15c   : > { %v2830_v18 = vpop.f32.mrb[30].mxu0 }
 0x15d   : > { %1633 = vrot.lane.b32.xlu1 %v2811_v7, %s2428_s18  ;;  %v537_v19 = vpop.f32.mrb[31].mxu0 }
 0x15e   : > { %v612_v19 = vpop.f32.mrb[29].mxu1 }
 0x15f   : > { %1823 = vrot.lane.b32.xlu0 %v2786_v53, %s2427_s17 }
 0x161   : > { %1665 = vrot.lane.b32.xlu1 %v2820_v12, %s2428_s18 }
 0x163   : > { %1470 = vrot.lane.b32.xlu0 %v1407_v61, %s2426_s6  ;;  %v632_v61 = vmul.f32 %v2694_v49, %v2745_v24 }
 0x165   : > { %1793 = vrot.lane.b32.xlu1 %v2811_v7, %s2427_s17  ;;  %v671_v0 = vadd.f32 %v2699_v51, %v632_v61 }
 0x167   : > { %1502 = vrot.lane.b32.xlu0 %v1439_v3, %s2426_s6  ;;  %v1444_v3 = vrot.slane %v2887_v52, 7  ;;  %v2919_v24 = vmax.f32 %v671_v0, 0.0 }
 0x169   : > { %1825 = vrot.lane.b32.xlu1 %v2820_v12, %s2427_s17  ;;  %v1445_v8 = vsel %vm1402_vm2, %v1442_v54, %v1444_v3  ;;  %v1414_v14 = vrot.slane %v2919_v24, 7  ;;  %v2972_v54 = vshrl.u32 %v729_v31, 7 }
 0x16b   : > { %1282 = vrot.lane.b32.xlu0 %v2850_v29, %s2426_s6  ;;  %v1415_v28 = vsel %vm1402_vm2, %v1412_v62, %v1414_v14  ;;  %v766_v59 = vand.u32 15, %v2972_v54 }
 0x16d   : > { %1472 = vrot.lane.b32.xlu1 %v1409_v17, %s2426_s6  ;;  %vm1146_vm3 = vcmp.ge.s32.totalorder %v766_v59, 1 }
 0x16f   : > { %1314 = vrot.lane.b32.xlu0 %v2859_v34, %s2426_s6 }
 0x171   : > { %1504 = vrot.lane.b32.xlu1 %v1441_v35, %s2426_s6 }
 0x173   : > { %1635 = vrot.lane.b32.xlu0 %v2850_v29, %s2428_s18 }
 0x175   : > { %1921 = vrot.lane.b32.xlu1 %v1409_v17, %s2427_s17  ;;  %v672_v17 = vadd.f32 %v2699_v51, %v633_v23 }
 0x177   : > { %1667 = vrot.lane.b32.xlu0 %v2859_v34, %s2428_s18  ;;  %v2955_v40 = vmax.f32 %v672_v17, 0.0  ;;  %v2999_v17 = vpop.f32.mrb[30].mxu1 }
 0x178   : > { %v617_v33 = vpop.f32.mrb[31].mxu1 }
 0x179   : > { %1953 = vrot.lane.b32.xlu1 %v1441_v35, %s2427_s17  ;;  %v1447_v35 = vsel %vm1402_vm2, %v1444_v3, %v1446_v16  ;;  %v2304_v3 = vsel %vm1146_vm3, 1.0, %v3840_v48 }
 0x17b   : > { %1795 = vrot.lane.b32.xlu0 %v2850_v29, %s2427_s17 }
 0x17d   : > { %1284 = vrot.lane.b32.xlu1 %v2879_v45, %s2426_s6 }
 0x17f   : > { %1827 = vrot.lane.b32.xlu0 %v2859_v34, %s2427_s17 }
 0x181   : > { %1316 = vrot.lane.b32.xlu1 %v2887_v52, %s2426_s6 }
 0x183   : > { %1474 = vrot.lane.b32.xlu0 %v1411_v21, %s2426_s6 }
 0x185   : > { %1637 = vrot.lane.b32.xlu1 %v2879_v45, %s2428_s18 }
 0x187   : > { %1506 = vrot.lane.b32.xlu0 %v1443_v56, %s2426_s6 }
 0x189   : > { %1669 = vrot.lane.b32.xlu1 %v2887_v52, %s2428_s18 }
 0x18b   : > { %1923 = vrot.lane.b32.xlu0 %v1411_v21, %s2427_s17 }
 0x18d   : > { %1797 = vrot.lane.b32.xlu1 %v2879_v45, %s2427_s17 }
 0x18f   : > { %1955 = vrot.lane.b32.xlu0 %v1443_v56, %s2427_s17 }
 0x191   : > { %1829 = vrot.lane.b32.xlu1 %v2887_v52, %s2427_s17 }
 0x193   : > { %1925 = vrot.lane.b32.xlu0 %v1413_v2, %s2427_s17 }
 0x195   : > { %1476 = vrot.lane.b32.xlu1 %v1413_v2, %s2426_s6 }
 0x197   : > { %1957 = vrot.lane.b32.xlu0 %v1445_v8, %s2427_s17 }
 0x199   : > { %v1275_v22 = vpop.permute.xlu0 %1274  ;;  %1508 = vrot.lane.b32.xlu1 %v1445_v8, %s2426_s6 }
 0x19a   : > { %v1370_v8 = vmax.f32 %v2704_v60, %v1275_v22 }
 0x19b   : > { %v1916_v26 = vpop.permute.xlu1 %1915  ;;  %1286 = vrot.lane.b32.xlu0 %v2919_v24, %s2426_s6 }
 0x19d   : > { %v2939_v32 = vpop.permute.xlu0 %1306  ;;  %1927 = vrot.lane.b32.xlu1 %v1415_v28, %s2427_s17 }
 0x19e   : > { %3861 = vst [vmem:[#allocation5_spill] sm:$0xff] %v2939_v32 }
 0x19f   : > { %v2945_v30 = vpop.permute.xlu1 %1308  ;;  %1318 = vrot.lane.b32.xlu0 %v2927_v11, %s2426_s6 }
 0x1a0   : > { %3862 = vst [vmem:[#allocation6_spill] sm:$0xff] %v2945_v30 }
 0x1a1   : > { %v2952_v37 = vpop.permute.xlu0 %1627  ;;  %1959 = vrot.lane.b32.xlu1 %v1447_v35, %s2427_s17 }
 0x1a3   : > { %v2958_v43 = vpop.permute.xlu1 %1629  ;;  %1639 = vrot.lane.b32.xlu0 %v2919_v24, %s2428_s18 }
 0x1a5   : > { %v2962_v20 = vpop.permute.xlu0 %1659  ;;  %1288 = vrot.lane.b32.xlu1 %v2955_v40, %s2426_s6 }
 0x1a6   : > { %3863 = vst [vmem:[#allocation7_spill] sm:$0xff] %v2962_v20 }
 0x1a7   : > { %v2968_v21 = vpop.permute.xlu1 %1661  ;;  %1671 = vrot.lane.b32.xlu0 %v2927_v11, %s2428_s18 }
 0x1a9   : > { %v2974_v56 = vpop.permute.xlu0 %1787  ;;  %1320 = vrot.lane.b32.xlu1 %v2966_v50, %s2426_s6 }
 0x1ab   : > { %v2979_v61 = vpop.permute.xlu1 %1789  ;;  %1799 = vrot.lane.b32.xlu0 %v2919_v24, %s2427_s17 }
 0x1ad   : > { %v2983_v62 = vpop.permute.xlu0 %1819  ;;  %1641 = vrot.lane.b32.xlu1 %v2955_v40, %s2428_s18 }
 0x1ae   : > { %3864 = vst [vmem:[#allocation8_spill] sm:$0xff] %v2983_v62 }
 0x1af   : > { %v2987_v0 = vpop.permute.xlu1 %1821  ;;  %1831 = vrot.lane.b32.xlu0 %v2927_v11, %s2427_s17 }
 0x1b0   : > { %3865 = vst [vmem:[#allocation9_spill] sm:$0xff] %v2987_v0 }
 0x1b1   : > { %v1467_v2 = vpop.permute.xlu0 %1466  ;;  %1673 = vrot.lane.b32.xlu1 %v2966_v50, %s2428_s18 }
 0x1b2   : > { %v1562_v5 = vsel %vm1402_vm2, 0.0, %v1467_v2 }
 0x1b3   : > { %v1563_v19 = vmul.f32 %v2304_v3, %v1562_v5  ;;  %v1469_v23 = vpop.permute.xlu1 %1468  ;;  %1478 = vrot.lane.b32.xlu0 %v1415_v28, %s2426_s6  ;;  %v3012_v28 = vsel %vm1402_vm2, 0.0, %v1916_v26  ;;  %v1416_v5 = vrot.slane %v2955_v40, 7 }
 0x1b5   : > { %v1595_v31 = vmax.f32 %v1370_v8, %v1563_v19  ;;  %v1277_v59 = vpop.permute.xlu0 %1276  ;;  %1801 = vrot.lane.b32.xlu1 %v2955_v40, %s2427_s17  ;;  %v689_v8 = vadd.f32 %v2699_v51, %v650_v38  ;;  %v1417_v38 = vsel %vm1402_vm2, %v1414_v14, %v1416_v5 }
 0x1b6   : > { %v1371_v2 = vmax.f32 %v2725_v15, %v1277_v59  ;;  %v2108_v59 = vmul.f32 0.0, %v2304_v3 }
 0x1b7   : > { %v1723_v60 = vmax.f32 %v1595_v31, %v2952_v37  ;;  %v3008_v22 = vpop.permute.xlu1 %1500  ;;  %1510 = vrot.lane.b32.xlu0 %v1447_v35, %s2426_s6  ;;  %v2012_v35 = vmul.f32 %v2304_v3, %v3012_v28  ;;  %v1448_v31 = vrot.slane %v2966_v50, 7 }
 0x1b8   : > { %3866 = vst [vmem:[#allocation10_spill] sm:$0xff] %v3008_v22  ;;  %v1596_v1 = vmax.f32 %v1371_v2, %v1469_v23  ;;  %v3033_v2 = vmax.f32 %v689_v8, 0.0 }
 0x1b9   : > { %v1755_v19 = vmax.f32 %v1723_v60, 0.0  ;;  %v3018_v33 = vpop.permute.xlu0 %1917  ;;  %1833 = vrot.lane.b32.xlu1 %v2966_v50, %s2427_s17  ;;  %v1449_v3 = vsel %vm1402_vm2, %v1446_v16, %v1448_v31  ;;  %v651_v16 = vmul.f32 %v2694_v49, %v2782_v47 }
 0x1ba   : > { %v1724_v15 = vmax.f32 %v1596_v1, %v2958_v43  ;;  %3868 = vst [vmem:[#allocation12_spill] sm:$0xff] %v3033_v2  ;;  %v1450_v32 = vrot.slane %v3033_v2, 7 }
 0x1bb   : > { %v1883_v26 = vmax.f32 %v1755_v19, %v2974_v56  ;;  %v3025_v23 = vpop.permute.xlu1 %1278  ;;  %1290 = vrot.lane.b32.xlu0 %v3015_v39, %s2426_s6 }
 0x1bc   : > { %v1756_v41 = vmax.f32 %v1724_v15, 0.0  ;;  %v1372_v10 = vmax.f32 %v2775_v44, %v3025_v23  ;;  %v636_v44 = vmul.f32 %v2694_v49, %v2789_v55 }
 0x1bd   : > { %v2044_v60 = vmax.f32 %v1883_v26, %v2012_v35  ;;  %v3036_v1 = vpop.permute.xlu0 %1949  ;;  %1480 = vrot.lane.b32.xlu1 %v1417_v38, %s2426_s6  ;;  %v635_v26 = vmul.f32 %v2694_v49, %v2780_v46 }
 0x1be   : > { %3869 = vst [vmem:[#allocation13_spill] sm:$0xff] %v3036_v1  ;;  %v1884_v19 = vmax.f32 %v1756_v41, %v2979_v61 }
 0x1bf   : > { %v2076_v42 = vmax.f32 %v2044_v60, 0.0  ;;  %v3040_v48 = vpop.permute.xlu1 %1919  ;;  %1322 = vrot.lane.b32.xlu0 %v3033_v2, %s2426_s6 }
 0x1c0   : > { %v2045_v14 = vmax.f32 %v1884_v19, %v3018_v33 }
 0x1c1   : > { %v2140_v8 = vmax.f32 %v2076_v42, %v2108_v59  ;;  %v3053_v15 = vpop.permute.xlu0 %1310  ;;  %1512 = vrot.lane.b32.xlu1 %v1449_v3, %s2426_s6  ;;  %v674_v42 = vadd.f32 %v2699_v51, %v635_v26 }
 0x1c2   : > { %3870 = vst [vmem:[#allocation14_spill] sm:$0xff] %v3053_v15  ;;  %v2077_v35 = vmax.f32 %v2045_v14, 0.0  ;;  %v732_v14 = vadd.s32 16, %v2972_v54 }
 0x1c3   : > { %2173 = vst.msk [vmem:[%s3047_s22] sm:$0xff] %vm2172_vm4, %v2140_v8  ;;  %v3060_v41 = vpop.permute.xlu1 %1951  ;;  %1643 = vrot.lane.b32.xlu0 %v3015_v39, %s2428_s18  ;;  %v3078_v8 = vmax.f32 %v674_v42, 0.0 }
 0x1c4   : > { %3871 = vst [vmem:[#allocation15_spill] sm:$0xff] %v3060_v41  ;;  %v2141_v60 = vmax.f32 %v2077_v35, 0.0  ;;  %v780_v47 = vand.u32 15, %v732_v14 }
 0x1c5   : > { %v3064_v19 = vpop.permute.xlu0 %1631  ;;  %1929 = vrot.lane.b32.xlu1 %v1417_v38, %s2427_s17  ;;  %3872 = vst [vmem:[#allocation16_spill] sm:$0xff] %v3078_v8  ;;  %v690_v38 = vadd.f32 %v2699_v51, %v651_v16 }
 0x1c6   : > { %2174 = vst.msk [vmem:[%s3047_s22 + $0x8] sm:$0xff] %vm2172_vm4, %v2141_v60  ;;  %v1418_v60 = vrot.slane %v3015_v39, 7  ;;  %vm1148_vm5 = vcmp.ge.s32.totalorder %v780_v47, 1  ;;  %v1451_v47 = vsel %vm1402_vm2, %v1448_v31, %v1450_v32 }
 0x1c7   : > { %v1281_v46 = vpop.permute.xlu1 %1280  ;;  %1675 = vrot.lane.b32.xlu0 %v3033_v2, %s2428_s18  ;;  %v3088_v62 = vmax.f32 %v690_v38, 0.0  ;;  %v3874_v38 = vmov 0.0  }
 0x1c8   : > { %v1419_v16 = vsel %vm1402_vm2, %v1416_v5, %v1418_v60  ;;  %v2305_v20 = vsel %vm1148_vm5, 1.0, %v3874_v38  ;;  %v1373_v31 = vmax.f32 %v2811_v7, %v1281_v46 }
 0x1c9   : > { %v3074_v59 = vpop.permute.xlu0 %1663  ;;  %1961 = vrot.lane.b32.xlu1 %v1449_v3, %s2427_s17  ;;  %v2110_v46 = vmul.f32 %v2305_v20, %v3012_v28 }
 0x1cb   : > { %v1313_v35 = vpop.permute.xlu1 %1312  ;;  %1803 = vrot.lane.b32.xlu0 %v3015_v39, %s2427_s17 }
 0x1cd   : > { %v3083_v26 = vpop.permute.xlu0 %1791  ;;  %1292 = vrot.lane.b32.xlu1 %v3078_v8, %s2426_s6 }
 0x1cf   : > { %v3090_v3 = vpop.permute.xlu1 %1633  ;;  %1835 = vrot.lane.b32.xlu0 %v3033_v2, %s2427_s17 }
 0x1d1   : > { %v3094_v42 = vpop.permute.xlu0 %1823  ;;  %1324 = vrot.lane.b32.xlu1 %v3088_v62, %s2426_s6 }
 0x1d2   : > { %3873 = vst [vmem:[#allocation17_spill] sm:$0xff] %v3094_v42 }
 0x1d3   : > { %v3100_v14 = vpop.permute.xlu1 %1665  ;;  %1482 = vrot.lane.b32.xlu0 %v1419_v16, %s2426_s6 }
 0x1d5   : > { %v1471_v22 = vpop.permute.xlu0 %1470  ;;  %1645 = vrot.lane.b32.xlu1 %v3078_v8, %s2428_s18 }
 0x1d6   : > { %v1565_v30 = vmul.f32 %v2305_v20, %v1471_v22 }
 0x1d7   : > { %v3109_v53 = vpop.permute.xlu1 %1793  ;;  %1514 = vrot.lane.b32.xlu0 %v1451_v47, %s2426_s6 }
 0x1d8   : > { %v1597_v5 = vmax.f32 %v1372_v10, %v1565_v30  ;;  %v1420_v10 = vrot.slane %v3078_v8, 7  ;;  %v2014_v30 = vmul.f32 %v2305_v20, %v3040_v48 }
 0x1d9   : > { %v3112_v15 = vpop.permute.xlu0 %1502  ;;  %1677 = vrot.lane.b32.xlu1 %v3088_v62, %s2428_s18 }
 0x1da   : > { %3875 = vst [vmem:[#allocation18_spill] sm:$0xff] %v3112_v15  ;;  %v1725_v6 = vmax.f32 %v1597_v5, %v3064_v19  ;;  %v1421_v7 = vsel %vm1402_vm2, %v1418_v60, %v1420_v10 }
 0x1db   : > { %v3117_v2 = vpop.permute.xlu1 %1825  ;;  %1931 = vrot.lane.b32.xlu0 %v1419_v16, %s2427_s17  ;;  %v652_v16 = vmul.f32 %v2694_v49, %v2793_v57 }
 0x1dc   : > { %v1757_v22 = vmax.f32 %v1725_v6, %v2952_v37  ;;  %v675_v6 = vadd.f32 %v2699_v51, %v636_v44 }
 0x1dd   : > { %v3123_v23 = vpop.permute.xlu0 %1282  ;;  %1805 = vrot.lane.b32.xlu1 %v3078_v8, %s2427_s17  ;;  %v691_v44 = vadd.f32 %v2699_v51, %v652_v16 }
 0x1de   : > { %v1885_v5 = vmax.f32 %v1757_v22, %v3083_v26  ;;  %v1389_v22 = vmax.f32 %v2820_v12, %v1313_v35 }
 0x1df   : > { %v1473_v15 = vpop.permute.xlu1 %1472  ;;  %1963 = vrot.lane.b32.xlu0 %v1451_v47, %s2427_s17 }
 0x1e0   : > { %v2046_v55 = vmax.f32 %v1885_v5, %v2014_v30  ;;  %v1598_v37 = vmax.f32 %v1373_v31, %v1473_v15  ;;  %v1452_v15 = vrot.slane %v3088_v62, 7  ;;  %v3147_v31 = vmax.f32 %v675_v6, 0.0 }
 0x1e1   : > { %v3135_v39 = vpop.permute.xlu0 %1314  ;;  %1837 = vrot.lane.b32.xlu1 %v3088_v62, %s2427_s17 }
 0x1e2   : > { %v2078_v57 = vmax.f32 %v2046_v55, %v2974_v56  ;;  %v1726_v47 = vmax.f32 %v1598_v37, %v3090_v3  ;;  %v3162_v35 = vsel %vm1402_vm2, %v1450_v32, %v1452_v15  ;;  %v3852_v55 = vrot.slane %v3147_v31, 7 }
 0x1e3   : > { %v1505_v30 = vpop.permute.xlu1 %1504  ;;  %1933 = vrot.lane.b32.xlu0 %v1421_v7, %s2427_s17 }
 0x1e4   : > { %v2142_v5 = vmax.f32 %v2078_v57, %v2110_v46  ;;  %v1758_v60 = vmax.f32 %v1726_v47, %v2958_v43  ;;  %v1614_v8 = vmax.f32 %v1389_v22, %v1505_v30  ;;  %v3164_v43 = vmax.f32 %v691_v44, 0.0 }
 0x1e5   : > { %v3150_v20 = vpop.permute.xlu0 %1635  ;;  %1484 = vrot.lane.b32.xlu1 %v1421_v7, %s2426_s6  ;;  %v637_v46 = vmul.f32 %v2694_v49, %v2799_v63  ;;  %v1423_v44 = vsel %vm1402_vm2, %v1420_v10, %v3852_v55 }
 0x1e6   : > { %2175 = vst.msk [vmem:[%s3047_s22 + $0x10] sm:$0xff] %vm2172_vm4, %v2142_v5  ;;  %v1742_v12 = vmax.f32 %v1614_v8, %v3100_v14  ;;  %v1886_v56 = vmax.f32 %v1758_v60, %v3109_v53  ;;  %v734_v8 = vadd.s32 32, %v2972_v54  ;;  %v750_v5 = vadd.s32 160, %v2972_v54 }
 0x1e7   : > { %v3157_v28 = vpop.permute.xlu1 %1921  ;;  %1294 = vrot.lane.b32.xlu0 %v3147_v31, %s2426_s6  ;;  %v676_v60 = vadd.f32 %v2699_v51, %v637_v46 }
 0x1e8   : > { %v1774_v16 = vmax.f32 %v1742_v12, %v2968_v21  ;;  %v2047_v6 = vmax.f32 %v1886_v56, %v3157_v28  ;;  %v794_v63 = vand.u32 15, %v734_v8  ;;  %v653_v12 = vmul.f32 %v2694_v49, %v2847_v27 }
 0x1e9   : > { %v3169_v37 = vpop.permute.xlu0 %1667  ;;  %1516 = vrot.lane.b32.xlu1 %v3162_v35, %s2426_s6  ;;  %v906_v8 = vand.u32 15, %v750_v5  ;;  %v3211_v27 = vmax.f32 %v676_v60, 0.0 }
 0x1ea   : > { %v2079_v7 = vmax.f32 %v2047_v6, %v2979_v61  ;;  %v1902_v32 = vmax.f32 %v1774_v16, %v3117_v2  ;;  %v3851_v61 = vrot.slane %v3164_v43, 7  ;;  %vm1150_vm6 = vcmp.ge.s32.totalorder %v794_v63, 1 }
 0x1eb   : > { %v3178_v22 = vpop.permute.xlu1 %1953  ;;  %1326 = vrot.lane.b32.xlu0 %v3164_v43, %s2426_s6  ;;  %v2306_v46 = vsel %vm1150_vm6, 1.0, %v3874_v38  ;;  %vm1166_vm7 = vcmp.ge.s32.totalorder %v906_v8, 1 }
 0x1ec   : > { %v2143_v57 = vmax.f32 %v2079_v7, %v3018_v33  ;;  %v2063_v47 = vmax.f32 %v1902_v32, %v3178_v22  ;;  %v1455_v16 = vsel %vm1402_vm2, %v1452_v15, %v3851_v61  ;;  %v692_v7 = vadd.f32 %v2699_v51, %v653_v12 }
 0x1ed   : > { %v3188_v30 = vpop.permute.xlu0 %1795  ;;  %1935 = vrot.lane.b32.xlu1 %v1423_v44, %s2427_s17  ;;  %v2314_v60 = vsel %vm1166_vm7, 1.0, %v3874_v38 }
 0x1ee   : > { %2176 = vst.msk [vmem:[%s3047_s22 + $0x18] sm:$0xff] %vm2172_vm4, %v2143_v57  ;;  %v2095_v33 = vmax.f32 %v2063_v47, %v2987_v0  ;;  %v1374_v57 = vmax.f32 %v2850_v29, %v3123_v23  ;;  %v3223_v63 = vmax.f32 %v692_v7, 0.0 }
 0x1ef   : > { %v3198_v10 = vpop.permute.xlu1 %1284  ;;  %1647 = vrot.lane.b32.xlu0 %v3147_v31, %s2428_s18 }
 0x1f0   : > { %v2159_v56 = vmax.f32 %v2095_v33, %v3036_v1 }
 0x1f1   : > { %v3206_v6 = vpop.permute.xlu0 %1827  ;;  %1967 = vrot.lane.b32.xlu1 %v1455_v16, %s2427_s17 }
 0x1f2   : > { %2192 = vst.msk [vmem:[%s3047_s22 + $0x98] sm:$0xff] %vm2172_vm4, %v2159_v56  ;;  %v1390_v56 = vmax.f32 %v2859_v34, %v3135_v39 }
 0x1f3   : > { %v3214_v32 = vpop.permute.xlu1 %1316  ;;  %1679 = vrot.lane.b32.xlu0 %v3164_v43, %s2428_s18 }
 0x1f5   : > { %v1475_v15 = vpop.permute.xlu0 %1474  ;;  %1296 = vrot.lane.b32.xlu1 %v3211_v27, %s2426_s6 }
 0x1f6   : > { %v1567_v47 = vmul.f32 %v2306_v46, %v1475_v15 }
 0x1f7   : > { %v3225_v5 = vpop.permute.xlu1 %1637  ;;  %1807 = vrot.lane.b32.xlu0 %v3147_v31, %s2427_s17 }
 0x1f8   : > { %v1599_v33 = vmax.f32 %v1374_v57, %v1567_v47  ;;  %v638_v57 = vmul.f32 %v2694_v49, %v2808_v4 }
 0x1f9   : > { %v1507_v12 = vpop.permute.xlu0 %1506  ;;  %1328 = vrot.lane.b32.xlu1 %v3223_v63, %s2426_s6 }
 0x1fa   : > { %v1727_v29 = vmax.f32 %v1599_v33, %v3150_v20  ;;  %v1583_v23 = vmul.f32 %v2314_v60, %v1507_v12  ;;  %v677_v4 = vadd.f32 %v2699_v51, %v638_v57 }
 0x1fb   : > { %v3235_v8 = vpop.permute.xlu1 %1669  ;;  %1839 = vrot.lane.b32.xlu0 %v3164_v43, %s2427_s17 }
 0x1fc   : > { %v1759_v7 = vmax.f32 %v1727_v29, %v3064_v19  ;;  %v1615_v15 = vmax.f32 %v1390_v56, %v1583_v23  ;;  %v654_v29 = vmul.f32 %v2694_v49, %v2866_v36 }
 0x1fd   : > { %v3242_v47 = vpop.permute.xlu0 %1923  ;;  %1649 = vrot.lane.b32.xlu1 %v3211_v27, %s2428_s18 }
 0x1fe   : > { %v1743_v34 = vmax.f32 %v1615_v15, %v3169_v37  ;;  %v1887_v39 = vmax.f32 %v1759_v7, %v3188_v30  ;;  %v2016_v33 = vmul.f32 %v2306_v46, %v3242_v47  ;;  %v2112_v7 = vmul.f32 %v2306_v46, %v3040_v48 }
 0x1ff   : > { %v3249_v12 = vpop.permute.xlu1 %1797  ;;  %1486 = vrot.lane.b32.xlu0 %v1423_v44, %s2426_s6  ;;  %v693_v61 = vadd.f32 %v2699_v51, %v654_v29  ;;  %v2128_v48 = vmul.f32 %v2314_v60, %v3060_v41 }
 0x200   : > { %v1775_v19 = vmax.f32 %v1743_v34, %v3074_v59  ;;  %v2048_v56 = vmax.f32 %v1887_v39, %v2016_v33  ;;  %v3267_v33 = vmax.f32 %v677_v4, 0.0  ;;  %v1424_v4 = vrot.slane %v3211_v27, 7 }
 0x201   : > { %v3256_v23 = vpop.permute.xlu0 %1955  ;;  %1681 = vrot.lane.b32.xlu1 %v3223_v63, %s2428_s18  ;;  %v3283_v29 = vmax.f32 %v693_v61, 0.0 }
 0x202   : > { %v2080_v15 = vmax.f32 %v2048_v56, %v3083_v26  ;;  %v1903_v44 = vmax.f32 %v1775_v19, %v3206_v6  ;;  %v2032_v34 = vmul.f32 %v2314_v60, %v3256_v23  ;;  %v1375_v26 = vmax.f32 %v2879_v45, %v3198_v10 }
 0x203   : > { %v3264_v39 = vpop.permute.xlu1 %1829  ;;  %1518 = vrot.lane.b32.xlu0 %v1455_v16, %s2426_s6  ;;  %v1391_v45 = vmax.f32 %v2887_v52, %v3214_v32 }
 0x204   : > { %v2144_v57 = vmax.f32 %v2080_v15, %v2112_v7  ;;  %v2064_v36 = vmax.f32 %v1903_v44, %v2032_v34  ;;  %v3876_v44 = vrot.slane %v3147_v31, 7 }
 0x205   : > { %v3270_v55 = vpop.permute.xlu0 %1925  ;;  %1809 = vrot.lane.b32.xlu1 %v3211_v27, %s2427_s17 }
 0x206   : > { %2177 = vst.msk [vmem:[%s3047_s22 + $0x20] sm:$0xff] %vm2172_vm4, %v2144_v57  ;;  %v2096_v16 = vmax.f32 %v2064_v36, %v3094_v42  ;;  %v1425_v34 = vsel %vm1402_vm2, %v3876_v44, %v1424_v4  ;;  %v1456_v57 = vrot.slane %v3223_v63, 7 }
 0x207   : > { %v1477_v46 = vpop.permute.xlu1 %1476  ;;  %1298 = vrot.lane.b32.xlu0 %v3267_v33, %s2426_s6 }
 0x208   : > { %v2160_v19 = vmax.f32 %v2096_v16, %v2128_v48  ;;  %v1600_v56 = vmax.f32 %v1375_v26, %v1477_v46  ;;  %v639_v48 = vmul.f32 %v2694_v49, %v2816_v9  ;;  %v3877_v46 = vrot.slane %v3164_v43, 7 }
 0x209   : > { %v3285_v7 = vpop.permute.xlu0 %1957  ;;  %1841 = vrot.lane.b32.xlu1 %v3223_v63, %s2427_s17 }
 0x20a   : > { %2193 = vst.msk [vmem:[%s3047_s22 + $0xa0] sm:$0xff] %vm2172_vm4, %v2160_v19  ;;  %v1728_v10 = vmax.f32 %v1600_v56, %v3225_v5  ;;  %v3317_v19 = vsel %vm1402_vm2, %v3877_v46, %v1456_v57 }
 0x20b   : > { %v1509_v60 = vpop.permute.xlu1 %1508  ;;  %1330 = vrot.lane.b32.xlu0 %v3283_v29, %s2426_s6 }
 0x20c   : > { %v1760_v15 = vmax.f32 %v1728_v10, %v3090_v3  ;;  %v1616_v61 = vmax.f32 %v1391_v45, %v1509_v60  ;;  %v678_v10 = vadd.f32 %v2699_v51, %v639_v48  ;;  %v655_v60 = vmul.f32 %v2694_v49, %v2900_v58 }
 0x20d   : > { %v3301_v36 = vpop.permute.xlu0 %1286  ;;  %1488 = vrot.lane.b32.xlu1 %v1425_v34, %s2426_s6 }
 0x20e   : > { %v1888_v52 = vmax.f32 %v1760_v15, %v3249_v12  ;;  %v1744_v32 = vmax.f32 %v1616_v61, %v3235_v8  ;;  %v694_v49 = vadd.f32 %v2699_v51, %v655_v60 }
 0x20f   : > { %v3308_v26 = vpop.permute.xlu1 %1927  ;;  %1651 = vrot.lane.b32.xlu0 %v3267_v33, %s2428_s18 }
 0x210   : > { %v2049_v3 = vmax.f32 %v1888_v52, %v3270_v55  ;;  %v1776_v16 = vmax.f32 %v1744_v32, %v3100_v14  ;;  %v3340_v52 = vmax.f32 %v678_v10, 0.0  ;;  %v3356_v48 = vmax.f32 %v694_v49, 0.0 }
 0x211   : > { %v3319_v56 = vpop.permute.xlu0 %1318  ;;  %1520 = vrot.lane.b32.xlu1 %v3317_v19, %s2426_s6  ;;  %v1376_v49 = vmax.f32 %v2919_v24, %v3301_v36 }
 0x212   : > { %v2081_v9 = vmax.f32 %v2049_v3, %v3109_v53  ;;  %v1904_v45 = vmax.f32 %v1776_v16, %v3264_v39  ;;  %v3853_v16 = vrot.slane %v3283_v29, 7  ;;  %v1428_v24 = vrot.slane %v3340_v52, 7 }
 0x213   : > { %v3328_v14 = vpop.permute.xlu1 %1959  ;;  %1683 = vrot.lane.b32.xlu0 %v3283_v29, %s2428_s18  ;;  %v1392_v36 = vmax.f32 %v2927_v11, %v3319_v56 }
 0x214   : > { %v2145_v15 = vmax.f32 %v2081_v9, %v3157_v28  ;;  %v2065_v61 = vmax.f32 %v1904_v45, %v3285_v7  ;;  %v752_v9 = vadd.s32 176, %v2972_v54  ;;  %v1459_v60 = vsel %vm1402_vm2, %v1456_v57, %v3853_v16  ;;  %v3390_v57 = vld [vmem:[%s3836_s2] ss:$0 sm:$0xff] }
 0x215   : > { %v3334_v44 = vpop.permute.xlu0 %1639  ;;  %1937 = vrot.lane.b32.xlu1 %v1425_v34, %s2427_s17  ;;  %v736_v34 = vadd.s32 48, %v2972_v54 }
 0x216   : > { %2178 = vst.msk [vmem:[%s3047_s22 + $0x28] sm:$0xff] %vm2172_vm4, %v2145_v15  ;;  %v2097_v53 = vmax.f32 %v2065_v61, %v3117_v2  ;;  %v1426_v2 = vrot.slane %v3267_v33, 7 }
 0x217   : > { %v3343_v58 = vpop.permute.xlu1 %1288  ;;  %1811 = vrot.lane.b32.xlu0 %v3267_v33, %s2427_s17  ;;  %v808_v46 = vand.u32 15, %v736_v34  ;;  %v640_v34 = vmul.f32 %v3390_v57, %v2824_v13  ;;  %v3407_v13 = vld [vmem:[%s3837_s3] ss:$0 sm:$0xff] }
 0x218   : > { %v2161_v28 = vmax.f32 %v2097_v53, %v3178_v22  ;;  %v1427_v22 = vsel %vm1402_vm2, %v1424_v4, %v1426_v2  ;;  %v920_v4 = vand.u32 15, %v752_v9 }
 0x219   : > { %v3348_v32 = vpop.permute.xlu0 %1671  ;;  %1300 = vrot.lane.b32.xlu1 %v3340_v52, %s2426_s6  ;;  %vm1152_vm8 = vcmp.ge.s32.totalorder %v808_v46, 1 }
 0x21a   : > { %2194 = vst.msk [vmem:[%s3047_s22 + $0xa8] sm:$0xff] %vm2172_vm4, %v2161_v28  ;;  %v2307_v61 = vsel %vm1152_vm8, 1.0, %v3874_v38  ;;  %vm1168_vm9 = vcmp.ge.s32.totalorder %v920_v4, 1 }
 0x21b   : > { %v3358_v51 = vpop.permute.xlu1 %1320  ;;  %1843 = vrot.lane.b32.xlu0 %v3283_v29, %s2427_s17  ;;  %v2315_v16 = vsel %vm1168_vm9, 1.0, %v3874_v38 }
 0x21d   : > { %v3362_v3 = vpop.permute.xlu0 %1799  ;;  %1332 = vrot.lane.b32.xlu1 %v3356_v48, %s2426_s6 }
 0x21f   : > { %v3369_v45 = vpop.permute.xlu1 %1641  ;;  %1490 = vrot.lane.b32.xlu0 %v1427_v22, %s2426_s6 }
 0x221   : > { %v3372_v10 = vpop.permute.xlu0 %1831  ;;  %1653 = vrot.lane.b32.xlu1 %v3340_v52, %s2428_s18 }
 0x223   : > { %v3379_v15 = vpop.permute.xlu1 %1673  ;;  %1522 = vrot.lane.b32.xlu0 %v1459_v60, %s2426_s6 }
 0x225   : > { %v1479_v53 = vpop.permute.xlu0 %1478  ;;  %1685 = vrot.lane.b32.xlu1 %v3356_v48, %s2428_s18 }
 0x226   : > { %v1569_v28 = vmul.f32 %v2307_v61, %v1479_v53 }
 0x227   : > { %v3394_v46 = vpop.permute.xlu1 %1801  ;;  %1939 = vrot.lane.b32.xlu0 %v1427_v22, %s2427_s17  ;;  %v679_v22 = vadd.f32 %v3407_v13, %v640_v34  ;;  %v1377_v34 = vmax.f32 %v2955_v40, %v3343_v58  ;;  %v2114_v40 = vmul.f32 %v2307_v61, %v3242_v47  ;;  %v2034_v58 = vmul.f32 %v2315_v16, %v3328_v14 }
 0x228   : > { %v1601_v9 = vmax.f32 %v1376_v49, %v1569_v28  ;;  %v656_v49 = vmul.f32 %v3390_v57, %v2925_v25  ;;  %v3878_v47 = vrot.slane %v3283_v29, 7 }
 0x229   : > { %v1511_v1 = vpop.permute.xlu0 %1510  ;;  %1813 = vrot.lane.b32.xlu1 %v3340_v52, %s2427_s17 }
 0x22a   : > { %v1729_v4 = vmax.f32 %v1601_v9, %v3334_v44  ;;  %v1585_v53 = vmul.f32 %v2315_v16, %v1511_v1  ;;  %v1429_v1 = vsel %vm1402_vm2, %v1426_v2, %v1428_v24  ;;  %v2018_v9 = vmul.f32 %v2307_v61, %v3308_v26 }
 0x22b   : > { %v3412_v28 = vpop.permute.xlu1 %1833  ;;  %1971 = vrot.lane.b32.xlu0 %v1459_v60, %s2427_s17  ;;  %v3426_v60 = vmax.f32 %v679_v22, 0.0  ;;  %v1393_v22 = vmax.f32 %v2966_v50, %v3358_v51 }
 0x22c   : > { %v1761_v41 = vmax.f32 %v1729_v4, %v3150_v20  ;;  %v1617_v11 = vmax.f32 %v1392_v36, %v1585_v53  ;;  %v695_v20 = vadd.f32 %v3407_v13, %v656_v49  ;;  %v1460_v4 = vrot.slane %v3356_v48, 7 }
 0x22d   : > { %v3416_v56 = vpop.permute.xlu0 %1290  ;;  %1845 = vrot.lane.b32.xlu1 %v3356_v48, %s2427_s17 }
 0x22e   : > { %v1889_v25 = vmax.f32 %v1761_v41, %v3362_v3  ;;  %v1745_v42 = vmax.f32 %v1617_v11, %v3348_v32  ;;  %v3449_v61 = vsel %vm1402_vm2, %v3878_v47, %v1460_v4 }
 0x22f   : > { %v1481_v36 = vpop.permute.xlu1 %1480  ;;  %1941 = vrot.lane.b32.xlu0 %v1429_v1, %s2427_s17 }
 0x230   : > { %v2050_v53 = vmax.f32 %v1889_v25, %v2018_v9  ;;  %v1777_v2 = vmax.f32 %v1745_v42, %v3169_v37  ;;  %v1602_v0 = vmax.f32 %v1377_v34, %v1481_v36  ;;  %v3442_v42 = vmax.f32 %v695_v20, 0.0 }
 0x231   : > { %v3434_v41 = vpop.permute.xlu0 %1322  ;;  %1492 = vrot.lane.b32.xlu1 %v1429_v1, %s2426_s6  ;;  %v1430_v1 = vrot.slane %v3426_v60, 7 }
 0x232   : > { %v2082_v49 = vmax.f32 %v2050_v53, %v3188_v30  ;;  %v1905_v11 = vmax.f32 %v1777_v2, %v3372_v10  ;;  %v1730_v9 = vmax.f32 %v1602_v0, %v3369_v45  ;;  %v2130_v0 = vmul.f32 %v2315_v16, %v3256_v23 }
 0x233   : > { %v1513_v37 = vpop.permute.xlu1 %1512  ;;  %1302 = vrot.lane.b32.xlu0 %v3426_v60, %s2426_s6  ;;  %v1462_v16 = vrot.slane %v3442_v42, 7 }
 0x234   : > { %v2146_v50 = vmax.f32 %v2082_v49, %v2114_v40  ;;  %v2066_v51 = vmax.f32 %v1905_v11, %v2034_v58  ;;  %v1762_v30 = vmax.f32 %v1730_v9, %v3225_v5  ;;  %v1618_v34 = vmax.f32 %v1393_v22, %v1513_v37 }
 0x235   : > { %v3453_v25 = vpop.permute.xlu0 %1643  ;;  %1524 = vrot.lane.b32.xlu1 %v3449_v61, %s2426_s6  ;;  %v641_v5 = vmul.f32 %v3390_v57, %v2830_v18  ;;  %v1431_v40 = vsel %vm1402_vm2, %v1428_v24, %v1430_v1  ;;  %v738_v24 = vadd.s32 64, %v2972_v54 }
 0x236   : > { %2179 = vst.msk [vmem:[%s3047_s22 + $0x30] sm:$0xff] %vm2172_vm4, %v2146_v50  ;;  %v2098_v20 = vmax.f32 %v2066_v51, %v3206_v6  ;;  %v1746_v36 = vmax.f32 %v1618_v34, %v3379_v15  ;;  %v1890_v53 = vmax.f32 %v1762_v30, %v3394_v46  ;;  %v754_v51 = vadd.s32 192, %v2972_v54 }
 0x237   : > { %v3465_v2 = vpop.permute.xlu1 %1929  ;;  %1334 = vrot.lane.b32.xlu0 %v3442_v42, %s2426_s6  ;;  %v680_v11 = vadd.f32 %v3407_v13, %v641_v5 }
 0x238   : > { %v2162_v58 = vmax.f32 %v2098_v20, %v2130_v0  ;;  %v1778_v23 = vmax.f32 %v1746_v36, %v3235_v8  ;;  %v2051_v6 = vmax.f32 %v1890_v53, %v3465_v2  ;;  %v657_v8 = vmul.f32 %v3390_v57, %v2999_v17 }
 0x239   : > { %v3475_v22 = vpop.permute.xlu0 %1675  ;;  %1943 = vrot.lane.b32.xlu1 %v1431_v40, %s2427_s17  ;;  %v822_v57 = vand.u32 15, %v738_v24  ;;  %v3502_v30 = vmax.f32 %v680_v11, 0.0  ;;  %v3880_v24 = vld [vmem:[#allocation12_spill] sm:$0xff] }
 0x23a   : > { %2195 = vst.msk [vmem:[%s3047_s22 + $0xb0] sm:$0xff] %vm2172_vm4, %v2162_v58  ;;  %v2083_v18 = vmax.f32 %v2051_v6, %v3249_v12  ;;  %v1906_v49 = vmax.f32 %v1778_v23, %v3412_v28  ;;  %v1463_v12 = vsel %vm1402_vm2, %v1460_v4, %v1462_v16  ;;  %v1394_v11 = vmax.f32 %v3880_v24, %v3434_v41 }
 0x23b   : > { %v3486_v9 = vpop.permute.xlu1 %1961  ;;  %1655 = vrot.lane.b32.xlu0 %v3426_v60, %s2428_s18  ;;  %vm1154_vm10 = vcmp.ge.s32.totalorder %v822_v57, 1 }
 0x23c   : > { %v2147_v37 = vmax.f32 %v2083_v18, %v3270_v55  ;;  %v2067_v47 = vmax.f32 %v1906_v49, %v3486_v9  ;;  %v696_v55 = vadd.f32 %v3407_v13, %v657_v8  ;;  %v2308_v13 = vsel %vm1154_vm10, 1.0, %v3874_v38 }
 0x23d   : > { %v3495_v50 = vpop.permute.xlu0 %1803  ;;  %1975 = vrot.lane.b32.xlu1 %v1463_v12, %s2427_s17 }
 0x23e   : > { %2180 = vst.msk [vmem:[%s3047_s22 + $0x38] sm:$0xff] %vm2172_vm4, %v2147_v37  ;;  %v2099_v17 = vmax.f32 %v2067_v47, %v3264_v39  ;;  %v934_v39 = vand.u32 15, %v754_v51  ;;  %v3514_v20 = vmax.f32 %v696_v55, 0.0 }
 0x23f   : > { %v1293_v34 = vpop.permute.xlu1 %1292  ;;  %1687 = vrot.lane.b32.xlu0 %v3442_v42, %s2428_s18 }
 0x240   : > { %v2163_v4 = vmax.f32 %v2099_v17, %v3285_v7  ;;  %v3879_v7 = vld [vmem:[#allocation11_spill] sm:$0xff]  ;;  %vm1170_vm11 = vcmp.ge.s32.totalorder %v934_v39, 1 }
 0x241   : > { %v3508_v0 = vpop.permute.xlu0 %1835  ;;  %1304 = vrot.lane.b32.xlu1 %v3502_v30, %s2426_s6  ;;  %v1378_v5 = vmax.f32 %v3879_v7, %v3416_v56  ;;  %v2316_v18 = vsel %vm1170_vm11, 1.0, %v3874_v38  ;;  %v2116_v7 = vmul.f32 %v2308_v13, %v3308_v26  ;;  %v3881_v26 = vld [vmem:[#allocation16_spill] sm:$0xff] }
 0x242   : > { %2196 = vst.msk [vmem:[%s3047_s22 + $0xb8] sm:$0xff] %vm2172_vm4, %v2163_v4 }
 0x243   : > { %v3516_v36 = vpop.permute.xlu1 %1324  ;;  %1815 = vrot.lane.b32.xlu0 %v3426_v60, %s2427_s17 }
 0x245   : > { %v1483_v53 = vpop.permute.xlu0 %1482  ;;  %1336 = vrot.lane.b32.xlu1 %v3514_v20, %s2426_s6 }
 0x246   : > { %v1571_v58 = vmul.f32 %v2308_v13, %v1483_v53  ;;  %v1432_v53 = vrot.slane %v3502_v30, 7 }
 0x247   : > { %v3525_v23 = vpop.permute.xlu1 %1645  ;;  %1847 = vrot.lane.b32.xlu0 %v3442_v42, %s2427_s17 }
 0x248   : > { %v1603_v6 = vmax.f32 %v1378_v5, %v1571_v58  ;;  %v1433_v24 = vsel %vm1402_vm2, %v1430_v1, %v1432_v53 }
 0x249   : > { %v1515_v49 = vpop.permute.xlu0 %1514  ;;  %1657 = vrot.lane.b32.xlu1 %v3502_v30, %s2428_s18 }
 0x24a   : > { %v1731_v8 = vmax.f32 %v1603_v6, %v3453_v25  ;;  %v1587_v56 = vmul.f32 %v2316_v18, %v1515_v49 }
 0x24b   : > { %v3535_v37 = vpop.permute.xlu1 %1677  ;;  %1494 = vrot.lane.b32.xlu0 %v1431_v40, %s2426_s6 }
 0x24c   : > { %v1763_v47 = vmax.f32 %v1731_v8, %v3334_v44  ;;  %v1619_v17 = vmax.f32 %v1394_v11, %v1587_v56  ;;  %v3882_v56 = vld [vmem:[#allocation2_spill] sm:$0xff] }
 0x24d   : > { %v3539_v57 = vpop.permute.xlu0 %1931  ;;  %1689 = vrot.lane.b32.xlu1 %v3514_v20, %s2428_s18 }
 0x24e   : > { %v1747_v51 = vmax.f32 %v1619_v17, %v3475_v22  ;;  %v1891_v55 = vmax.f32 %v1763_v47, %v3495_v50  ;;  %v2020_v41 = vmul.f32 %v2308_v13, %v3539_v57  ;;  %v2132_v13 = vmul.f32 %v2316_v18, %v3328_v14 }
 0x24f   : > { %v3546_v4 = vpop.permute.xlu1 %1805  ;;  %1526 = vrot.lane.b32.xlu0 %v1463_v12, %s2426_s6  ;;  %v3883_v47 = vrot.slane %v3882_v56, 7  ;;  %v1395_v14 = vmax.f32 %v3088_v62, %v3516_v36 }
 0x250   : > { %v1779_v40 = vmax.f32 %v1747_v51, %v3348_v32  ;;  %v2052_v39 = vmax.f32 %v1891_v55, %v2020_v41  ;;  %v1464_v41 = vrot.slane %v3514_v20, 7 }
 0x251   : > { %v3550_v44 = vpop.permute.xlu0 %1963  ;;  %1817 = vrot.lane.b32.xlu1 %v3502_v30, %s2427_s17  ;;  %v1435_v17 = vsel %vm1402_vm2, %v1432_v53, %v3883_v47 }
 0x252   : > { %v2084_v5 = vmax.f32 %v2052_v39, %v3362_v3  ;;  %v1907_v58 = vmax.f32 %v1779_v40, %v3508_v0  ;;  %v2036_v6 = vmul.f32 %v2316_v18, %v3550_v44  ;;  %v1379_v3 = vmax.f32 %v3881_v26, %v1293_v34 }
 0x253   : > { %v3559_v12 = vpop.permute.xlu1 %1837  ;;  %1849 = vrot.lane.b32.xlu0 %v3514_v20, %s2427_s17  ;;  %v1465_v53 = vsel %vm1402_vm2, %v1462_v16, %v1464_v41 }
 0x254   : > { %v2148_v32 = vmax.f32 %v2084_v5, %v2116_v7  ;;  %v2068_v49 = vmax.f32 %v1907_v58, %v2036_v6 }
 0x255   : > { %v3566_v11 = vpop.permute.xlu0 %1933  ;;  %1496 = vrot.lane.b32.xlu1 %v1433_v24, %s2426_s6 }
 0x256   : > { %2181 = vst.msk [vmem:[%s3047_s22 + $0x40] sm:$0xff] %vm2172_vm4, %v2148_v32  ;;  %v2100_v8 = vmax.f32 %v2068_v49, %v3372_v10 }
 0x257   : > { %v1485_v51 = vpop.permute.xlu1 %1484  ;;  %1498 = vrot.lane.b32.xlu0 %v1435_v17, %s2426_s6 }
 0x258   : > { %v2164_v1 = vmax.f32 %v2100_v8, %v2132_v13  ;;  %v1604_v55 = vmax.f32 %v1379_v3, %v1485_v51 }
 0x259   : > { %v1295_v40 = vpop.permute.xlu0 %1294  ;;  %1969 = vrot.lane.b32.xlu1 %v3317_v19, %s2427_s17 }
 0x25a   : > { %2197 = vst.msk [vmem:[%s3047_s22 + $0xc0] sm:$0xff] %vm2172_vm4, %v2164_v1  ;;  %v1732_v10 = vmax.f32 %v1604_v55, %v3525_v23 }
 0x25b   : > { %v1517_v34 = vpop.permute.xlu1 %1516  ;;  %1965 = vrot.lane.b32.xlu0 %v3162_v35, %s2427_s17 }
 0x25c   : > { %v1764_v18 = vmax.f32 %v1732_v10, %v3369_v45  ;;  %v1620_v39 = vmax.f32 %v1395_v14, %v1517_v34 }
 0x25d   : > { %v1327_v7 = vpop.permute.xlu0 %1326  ;;  %1528 = vrot.lane.b32.xlu1 %v1465_v53, %s2426_s6 }
 0x25e   : > { %v1892_v62 = vmax.f32 %v1764_v18, %v3546_v4  ;;  %v1748_v19 = vmax.f32 %v1620_v39, %v3535_v37  ;;  %v1396_v10 = vmax.f32 %v3164_v43, %v1327_v7 }
 0x25f   : > { %v3595_v36 = vpop.permute.xlu1 %1935  ;;  %1947 = vrot.lane.b32.xlu0 %v1435_v17, %s2427_s17  ;;  %v1380_v17 = vmax.f32 %v3147_v31, %v1295_v40 }
 0x260   : > { %v2053_v35 = vmax.f32 %v1892_v62, %v3566_v11  ;;  %v3600_v45 = vmax.f32 %v1748_v19, %v3379_v15  ;;  %v740_v15 = vadd.s32 80, %v2972_v54 }
 0x261   : > { %v3602_v5 = vpop.permute.xlu0 %1647  ;;  %1945 = vrot.lane.b32.xlu1 %v1433_v24, %s2427_s17 }
 0x262   : > { %v2085_v16 = vmax.f32 %v2053_v35, %v3394_v46  ;;  %v836_v24 = vand.u32 15, %v740_v15  ;;  %v756_v46 = vadd.s32 208, %v2972_v54 }
 0x263   : > { %v3606_v58 = vpop.permute.xlu1 %1967  ;;  %1973 = vrot.lane.b32.xlu0 %v3449_v61, %s2427_s17 }
 0x264   : > { %v2149_v6 = vmax.f32 %v2085_v16, %v3465_v2  ;;  %vm1156_vm12 = vcmp.ge.s32.totalorder %v836_v24, 1  ;;  %v948_v61 = vand.u32 15, %v756_v46 }
 0x265   : > { %v3611_v32 = vpop.permute.xlu0 %1679  ;;  %1977 = vrot.lane.b32.xlu1 %v1465_v53, %s2427_s17  ;;  %v2309_v8 = vsel %vm1156_vm12, 1.0, %v3874_v38 }
 0x266   : > { %2182 = vst.msk [vmem:[%s3047_s22 + $0x48] sm:$0xff] %vm2172_vm4, %v2149_v6  ;;  %vm1172_vm13 = vcmp.ge.s32.totalorder %v948_v61, 1  ;;  %v2022_v31 = vmul.f32 %v2309_v8, %v3595_v36  ;;  %v2118_v7 = vmul.f32 %v2309_v8, %v3539_v57 }
 0x267   : > { %v1297_v49 = vpop.permute.xlu1 %1296  ;;  %v2317_v41 = vsel %vm1172_vm13, 1.0, %v3874_v38 }
 0x268   : > { %v2038_v24 = vmul.f32 %v2317_v41, %v3606_v58 }
 0x269   : > { %v3617_v26 = vpop.permute.xlu0 %1807 }
 0x26b   : > { %v1329_v3 = vpop.permute.xlu1 %1328 }
 0x26c   : > { %v1397_v57 = vmax.f32 %v3223_v63, %v1329_v3 }
 0x26d   : > { %v3620_v13 = vpop.permute.xlu0 %1839 }
 0x26f   : > { %v3622_v2 = vpop.permute.xlu1 %1649 }
 0x271   : > { %v1487_v47 = vpop.permute.xlu0 %1486 }
 0x272   : > { %v1573_v51 = vmul.f32 %v2309_v8, %v1487_v47 }
 0x273   : > { %v3626_v1 = vpop.permute.xlu1 %1681 }
 0x274   : > { %v1605_v55 = vmax.f32 %v1380_v17, %v1573_v51 }
 0x275   : > { %v1519_v14 = vpop.permute.xlu0 %1518 }
 0x276   : > { %v1733_v34 = vmax.f32 %v1605_v55, %v3602_v5  ;;  %v1589_v18 = vmul.f32 %v2317_v41, %v1519_v14 }
 0x277   : > { %v3631_v39 = vpop.permute.xlu1 %1809 }
 0x278   : > { %v1765_v53 = vmax.f32 %v1733_v34, %v3453_v25  ;;  %v1621_v62 = vmax.f32 %v1396_v10, %v1589_v18  ;;  %v1381_v25 = vmax.f32 %v3211_v27, %v1297_v49 }
 0x279   : > { %v1299_v19 = vpop.permute.xlu0 %1298 }
 0x27a   : > { %v1893_v40 = vmax.f32 %v1765_v53, %v3617_v26  ;;  %v1749_v35 = vmax.f32 %v1621_v62, %v3611_v32  ;;  %v742_v53 = vadd.s32 96, %v2972_v54 }
 0x27b   : > { %v3637_v16 = vpop.permute.xlu1 %1841 }
 0x27c   : > { %v2054_v6 = vmax.f32 %v1893_v40, %v2022_v31  ;;  %v1781_v43 = vmax.f32 %v1749_v35, %v3475_v22  ;;  %v2134_v22 = vmul.f32 %v2317_v41, %v3550_v44  ;;  %v850_v62 = vand.u32 15, %v742_v53 }
 0x27d   : > { %v1331_v15 = vpop.permute.xlu0 %1330  ;;  %v758_v31 = vadd.s32 224, %v2972_v54 }
 0x27e   : > { %v2086_v46 = vmax.f32 %v2054_v6, %v3495_v50  ;;  %v1909_v61 = vmax.f32 %v1781_v43, %v3620_v13  ;;  %vm1158_vm14 = vcmp.ge.s32.totalorder %v850_v62, 1 }
 0x27f   : > { %v1489_v47 = vpop.permute.xlu1 %1488 }
 0x280   : > { %v2150_v17 = vmax.f32 %v2086_v46, %v2118_v7  ;;  %v2070_v51 = vmax.f32 %v1909_v61, %v2038_v24  ;;  %v1606_v55 = vmax.f32 %v1381_v25, %v1489_v47  ;;  %v962_v7 = vand.u32 15, %v758_v31 }
 0x281   : > { %v3645_v14 = vpop.permute.xlu0 %1651  ;;  %v2310_v24 = vsel %vm1158_vm14, 1.0, %v3874_v38  ;;  %v1382_v46 = vmax.f32 %v3267_v33, %v1299_v19 }
 0x282   : > { %2183 = vst.msk [vmem:[%s3047_s22 + $0x50] sm:$0xff] %vm2172_vm4, %v2150_v17  ;;  %v2102_v8 = vmax.f32 %v2070_v51, %v3508_v0  ;;  %v1734_v27 = vmax.f32 %v1606_v55, %v3622_v2  ;;  %vm1174_vm15 = vcmp.ge.s32.totalorder %v962_v7, 1  ;;  %v1398_v51 = vmax.f32 %v3283_v29, %v1331_v15 }
 0x283   : > { %v1521_v50 = vpop.permute.xlu1 %1520  ;;  %v2120_v53 = vmul.f32 %v2310_v24, %v3595_v36 }
 0x284   : > { %v2166_v49 = vmax.f32 %v2102_v8, %v2134_v22  ;;  %v1766_v10 = vmax.f32 %v1734_v27, %v3525_v23  ;;  %v1622_v34 = vmax.f32 %v1397_v57, %v1521_v50 }
 0x285   : > { %v3654_v18 = vpop.permute.xlu0 %1683 }
 0x286   : > { %2199 = vst.msk [vmem:[%s3047_s22 + $0xd0] sm:$0xff] %vm2172_vm4, %v2166_v49  ;;  %v1750_v63 = vmax.f32 %v1622_v34, %v3626_v1  ;;  %v1894_v44 = vmax.f32 %v1766_v10, %v3631_v39 }
 0x287   : > { %v3661_v3 = vpop.permute.xlu1 %1937 }
 0x288   : > { %v3664_v0 = vmax.f32 %v1750_v63, %v3535_v37  ;;  %v2055_v41 = vmax.f32 %v1894_v44, %v3661_v3 }
 0x289   : > { %v3667_v23 = vpop.permute.xlu0 %1811 }
 0x28a   : > { %v2087_v40 = vmax.f32 %v2055_v41, %v3546_v4 }
 0x28b   : > { %v1301_v35 = vpop.permute.xlu1 %1300 }
 0x28c   : > { %v2151_v6 = vmax.f32 %v2087_v40, %v3566_v11  ;;  %v2318_v11 = vsel %vm1174_vm15, 1.0, %v3874_v38 }
 0x28d   : > { %v3672_v43 = vpop.permute.xlu0 %1843 }
 0x28e   : > { %2184 = vst.msk [vmem:[%s3047_s22 + $0x58] sm:$0xff] %vm2172_vm4, %v2151_v6  ;;  %v1383_v6 = vmax.f32 %v3340_v52, %v1301_v35 }
 0x28f   : > { %v3676_v37 = vpop.permute.xlu1 %1332 }
 0x291   : > { %v1491_v25 = vpop.permute.xlu0 %1490 }
 0x292   : > { %v1575_v61 = vmul.f32 %v2310_v24, %v1491_v25 }
 0x293   : > { %v3680_v47 = vpop.permute.xlu1 %1653 }
 0x294   : > { %v1607_v4 = vmax.f32 %v1382_v46, %v1575_v61 }
 0x295   : > { %v1523_v17 = vpop.permute.xlu0 %1522 }
 0x296   : > { %v1735_v55 = vmax.f32 %v1607_v4, %v3645_v14  ;;  %v1591_v22 = vmul.f32 %v2318_v11, %v1523_v17 }
 0x297   : > { %v3685_v57 = vpop.permute.xlu1 %1685 }
 0x298   : > { %v1767_v8 = vmax.f32 %v1735_v55, %v3602_v5  ;;  %v1623_v27 = vmax.f32 %v1398_v51, %v1591_v22  ;;  %v748_v51 = vadd.s32 144, %v2972_v54 }
 0x299   : > { %v3688_v50 = vpop.permute.xlu0 %1939 }
 0x29a   : > { %v1751_v33 = vmax.f32 %v1623_v27, %v3654_v18  ;;  %v1895_v19 = vmax.f32 %v1767_v8, %v3667_v23  ;;  %v2024_v49 = vmul.f32 %v2310_v24, %v3688_v50  ;;  %v744_v27 = vadd.s32 112, %v2972_v54 }
 0x29b   : > { %v3693_v10 = vpop.permute.xlu1 %1813 }
 0x29c   : > { %v1783_v29 = vmax.f32 %v1751_v33, %v3611_v32  ;;  %v2056_v15 = vmax.f32 %v1895_v19, %v2024_v49  ;;  %v2136_v32 = vmul.f32 %v2318_v11, %v3606_v58  ;;  %v864_v49 = vand.u32 15, %v744_v27 }
 0x29d   : > { %v3696_v34 = vpop.permute.xlu0 %1971 }
 0x29e   : > { %v2088_v5 = vmax.f32 %v2056_v15, %v3617_v26  ;;  %v1911_v63 = vmax.f32 %v1783_v29, %v3672_v43  ;;  %v2040_v44 = vmul.f32 %v2318_v11, %v3696_v34  ;;  %v760_v29 = vadd.s32 240, %v2972_v54 }
 0x29f   : > { %v3702_v41 = vpop.permute.xlu1 %1845  ;;  %vm1160_vm1 = vcmp.ge.s32.totalorder %v864_v49, 1 }
 0x2a0   : > { %v2152_v62 = vmax.f32 %v2088_v5, %v2120_v53  ;;  %v2072_v31 = vmax.f32 %v1911_v63, %v2040_v44  ;;  %v3884_v5 = vld [vmem:[#allocation18_spill] sm:$0xff] }
 0x2a1   : > { %v3704_v40 = vpop.permute.xlu0 %1941 }
 0x2a2   : > { %2185 = vst.msk [vmem:[%s3047_s22 + $0x60] sm:$0xff] %vm2172_vm4, %v2152_v62  ;;  %v2104_v36 = vmax.f32 %v2072_v31, %v3620_v13  ;;  %v3885_v62 = vld [vmem:[#allocation14_spill] sm:$0xff]  ;;  %v3886_v31 = vld [vmem:[#allocation4_spill] sm:$0xff] }
 0x2a3   : > { %v1493_v7 = vpop.permute.xlu1 %1492 }
 0x2a4   : > { %v2168_v26 = vmax.f32 %v2104_v36, %v2136_v32  ;;  %v1608_v24 = vmax.f32 %v1383_v6, %v1493_v7  ;;  %v1388_v32 = vmax.f32 %v3886_v31, %v3885_v62  ;;  %v2311_v6 = vsel %vm1160_vm1, 1.0, %v3874_v38 }
 0x2a5   : > { %v1303_v25 = vpop.permute.xlu0 %1302  ;;  %v746_v36 = vadd.s32 128, %v2972_v54  ;;  %v1399_v31 = vmax.f32 %v3356_v48, %v3676_v37 }
 0x2a6   : > { %2201 = vst.msk [vmem:[%s3047_s22 + $0xe0] sm:$0xff] %vm2172_vm4, %v2168_v26  ;;  %v1736_v46 = vmax.f32 %v1608_v24, %v3680_v47  ;;  %v1384_v26 = vmax.f32 %v3426_v60, %v1303_v25 }
 0x2a7   : > { %v1525_v61 = vpop.permute.xlu1 %1524  ;;  %v878_v49 = vand.u32 15, %v746_v36 }
 0x2a8   : > { %v1768_v4 = vmax.f32 %v1736_v46, %v3622_v2  ;;  %v892_v2 = vand.u32 15, %v748_v51  ;;  %v3887_v46 = vld [vmem:[#allocation6_spill] sm:$0xff] }
 0x2a9   : > { %v1335_v17 = vpop.permute.xlu0 %1334  ;;  %vm3756_vm3 = vcmp.ge.s32.totalorder %v878_v49, 1 }
 0x2aa   : > { %v1896_v58 = vmax.f32 %v1768_v4, %v3693_v10  ;;  %vm1164_vm0 = vcmp.ge.s32.totalorder %v892_v2, 1  ;;  %v3888_v4 = vld [vmem:[#allocation3_spill] sm:$0xff]  ;;  %v1400_v54 = vmax.f32 %v3442_v42, %v1335_v17 }
 0x2ab   : > { %v3716_v52 = vpop.permute.xlu1 %1943  ;;  %v3733_v53 = vsel %vm1164_vm0, 1.0, %v3874_v38 }
 0x2ac   : > { %v2057_v35 = vmax.f32 %v1896_v58, %v3704_v40  ;;  %v1581_v63 = vmul.f32 %v3733_v53, %v3884_v5  ;;  %v1387_v58 = vmax.f32 %v3888_v4, %v3887_v46  ;;  %v2026_v17 = vmul.f32 %v2311_v6, %v3716_v52 }
 0x2ad   : > { %v3719_v13 = vpop.permute.xlu0 %1655  ;;  %v1624_v46 = vmax.f32 %v1399_v31, %v1525_v61 }
 0x2ae   : > { %v2089_v11 = vmax.f32 %v2057_v35, %v3631_v39  ;;  %v1613_v35 = vmax.f32 %v1388_v32, %v1581_v63 }
 0x2af   : > { %v1976_v55 = vpop.permute.xlu1 %1975 }
 0x2b0   : > { %v2153_v22 = vmax.f32 %v2089_v11, %v3661_v3  ;;  %v976_v3 = vand.u32 15, %v760_v29  ;;  %v1741_v60 = vmax.f32 %v1613_v35, %v3074_v59 }
 0x2b1   : > { %v1688_v8 = vpop.permute.xlu0 %1687 }
 0x2b2   : > { %2186 = vst.msk [vmem:[%s3047_s22 + $0x68] sm:$0xff] %vm2172_vm4, %v2153_v22  ;;  %vm1176_vm2 = vcmp.ge.s32.totalorder %v976_v3, 1  ;;  %v3889_v22 = vld [vmem:[#allocation10_spill] sm:$0xff] }
 0x2b3   : > { %v1305_v33 = vpop.permute.xlu1 %1304  ;;  %v1612_v27 = vmax.f32 %v1387_v58, %v3889_v22  ;;  %v2319_v2 = vsel %vm1176_vm2, 1.0, %v3874_v38  ;;  %v2122_v22 = vmul.f32 %v2311_v6, %v3688_v50 }
 0x2b4   : > { %v1385_v59 = vmax.f32 %v3502_v30, %v1305_v33  ;;  %v2312_v30 = vsel %vm3756_vm3, 1.0, %v3874_v38  ;;  %v2042_v33 = vmul.f32 %v2319_v2, %v1976_v55 }
 0x2b5   : > { %v3727_v19 = vpop.permute.xlu0 %1815  ;;  %v1740_v36 = vmax.f32 %v1612_v27, %v2968_v21 }
 0x2b7   : > { %v3730_v15 = vpop.permute.xlu1 %1336 }
 0x2b9   : > { %v1848_v39 = vpop.permute.xlu0 %1847 }
 0x2bb   : > { %v1658_v44 = vpop.permute.xlu1 %1657 }
 0x2bc   : > { %v1772_v4 = vmax.f32 %v1740_v36, %v1658_v44 }
 0x2bd   : > { %v1495_v7 = vpop.permute.xlu0 %1494 }
 0x2be   : > { %v1577_v24 = vmul.f32 %v2311_v6, %v1495_v7  ;;  %v3895_v6 = vld [vmem:[#allocation17_spill] sm:$0xff] }
 0x2bf   : > { %v3744_v11 = vpop.permute.xlu1 %1689 }
 0x2c0   : > { %v1609_v51 = vmax.f32 %v1384_v26, %v1577_v24 }
 0x2c1   : > { %v1527_v29 = vpop.permute.xlu0 %1526 }
 0x2c2   : > { %v1737_v3 = vmax.f32 %v1609_v51, %v3719_v13  ;;  %v1593_v5 = vmul.f32 %v2319_v2, %v1527_v29  ;;  %v3893_v51 = vld [vmem:[#allocation5_spill] sm:$0xff] }
 0x2c3   : > { %v3751_v25 = vpop.permute.xlu1 %1817  ;;  %v1386_v21 = vmax.f32 %v3882_v56, %v3893_v51  ;;  %v1910_v56 = vmax.f32 %v3664_v0, %v3637_v16  ;;  %v1401_v0 = vmax.f32 %v3514_v20, %v3730_v15 }
 0x2c4   : > { %v1769_v63 = vmax.f32 %v1737_v3, %v3645_v14  ;;  %v1625_v62 = vmax.f32 %v1400_v54, %v1593_v5  ;;  %v3892_v14 = vld [vmem:[#allocation7_spill] sm:$0xff]  ;;  %v3894_v54 = vld [vmem:[#allocation9_spill] sm:$0xff] }
 0x2c5   : > { %v3761_v42 = vpop.permute.xlu0 %1849  ;;  %v1773_v24 = vmax.f32 %v1741_v60, %v3892_v14  ;;  %v1900_v3 = vmax.f32 %v1772_v4, %v3894_v54 }
 0x2c6   : > { %v1897_v7 = vmax.f32 %v1769_v63, %v3727_v19  ;;  %v1753_v26 = vmax.f32 %v1625_v62, %v1688_v8  ;;  %v2138_v63 = vmul.f32 %v2319_v2, %v3696_v34 }
 0x2c7   : > { %v1497_v48 = vpop.permute.xlu1 %1496  ;;  %v1901_v5 = vmax.f32 %v1773_v24, %v3895_v6 }
 0x2c8   : > { %v2058_v37 = vmax.f32 %v1897_v7, %v2026_v17  ;;  %v1785_v58 = vmax.f32 %v1753_v26, %v3654_v18  ;;  %v1610_v35 = vmax.f32 %v1385_v59, %v1497_v48  ;;  %v1752_v18 = vmax.f32 %v1624_v46, %v3685_v57  ;;  %v3897_v59 = vld [vmem:[#allocation13_spill] sm:$0xff] }
 0x2c9   : > { %v1499_v8 = vpop.permute.xlu0 %1498  ;;  %v2061_v7 = vmax.f32 %v1900_v3, %v3897_v59 }
 0x2ca   : > { %v2090_v27 = vmax.f32 %v2058_v37, %v3667_v23  ;;  %v1913_v61 = vmax.f32 %v1785_v58, %v1848_v39  ;;  %v1738_v49 = vmax.f32 %v1610_v35, %v1658_v44  ;;  %v1579_v29 = vmul.f32 %v2312_v30, %v1499_v8  ;;  %v3896_v39 = vld [vmem:[#allocation15_spill] sm:$0xff] }
 0x2cb   : > { %v1970_v50 = vpop.permute.xlu1 %1969  ;;  %v1908_v23 = vmax.f32 %v3600_v45, %v3559_v12  ;;  %v2030_v44 = vmul.f32 %v3733_v53, %v3896_v39  ;;  %v1784_v2 = vmax.f32 %v1752_v18, %v3626_v1  ;;  %v2093_v46 = vmax.f32 %v2061_v7, %v3751_v25  ;;  %v3898_v1 = vld [vmem:[#allocation8_spill] sm:$0xff] }
 0x2cc   : > { %v2154_v60 = vmax.f32 %v2090_v27, %v2122_v22  ;;  %v2074_v38 = vmax.f32 %v1913_v61, %v2042_v33  ;;  %v1611_v55 = vmax.f32 %v1386_v21, %v1579_v29  ;;  %v1770_v62 = vmax.f32 %v1738_v49, %v3680_v47 }
 0x2cd   : > { %v2071_v31 = vmax.f32 %v1910_v56, %v1970_v50  ;;  %v1966_v32 = vpop.permute.xlu0 %1965  ;;  %v2062_v47 = vmax.f32 %v1901_v5, %v2030_v44  ;;  %v2124_v33 = vmul.f32 %v2312_v30, %v3716_v52 }
 0x2ce   : > { %2187 = vst.msk [vmem:[%s3047_s22 + $0x70] sm:$0xff] %vm2172_vm4, %v2154_v60  ;;  %v2106_v36 = vmax.f32 %v2074_v38, %v3672_v43  ;;  %v1739_v17 = vmax.f32 %v1611_v55, %v3892_v14  ;;  %v2069_v45 = vmax.f32 %v1908_v23, %v1966_v32  ;;  %v1898_v48 = vmax.f32 %v1770_v62, %v3751_v25 }
 0x2cf   : > { %v2103_v26 = vmax.f32 %v2071_v31, %v3559_v12  ;;  %v1529_v34 = vpop.permute.xlu1 %1528  ;;  %v1912_v25 = vmax.f32 %v1784_v2, %v3702_v41 }
 0x2d0   : > { %v2170_v24 = vmax.f32 %v2106_v36, %v2138_v63  ;;  %v1771_v20 = vmax.f32 %v1739_v17, %v3719_v13  ;;  %v2101_v15 = vmax.f32 %v2069_v45, %v3412_v28  ;;  %v1626_v43 = vmax.f32 %v1401_v0, %v1529_v34 }
 0x2d1   : > { %v2167_v14 = vmax.f32 %v2103_v26, %v1966_v32  ;;  %v1948_v4 = vpop.permute.xlu0 %1947  ;;  %v2094_v28 = vmax.f32 %v2062_v47, %v3898_v1 }
 0x2d2   : > { %2203 = vst.msk [vmem:[%s3047_s22 + $0xf0] sm:$0xff] %vm2172_vm4, %v2170_v24  ;;  %v2165_v12 = vmax.f32 %v2101_v15, %v3486_v9  ;;  %v1754_v37 = vmax.f32 %v1626_v43, %v3744_v11  ;;  %v1899_v58 = vmax.f32 %v1771_v20, %v3898_v1  ;;  %v2028_v35 = vmul.f32 %v2312_v30, %v1948_v4 }
 0x2d3   : > { %2200 = vst.msk [vmem:[%s3047_s22 + $0xd8] sm:$0xff] %vm2172_vm4, %v2167_v14  ;;  %v2126_v13 = vmul.f32 %v3733_v53, %v1948_v4  ;;  %v1946_v51 = vpop.permute.xlu1 %1945 }
 0x2d4   : > { %2198 = vst.msk [vmem:[%s3047_s22 + $0xc8] sm:$0xff] %vm2172_vm4, %v2165_v12  ;;  %v2060_v21 = vmax.f32 %v1899_v58, %v2028_v35  ;;  %v2059_v9 = vmax.f32 %v1898_v48, %v1946_v51  ;;  %v2157_v22 = vmax.f32 %v2093_v46, %v1946_v51  ;;  %v1786_v11 = vmax.f32 %v1754_v37, %v3685_v57 }
 0x2d5   : > { %v2158_v8 = vmax.f32 %v2094_v28, %v2126_v13  ;;  %v1974_v27 = vpop.permute.xlu0 %1973 }
 0x2d6   : > { %v2092_v53 = vmax.f32 %v2060_v21, %v3727_v19  ;;  %v2091_v61 = vmax.f32 %v2059_v9, %v3693_v10  ;;  %2190 = vst.msk [vmem:[%s3047_s22 + $0x88] sm:$0xff] %vm2172_vm4, %v2157_v22  ;;  %v2073_v49 = vmax.f32 %v1912_v25, %v1974_v27  ;;  %v1914_v29 = vmax.f32 %v1786_v11, %v3761_v42 }
 0x2d7   : > { %2191 = vst.msk [vmem:[%s3047_s22 + $0x90] sm:$0xff] %vm2172_vm4, %v2158_v8  ;;  %v1978_v18 = vpop.permute.xlu1 %1977 }
 0x2d8   : > { %v2156_v57 = vmax.f32 %v2092_v53, %v2124_v33  ;;  %v2155_v54 = vmax.f32 %v2091_v61, %v3704_v40  ;;  %v2105_v52 = vmax.f32 %v2073_v49, %v3637_v16  ;;  %v2075_v30 = vmax.f32 %v1914_v29, %v1978_v18 }
 0x2da   : > { %2189 = vst.msk [vmem:[%s3047_s22 + $0x80] sm:$0xff] %vm2172_vm4, %v2156_v57  ;;  %2188 = vst.msk [vmem:[%s3047_s22 + $0x78] sm:$0xff] %vm2172_vm4, %v2155_v54  ;;  %v2169_v10 = vmax.f32 %v2105_v52, %v1970_v50  ;;  %v2107_v19 = vmax.f32 %v2075_v30, %v3702_v41 }
 0x2dc   : > { %2202 = vst.msk [vmem:[%s3047_s22 + $0xe8] sm:$0xff] %vm2172_vm4, %v2169_v10  ;;  %v2171_v3 = vmax.f32 %v2107_v19, %v1974_v27 }
 0x2de   : > { %2204 = vst.msk [vmem:[%s3047_s22 + $0xf8] sm:$0xff] %vm2172_vm4, %v2171_v3 }
 0x2df PF: > { %s14_s15 = sadd.s32 1, %s2422_s15  }
 0x2e0   : > { %p11_p4 = scmp.ge.s32.totalorder %s14_s15, 4  }
 0x2e2   :  { %13 = sbr.rel (!%p11_p4) target bundleno = 1 (0x1), region = 66 }

// kernel: densenet_forward.3
= control target key start
LH: loop header
LB: loop body
LE: loop exit
PB: predicated region body
PF: predicated region fallthrough
CT: control target
= control target key end

     0   :  { %s9718_s6 = smov 1   ;;  %s9719_s10 = smov 2   ;;  %s13066_s0 = inlined_call_operand.smem [shape: u32[42], index: -1, kind: input, shape index: {}] }
   0x1   :  { %s9782_s5 = sld [smem:[%s13066_s0]]   ;;  %s9720_s14 = smov 3  }
   0x2   :  { %s9787_s9 = sld [smem:[%s13066_s0 + %s9718_s6]]   ;;  %s9721_s18 = smov 4  }
   0x3   :  { %s9792_s13 = sld [smem:[%s13066_s0 + %s9719_s10]]   ;;  %s9722_s22 = smov 5  }
   0x4   :  { %s9797_s17 = sld [smem:[%s13066_s0 + %s9720_s14]]   ;;  %s9723_s26 = smov 6  }
   0x5   :  { %s9802_s21 = sld [smem:[%s13066_s0 + %s9721_s18]]   ;;  %s9724_s30 = smov 7  }
   0x6   :  { %s9807_s25 = sld [smem:[%s13066_s0 + %s9722_s22]]   ;;  %s9725_s4 = smov 8  }
   0x7   :  { %13177 = sst [smem:[#allocation12_spill]] %s9782_s5  ;;  %s9726_s10 = smov 9  }
   0x8   :  { %s9812_s29 = sld [smem:[%s13066_s0 + %s9723_s26]]   ;;  %s9727_s15 = smov 10  }
   0x9   :  { %s9817_s3 = sld [smem:[%s13066_s0 + %s9724_s30]]   ;;  %s9728_s20 = smov 11  }
   0xa   :  { %s9822_s8 = sld [smem:[%s13066_s0 + %s9725_s4]]   ;;  %s9729_s26 = smov 12  }
   0xb   :  { %s9827_s14 = sld [smem:[%s13066_s0 + %s9726_s10]]   ;;  %s9730_s1 = smov 13  }
   0xc   :  { %s9832_s19 = sld [smem:[%s13066_s0 + %s9727_s15]]   ;;  %s9731_s7 = smov 14  }
   0xd   :  { %s9837_s24 = sld [smem:[%s13066_s0 + %s9728_s20]]   ;;  %s9732_s15 = smov 15  }
   0xe   :  { %s9842_s30 = sld [smem:[%s13066_s0 + %s9729_s26]]   ;;  %s9733_s22 = smov 16  }
   0xf   :  { %13178 = sst [smem:[#allocation13_spill]] %s9817_s3  ;;  %s9734_s28 = smov 17  }
  0x10   :  { %13179 = sst [smem:[#allocation14_spill]] %s9822_s8 }
  0x11   :  { %s9847_s6 = sld [smem:[%s13066_s0 + %s9730_s1]]  }
  0x12   :  { %s9852_s12 = sld [smem:[%s13066_s0 + %s9731_s7]]   ;;  %s9735_s7 = smov 18  }
  0x13   :  { %s9857_s20 = sld [smem:[%s13066_s0 + %s9732_s15]]   ;;  %s9736_s15 = smov 19  }
  0x14   :  { %13180 = sst [smem:[#allocation15_spill]] %s9842_s30 }
  0x15   :  { %s9862_s27 = sld [smem:[%s13066_s0 + %s9733_s22]]   ;;  %s9737_s22 = smov 20  }
  0x16   :  { %s9867_s4 = sld [smem:[%s13066_s0 + %s9734_s28]]   ;;  %s9738_s28 = smov 21  }
  0x17   :  { %13181 = sst [smem:[#allocation16_spill]] %s9847_s6 }
  0x18   :  { %13182 = sst [smem:[#allocation17_spill]] %s9852_s12 }
  0x19   :  { %13183 = sst [smem:[#allocation18_spill]] %s9857_s20 }
  0x1a   :  { %s9872_s12 = sld [smem:[%s13066_s0 + %s9735_s7]]   ;;  %s9739_s7 = smov 22  }
  0x1b   :  { %13184 = sst [smem:[#allocation19_spill]] %s9862_s27 }
  0x1c   :  { %13185 = sst [smem:[#allocation20_spill]] %s9867_s4 }
  0x1d   :  { %s9877_s20 = sld [smem:[%s13066_s0 + %s9736_s15]]   ;;  %s9740_s15 = smov 23  }
  0x1e   :  { %s9882_s27 = sld [smem:[%s13066_s0 + %s9737_s22]]   ;;  %s9741_s22 = smov 24  }
  0x1f   :  { %s9887_s4 = sld [smem:[%s13066_s0 + %s9738_s28]]   ;;  %s9742_s28 = smov 25  }
  0x20   :  { %13186 = sst [smem:[#allocation21_spill]] %s9872_s12 }
  0x21   :  { %s9892_s12 = sld [smem:[%s13066_s0 + %s9739_s7]]   ;;  %s9743_s7 = smov 26  }
  0x23   :  { %13187 = sst [smem:[#allocation22_spill]] %s9877_s20 }
  0x24   :  { %13188 = sst [smem:[#allocation23_spill]] %s9882_s27 }
  0x25   :  { %13189 = sst [smem:[#allocation24_spill]] %s9887_s4 }
  0x26   :  { %s9897_s20 = sld [smem:[%s13066_s0 + %s9740_s15]]   ;;  %s9744_s15 = smov 27  }
  0x27   :  { %13190 = sst [smem:[#allocation25_spill]] %s9892_s12 }
  0x28   :  { %s9902_s27 = sld [smem:[%s13066_s0 + %s9741_s22]]   ;;  %s9745_s22 = smov 28  }
  0x29   :  { %s9907_s4 = sld [smem:[%s13066_s0 + %s9742_s28]]   ;;  %s9746_s28 = smov 29  }
  0x2a   :  { %s9912_s12 = sld [smem:[%s13066_s0 + %s9743_s7]]   ;;  %s9747_s7 = smov 30  }
  0x2c   :  { %13191 = sst [smem:[#allocation26_spill]] %s9897_s20 }
  0x2d   :  { %s9917_s20 = sld [smem:[%s13066_s0 + %s9744_s15]]   ;;  %s9748_s15 = smov 31  }
  0x2e   :  { %13192 = sst [smem:[#allocation27_spill]] %s9902_s27 }
  0x2f   :  { %13193 = sst [smem:[#allocation28_spill]] %s9907_s4 }
  0x30   :  { %13194 = sst [smem:[#allocation29_spill]] %s9912_s12 }
  0x31   :  { %s9922_s27 = sld [smem:[%s13066_s0 + %s9745_s22]]   ;;  %s9749_s22 = smov 32  }
  0x32   :  { %s9927_s4 = sld [smem:[%s13066_s0 + %s9746_s28]]   ;;  %s9750_s28 = smov 33  }
  0x33   :  { %13195 = sst [smem:[#allocation30_spill]] %s9917_s20 }
  0x34   :  { %s9932_s12 = sld [smem:[%s13066_s0 + %s9747_s7]]   ;;  %s9751_s7 = smov 34  }
  0x35   :  { %s9937_s20 = sld [smem:[%s13066_s0 + %s9748_s15]]   ;;  %s9752_s15 = smov 35  }
  0x37   :  { %13196 = sst [smem:[#allocation31_spill]] %s9922_s27 }
  0x38   :  { %13197 = sst [smem:[#allocation32_spill]] %s9927_s4 }
  0x39   :  { %s9942_s27 = sld [smem:[%s13066_s0 + %s9749_s22]]   ;;  %s9753_s22 = smov 36  }
  0x3a   :  { %13198 = sst [smem:[#allocation33_spill]] %s9932_s12 }
  0x3b   :  { %13199 = sst [smem:[#allocation34_spill]] %s9937_s20 }
  0x3c   :  { %s9947_s4 = sld [smem:[%s13066_s0 + %s9750_s28]]   ;;  %s9754_s28 = smov 37  }
  0x3d   :  { %s9952_s12 = sld [smem:[%s13066_s0 + %s9751_s7]]   ;;  %s9755_s7 = smov 38  }
  0x3e   :  { %s9957_s20 = sld [smem:[%s13066_s0 + %s9752_s15]]   ;;  %s9756_s15 = smov 39  }
  0x3f   :  { %13200 = sst [smem:[#allocation35_spill]] %s9942_s27 }
  0x40   :  { %s9962_s27 = sld [smem:[%s13066_s0 + %s9753_s22]]   ;;  %s9757_s22 = smov 40  }
  0x42   :  { %13201 = sst [smem:[#allocation36_spill]] %s9947_s4 }
  0x43   :  { %13202 = sst [smem:[#allocation37_spill]] %s9952_s12 }
  0x44   :  { %13203 = sst [smem:[#allocation38_spill]] %s9957_s20 }
  0x45   :  { %s9967_s4 = sld [smem:[%s13066_s0 + %s9754_s28]]   ;;  %s9758_s28 = smov 41  }
  0x46   :  { %13204 = sst [smem:[#allocation39_spill]] %s9962_s27 }
  0x47   :  { %s9972_s12 = sld [smem:[%s13066_s0 + %s9755_s7]]  }
  0x48   :  { %s9977_s20 = sld [smem:[%s13066_s0 + %s9756_s15]]  }
  0x49   :  { %s9982_s27 = sld [smem:[%s13066_s0 + %s9757_s22]]  }
  0x4a   :  { %s9987_s30 = sld [smem:[%s13066_s0 + %s9758_s28]]  }
  0x4b   :  { %13205 = sst [smem:[#allocation40_spill]] %s9967_s4 }
  0x4c   :  { %88 = vsyncpa [#allocation3], 0 }
  0x4d   :  { %89 = vsyncpa [#allocation6], 0 }
  0x4e   :  { %90 = vsyncpa [#allocation4], 0 }
  0x4f   :  { %92 = vsyncpa [#allocation4 + $0x1], 0  ;;  %s9989_s7 = smov 0   ;;  %s9991_s10 = smov 0  }
  0x50   :  { %s9993_s11 = smov 0   ;;  %s9995_s15 = smov 0  }
  0x51 LB: > { %s13206_s6 = sld [smem:[#allocation16_spill]]  ;;  %13208 = sst [smem:[#allocation41_spill]] %s9704_s7  ;;  %s9708_s10 = sphi %s9991_s10, %s13534_s10   ;;  %s9704_s7 = sphi %s9989_s7, %s13533_s7   ;;  %s9716_s15 = sphi %s9995_s15, %s13530_s15   ;;  %s9712_s11 = sphi %s9993_s11, %s13532_s11  }
  0x52   : > { %s13207_s4 = sld [smem:[#allocation40_spill]]  ;;  %13209 = sst [smem:[#allocation42_spill]] %s9712_s11 }
  0x53   : > { %s10010_s0 = sadd.s32 4294967295, %s9716_s15   ;;  %s7599_s16 = sadd.s32 4294967294, %s9716_s15  }
  0x54   : > { %s10014_s18 = sadd.s32 1, %s9716_s15   ;;  %s971_s22 = sadd.s32 1, %s9712_s11 }
  0x55   : > { %13210 = sst [smem:[#allocation43_spill]] %s10014_s18  ;;  %s968_s23 = ssub.s32 %s9716_s15, %s10014_s18 }
  0x56   : > { %p981_p0 = scmp.ne.s32.totalorder %s9712_s11, %s9708_s10  ;;  %p969_p1 = scmp.eq.s32.totalorder %s968_s23, 0 }
  0x57   : > { %p982_p2 = scmp.eq.s32.totalorder %s10010_s0, 1  ;;  %p987_p3 = scmp.ne.s32.totalorder %s9708_s10, %s9704_s7 }
  0x58   : > { %p988_p4 = scmp.eq.s32.totalorder %s7599_s16, 1  ;;  %p7600_p7 = scmp.ge.s32.totalorder %s9716_s15, 1 }
  0x59   : > { %s10025_s26 = scalar_select %p969_p1, %s9712_s11, %s971_s22  }
  0x5a   : > { %p10027_p5 = por %p982_p2, %p981_p0  ;;  %p10031_p6 = por %p988_p4, %p987_p3 }
  0x5b   : > { %13211 = sst [smem:[#allocation44_spill]] %s10025_s26  ;;  %p995_p8 = scmp.lt.s32.totalorder %s9716_s15, 3 }
  0x5c   : > { %s13212_s28 = scalar_select %p10027_p5, 1, 0 }
  0x5d   : > { %s13213_s1 = scalar_select %p10031_p6, 1, 0 }
  0x5e   : > { %p13080_p9 = scmp.eq.s32.totalorder %s10010_s0, 0  ;;  %p10038_p10 = pnand %p7600_p7, %p995_p8 }
  0x5f   : > { %13214 = sst [smem:[#allocation45_spill]] %s13213_s1  ;;  %s9759_s16 = smov [#allocation5]  }
  0x60   : > { %s13215_s2 = scalar_select %p10038_p10, 1, 0 }
  0x61   : > { %s1127_s22 = sshll.u32 %s9759_s16, 4  ;;  %p8795_p11 = pneg %p10038_p10  ;;  %s1128_s22 = int_to_ptr.vmem [resolvable:$true] %s1127_s22 }
  0x62   : > { %s9760_s23 = smov [#allocation2]   ;;  %s9761_s18 = smov [#allocation7]  }
  0x63   : > { %s1116_s26 = sshll.u32 %s9760_s23, 4  ;;  %p10046_p12 = pnand %p13080_p9, %p8795_p11  ;;  %s10050_s26 = int_to_ptr.vmem [resolvable:$true] %s1116_s26 }
  0x64   : > { %s1141_s1 = sshll.u32 %s9761_s18, 4  ;;  %s9562_s7 = scalar_lea.hbm %s9972_s12, 16  ;;  %s10052_s1 = int_to_ptr.vmem [resolvable:$true] %s1141_s1 }
  0x65   : > { %p9563_p13 = scmp.ne.s32.totalorder %s9972_s12, %s9562_s7  ;;  %p10058_p0 = pneg %p10046_p12 }
  0x66   : > { %p9569_p3 = scmp.lt.u32.totalorder %s9562_s7, %s9972_s12 }
  0x67   : > { %p9565_p1 = pnand %p10058_p0, %p9563_p13 }
  0x69   : > { %p9566_p2 = pneg %p9565_p1 }
  0x6b   : > { %p9571_p4 = pnand %p9569_p3, %p9566_p2 }
  0x6d   : > { %9574 = shalt.err (!%p9571_p4)
}
  0x6e   : > { %s9575_s23 = scalar_lea.vmem %s1128_s22, 16  ;;  %s9582_s18 = scalar_lea.vmem %s1128_s22, 32 }
  0x6f   : > { %p9576_p7 = scmp.ne.s32.totalorder %s1128_s22, %s9575_s23  ;;  %p9583_p9 = scmp.lt.s32.totalorder %s1128_s22, %s1128_s22 }
  0x70   : > { %p9584_p6 = scmp.lt.s32.totalorder %s9582_s18, %s9575_s23 }
  0x71   : > { %p9578_p8 = pnand %p9576_p7, %p10058_p0 }
  0x72   : > { %p9585_p5 = por %p9584_p6, %p9583_p9 }
  0x73   : > { %p9579_p11 = pneg %p9578_p8 }
  0x75   : > { %p9586_p10 = pnand %p9585_p5, %p9579_p11 }
  0x77   : > { %9589 = shalt.err (!%p9586_p10)
}
  0x78   : > { %8801 = dma.hbm_to_vmem [thread:$0]  (!%p10046_p12), %s9972_s12, 16, %s1128_s22, [#allocation6]  }
  0x79   : > { %s9590_s7 = scalar_lea.hbm %s13207_s4, 16 }
  0x7a   : > { %p9591_p13 = scmp.ne.s32.totalorder %s13207_s4, %s9590_s7  ;;  %p9597_p3 = scmp.lt.u32.totalorder %s9590_s7, %s13207_s4 }
  0x7c   : > { %p9593_p1 = pnand %p9591_p13, %p10058_p0 }
  0x7e   : > { %p9594_p2 = pneg %p9593_p1 }
  0x80   : > { %p9599_p4 = pnand %p9597_p3, %p9594_p2 }
  0x82   : > { %9602 = shalt.err (!%p9599_p4)
}
  0x83   : > { %s9603_s23 = scalar_lea.vmem %s10050_s26, 16  ;;  %s9610_s18 = scalar_lea.vmem %s10050_s26, 32 }
  0x84   : > { %p9604_p5 = scmp.ne.s32.totalorder %s10050_s26, %s9603_s23  ;;  %p9611_p10 = scmp.lt.s32.totalorder %s10050_s26, %s10050_s26 }
  0x85   : > { %p9612_p7 = scmp.lt.s32.totalorder %s9610_s18, %s9603_s23 }
  0x86   : > { %p9606_p6 = pnand %p9604_p5, %p10058_p0 }
  0x87   : > { %p9613_p8 = por %p9612_p7, %p9611_p10 }
  0x88   : > { %p9607_p9 = pneg %p9606_p6 }
  0x8a   : > { %p9614_p11 = pnand %p9613_p8, %p9607_p9 }
  0x8c   : > { %9617 = shalt.err (!%p9614_p11)
}
  0x8d   : > { %8798 = dma.hbm_to_vmem [thread:$0]  (!%p10046_p12), %s13207_s4, 16, %s10050_s26, [#allocation3]  }
  0x8e   : > { %s9618_s22 = scalar_lea.hbm %s9982_s27, 16 }
  0x8f   : > { %p9619_p13 = scmp.ne.s32.totalorder %s9982_s27, %s9618_s22  ;;  %p9625_p3 = scmp.lt.u32.totalorder %s9618_s22, %s9982_s27 }
  0x91   : > { %p9621_p1 = pnand %p9619_p13, %p10058_p0 }
  0x93   : > { %p9622_p2 = pneg %p9621_p1 }
  0x95   : > { %p9627_p4 = pnand %p9625_p3, %p9622_p2 }
  0x97   : > { %9630 = shalt.err (!%p9627_p4)
}
  0x98   : > { %s9631_s7 = scalar_lea.vmem %s10052_s1, 16  ;;  %s9638_s23 = scalar_lea.vmem %s10052_s1, 32 }
  0x99   : > { %p9632_p5 = scmp.ne.s32.totalorder %s10052_s1, %s9631_s7  ;;  %p9639_p10 = scmp.lt.s32.totalorder %s10052_s1, %s10052_s1 }
  0x9a   : > { %p9640_p7 = scmp.lt.s32.totalorder %s9638_s23, %s9631_s7 }
  0x9b   : > { %p9634_p6 = pnand %p9632_p5, %p10058_p0 }
  0x9c   : > { %p9641_p8 = por %p9640_p7, %p9639_p10 }
  0x9d   : > { %p9635_p9 = pneg %p9634_p6 }
  0x9f   : > { %p9642_p11 = pnand %p9641_p8, %p9635_p9 }
  0xa1   : > { %9645 = shalt.err (!%p9642_p11)
}
  0xa2   : > { %8804 = dma.hbm_to_vmem [thread:$0]  (!%p10046_p12), %s9982_s27, 16, %s10052_s1, [#allocation6]  }
  0xa3   : > { %p13218_p13 = scmp.ne.s32.totalorder %s13215_s2, 0 }
  0xa5   : > { %1162 = sbr.rel (%p13218_p13) target bundleno = 4738 (0x1282), region = 184 }
  0xac   : > { %p13219_p1 = scmp.eq.s32.totalorder %s10010_s0, 0 }
  0xae   : > { %9691 = dma.done.wait (%p13219_p1), [#allocation3], 16   ;;  %p13220_p0 = pmov %p13219_p1 }
  0xb0   : > { %9693 = vsyncadd (%p13220_p0), [#allocation3], 4294967280  ;;  %p13221_p2 = pmov %p13220_p0 }
  0xb1   : > { %p13222_p3 = pmov %p13220_p0 }
  0xb2   : > { %9695 = dma.done.wait (%p13221_p2), [#allocation6], 32  }
  0xb3   : > { %9697 = vsyncadd (%p13222_p3), [#allocation6], 4294967264  ;;  %s13223_s5 = sld [smem:[#allocation12_spill]]  ;;  %p1269_p12 = scmp.lt.s32.totalorder %s10010_s0, 1  ;;  %v1308_v0 = vld [vmem:[%s9797_s17] sm:$0xff]  ;;  %v1309_v1 = vld [vmem:[%s9797_s17 + $0x8] sm:$0xff] }
  0xb4   : > { %v8489_v3 = vpack.c.bf16 %v1309_v1, %v1308_v0  ;;  %v10121_v4 = vld [vmem:[%s9787_s9] ss:$0 sm:$0xff]  ;;  %vm1456_vm0 = vcmask 130048   ;;  %vm2525_vm2 = vcmask 1040384   ;;  %vm2649_vm3 = vcmask 1046528   ;;  %s13171_s2 = smov 32  }
  0xb5   : > { %s1270_s11 = scalar_select %p1269_p12, %s10010_s0, 1  ;;  %v10124_v5 = vld [vmem:[%s9792_s13] ss:$0 sm:$0xff] }
  0xb6   : > { %8490 = vmatprep.subr.bf16.mxu0 %v8489_v3  ;;  %s13168_s16 = smov 96   ;;  %s13170_s18 = smov 64  }
  0xb7   : > { %s7829_s26 = sshll.u32 %s1270_s11, 8  ;;  %8492 = vmatpush3.bf16.msra.mxu0 %v8489_v3  ;;  %s9767_s22 = smov 16  }
  0xb8   : > { %s13456_s3 = sld [smem:[#allocation13_spill]]  ;;  %s13457_s8 = sld [smem:[#allocation14_spill]] }
  0xb9   : > { %s10115_s1 = scalar_lea.vmem %s13223_s5, %s7829_s26  ;;  %s13458_s7 = sld [smem:[#allocation15_spill]] }
  0xba   : > { %v1274_v2 = vld [vmem:[%s10115_s1] sm:$0xff]  ;;  %v1275_v6 = vld [vmem:[%s10115_s1 + $0x8] sm:$0xff]  ;;  %v1276_v9 = vld [vmem:[%s10115_s1 + $0x10] sm:$0xff]  ;;  %s13459_s23 = sld [smem:[#allocation19_spill]]  ;;  %s13460_s11 = sld [smem:[#allocation17_spill]] }
  0xbb   : > { %v1354_v7 = vmul.f32 %v10121_v4, %v1274_v2  ;;  %v1355_v8 = vmul.f32 %v10121_v4, %v1275_v6  ;;  %v1277_v10 = vld [vmem:[%s10115_s1 + $0x18] sm:$0xff]  ;;  %v1278_v11 = vld [vmem:[%s10115_s1 + $0x20] sm:$0xff]  ;;  %v1356_v12 = vmul.f32 %v10121_v4, %v1276_v9  ;;  %v1279_v15 = vld [vmem:[%s10115_s1 + $0x28] sm:$0xff]  ;;  %s13461_s26 = sld [smem:[#allocation18_spill]]  ;;  %s13518_s4 = sld [smem:[#allocation36_spill]] }
  0xbc   : > { %v1357_v13 = vmul.f32 %v10121_v4, %v1277_v10  ;;  %v1358_v14 = vmul.f32 %v10121_v4, %v1278_v11  ;;  %v1280_v16 = vld [vmem:[%s10115_s1 + $0x30] sm:$0xff]  ;;  %v1359_v21 = vmul.f32 %v10121_v4, %v1279_v15  ;;  %v1281_v26 = vld [vmem:[%s10115_s1 + $0x38] sm:$0xff]  ;;  %v1282_v28 = vld [vmem:[%s10115_s1 + $0x40] sm:$0xff]  ;;  %p13526_p5 = scmp.ne.s32.totalorder %s13212_s28, 0 }
  0xbd   : > { %v1392_v17 = vadd.f32 %v10124_v5, %v1354_v7  ;;  %v1393_v18 = vadd.f32 %v10124_v5, %v1355_v8  ;;  %v1394_v19 = vadd.f32 %v10124_v5, %v1356_v12  ;;  %v1360_v25 = vmul.f32 %v10121_v4, %v1280_v16  ;;  %v1283_v35 = vld [vmem:[%s10115_s1 + $0x48] sm:$0xff]  ;;  %v1284_v36 = vld [vmem:[%s10115_s1 + $0x50] sm:$0xff]  ;;  %v1285_v43 = vld [vmem:[%s10115_s1 + $0x58] sm:$0xff] }
  0xbe   : > { %v1395_v20 = vadd.f32 %v10124_v5, %v1357_v13  ;;  %v1396_v24 = vadd.f32 %v10124_v5, %v1358_v14  ;;  %v1397_v30 = vadd.f32 %v10124_v5, %v1359_v21  ;;  %v1361_v31 = vmul.f32 %v10121_v4, %v1281_v26  ;;  %v1286_v44 = vld [vmem:[%s10115_s1 + $0x60] sm:$0xff]  ;;  %v1287_v51 = vld [vmem:[%s10115_s1 + $0x68] sm:$0xff]  ;;  %v1288_v52 = vld [vmem:[%s10115_s1 + $0x70] sm:$0xff] }
  0xbf   : > { %v1424_v22 = vmax.f32 %v1392_v17, 0.0  ;;  %v1425_v23 = vmax.f32 %v1393_v18, 0.0  ;;  %v1426_v27 = vmax.f32 %v1394_v19, 0.0  ;;  %v1398_v33 = vadd.f32 %v10124_v5, %v1360_v25  ;;  %v1289_v59 = vld [vmem:[%s10115_s1 + $0x78] sm:$0xff]  ;;  %v1290_v60 = vld [vmem:[%s10115_s1 + $0x80] sm:$0xff]  ;;  %v1291_v3 = vld [vmem:[%s10115_s1 + $0x88] sm:$0xff] }
  0xc0   : > { %v1427_v29 = vmax.f32 %v1395_v20, 0.0  ;;  %v1428_v32 = vmax.f32 %v1396_v24, 0.0  ;;  %v1362_v34 = vmul.f32 %v10121_v4, %v1282_v28  ;;  %v1429_v37 = vmax.f32 %v1397_v30, 0.0  ;;  %v1292_v6 = vld [vmem:[%s10115_s1 + $0x90] sm:$0xff]  ;;  %v1293_v13 = vld [vmem:[%s10115_s1 + $0x98] sm:$0xff]  ;;  %v1294_v14 = vld [vmem:[%s10115_s1 + $0xa0] sm:$0xff] }
  0xc1   : > { %8197 = vmatprep.mubr.msk.f32.mxu0 %vm1456_vm0, %v1424_v22  ;;  %v1399_v38 = vadd.f32 %v10124_v5, %v1361_v31  ;;  %v1363_v39 = vmul.f32 %v10121_v4, %v1283_v35  ;;  %v1430_v40 = vmax.f32 %v1398_v33, 0.0  ;;  %v1364_v42 = vmul.f32 %v10121_v4, %v1284_v36  ;;  %v1295_v21 = vld [vmem:[%s10115_s1 + $0xa8] sm:$0xff]  ;;  %v1296_v22 = vld [vmem:[%s10115_s1 + $0xb0] sm:$0xff]  ;;  %v1298_v30 = vld [vmem:[%s10115_s1 + $0xc0] sm:$0xff] }
  0xc2   : > { %8198 = vmatmul.mubr.msk.f32.vlgmr.msra.gmra.mrb[0].mxu0 %vm1456_vm0, %v1425_v23  ;;  %v1400_v41 = vadd.f32 %v10124_v5, %v1362_v34  ;;  %v1365_v47 = vmul.f32 %v10121_v4, %v1285_v43  ;;  %v1366_v50 = vmul.f32 %v10121_v4, %v1286_v44  ;;  %v1367_v55 = vmul.f32 %v10121_v4, %v1287_v51 }
  0xc3   : > { %8200 = vmatprep.mubr.msk.f32.mxu0 %vm1456_vm0, %v1426_v27  ;;  %v1431_v45 = vmax.f32 %v1399_v38, 0.0  ;;  %v1401_v46 = vadd.f32 %v10124_v5, %v1363_v39  ;;  %v1402_v49 = vadd.f32 %v10124_v5, %v1364_v42  ;;  %v1368_v58 = vmul.f32 %v10121_v4, %v1288_v52  ;;  %v1300_v38 = vld [vmem:[%s10115_s1 + $0xd0] sm:$0xff] }
  0xc4   : > { %v1432_v48 = vmax.f32 %v1400_v41, 0.0  ;;  %v1403_v54 = vadd.f32 %v10124_v5, %v1365_v47  ;;  %v1404_v57 = vadd.f32 %v10124_v5, %v1366_v50  ;;  %v1405_v62 = vadd.f32 %v10124_v5, %v1367_v55 }
  0xc5   : > { %v1433_v53 = vmax.f32 %v1401_v46, 0.0  ;;  %v1434_v56 = vmax.f32 %v1402_v49, 0.0  ;;  %v1369_v63 = vmul.f32 %v10121_v4, %v1289_v59  ;;  %v1406_v1 = vadd.f32 %v10124_v5, %v1368_v58  ;;  %v1302_v46 = vld [vmem:[%s10115_s1 + $0xe0] sm:$0xff] }
  0xc6   : > { %8201 = vmatmul.mubr.msk.f32.gmra.mrb[2].mxu0 %vm1456_vm0, %v1427_v29  ;;  %v1435_v61 = vmax.f32 %v1403_v54, 0.0  ;;  %v1436_v0 = vmax.f32 %v1404_v57, 0.0  ;;  %v1370_v2 = vmul.f32 %v10121_v4, %v1290_v60  ;;  %v1437_v7 = vmax.f32 %v1405_v62, 0.0  ;;  %v1297_v29 = vld [vmem:[%s10115_s1 + $0xb8] sm:$0xff]  ;;  %v1304_v54 = vld [vmem:[%s10115_s1 + $0xf0] sm:$0xff] }
  0xc7   : > { %8203 = vmatprep.mubr.msk.f32.mxu0 %vm1456_vm0, %v1428_v32  ;;  %v1407_v8 = vadd.f32 %v10124_v5, %v1369_v63  ;;  %v1371_v9 = vmul.f32 %v10121_v4, %v1291_v3  ;;  %v1438_v10 = vmax.f32 %v1406_v1, 0.0  ;;  %v1372_v12 = vmul.f32 %v10121_v4, %v1292_v6 }
  0xc8   : > { %v1408_v11 = vadd.f32 %v10124_v5, %v1370_v2  ;;  %v1373_v17 = vmul.f32 %v10121_v4, %v1293_v13  ;;  %v1374_v20 = vmul.f32 %v10121_v4, %v1294_v14  ;;  %v1375_v25 = vmul.f32 %v10121_v4, %v1295_v21  ;;  %v1316_v14 = vld [vmem:[%s9812_s29 + $0x20] sm:$0xff]  ;;  %v1321_v21 = vld [vmem:[%s9812_s29 + $0x48] sm:$0xff] }
  0xc9   : > { %v1439_v15 = vmax.f32 %v1407_v8, 0.0  ;;  %v1409_v16 = vadd.f32 %v10124_v5, %v1371_v9  ;;  %v1410_v19 = vadd.f32 %v10124_v5, %v1372_v12  ;;  %v1376_v28 = vmul.f32 %v10121_v4, %v1296_v22  ;;  %v1313_v9 = vld [vmem:[%s9812_s29 + $0x8] sm:$0xff]  ;;  %v1315_v12 = vld [vmem:[%s9812_s29 + $0x18] sm:$0xff] }
  0xca   : > { %8204 = vmatmul.mubr.msk.f32.gmra.mrb[4].mxu0 %vm1456_vm0, %v1429_v37  ;;  %v1440_v18 = vmax.f32 %v1408_v11, 0.0  ;;  %v1411_v24 = vadd.f32 %v10124_v5, %v1373_v17  ;;  %v1412_v27 = vadd.f32 %v10124_v5, %v1374_v20  ;;  %v1413_v32 = vadd.f32 %v10124_v5, %v1375_v25  ;;  %v1299_v37 = vld [vmem:[%s10115_s1 + $0xc8] sm:$0xff]  ;;  %v1314_v11 = vld [vmem:[%s9812_s29 + $0x10] sm:$0xff]  ;;  %v1320_v20 = vld [vmem:[%s9812_s29 + $0x40] sm:$0xff] }
  0xcb   : > { %8206 = vmatprep.mubr.msk.f32.mxu0 %vm1456_vm0, %v1430_v40  ;;  %v1441_v23 = vmax.f32 %v1409_v16, 0.0  ;;  %v1442_v26 = vmax.f32 %v1410_v19, 0.0  ;;  %v1377_v33 = vmul.f32 %v10121_v4, %v1297_v29  ;;  %v1414_v35 = vadd.f32 %v10124_v5, %v1376_v28  ;;  %v1318_v17 = vld [vmem:[%s9812_s29 + $0x30] sm:$0xff] }
  0xcc   : > { %v1443_v31 = vmax.f32 %v1411_v24, 0.0  ;;  %v1444_v34 = vmax.f32 %v1412_v27, 0.0  ;;  %v1378_v36 = vmul.f32 %v10121_v4, %v1298_v30  ;;  %v1445_v39 = vmax.f32 %v1413_v32, 0.0  ;;  %v1323_v24 = vld [vmem:[%s9812_s29 + $0x58] sm:$0xff]  ;;  %v1325_v27 = vld [vmem:[%s9812_s29 + $0x68] sm:$0xff]  ;;  %v1326_v29 = vld [vmem:[%s9812_s29 + $0x70] sm:$0xff] }
  0xcd   : > { %v1415_v40 = vadd.f32 %v10124_v5, %v1377_v33  ;;  %v1379_v41 = vmul.f32 %v10121_v4, %v1299_v37  ;;  %v1446_v42 = vmax.f32 %v1414_v35, 0.0  ;;  %v1380_v44 = vmul.f32 %v10121_v4, %v1300_v38  ;;  %v1327_v30 = vld [vmem:[%s9812_s29 + $0x78] sm:$0xff]  ;;  %v1328_v33 = vld [vmem:[%s9812_s29 + $0x80] sm:$0xff]  ;;  %v1330_v37 = vld [vmem:[%s9812_s29 + $0x90] sm:$0xff] }
  0xce   : > { %8207 = vmatmul.mubr.msk.f32.gmra.mrb[6].mxu0 %vm1456_vm0, %v1431_v45  ;;  %v1416_v43 = vadd.f32 %v10124_v5, %v1378_v36  ;;  %v1301_v45 = vld [vmem:[%s10115_s1 + $0xd8] sm:$0xff]  ;;  %v1382_v52 = vmul.f32 %v10121_v4, %v1302_v46  ;;  %v1384_v60 = vmul.f32 %v10121_v4, %v1304_v54  ;;  %v13083_v8 = vmov 0.0|0.0   ;;  %v10307_v46 = vld [vmem:[%s9807_s25] ss:$0 sm:$0xff] }
  0xcf   : > { %8209 = vmatprep.mubr.msk.f32.mxu0 %vm1456_vm0, %v1432_v48  ;;  %v1447_v47 = vmax.f32 %v1415_v40, 0.0  ;;  %v1417_v48 = vadd.f32 %v10124_v5, %v1379_v41  ;;  %v1381_v49 = vmul.f32 %v10121_v4, %v1301_v45  ;;  %v1418_v51 = vadd.f32 %v10124_v5, %v1380_v44  ;;  %8749 = vmatprep.subr.bf16.mxu1 %v13083_v8  ;;  %v1331_v38 = vld [vmem:[%s9812_s29 + $0x98] sm:$0xff]  ;;  %v1332_v41 = vld [vmem:[%s9812_s29 + $0xa0] sm:$0xff] }
  0xd0   : > { %v1448_v50 = vmax.f32 %v1416_v43, 0.0  ;;  %v1420_v59 = vadd.f32 %v10124_v5, %v1382_v52  ;;  %v1422_v2 = vadd.f32 %v10124_v5, %v1384_v60  ;;  %8493 = vmatprep.subr.bf16.mxu0 %v13083_v8  ;;  %v8497_v13 = vpack.c.bf16 %v1315_v12, %v1314_v11  ;;  %v10303_v43 = vld [vmem:[%s9802_s21] ss:$0 sm:$0xff] }
  0xd1   : > { %v1449_v55 = vmax.f32 %v1417_v48, 0.0  ;;  %v1450_v58 = vmax.f32 %v1418_v51, 0.0  ;;  %v8506_v22 = vpack.c.bf16 %v1321_v21, %v1320_v20  ;;  %v8515_v32 = vpack.c.bf16 %v1327_v30, %v1326_v29 }
  0xd2   : > { %8210 = vmatmul.mubr.msk.f32.gmra.mrb[8].mxu0 %vm1456_vm0, %v1433_v53  ;;  %v1303_v53 = vld [vmem:[%s10115_s1 + $0xe8] sm:$0xff]  ;;  %v1452_v1 = vmax.f32 %v1420_v59, 0.0  ;;  %v8521_v40 = vpack.c.bf16 %v1331_v38, %v1330_v37 }
  0xd3   : > { %8212 = vmatprep.mubr.msk.f32.mxu0 %vm1456_vm0, %v1434_v56  ;;  %v1419_v56 = vadd.f32 %v10124_v5, %v1381_v49  ;;  %v1383_v57 = vmul.f32 %v10121_v4, %v1303_v53 }
  0xd5   : > { %v1451_v62 = vmax.f32 %v1419_v56, 0.0  ;;  %v1421_v63 = vadd.f32 %v10124_v5, %v1383_v57  ;;  %v1335_v56 = vld [vmem:[%s9812_s29 + $0xb8] sm:$0xff] }
  0xd6   : > { %8213 = vmatmul.mubr.msk.f32.gmra.mrb[10].mxu0 %vm1456_vm0, %v1435_v61  ;;  %v1305_v61 = vld [vmem:[%s10115_s1 + $0xf8] sm:$0xff] }
  0xd7   : > { %8215 = vmatprep.mubr.msk.f32.mxu0 %vm1456_vm0, %v1436_v0  ;;  %v1385_v0 = vmul.f32 %v10121_v4, %v1305_v61  ;;  %v1453_v3 = vmax.f32 %v1421_v63, 0.0 }
  0xd9   : > { %v1423_v6 = vadd.f32 %v10124_v5, %v1385_v0  ;;  %v1312_v5 = vld [vmem:[%s9812_s29] sm:$0xff] }
  0xda   : > { %8216 = vmatmul.mubr.msk.f32.gmra.mrb[12].mxu0 %vm1456_vm0, %v1437_v7  ;;  %v1454_v7 = vmax.f32 %v1422_v2, 0.0 }
  0xdb   : > { %8218 = vmatprep.mubr.msk.f32.mxu0 %vm1456_vm0, %v1438_v10  ;;  %v1455_v4 = vmax.f32 %v1423_v6, 0.0  ;;  %v8494_v10 = vpack.c.bf16 %v1313_v9, %v1312_v5  ;;  %v1336_v6 = vld [vmem:[%s9812_s29 + $0xc0] sm:$0xff]  ;;  %v13097_v9 = vmov 0.0  }
  0xdd   : > { %8765 = vmatpush1.bf16.msra.mxu1 %v8494_v10  ;;  %8495 = vmatpush1.bf16.msra.mxu0 %v8494_v10 }
  0xde   : > { %8219 = vmatmul.mubr.msk.f32.gmra.mrb[14].mxu0 %vm1456_vm0, %v1439_v15  ;;  %8750 = vmatprep.subr.bf16.mxu1 %v13083_v8  ;;  %v1317_v15 = vld [vmem:[%s9812_s29 + $0x28] sm:$0xff] }
  0xdf   : > { %8221 = vmatprep.mubr.msk.f32.mxu0 %vm1456_vm0, %v1440_v18  ;;  %8496 = vmatprep.subr.bf16.mxu0 %v13083_v8  ;;  %v8500_v16 = vpack.c.bf16 %v1317_v15, %v1316_v14  ;;  %v1319_v18 = vld [vmem:[%s9812_s29 + $0x38] sm:$0xff] }
  0xe0   : > { %v8503_v19 = vpack.c.bf16 %v1319_v18, %v1318_v17 }
  0xe1   : > { %8766 = vmatpush1.bf16.msra.mxu1 %v8497_v13  ;;  %8498 = vmatpush1.bf16.msra.mxu0 %v8497_v13 }
  0xe2   : > { %8222 = vmatmul.mubr.msk.f32.gmra.mrb[16].mxu0 %vm1456_vm0, %v1441_v23  ;;  %8751 = vmatprep.subr.bf16.mxu1 %v13083_v8  ;;  %v1322_v23 = vld [vmem:[%s9812_s29 + $0x50] sm:$0xff] }
  0xe3   : > { %8224 = vmatprep.mubr.msk.f32.mxu0 %vm1456_vm0, %v1442_v26  ;;  %8499 = vmatprep.subr.bf16.mxu0 %v13083_v8  ;;  %v8509_v25 = vpack.c.bf16 %v1323_v24, %v1322_v23  ;;  %v1324_v26 = vld [vmem:[%s9812_s29 + $0x60] sm:$0xff] }
  0xe4   : > { %v8512_v28 = vpack.c.bf16 %v1325_v27, %v1324_v26 }
  0xe5   : > { %8767 = vmatpush1.bf16.msra.mxu1 %v8500_v16  ;;  %8501 = vmatpush1.bf16.msra.mxu0 %v8500_v16 }
  0xe6   : > { %8225 = vmatmul.mubr.msk.f32.gmra.mrb[18].mxu0 %vm1456_vm0, %v1443_v31  ;;  %8752 = vmatprep.subr.bf16.mxu1 %v13083_v8  ;;  %v1886_v31 = vlaneseq }
  0xe7   : > { %8227 = vmatprep.mubr.msk.f32.mxu0 %vm1456_vm0, %v1444_v34  ;;  %8502 = vmatprep.subr.bf16.mxu0 %v13083_v8  ;;  %v1329_v34 = vld [vmem:[%s9812_s29 + $0x88] sm:$0xff] }
  0xe8   : > { %v10289_v35 = vshrl.u32 %v1886_v31, 7  ;;  %v8518_v36 = vpack.c.bf16 %v1329_v34, %v1328_v33 }
  0xe9   : > { %8768 = vmatpush1.bf16.msra.mxu1 %v8503_v19  ;;  %8504 = vmatpush1.bf16.msra.mxu0 %v8503_v19 }
  0xea   : > { %8228 = vmatmul.mubr.msk.f32.gmra.mrb[20].mxu0 %vm1456_vm0, %v1445_v39  ;;  %8753 = vmatprep.subr.bf16.mxu1 %v13083_v8  ;;  %v10296_v39 = vadd.s32 16, %v10289_v35  ;;  %v1923_v48 = vand.u32 15, %v10289_v35  ;;  %v10311_v49 = vadd.s32 8, %v10289_v35  ;;  %v10315_v52 = vadd.s32 24, %v10289_v35 }
  0xeb   : > { %8230 = vmatprep.mubr.msk.f32.mxu0 %vm1456_vm0, %v1446_v42  ;;  %8505 = vmatprep.subr.bf16.mxu0 %v13083_v8  ;;  %v1333_v42 = vld [vmem:[%s9812_s29 + $0xa8] sm:$0xff] }
  0xec   : > { %13224 = vst [vmem:[#allocation46_spill] sm:$0xff] %v10296_v39  ;;  %v1937_v44 = vand.u32 15, %v10296_v39  ;;  %v8524_v45 = vpack.c.bf16 %v1333_v42, %v1332_v41  ;;  %13225 = vst [vmem:[#allocation47_spill] sm:$0xff] %v10311_v49  ;;  %vm10328_vm4 = vcmp.ge.s32.totalorder %v1923_v48, 1  ;;  %v1944_v2 = vand.u32 15, %v10315_v52 }
  0xed   : > { %8769 = vmatpush1.bf16.msra.mxu1 %v8506_v22  ;;  %8507 = vmatpush1.bf16.msra.mxu0 %v8506_v22  ;;  %13226 = vst [vmem:[#allocation48_spill] sm:$0xff] %v10315_v52  ;;  %v10358_v15 = vsel %vm10328_vm4, 1.0, %v13097_v9 }
  0xee   : > { %8231 = vmatmul.mubr.msk.f32.gmra.mrb[22].mxu0 %vm1456_vm0, %v1447_v47  ;;  %8754 = vmatprep.subr.bf16.mxu1 %v13083_v8  ;;  %vm10320_vm1 = vcmp.ge.s32.totalorder %v1937_v44, 1  ;;  %vm10370_vm6 = vcmp.le.s32.totalorder %v1944_v2, 14  ;;  %v10441_v2 = vadd.s32 40, %v10289_v35 }
  0xef   : > { %8233 = vmatprep.mubr.msk.f32.mxu0 %vm1456_vm0, %v1448_v50  ;;  %8508 = vmatprep.subr.bf16.mxu0 %v13083_v8  ;;  %v10348_v10 = vsel %vm10320_vm1, 1.0, %v13097_v9 }
  0xf0   : > { %13245 = vst [vmem:[#allocation57_spill] sm:$0xff] %v10441_v2 }
  0xf1   : > { %8770 = vmatpush1.bf16.msra.mxu1 %v8509_v25  ;;  %8510 = vmatpush1.bf16.msra.mxu0 %v8509_v25 }
  0xf2   : > { %8234 = vmatmul.mubr.msk.f32.gmra.mrb[24].mxu0 %vm1456_vm0, %v1449_v55  ;;  %8755 = vmatprep.subr.bf16.mxu1 %v13083_v8  ;;  %v1334_v55 = vld [vmem:[%s9812_s29 + $0xb0] sm:$0xff] }
  0xf3   : > { %8236 = vmatprep.mubr.msk.f32.mxu0 %vm1456_vm0, %v1450_v58  ;;  %8511 = vmatprep.subr.bf16.mxu0 %v13083_v8  ;;  %v8527_v58 = vpack.c.bf16 %v1335_v56, %v1334_v55 }
  0xf5   : > { %8771 = vmatpush1.bf16.msra.mxu1 %v8512_v28  ;;  %8513 = vmatpush1.bf16.msra.mxu0 %v8512_v28 }
  0xf6   : > { %8237 = vmatmul.mubr.msk.f32.gmra.mrb[26].mxu0 %vm1456_vm0, %v1451_v62  ;;  %8756 = vmatprep.subr.bf16.mxu1 %v13083_v8  ;;  %v1930_v62 = vand.u32 15, %v10311_v49 }
  0xf7   : > { %8239 = vmatprep.mubr.msk.f32.mxu0 %vm1456_vm0, %v1452_v1  ;;  %8514 = vmatprep.subr.bf16.mxu0 %v13083_v8 }
  0xf8   : > { %vm10363_vm5 = vcmp.le.s32.totalorder %v1930_v62, 14 }
  0xf9   : > { %8772 = vmatpush1.bf16.msra.mxu1 %v8515_v32  ;;  %8516 = vmatpush1.bf16.msra.mxu0 %v8515_v32 }
  0xfa   : > { %8240 = vmatmul.mubr.msk.f32.gmra.mrb[28].mxu0 %vm1456_vm0, %v1453_v3  ;;  %8757 = vmatprep.subr.bf16.mxu1 %v13083_v8  ;;  %v10338_v3 = vadd.s32 32, %v10289_v35 }
  0xfb   : > { %8242 = vmatprep.mubr.msk.f32.mxu0 %vm1456_vm0, %v1454_v7  ;;  %8517 = vmatprep.subr.bf16.mxu0 %v13083_v8  ;;  %v1337_v7 = vld [vmem:[%s9812_s29 + $0xc8] sm:$0xff] }
  0xfc   : > { %13232 = vst [vmem:[#allocation50_spill] sm:$0xff] %v10338_v3  ;;  %v8530_v11 = vpack.c.bf16 %v1337_v7, %v1336_v6  ;;  %v1951_v25 = vand.u32 15, %v10338_v3  ;;  %v10444_v6 = vadd.s32 48, %v10289_v35 }
  0xfd   : > { %8773 = vmatpush1.bf16.msra.mxu1 %v8518_v36  ;;  %8519 = vmatpush1.bf16.msra.mxu0 %v8518_v36 }
  0xfe   : > { %8243 = vmatmul.mubr.msk.f32.gmra.mrb[30].mxu0 %vm1456_vm0, %v1455_v4  ;;  %8758 = vmatprep.subr.bf16.mxu1 %v13083_v8  ;;  %vm10419_vm7 = vcmp.ge.s32.totalorder %v1951_v25, 1  ;;  %13246 = vst [vmem:[#allocation58_spill] sm:$0xff] %v10444_v6 }
  0xff   : > { %8520 = vmatprep.subr.bf16.mxu0 %v13083_v8 }
 0x101   : > { %8774 = vmatpush1.bf16.msra.mxu1 %v8521_v40  ;;  %8522 = vmatpush1.bf16.msra.mxu0 %v8521_v40 }
 0x102   : > { %8759 = vmatprep.subr.bf16.mxu1 %v13083_v8  ;;  %8523 = vmatprep.subr.bf16.mxu0 %v13083_v8 }
 0x105   : > { %8775 = vmatpush1.bf16.msra.mxu1 %v8524_v45  ;;  %8525 = vmatpush1.bf16.msra.mxu0 %v8524_v45 }
 0x106   : > { %8760 = vmatprep.subr.bf16.mxu1 %v13083_v8  ;;  %8526 = vmatprep.subr.bf16.mxu0 %v13083_v8 }
 0x109   : > { %8776 = vmatpush1.bf16.msra.mxu1 %v8527_v58  ;;  %8528 = vmatpush1.bf16.msra.mxu0 %v8527_v58 }
 0x10a   : > { %8761 = vmatprep.subr.bf16.mxu1 %v13083_v8  ;;  %8529 = vmatprep.subr.bf16.mxu0 %v13083_v8 }
 0x10d   : > { %8777 = vmatpush1.bf16.msra.mxu1 %v8530_v11  ;;  %8531 = vmatpush1.bf16.msra.mxu0 %v8530_v11  ;;  %v10459_v11 = vsel %vm10419_vm7, 1.0, %v13097_v9 }
 0x10e   : > { %8762 = vmatprep.subr.bf16.mxu1 %v13083_v8  ;;  %8532 = vmatprep.subr.bf16.mxu0 %v13083_v8 }
 0x195   : > { %v8199_v47 = vpop.f32.mrb[0].mxu0 }
 0x196   : > { %v1785_v50 = vmul.f32 %v8199_v47, %v10303_v43  ;;  %v1619_v51 = vpop.f32.mrb[1].mxu0  ;;  %v10409_v47 = vsel %vm10370_vm6, 1.0, %v13097_v9 }
 0x197   : > { %v1784_v53 = vmul.f32 %v10303_v43, %v1619_v51  ;;  %13239 = vst [vmem:[#allocation53_spill] sm:$0xff] %v10409_v47 }
 0x198   : > { %v1823_v57 = vadd.f32 %v10307_v46, %v1785_v50 }
 0x199   : > { %v1822_v59 = vadd.f32 %v10307_v46, %v1784_v53  ;;  %v8202_v60 = vpop.f32.mrb[2].mxu0 }
 0x19a   : > { %v10333_v63 = vmax.f32 %v1823_v57, 0.0  ;;  %v1787_v0 = vmul.f32 %v8202_v60, %v10303_v43  ;;  %v1629_v1 = vpop.f32.mrb[3].mxu0 }
 0x19b   : > { %v10342_v4 = vmax.f32 %v1822_v59, 0.0  ;;  %v1786_v5 = vmul.f32 %v10303_v43, %v1629_v1 }
 0x19c   : > { %13231 = vst [vmem:[#allocation49_spill] sm:$0xff] %v10333_v63  ;;  %v1825_v12 = vadd.f32 %v10307_v46, %v1787_v0  ;;  %v2651_v13 = vrot.slane %v10333_v63, 1  ;;  %v2527_v14 = vrot.slane %v10333_v63, 7 }
 0x19d   : > { %v1824_v16 = vadd.f32 %v10307_v46, %v1786_v5  ;;  %v8205_v17 = vpop.f32.mrb[4].mxu0  ;;  %v2650_v18 = vrot.slane %v10342_v4, 1  ;;  %v2526_v19 = vrot.slane %v10342_v4, 7  ;;  %v10454_v5 = vsel %vm10363_vm5, 1.0, %v13097_v9 }
 0x19e   : > { %v10367_v21 = vmax.f32 %v1825_v12, 0.0  ;;  %v1789_v22 = vmul.f32 %v8205_v17, %v10303_v43  ;;  %v1639_v23 = vpop.f32.mrb[5].mxu0 }
 0x19f   : > { %v10375_v26 = vmax.f32 %v1824_v16, 0.0  ;;  %v1788_v27 = vmul.f32 %v10303_v43, %v1639_v23  ;;  %v10379_v28 = vsel %vm2649_vm3, %v2650_v18, %v2651_v13  ;;  %v10384_v29 = vsel %vm2525_vm2, %v2526_v19, %v2527_v14 }
 0x1a0   : > { %13237 = vst [vmem:[#allocation51_spill] sm:$0xff] %v10384_v29  ;;  %v1827_v30 = vadd.f32 %v10307_v46, %v1789_v22  ;;  %v8903_v31 = vpack.i.bf16 %v13097_v9, %v10379_v28  ;;  %v2531_v32 = vrot.slane %v10367_v21, 7  ;;  %v8908_v33 = vpack.i.bf16 %v10384_v29, %v10367_v21 }
 0x1a1   : > { %v1826_v34 = vadd.f32 %v10307_v46, %v1788_v27  ;;  %v8208_v36 = vpop.f32.mrb[6].mxu0  ;;  %v2615_v37 = vsel %vm2525_vm2, 0.0, %v2526_v19  ;;  %v2653_v38 = vrot.slane %v10375_v26, 1  ;;  %v2655_v40 = vrot.slane %v10367_v21, 1 }
 0x1a2   : > { %v10398_v41 = vmax.f32 %v1827_v30, 0.0  ;;  %8904 = vrot.lane.b32.xlu1 %v8903_v31, %s13171_s2  ;;  %8909 = vrot.lane.b32.xlu0 %v8908_v33, %s13168_s16  ;;  %v1649_v42 = vpop.f32.mrb[7].mxu0  ;;  %v10403_v44 = vmul.f32 %v10348_v10, %v2615_v37  ;;  %v2782_v45 = vmul.f32 %v10358_v15, %v2615_v37  ;;  %v2529_v51 = vrot.slane %v10375_v26, 7 }
 0x1a3   : > { %v10411_v48 = vmax.f32 %v1826_v34, 0.0  ;;  %v10416_v50 = vsel %vm2649_vm3, %v2653_v38, %v2655_v40  ;;  %v1791_v54 = vmul.f32 %v8208_v36, %v10303_v43  ;;  %v1790_v59 = vmul.f32 %v10303_v43, %v1649_v42 }
 0x1a4   : > { %13238 = vst [vmem:[#allocation52_spill] sm:$0xff] %v10398_v41  ;;  %13241 = vst [vmem:[#allocation55_spill] sm:$0xff] %v10416_v50  ;;  %v8913_v55 = vpack.i.bf16 %v2782_v45, %v10375_v26  ;;  %v8918_v56 = vpack.i.bf16 %v10342_v4, %v10416_v50  ;;  %v2535_v57 = vrot.slane %v10398_v41, 7  ;;  %v10431_v61 = vsel %vm2525_vm2, %v2529_v51, %v2531_v32 }
 0x1a5   : > { %13240 = vst [vmem:[#allocation54_spill] sm:$0xff] %v10411_v48  ;;  %v2533_v58 = vrot.slane %v10411_v48, 7  ;;  %v8211_v60 = vpop.f32.mrb[8].mxu0  ;;  %13244 = vst [vmem:[#allocation56_spill] sm:$0xff] %v10431_v61  ;;  %v10434_v62 = vsel %vm2649_vm3, %v2651_v13, %v2653_v38  ;;  %v8923_v13 = vpack.i.bf16 %v10431_v61, %v10398_v41  ;;  %v2742_v17 = vsel %vm2649_vm3, 0.0, %v2650_v18 }
 0x1a6   : > { %8914 = vrot.lane.b32.xlu1 %v8913_v55, %s13168_s16  ;;  %8919 = vrot.lane.b32.xlu0 %v8918_v56, %s13171_s2  ;;  %v1659_v0 = vpop.f32.mrb[9].mxu0  ;;  %v2746_v1 = vmul.f32 %v10409_v47, %v10434_v62  ;;  %v1829_v19 = vadd.f32 %v10307_v46, %v1791_v54  ;;  %v1828_v20 = vadd.f32 %v10307_v46, %v1790_v59  ;;  %v2657_v23 = vrot.slane %v10411_v48, 1 }
 0x1a7   : > { %v10449_v7 = vsel %vm2525_vm2, %v2533_v58, %v2535_v57  ;;  %v2534_v12 = vsel %vm2525_vm2, %v2531_v32, %v2533_v58  ;;  %v13086_v24 = vrot.slane %v10398_v41, 1  ;;  %v2744_v27 = vmul.f32 %v10454_v5, %v2742_v17 }
 0x1a8   : > { %13247 = vst [vmem:[#allocation59_spill] sm:$0xff] %v10449_v7  ;;  %v8943_v16 = vpack.i.bf16 %v2746_v1, %v10449_v7  ;;  %v2530_v18 = vsel %vm2525_vm2, %v2527_v14, %v2529_v51  ;;  %v1958_v30 = vand.u32 15, %v10441_v2  ;;  %v1965_v31 = vand.u32 15, %v10444_v6 }
 0x1a9   : > { %v10468_v22 = vpop.f32.mrb[10].mxu0  ;;  %v2855_v32 = vmul.f32 %v10348_v10, %v2534_v12  ;;  %v10484_v33 = vsel %vm2649_vm3, %v2657_v23, %v13086_v24  ;;  %v1895_v34 = vadd.s32 64, %v10289_v35  ;;  %v8928_v36 = vpack.i.bf16 %v2744_v27, %v10431_v61 }
 0x1aa   : > { %8924 = vrot.lane.b32.xlu1 %v8923_v13, %s13168_s16  ;;  %8944 = vrot.lane.b32.xlu0 %v8943_v16, %s13170_s18  ;;  %v1669_v25 = vpop.f32.mrb[11].mxu0  ;;  %13248 = vst [vmem:[#allocation60_spill] sm:$0xff] %v10484_v33  ;;  %v8948_v37 = vpack.i.bf16 %v10375_v26, %v10484_v33  ;;  %v2784_v14 = vmul.f32 %v10348_v10, %v2530_v18  ;;  %v10491_v38 = vmax.f32 %v1829_v19, 0.0  ;;  %v10493_v42 = vmax.f32 %v1828_v20, 0.0 }
 0x1ab   : > { %v10498_v51 = vmul.f32 %v10459_v11, %v2530_v18  ;;  %v1792_v53 = vmul.f32 %v10303_v43, %v1659_v0  ;;  %vm10505_vm8 = vcmp.le.s32.totalorder %v1958_v30, 14  ;;  %vm10509_vm9 = vcmp.ge.s32.totalorder %v1965_v31, 1 }
 0x1ac   : > { %13249 = vst [vmem:[#allocation61_spill] sm:$0xff] %v10491_v38  ;;  %13250 = vst [vmem:[#allocation62_spill] sm:$0xff] %v10493_v42  ;;  %v8958_v56 = vpack.i.bf16 %v10379_v28, %v2855_v32  ;;  %v1793_v58 = vmul.f32 %v8211_v60, %v10303_v43  ;;  %v1979_v59 = vand.u32 15, %v1895_v34  ;;  %v1897_v0 = vadd.s32 80, %v10289_v35 }
 0x1ad   : > { %v10495_v45 = vpop.f32.mrb[12].mxu0  ;;  %13251 = vst [vmem:[#allocation63_spill] sm:$0xff] %v10498_v51  ;;  %v8933_v1 = vpack.i.bf16 %v2784_v14, %v10411_v48  ;;  %v2853_v13 = vmul.f32 %v10358_v15, %v2530_v18  ;;  %v2786_v16 = vmul.f32 %v10459_v11, %v2534_v12  ;;  %v2658_v17 = vsel %vm2649_vm3, %v2655_v40, %v2657_v23 }
 0x1ae   : > { %8929 = vrot.lane.b32.xlu1 %v8928_v36, %s13170_s18  ;;  %8949 = vrot.lane.b32.xlu0 %v8948_v37, %s13171_s2  ;;  %v10503_v54 = vpop.f32.mrb[13].mxu0  ;;  %v2537_v20 = vrot.slane %v10493_v42, 7  ;;  %v2539_v28 = vrot.slane %v10491_v38, 7  ;;  %v10527_v60 = vmul.f32 %v10454_v5, %v2658_v17  ;;  %v1830_v27 = vadd.f32 %v10307_v46, %v1792_v53 }
 0x1af   : > { %v10537_v40 = vsel %vm10509_vm9, 1.0, %v13097_v9  ;;  %v10542_v23 = vsel %vm10505_vm8, 1.0, %v13097_v9  ;;  %v10545_v30 = vadd.s32 56, %v10289_v35  ;;  %v1993_v31 = vand.u32 15, %v1897_v0 }
 0x1b0   : > { %13256 = vst [vmem:[#allocation64_spill] sm:$0xff] %v10527_v60  ;;  %13257 = vst [vmem:[#allocation65_spill] sm:$0xff] %v10542_v23  ;;  %v1831_v32 = vadd.f32 %v10307_v46, %v1793_v58  ;;  %v8938_v34 = vpack.i.bf16 %v13097_v9, %v2853_v13  ;;  %v8968_v36 = vpack.i.bf16 %v2786_v16, %v10493_v42  ;;  %vm2311_vm10 = vcmp.ge.s32.totalorder %v1979_v59, 1 }
 0x1b1   : > { %v10522_v19 = vpop.f32.mrb[14].mxu0  ;;  %13258 = vst [vmem:[#allocation66_spill] sm:$0xff] %v10545_v30  ;;  %v10553_v14 = vsel %vm2525_vm2, %v2537_v20, %v2539_v28  ;;  %v2661_v53 = vrot.slane %v10493_v42, 1  ;;  %v13085_v55 = vrot.slane %v10491_v38, 1  ;;  %v10558_v10 = vmul.f32 %v10537_v40, %v2534_v12 }
 0x1b2   : > { %8934 = vrot.lane.b32.xlu1 %v8933_v1, %s13168_s16  ;;  %8959 = vrot.lane.b32.xlu0 %v8958_v56, %s13170_s18  ;;  %v10532_v18 = vpop.f32.mrb[15].mxu0  ;;  %13259 = vst [vmem:[#allocation67_spill] sm:$0xff] %v10553_v14  ;;  %v10560_v56 = vmax.f32 %v1830_v27, 0.0  ;;  %v2748_v59 = vmul.f32 %v10542_v23, %v2658_v17  ;;  %v1794_v0 = vmul.f32 %v10303_v43, %v1669_v25  ;;  %v1972_v1 = vand.u32 15, %v10545_v30 }
 0x1b3   : > { %13260 = vst [vmem:[#allocation68_spill] sm:$0xff] %v10558_v10  ;;  %v10570_v13 = vsel %vm2311_vm10, 1.0, %v13097_v9  ;;  %vm2313_vm11 = vcmp.ge.s32.totalorder %v1993_v31, 1  ;;  %v8953_v12 = vpack.i.bf16 %v10449_v7, %v10491_v38  ;;  %v2822_v27 = vmul.f32 %v10409_v47, %v2658_v17 }
 0x1b4   : > { %13261 = vst [vmem:[#allocation69_spill] sm:$0xff] %v10560_v56  ;;  %v8973_v16 = vpack.i.bf16 %v2748_v59, %v10553_v14  ;;  %v10584_v25 = vsel %vm2649_vm3, %v2661_v53, %v13085_v55  ;;  %v2541_v31 = vrot.slane %v10560_v56, 7  ;;  %vm2406_vm12 = vcmp.le.s32.totalorder %v1972_v1, 14 }
 0x1b5   : > { %v10550_v37 = vpop.f32.mrb[16].mxu0  ;;  %13263 = vst [vmem:[#allocation71_spill] sm:$0xff] %v10584_v25  ;;  %v1832_v59 = vadd.f32 %v10307_v46, %v1794_v0  ;;  %v8963_v55 = vpack.i.bf16 %v10333_v63, %v2822_v27  ;;  %v1795_v1 = vmul.f32 %v10468_v22, %v10303_v43  ;;  %v10613_v0 = vsel %vm2406_vm12, 1.0, %v13097_v9 }
 0x1b6   : > { %8939 = vrot.lane.b32.xlu1 %v8938_v34, %s13170_s18  ;;  %8969 = vrot.lane.b32.xlu0 %v8968_v36, %s13168_s16  ;;  %v10564_v58 = vpop.f32.mrb[17].mxu0  ;;  %v2538_v34 = vsel %vm2525_vm2, %v2535_v57, %v2537_v20  ;;  %v10579_v36 = vmax.f32 %v1831_v32, 0.0  ;;  %v10597_v20 = vsel %vm2313_vm11, 1.0, %v13097_v9  ;;  %v1899_v32 = vadd.s32 96, %v10289_v35  ;;  %13265 = vst [vmem:[#allocation73_spill] sm:$0xff] %v10613_v0 }
 0x1b7   : > { %v10594_v57 = vmul.f32 %v10570_v13, %v2538_v34  ;;  %v2542_v27 = vsel %vm2525_vm2, %v2539_v28, %v2541_v31  ;;  %v1896_v30 = vadd.s32 72, %v10289_v35  ;;  %v13266_v3 = vrot.slane %v10398_v41, 1 }
 0x1b8   : > { %13262 = vst [vmem:[#allocation70_spill] sm:$0xff] %v10579_v36  ;;  %v2543_v24 = vrot.slane %v10579_v36, 7  ;;  %v10625_v52 = vmul.f32 %v10597_v20, %v2542_v27  ;;  %v10628_v39 = vmax.f32 %v1832_v59, 0.0  ;;  %v8983_v28 = vpack.i.bf16 %v10553_v14, %v10579_v36 }
 0x1b9   : > { %v10586_v8 = vpop.f32.mrb[18].mxu0  ;;  %13264 = vst [vmem:[#allocation72_spill] sm:$0xff] %v10594_v57  ;;  %v10622_v22 = vsel %vm2649_vm3, %v13266_v3, %v2661_v53  ;;  %v2857_v49 = vmul.f32 %v10459_v11, %v2538_v34  ;;  %v1833_v47 = vadd.f32 %v10307_v46, %v1795_v1  ;;  %v1796_v3 = vmul.f32 %v10303_v43, %v10503_v54 }
 0x1ba   : > { %8954 = vrot.lane.b32.xlu1 %v8953_v12, %s13168_s16  ;;  %8974 = vrot.lane.b32.xlu0 %v8973_v16, %s13170_s18  ;;  %v10591_v17 = vpop.f32.mrb[19].mxu0  ;;  %v8978_v12 = vpack.i.bf16 %v10411_v48, %v10584_v25  ;;  %v2788_v16 = vmul.f32 %v10537_v40, %v2538_v34  ;;  %13267 = vst [vmem:[#allocation74_spill] sm:$0xff] %v10622_v22  ;;  %13268 = vst [vmem:[#allocation75_spill] sm:$0xff] %v10625_v52  ;;  %v1986_v11 = vand.u32 15, %v1896_v30 }
 0x1bb   : > { %13269 = vst [vmem:[#allocation76_spill] sm:$0xff] %v10628_v39  ;;  %v10638_v53 = vsel %vm2525_vm2, %v2541_v31, %v2543_v24  ;;  %v2750_v59 = vmul.f32 %v10613_v0, %v10622_v22  ;;  %v1903_v1 = vadd.s32 128, %v10289_v35  ;;  %v2545_v30 = vrot.slane %v10628_v39, 7 }
 0x1bc   : > { %v8998_v9 = vpack.i.bf16 %v2788_v16, %v10560_v56  ;;  %13270 = vst [vmem:[#allocation77_spill] sm:$0xff] %v10638_v53  ;;  %v2665_v16 = vrot.slane %v10560_v56, 1  ;;  %v10660_v63 = vmax.f32 %v1833_v47, 0.0  ;;  %v1834_v52 = vadd.f32 %v10307_v46, %v1796_v3 }
 0x1bd   : > { %v10608_v6 = vpop.f32.mrb[20].mxu0  ;;  %vm10676_vm14 = vcmp.le.s32.totalorder %v1986_v11, 14  ;;  %v2790_v54 = vmul.f32 %v10570_v13, %v2542_v27 }
 0x1be   : > { %8964 = vrot.lane.b32.xlu1 %v8963_v55, %s13171_s2  ;;  %8979 = vrot.lane.b32.xlu0 %v8978_v12, %s13171_s2  ;;  %v10617_v2 = vpop.f32.mrb[21].mxu0  ;;  %v2007_v55 = vand.u32 15, %v1899_v32  ;;  %v1901_v12 = vadd.s32 112, %v10289_v35  ;;  %v8988_v32 = vpack.i.bf16 %v10416_v50, %v2857_v49  ;;  %13273 = vst [vmem:[#allocation78_spill] sm:$0xff] %v10660_v63  ;;  %v10698_v50 = vsel %vm2525_vm2, %v2543_v24, %v2545_v30 }
 0x1bf   : > { %v10701_v7 = vmax.f32 %v1834_v52, 0.0  ;;  %v1800_v24 = vmul.f32 %v10303_v43, %v10564_v58  ;;  %v13113_v48 = vrot.slane %v10660_v63, 1 }
 0x1c0   : > { %vm10650_vm13 = vcmp.ge.s32.totalorder %v2007_v55, 1  ;;  %v2021_v31 = vand.u32 15, %v1901_v12  ;;  %v1797_v55 = vmul.f32 %v10495_v45, %v10303_v43  ;;  %v13274_v12 = vrot.slane %v10579_v36, 1 }
 0x1c1   : > { %v10641_v60 = vpop.f32.mrb[22].mxu0  ;;  %v13278_v45 = vmov 0.0   ;;  %13281 = vst [vmem:[#allocation80_spill] sm:$0xff] %v10701_v7  ;;  %v2549_v58 = vrot.slane %v10701_v7, 7 }
 0x1c2   : > { %8984 = vrot.lane.b32.xlu1 %v8983_v28, %s13168_s16  ;;  %8999 = vrot.lane.b32.xlu0 %v8998_v9, %s13168_s16  ;;  %v10647_v34 = vpop.f32.mrb[23].mxu0  ;;  %v9003_v28 = vpack.i.bf16 %v2750_v59, %v10638_v53  ;;  %v2824_v9 = vmul.f32 %v10542_v23, %v10622_v22  ;;  %v10668_v14 = vsel %vm2649_vm3, %v2665_v16, %v13274_v12  ;;  %v10683_v3 = vsel %vm10650_vm13, 1.0, %v13278_v45 }
 0x1c3   : > { %13275 = vst [vmem:[#allocation79_spill] sm:$0xff] %v10668_v14  ;;  %v1798_v59 = vmul.f32 %v10303_v43, %v10532_v18  ;;  %v1898_v23 = vadd.s32 88, %v10289_v35  ;;  %vm10688_vm15 = vcmp.ge.s32.totalorder %v2021_v31, 1  ;;  %v2035_v18 = vand.u32 15, %v1903_v1 }
 0x1c4   : > { %v8993_v11 = vpack.i.bf16 %v10367_v21, %v2824_v9  ;;  %v1835_v57 = vadd.f32 %v10307_v46, %v1797_v55  ;;  %v2547_v31 = vrot.slane %v10660_v63, 7  ;;  %v10706_v1 = vmul.f32 %v10683_v3, %v10698_v50 }
 0x1c5   : > { %v10670_v49 = vpop.f32.mrb[24].mxu0  ;;  %v1799_v9 = vmul.f32 %v10522_v19, %v10303_v43  ;;  %v10720_v52 = vsel %vm10676_vm14, 1.0, %v13278_v45  ;;  %v13284_v19 = vrot.slane %v10491_v38, 1  ;;  %v2000_v61 = vand.u32 15, %v1898_v23 }
 0x1c6   : > { %8989 = vrot.lane.b32.xlu1 %v8988_v32, %s13170_s18  ;;  %9004 = vrot.lane.b32.xlu0 %v9003_v28, %s13170_s18  ;;  %v10685_v12 = vpop.f32.mrb[25].mxu0  ;;  %v1905_v32 = vadd.s32 144, %v10289_v35  ;;  %v9008_v28 = vpack.i.bf16 %v10493_v42, %v10668_v14  ;;  %13282 = vst [vmem:[#allocation81_spill] sm:$0xff] %v10706_v1  ;;  %v1836_v42 = vadd.f32 %v10307_v46, %v1798_v59  ;;  %13283 = vst [vmem:[#allocation82_spill] sm:$0xff] %v10720_v52 }
 0x1c7   : > { %v2859_v1 = vmul.f32 %v10537_v40, %v2542_v27  ;;  %v10728_v59 = vsel %vm2649_vm3, %v13284_v19, %v2665_v16  ;;  %v10739_v40 = vsel %vm10688_vm15, 1.0, %v13278_v45  ;;  %v10741_v27 = vmax.f32 %v1835_v57, 0.0 }
 0x1c8   : > { %13285 = vst [vmem:[#allocation83_spill] sm:$0xff] %v10728_v59  ;;  %v2752_v47 = vmul.f32 %v10720_v52, %v10728_v59  ;;  %v10744_v16 = vsel %vm2525_vm2, %v2545_v30, %v2547_v31  ;;  %vm10746_vm1 = vcmp.ge.s32.totalorder %v2035_v18, 1  ;;  %v2049_v19 = vand.u32 15, %v1905_v32 }
 0x1c9   : > { %v10708_v10 = vpop.f32.mrb[26].mxu0  ;;  %13286 = vst [vmem:[#allocation84_spill] sm:$0xff] %v10741_v27  ;;  %13287 = vst [vmem:[#allocation85_spill] sm:$0xff] %v10744_v16  ;;  %v10753_v51 = vmax.f32 %v1836_v42, 0.0  ;;  %v1838_v22 = vadd.f32 %v10307_v46, %v1800_v24  ;;  %v2669_v57 = vrot.slane %v10628_v39, 1  ;;  %v9018_v18 = vpack.i.bf16 %v10484_v33, %v2859_v1 }
 0x1ca   : > { %8994 = vrot.lane.b32.xlu1 %v8993_v11, %s13171_s2  ;;  %9009 = vrot.lane.b32.xlu0 %v9008_v28, %s13171_s2  ;;  %v10722_v55 = vpop.f32.mrb[27].mxu0  ;;  %v9013_v11 = vpack.i.bf16 %v10638_v53, %v10660_v63  ;;  %v9028_v28 = vpack.i.bf16 %v2790_v54, %v10628_v39  ;;  %v1837_v54 = vadd.f32 %v10307_v46, %v1799_v9  ;;  %vm10781_vm4 = vcmp.le.s32.totalorder %v2000_v61, 14 }
 0x1cb   : > { %13290 = vst [vmem:[#allocation86_spill] sm:$0xff] %v10753_v51  ;;  %v2826_v32 = vmul.f32 %v10613_v0, %v10728_v59  ;;  %v10766_v42 = vsel %vm2525_vm2, %v2547_v31, %v2549_v58  ;;  %v9033_v9 = vpack.i.bf16 %v2752_v47, %v10744_v16  ;;  %v1802_v24 = vmul.f32 %v10303_v43, %v10591_v17 }
 0x1cc   : > { %v10779_v1 = vsel %vm2649_vm3, %v2669_v57, %v13113_v48  ;;  %v10788_v31 = vsel %vm10746_vm1, 1.0, %v13278_v45  ;;  %vm10790_vm5 = vcmp.ge.s32.totalorder %v2049_v19, 1  ;;  %v10798_v48 = vmax.f32 %v1838_v22, 0.0 }
 0x1cd   : > { %v10750_v53 = vpop.f32.mrb[28].mxu0  ;;  %13292 = vst [vmem:[#allocation88_spill] sm:$0xff] %v10779_v1  ;;  %v2551_v61 = vrot.slane %v10741_v27, 7  ;;  %v1907_v23 = vadd.s32 160, %v10289_v35  ;;  %v10806_v19 = vmax.f32 %v1837_v54, 0.0  ;;  %v9023_v33 = vpack.i.bf16 %v10398_v41, %v2826_v32 }
 0x1ce   : > { %9014 = vrot.lane.b32.xlu1 %v9013_v11, %s13168_s16  ;;  %9029 = vrot.lane.b32.xlu0 %v9028_v28, %s13168_s16  ;;  %v10759_v30 = vpop.f32.mrb[29].mxu0  ;;  %v10774_v28 = vmul.f32 %v10739_v40, %v10766_v42  ;;  %v1801_v11 = vmul.f32 %v10550_v37, %v10303_v43  ;;  %v10813_v37 = vmul.f32 %v10454_v5, %v10434_v62  ;;  %v10834_v62 = vsel %vm10781_vm4, 1.0, %v13278_v45 }
 0x1cf   : > { %13297 = vst [vmem:[#allocation89_spill] sm:$0xff] %v10806_v19  ;;  %v9038_v22 = vpack.i.bf16 %v10560_v56, %v10779_v1  ;;  %13300 = vst [vmem:[#allocation91_spill] sm:$0xff] %v10834_v62  ;;  %v2063_v0 = vand.u32 15, %v1907_v23  ;;  %v2861_v5 = vmul.f32 %v10570_v13, %v10698_v50  ;;  %v10864_v56 = vsel %vm2525_vm2, %v2549_v58, %v2551_v61 }
 0x1d0   : > { %13291 = vst [vmem:[#allocation87_spill] sm:$0xff] %v10774_v28  ;;  %v2792_v28 = vmul.f32 %v10597_v20, %v10698_v50  ;;  %v1839_v41 = vadd.f32 %v10307_v46, %v1801_v11  ;;  %13306 = vst [vmem:[#allocation94_spill] sm:$0xff] %v10864_v56 }
 0x1d1   : > { %v10794_v47 = vpop.f32.mrb[30].mxu0  ;;  %vm2323_vm6 = vcmp.ge.s32.totalorder %v2063_v0, 1  ;;  %v9048_v58 = vpack.i.bf16 %v10584_v25, %v2861_v5  ;;  %v1803_v0 = vmul.f32 %v10586_v8, %v10303_v43  ;;  %v1340_v25 = vld [vmem:[%s9812_s29 + $0xe0] sm:$0xff] }
 0x1d2   : > { %9019 = vrot.lane.b32.xlu1 %v9018_v18, %s13170_s18  ;;  %9034 = vrot.lane.b32.xlu0 %v9033_v9, %s13170_s18  ;;  %v10804_v59 = vpop.f32.mrb[31].mxu0  ;;  %v1840_v18 = vadd.f32 %v10307_v46, %v1802_v24  ;;  %v13298_v9 = vrot.slane %v10753_v51, 7  ;;  %v10840_v24 = vsel %vm10790_vm5, 1.0, %v13278_v45  ;;  %v9058_v11 = vpack.i.bf16 %v2792_v28, %v10701_v7 }
 0x1d3   : > { %v10871_v50 = vmax.f32 %v1839_v41, 0.0 }
 0x1d4   : > { %v10821_v29 = vsel %vm2525_vm2, %v2551_v61, %v13298_v9  ;;  %v9043_v9 = vpack.i.bf16 %v10744_v16, %v10741_v27  ;;  %v10850_v54 = vmax.f32 %v1840_v18, 0.0  ;;  %v13305_v16 = vrot.slane %v10806_v19, 7 }
 0x1d5   : > { %v10826_v32 = vmul.f32 %v10788_v31, %v10821_v29  ;;  %v13120_v18 = vrot.slane %v10741_v27, 1 }
 0x1d6   : > { %9024 = vrot.lane.b32.xlu1 %v9023_v33, %s13171_s2  ;;  %9039 = vrot.lane.b32.xlu0 %v9038_v22, %s13171_s2  ;;  %v13301_v33 = vrot.slane %v10579_v36, 1  ;;  %13303 = vst [vmem:[#allocation93_spill] sm:$0xff] %v10850_v54  ;;  %v13121_v13 = vrot.slane %v10850_v54, 7 }
 0x1d7   : > { %13299 = vst [vmem:[#allocation90_spill] sm:$0xff] %v10826_v32  ;;  %v13304_v32 = vrot.slane %v10798_v48, 7 }
 0x1d8   : > { %v10848_v22 = vsel %vm2649_vm3, %v13301_v33, %v2669_v57  ;;  %v1900_v57 = vadd.s32 104, %v10289_v35 }
 0x1d9   : > { %13302 = vst [vmem:[#allocation92_spill] sm:$0xff] %v10848_v22  ;;  %v2754_v17 = vmul.f32 %v10834_v62, %v10848_v22  ;;  %v10861_v28 = vsel %vm2525_vm2, %v13305_v16, %v13304_v32  ;;  %v2673_v16 = vrot.slane %v10701_v7, 1  ;;  %v2828_v41 = vmul.f32 %v10720_v52, %v10848_v22 }
 0x1da   : > { %v10869_v23 = vmul.f32 %v10840_v24, %v10861_v28  ;;  %9044 = vrot.lane.b32.xlu1 %v9043_v9, %s13168_s16  ;;  %9059 = vrot.lane.b32.xlu0 %v9058_v11, %s13168_s16  ;;  %v13122_v32 = vrot.slane %v10871_v50, 7  ;;  %v1804_v9 = vmul.f32 %v10303_v43, %v10617_v2  ;;  %v2014_v33 = vand.u32 15, %v1900_v57  ;;  %v1338_v57 = vld [vmem:[%s9812_s29 + $0xd0] sm:$0xff] }
 0x1db   : > { %v9063_v61 = vpack.i.bf16 %v2754_v17, %v10864_v56  ;;  %v10888_v11 = vsel %vm2649_vm3, %v2673_v16, %v13120_v18  ;;  %v10902_v2 = vsel %vm2323_vm6, 1.0, %v13278_v45  ;;  %v1902_v17 = vadd.s32 120, %v10289_v35 }
 0x1dc   : > { %13307 = vst [vmem:[#allocation95_spill] sm:$0xff] %v10869_v23  ;;  %13308 = vst [vmem:[#allocation96_spill] sm:$0xff] %v10888_v11  ;;  %v10899_v5 = vsel %vm2525_vm2, %v13122_v32, %v13121_v13  ;;  %v9068_v18 = vpack.i.bf16 %v10628_v39, %v10888_v11  ;;  %v2863_v13 = vmul.f32 %v10597_v20, %v10766_v42  ;;  %v13310_v32 = vrot.slane %v10660_v63, 1  ;;  %v1341_v39 = vld [vmem:[%s9812_s29 + $0xe8] sm:$0xff] }
 0x1dd   : > { %v10907_v8 = vmul.f32 %v10902_v2, %v10899_v5  ;;  %v1842_v52 = vadd.f32 %v10307_v46, %v1804_v9  ;;  %vm2412_vm7 = vcmp.le.s32.totalorder %v2014_v33, 14  ;;  %v2028_v20 = vand.u32 15, %v1902_v17 }
 0x1de   : > { %9049 = vrot.lane.b32.xlu1 %v9048_v58, %s13170_s18  ;;  %9064 = vrot.lane.b32.xlu0 %v9063_v61, %s13170_s18  ;;  %v1339_v58 = vld [vmem:[%s9812_s29 + $0xd8] sm:$0xff]  ;;  %v9053_v61 = vpack.i.bf16 %v10491_v38, %v2828_v41  ;;  %v10919_v23 = vsel %vm2649_vm3, %v13310_v32, %v2673_v16  ;;  %v9078_v16 = vpack.i.bf16 %v10668_v14, %v2863_v13  ;;  %v10935_v33 = vsel %vm2412_vm7, 1.0, %v13278_v45 }
 0x1df   : > { %13309 = vst [vmem:[#allocation97_spill] sm:$0xff] %v10907_v8  ;;  %13311 = vst [vmem:[#allocation98_spill] sm:$0xff] %v10919_v23  ;;  %v1841_v8 = vadd.f32 %v10307_v46, %v1803_v0  ;;  %v8533_v41 = vpack.c.bf16 %v1339_v58, %v1338_v57  ;;  %v2830_v22 = vmul.f32 %v10834_v62, %v10919_v23  ;;  %v1904_v17 = vadd.s32 136, %v10289_v35  ;;  %v1342_v58 = vld [vmem:[%s9812_s29 + $0xf0] sm:$0xff] }
 0x1e0   : > { %v9073_v32 = vpack.i.bf16 %v10864_v56, %v10806_v19  ;;  %v2794_v9 = vmul.f32 %v10683_v3, %v10766_v42  ;;  %v1806_v0 = vmul.f32 %v10303_v43, %v10647_v34  ;;  %v1906_v13 = vadd.s32 152, %v10289_v35 }
 0x1e1   : > { %8778 = vmatpush1.bf16.msra.mxu1 %v8533_v41  ;;  %8534 = vmatpush1.bf16.msra.mxu0 %v8533_v41  ;;  %v13312_v57 = vmov 0.0|0.0   ;;  %v10946_v62 = vmax.f32 %v1841_v8, 0.0  ;;  %v1805_v42 = vmul.f32 %v10608_v6, %v10303_v43  ;;  %v1909_v34 = vadd.s32 176, %v10289_v35 }
 0x1e2   : > { %9054 = vrot.lane.b32.xlu1 %v9053_v61, %s13171_s2  ;;  %9069 = vrot.lane.b32.xlu0 %v9068_v18, %s13171_s2  ;;  %v10937_v18 = vmax.f32 %v1842_v52, 0.0  ;;  %v1343_v61 = vld [vmem:[%s9812_s29 + $0xf8] sm:$0xff]  ;;  %v8536_v52 = vpack.c.bf16 %v1341_v39, %v1340_v25  ;;  %v9083_v41 = vpack.i.bf16 %v10579_v36, %v2830_v22  ;;  %v2756_v14 = vmul.f32 %v10935_v33, %v10919_v23 }
 0x1e3   : > { %8763 = vmatprep.subr.bf16.mxu1 %v13312_v57  ;;  %v2677_v56 = vrot.slane %v10753_v51, 1  ;;  %8535 = vmatprep.subr.bf16.mxu0 %v13312_v57  ;;  %v9088_v6 = vpack.i.bf16 %v2794_v9, %v10753_v51  ;;  %v2077_v25 = vand.u32 15, %v1909_v34  ;;  %v8539_v22 = vpack.c.bf16 %v1343_v61, %v1342_v58 }
 0x1e4   : > { %v1844_v23 = vadd.f32 %v10307_v46, %v1806_v0  ;;  %v2042_v36 = vand.u32 15, %v1904_v17  ;;  %v13133_v8 = vrot.slane %v10946_v62, 7  ;;  %v2056_v38 = vand.u32 15, %v1906_v13 }
 0x1e5   : > { %8779 = vmatpush1.bf16.msra.mxu1 %v8536_v52  ;;  %8537 = vmatpush1.bf16.msra.mxu0 %v8536_v52  ;;  %v1843_v9 = vadd.f32 %v10307_v46, %v1805_v42  ;;  %v2679_v34 = vrot.slane %v10806_v19, 1  ;;  %vm10975_vm8 = vcmp.le.s32.totalorder %v2028_v20, 14  ;;  %vm2325_vm9 = vcmp.ge.s32.totalorder %v2077_v25, 1 }
 0x1e6   : > { %9079 = vrot.lane.b32.xlu1 %v9078_v16, %s13170_s18  ;;  %9074 = vrot.lane.b32.xlu0 %v9073_v32, %s13168_s16  ;;  %v13313_v16 = vrot.slane %v10806_v19, 7  ;;  %v13314_v32 = vrot.slane %v10753_v51, 7  ;;  %v13318_v17 = vrot.slane %v10741_v27, 1  ;;  %v13320_v61 = vrot.slane %v10937_v18, 7 }
 0x1e7   : > { %8764 = vmatprep.subr.bf16.mxu1 %v13312_v57  ;;  %8538 = vmatprep.subr.bf16.mxu0 %v13312_v57  ;;  %v10993_v20 = vsel %vm2325_vm9, 1.0, %v13278_v45  ;;  %vm11010_vm10 = vcmp.le.s32.totalorder %v2042_v36, 14  ;;  %vm11014_vm11 = vcmp.le.s32.totalorder %v2056_v38, 14  ;;  %v1911_v36 = vadd.s32 192, %v10289_v35 }
 0x1e8   : > { %v10965_v39 = vsel %vm2525_vm2, %v13314_v32, %v13313_v16  ;;  %v10983_v13 = vsel %vm2649_vm3, %v13318_v17, %v2677_v56  ;;  %v10990_v42 = vsel %vm2525_vm2, %v13133_v8, %v13320_v61  ;;  %v11005_v16 = vmax.f32 %v1844_v23, 0.0 }
 0x1e9   : > { %13315 = vst [vmem:[#allocation99_spill] sm:$0xff] %v10965_v39  ;;  %v9093_v0 = vpack.i.bf16 %v2756_v14, %v10965_v39  ;;  %13319 = vst [vmem:[#allocation100_spill] sm:$0xff] %v10983_v13  ;;  %v9103_v52 = vpack.i.bf16 %v10965_v39, %v10871_v50  ;;  %v2865_v14 = vmul.f32 %v10683_v3, %v10821_v29  ;;  %8780 = vmatpush1.bf16.msra.mxu1 %v8539_v22  ;;  %vm3616_vm7 = vcmask 261120  }
 0x1ea   : > { %9084 = vrot.lane.b32.xlu1 %v9083_v41, %s13171_s2  ;;  %9089 = vrot.lane.b32.xlu0 %v9088_v6, %s13168_s16  ;;  %v1808_v41 = vmul.f32 %v10303_v43, %v10685_v12  ;;  %v11003_v6 = vmul.f32 %v10993_v20, %v10990_v42  ;;  %v11008_v32 = vsel %vm2649_vm3, %v2677_v56, %v2679_v34  ;;  %v11018_v3 = vmax.f32 %v1843_v9, 0.0 }
 0x1eb   : > { %13322 = vst [vmem:[#allocation102_spill] sm:$0xff] %v11008_v32  ;;  %8540 = vmatpush1.bf16.msra.mxu0 %v8539_v22  ;;  %v1807_v12 = vmul.f32 %v10641_v60, %v10303_v43  ;;  %v2832_v56 = vmul.f32 %v10935_v33, %v10983_v13  ;;  %v2796_v38 = vmul.f32 %v10739_v40, %v10821_v29  ;;  %v2681_v23 = vrot.slane %v10798_v48, 1 }
 0x1ec   : > { %13321 = vst [vmem:[#allocation101_spill] sm:$0xff] %v11003_v6  ;;  %v2683_v22 = vrot.slane %v10871_v50, 1  ;;  %v9108_v61 = vpack.i.bf16 %v10779_v1, %v2865_v14  ;;  %v1846_v60 = vadd.f32 %v10307_v46, %v1808_v41  ;;  %v11039_v8 = vsel %vm10975_vm8, 1.0, %v13278_v45 }
 0x1ed   : > { %v11044_v29 = vsel %vm11010_vm10, 1.0, %v13278_v45  ;;  %v11049_v9 = vsel %vm11014_vm11, 1.0, %v13278_v45  ;;  %v13135_v14 = vrot.slane %v11018_v3, 7  ;;  %v1845_v41 = vadd.f32 %v10307_v46, %v1807_v12 }
 0x1ee   : > { %9094 = vrot.lane.b32.xlu0 %v9093_v0, %s13170_s18  ;;  %9104 = vrot.lane.b32.xlu1 %v9103_v52, %s13168_s16  ;;  %v9098_v0 = vpack.i.bf16 %v10701_v7, %v11008_v32  ;;  %v2091_v52 = vand.u32 15, %v1911_v36  ;;  %v9113_v58 = vpack.i.bf16 %v10660_v63, %v2832_v56  ;;  %v2758_v25 = vmul.f32 %v11039_v8, %v10983_v13 }
 0x1ef   : > { %v9118_v36 = vpack.i.bf16 %v2796_v38, %v10798_v48  ;;  %v11060_v17 = vsel %vm2649_vm3, %v2681_v23, %v2683_v22  ;;  %v13328_v57 = vrot.slane %v11005_v16, 7  ;;  %v11073_v56 = vsel %vm2649_vm3, %v2679_v34, %v2681_v23 }
 0x1f0   : > { %vm2327_vm12 = vcmp.ge.s32.totalorder %v2091_v52, 1  ;;  %13327 = vst [vmem:[#allocation103_spill] sm:$0xff] %v11060_v17  ;;  %v1810_v38 = vmul.f32 %v10303_v43, %v10722_v55  ;;  %v13330_v6 = vrot.slane %v10871_v50, 7  ;;  %v2685_v13 = vrot.slane %v10850_v54, 1 }
 0x1f1   : > { %v11067_v12 = vsel %vm2525_vm2, %v13135_v14, %v13328_v57  ;;  %v13331_v57 = vrot.slane %v10798_v48, 7  ;;  %v1913_v23 = vadd.s32 208, %v10289_v35  ;;  %v1809_v55 = vmul.f32 %v10670_v49, %v10303_v43 }
 0x1f2   : > { %9099 = vrot.lane.b32.xlu0 %v9098_v0, %s13171_s2  ;;  %9109 = vrot.lane.b32.xlu1 %v9108_v61, %s13170_s18  ;;  %v11070_v0 = vsel %vm2327_vm12, 1.0, %v13278_v45  ;;  %v11075_v61 = vmax.f32 %v1846_v60, 0.0  ;;  %v11093_v60 = vmax.f32 %v1845_v41, 0.0  ;;  %v2867_v34 = vmul.f32 %v10739_v40, %v10861_v28 }
 0x1f3   : > { %v11081_v52 = vmul.f32 %v11070_v0, %v11067_v12  ;;  %v11088_v14 = vsel %vm2525_vm2, %v13331_v57, %v13330_v6  ;;  %v9123_v57 = vpack.i.bf16 %v11060_v17, %v10741_v27  ;;  %v2834_v41 = vmul.f32 %v11039_v8, %v11073_v56 }
 0x1f4   : > { %13332 = vst [vmem:[#allocation105_spill] sm:$0xff] %v11088_v14  ;;  %v2105_v1 = vand.u32 15, %v1913_v23  ;;  %v13141_v49 = vrot.slane %v11093_v60, 7  ;;  %v1848_v39 = vadd.f32 %v10307_v46, %v1810_v38  ;;  %v13333_v6 = vrot.slane %v10946_v62, 1 }
 0x1f5   : > { %13329 = vst [vmem:[#allocation104_spill] sm:$0xff] %v11081_v52  ;;  %v1908_v52 = vadd.s32 168, %v10289_v35  ;;  %v2760_v40 = vmul.f32 %v11044_v29, %v11073_v56  ;;  %v11120_v7 = vsel %vm2649_vm3, %v2683_v22, %v2685_v13  ;;  %v1847_v23 = vadd.f32 %v10307_v46, %v1809_v55 }
 0x1f6   : > { %9114 = vrot.lane.b32.xlu1 %v9113_v58, %s13171_s2  ;;  %9119 = vrot.lane.b32.xlu0 %v9118_v36, %s13168_s16  ;;  %v9128_v58 = vpack.i.bf16 %v2758_v25, %v11088_v14  ;;  %v2798_v36 = vmul.f32 %v10788_v31, %v10861_v28  ;;  %v11115_v27 = vsel %vm2649_vm3, %v2685_v13, %v13333_v6  ;;  %vm2329_vm13 = vcmp.ge.s32.totalorder %v2105_v1, 1 }
 0x1f7   : > { %13334 = vst [vmem:[#allocation106_spill] sm:$0xff] %v11115_v27  ;;  %v13335_v28 = vrot.slane %v10946_v62, 7  ;;  %v13336_v25 = vrot.slane %v10850_v54, 7  ;;  %v13338_v6 = vrot.slane %v11075_v61, 7  ;;  %v11140_v1 = vsel %vm2329_vm13, 1.0, %v13278_v45 }
 0x1f8   : > { %13339 = vst [vmem:[#allocation108_spill] sm:$0xff] %v11140_v1  ;;  %v9138_v22 = vpack.i.bf16 %v10888_v11, %v2867_v34  ;;  %v2836_v11 = vmul.f32 %v11044_v29, %v11120_v7  ;;  %vm3649_vm9 = vcmask 523264   ;;  %vm3682_vm10 = vcmask 785408  }
 0x1f9   : > { %v11129_v38 = vsel %vm2525_vm2, %v13336_v25, %v13335_v28  ;;  %v11137_v13 = vsel %vm2525_vm2, %v13141_v49, %v13338_v6  ;;  %v9148_v28 = vpack.i.bf16 %v2798_v36, %v10850_v54  ;;  %v9153_v25 = vpack.i.bf16 %v11115_v27, %v10806_v19 }
 0x1fa   : > { %9124 = vrot.lane.b32.xlu1 %v9123_v57, %s13171_s2  ;;  %9129 = vrot.lane.b32.xlu0 %v9128_v58, %s13170_s18  ;;  %13337 = vst [vmem:[#allocation107_spill] sm:$0xff] %v11129_v38  ;;  %v9133_v57 = vpack.i.bf16 %v11088_v14, %v10946_v62  ;;  %v9143_v58 = vpack.i.bf16 %v2834_v41, %v10813_v37  ;;  %v11153_v6 = vmax.f32 %v1848_v39, 0.0  ;;  %v1915_v41 = vadd.s32 224, %v10289_v35 }
 0x1fb   : > { %v11148_v55 = vmul.f32 %v11140_v1, %v11137_v13  ;;  %v1812_v49 = vmul.f32 %v10303_v43, %v10759_v30  ;;  %v9158_v34 = vpack.i.bf16 %v2760_v40, %v11129_v38  ;;  %v11162_v37 = vmul.f32 %v10788_v31, %v10899_v5 }
 0x1fc   : > { %v9163_v39 = vpack.i.bf16 %v11129_v38, %v11018_v3  ;;  %v11169_v36 = vmax.f32 %v1847_v23, 0.0  ;;  %v1811_v30 = vmul.f32 %v10708_v10, %v10303_v43  ;;  %v13146_v40 = vrot.slane %v11153_v6, 7 }
 0x1fd   : > { %13340 = vst [vmem:[#allocation109_spill] sm:$0xff] %v11148_v55  ;;  %v11176_v31 = vmul.f32 %v10840_v24, %v10899_v5  ;;  %v2689_v55 = vrot.slane %v10937_v18, 1  ;;  %v2070_v14 = vand.u32 15, %v1908_v52  ;;  %v1910_v19 = vadd.s32 184, %v10289_v35  ;;  %v1345_v52 = vld [vmem:[%s9812_s29 + $0x108] sm:$0xff] }
 0x1fe   : > { %9139 = vrot.lane.b32.xlu0 %v9138_v22, %s13170_s18  ;;  %9134 = vrot.lane.b32.xlu1 %v9133_v57, %s13168_s16  ;;  %v2119_v22 = vand.u32 15, %v1915_v41  ;;  %v2691_v57 = vrot.slane %v11018_v3, 1  ;;  %v13147_v23 = vrot.slane %v11169_v36, 7  ;;  %v1850_v38 = vadd.f32 %v10307_v46, %v1812_v49 }
 0x1ff   : > { %v9168_v43 = vpack.i.bf16 %v2836_v11, %v10753_v51  ;;  %v9173_v10 = vpack.i.bf16 %v11008_v32, %v11162_v37  ;;  %v1912_v5 = vadd.s32 200, %v10289_v35  ;;  %v1849_v41 = vadd.f32 %v10307_v46, %v1811_v30 }
 0x200   : > { %vm2331_vm14 = vcmp.ge.s32.totalorder %v2119_v22, 1  ;;  %v11196_v11 = vsel %vm2525_vm2, %v13147_v23, %v13146_v40  ;;  %v9178_v37 = vpack.i.bf16 %v11176_v31, %v10937_v18  ;;  %vm2420_vm15 = vcmp.le.s32.totalorder %v2070_v14, 14  ;;  %v1344_v31 = vld [vmem:[%s9812_s29 + $0x100] sm:$0xff] }
 0x201   : > { %13341 = vst [vmem:[#allocation110_spill] sm:$0xff] %v11196_v11  ;;  %v11199_v49 = vsel %vm2331_vm14, 1.0, %v13278_v45  ;;  %v13344_v30 = vrot.slane %v10946_v62, 1  ;;  %v2084_v40 = vand.u32 15, %v1910_v19  ;;  %v11217_v23 = vmax.f32 %v1850_v38, 0.0 }
 0x202   : > { %9144 = vrot.lane.b32.xlu1 %v9143_v58, %s13171_s2  ;;  %9149 = vrot.lane.b32.xlu0 %v9148_v28, %s13168_s16  ;;  %13342 = vst [vmem:[#allocation111_spill] sm:$0xff] %v11199_v49  ;;  %v2762_v58 = vmul.f32 %v11049_v9, %v11120_v7  ;;  %v11207_v46 = vmul.f32 %v11199_v49, %v11196_v11  ;;  %v13345_v32 = vrot.slane %v11018_v3, 7  ;;  %v13346_v14 = vrot.slane %v10937_v18, 7 }
 0x203   : > { %v11210_v28 = vsel %vm2649_vm3, %v2689_v55, %v2691_v57  ;;  %v11215_v22 = vsel %vm2649_vm3, %v13344_v30, %v2689_v55  ;;  %v2098_v63 = vand.u32 15, %v1912_v5  ;;  %v1917_v49 = vadd.s32 240, %v10289_v35 }
 0x204   : > { %13343 = vst [vmem:[#allocation112_spill] sm:$0xff] %v11207_v46  ;;  %v11226_v46 = vsel %vm2525_vm2, %v13346_v14, %v13345_v32  ;;  %v11233_v19 = vsel %vm2420_vm15, 1.0, %v13278_v45  ;;  %v11235_v38 = vmax.f32 %v1849_v41, 0.0  ;;  %v13348_v55 = vrot.slane %v11005_v16, 1  ;;  %v9528_v41 = vld [vmem:[%s9802_s21] ss:$0 sm:$0xff] }
 0x205   : > { %13347 = vst [vmem:[#allocation113_spill] sm:$0xff] %v11226_v46  ;;  %v13157_v32 = vrot.slane %v11217_v23, 7  ;;  %v13162_v14 = vrot.slane %v11169_v36, 1  ;;  %v2133_v51 = vand.u32 15, %v1917_v49  ;;  %vm11247_vm1 = vcmp.le.s32.totalorder %v2084_v40, 14 }
 0x206   : > { %9154 = vrot.lane.b32.xlu1 %v9153_v25, %s13171_s2  ;;  %9159 = vrot.lane.b32.xlu0 %v9158_v34, %s13170_s18  ;;  %v11240_v30 = vsel %vm2649_vm3, %v2691_v57, %v13348_v55  ;;  %v11245_v25 = vpack.c.bf16 %v1345_v52, %v1344_v31  ;;  %v1813_v1 = vmul.f32 %v9528_v41, %v10750_v53  ;;  %v13160_v11 = vrot.slane %v11153_v6, 1  ;;  %v9529_v34 = vld [vmem:[%s9807_s25] ss:$0 sm:$0xff] }
 0x207   : > { %v13158_v57 = vrot.slane %v11235_v38, 7  ;;  %vm2424_vm4 = vcmp.le.s32.totalorder %v2098_v63, 14  ;;  %v1814_v55 = vmul.f32 %v9528_v41, %v10804_v59  ;;  %v13159_v5 = vrot.slane %v11217_v23, 1 }
 0x208   : > { %vm2333_vm5 = vcmp.ge.s32.totalorder %v2133_v51, 1  ;;  %8542 = vmatprep.subr.bf16.mxu0 %v11245_v25  ;;  %v11272_v51 = vmul.f32 %v10935_v33, %v11073_v56  ;;  %v11276_v59 = vmul.f32 %v11039_v8, %v11120_v7  ;;  %v13353_v40 = vrot.slane %v11075_v61, 1 }
 0x209   : > { %v11265_v53 = vsel %vm2525_vm2, %v13158_v57, %v13157_v32  ;;  %v11268_v63 = vsel %vm2333_vm5, 1.0, %v13278_v45  ;;  %v13161_v49 = vrot.slane %v11235_v38, 1  ;;  %v11296_v7 = vsel %vm2424_vm4, 1.0, %v13278_v45 }
 0x20a   : > { %9169 = vrot.lane.b32.xlu0 %v9168_v43, %s13171_s2  ;;  %9164 = vrot.lane.b32.xlu1 %v9163_v39, %s13168_s16  ;;  %13351 = vst [vmem:[#allocation114_spill] sm:$0xff] %v11272_v51  ;;  %13352 = vst [vmem:[#allocation115_spill] sm:$0xff] %v11276_v59  ;;  %v11281_v39 = vsel %vm11247_vm1, 1.0, %v13278_v45  ;;  %v13354_v43 = vrot.slane %v11093_v60, 1  ;;  %v11293_v33 = vmul.f32 %v11268_v63, %v11265_v53  ;;  %vm4646_vm12 = vcmask 195584  }
 0x20b   : > { %v11303_v8 = vsel %vm2649_vm3, %v13162_v14, %v13160_v11  ;;  %v11307_v56 = vmul.f32 %v11044_v29, %v11215_v22  ;;  %v11311_v31 = vmul.f32 %v11049_v9, %v11240_v30  ;;  %v9183_v11 = vpack.i.bf16 %v11210_v28, %v10871_v50 }
 0x20c   : > { %v11288_v52 = vsel %vm2649_vm3, %v13354_v43, %v13353_v40  ;;  %13355 = vst [vmem:[#allocation116_spill] sm:$0xff] %v11293_v33  ;;  %v1852_v40 = vadd.f32 %v9529_v34, %v1814_v55  ;;  %v11319_v43 = vsel %vm2649_vm3, %v13161_v49, %v13159_v5  ;;  %v11327_v29 = vmul.f32 %v11281_v39, %v11303_v8 }
 0x20d   : > { %13356 = vst [vmem:[#allocation117_spill] sm:$0xff] %v11307_v56  ;;  %13357 = vst [vmem:[#allocation118_spill] sm:$0xff] %v11311_v31  ;;  %v11323_v32 = vmul.f32 %v11233_v19, %v11288_v52  ;;  %v1914_v55 = vadd.s32 216, %v10289_v35  ;;  %v11334_v57 = vmul.f32 %v11296_v7, %v11319_v43  ;;  %v1851_v5 = vadd.f32 %v9529_v34, %v1813_v1 }
 0x20e   : > { %13359 = vst [vmem:[#allocation120_spill] sm:$0xff] %v11327_v29  ;;  %9174 = vrot.lane.b32.xlu1 %v9173_v10, %s13170_s18  ;;  %9179 = vrot.lane.b32.xlu0 %v9178_v37, %s13168_s16  ;;  %v9188_v49 = vpack.i.bf16 %v2762_v58, %v11226_v46  ;;  %v2838_v14 = vmul.f32 %v11049_v9, %v11215_v22  ;;  %v11341_v33 = vmax.f32 %v1852_v40, 0.0  ;;  %vm5176_vm13 = vcmask 1043456  }
 0x20f   : > { %13358 = vst [vmem:[#allocation119_spill] sm:$0xff] %v11323_v32  ;;  %13360 = vst [vmem:[#allocation121_spill] sm:$0xff] %v11334_v57  ;;  %v2112_v10 = vand.u32 15, %v1914_v55  ;;  %v11345_v37 = vmax.f32 %v1851_v5, 0.0  ;;  %v9193_v58 = vpack.i.bf16 %v11226_v46, %v11093_v60  ;;  %v2871_v9 = vmul.f32 %v10840_v24, %v10990_v42 }
 0x210   : > { %v9198_v57 = vpack.i.bf16 %v2838_v14, %v10798_v48  ;;  %v1815_v5 = vmul.f32 %v9528_v41, %v10794_v47  ;;  %v2764_v47 = vmul.f32 %v11233_v19, %v11215_v22  ;;  %v13363_v41 = vrot.slane %v11093_v60, 7 }
 0x211   : > { %vm2426_vm6 = vcmp.le.s32.totalorder %v2112_v10, 14  ;;  %v9203_v32 = vpack.i.bf16 %v11060_v17, %v2871_v9  ;;  %v13364_v10 = vrot.slane %v11005_v16, 7  ;;  %v13366_v14 = vrot.slane %v11341_v33, 1 }
 0x212   : > { %9184 = vrot.lane.b32.xlu1 %v9183_v11, %s13171_s2  ;;  %9189 = vrot.lane.b32.xlu0 %v9188_v49, %s13170_s18  ;;  %v2802_v11 = vmul.f32 %v10902_v2, %v10990_v42  ;;  %v13361_v42 = vrot.slane %v11093_v60, 1  ;;  %v13362_v49 = vrot.slane %v11005_v16, 1  ;;  %v11384_v9 = vsel %vm2426_vm6, 1.0, %v13278_v45 }
 0x213   : > { %v1853_v22 = vadd.f32 %v9529_v34, %v1815_v5  ;;  %v2873_v5 = vmul.f32 %v10902_v2, %v11067_v12  ;;  %vm9768_vm14 = vmmov 1   ;;  %vm5151_vm1 = vcmask 97280  }
 0x214   : > { %v11347_v29 = vpop.permute.xlu1 %8904  ;;  %v11349_v1 = vpop.permute.xlu0 %8909  ;;  %v9208_v24 = vpack.i.bf16 %v2802_v11, %v11005_v16  ;;  %v1916_v11 = vadd.s32 232, %v10289_v35  ;;  %vm8586_vm15 = vmpackc.low %vm5176_vm13, %vm9768_vm14 }
 0x215   : > { %v11411_v34 = vmax.f32 %v1853_v22, 0.0  ;;  %v8906_v51 = vunpack.i.l.bf16 %v11347_v29 }
 0x216   : > { %9199 = vrot.lane.b32.xlu0 %v9198_v57, %s13171_s2  ;;  %9194 = vrot.lane.b32.xlu1 %v9193_v58, %s13168_s16  ;;  %v11372_v57 = vsel %vm2649_vm3, %v13362_v49, %v13361_v42  ;;  %v11381_v58 = vsel %vm2525_vm2, %v13364_v10, %v13363_v41  ;;  %v13367_v49 = vrot.slane %v11345_v37, 1 }
 0x217   : > { %13365 = vst [vmem:[#allocation122_spill] sm:$0xff] %v11381_v58  ;;  %v9213_v31 = vpack.i.bf16 %v11372_v57, %v10946_v62  ;;  %v9218_v56 = vpack.i.bf16 %v2764_v47, %v11381_v58 }
 0x218   : > { %v11363_v40 = vpop.permute.xlu1 %8914  ;;  %v8920_v55 = vpop.permute.xlu0 %8919  ;;  %v11392_v42 = vsel %vm2649_vm3, %v13367_v49, %v13366_v14  ;;  %v2840_v14 = vmul.f32 %v11233_v19, %v11240_v30  ;;  %v9223_v19 = vpack.i.bf16 %v11381_v58, %v11169_v36  ;;  %v13370_v58 = vrot.slane %v11075_v61, 1 }
 0x219   : > { %v11398_v41 = vmul.f32 %v11384_v9, %v11392_v42 }
 0x21a   : > { %9204 = vrot.lane.b32.xlu1 %v9203_v32, %s13170_s18  ;;  %9209 = vrot.lane.b32.xlu0 %v9208_v24, %s13168_s16  ;;  %v2126_v32 = vand.u32 15, %v1916_v11  ;;  %v2804_v24 = vmul.f32 %v10993_v20, %v11067_v12  ;;  %v9228_v47 = vpack.i.bf16 %v2840_v14, %v10850_v54  ;;  %v8921_v11 = vunpack.i.l.bf16 %v8920_v55 }
 0x21b   : > { %13368 = vst [vmem:[#allocation123_spill] sm:$0xff] %v11398_v41  ;;  %v9233_v12 = vpack.i.bf16 %v11115_v27, %v2873_v5  ;;  %v13369_v14 = vrot.slane %v11169_v36, 1 }
 0x21c   : > { %v11400_v10 = vpop.permute.xlu1 %8924  ;;  %v11402_v46 = vpop.permute.xlu0 %8944  ;;  %vm2428_vm8 = vcmp.le.s32.totalorder %v2126_v32, 14  ;;  %v9238_v22 = vpack.i.bf16 %v2804_v24, %v11075_v61  ;;  %v13372_v32 = vrot.slane %v11075_v61, 7  ;;  %v2766_v24 = vmul.f32 %v11281_v39, %v11240_v30 }
 0x21d   : > { %v11450_v27 = vsel %vm2428_vm8, 1.0, %v13278_v45  ;;  %v3717_v30 = vsel %vm3616_vm7, %v10375_v26, %v8921_v11 }
 0x21e   : > { %9214 = vrot.lane.b32.xlu1 %v9213_v31, %s13171_s2  ;;  %9219 = vrot.lane.b32.xlu0 %v9218_v56, %s13170_s18  ;;  %v2616_v31 = vmul.f32 0.0, %v10358_v15  ;;  %v8922_v56 = vunpack.i.h.bf16 %v8920_v55  ;;  %v11435_v15 = vsel %vm2649_vm3, %v13370_v58, %v13369_v14  ;;  %v13371_v55 = vrot.slane %v11169_v36, 7 }
 0x21f   : > { %v13373_v58 = vrot.slane %v11411_v34, 1 }
 0x220   : > { %v11417_v49 = vpop.permute.xlu1 %8929  ;;  %v11419_v41 = vpop.permute.xlu0 %8949  ;;  %v3619_v54 = vsel %vm3616_vm7, %v10403_v44, %v8922_v56  ;;  %v9243_v44 = vpack.i.bf16 %v11435_v15, %v11018_v3 }
 0x221   : > { %v11455_v14 = vsel %vm2649_vm3, %v13373_v58, 0.0 }
 0x222   : > { %9229 = vrot.lane.b32.xlu0 %v9228_v47, %s13171_s2  ;;  %9224 = vrot.lane.b32.xlu1 %v9223_v19, %s13168_s16  ;;  %v11442_v47 = vsel %vm2525_vm2, %v13372_v32, %v13371_v55  ;;  %v11445_v19 = vunpack.i.h.bf16 %v11347_v29  ;;  %v11466_v58 = vmul.f32 %v11450_v27, %v11455_v14 }
 0x224   : > { %v8935_v5 = vpop.permute.xlu1 %8934  ;;  %v8960_v2 = vpop.permute.xlu0 %8959  ;;  %13374 = vst [vmem:[#allocation124_spill] sm:$0xff] %v11466_v58  ;;  %v9248_v58 = vpack.i.bf16 %v2766_v24, %v11442_v47 }
 0x225   : > { %v8937_v59 = vunpack.i.h.bf16 %v8935_v5  ;;  %v8936_v17 = vunpack.i.l.bf16 %v8935_v5  ;;  %v8962_v55 = vunpack.i.h.bf16 %v8960_v2  ;;  %v8961_v32 = vunpack.i.l.bf16 %v8960_v2 }
 0x226   : > { %9234 = vrot.lane.b32.xlu1 %v9233_v12, %s13170_s18  ;;  %9239 = vrot.lane.b32.xlu0 %v9238_v22, %s13168_s16 }
 0x227   : > { %v3749_v2 = vsel %vm3649_vm9, %v3717_v30, %v8961_v32  ;;  %v3652_v29 = vsel %vm3649_vm9, %v3619_v54, %v8962_v55  ;;  %v2842_v32 = vmul.f32 %v11281_v39, %v11288_v52  ;;  %v1346_v30 = vld [vmem:[%s9812_s29 + $0x110] sm:$0xff]  ;;  %v1347_v54 = vld [vmem:[%s9812_s29 + $0x118] sm:$0xff]  ;;  %v3617_v55 = vsel %vm3616_vm7, %v2616_v31, %v11445_v19 }
 0x228   : > { %v8940_v12 = vpop.permute.xlu1 %8939  ;;  %v11470_v5 = vpop.permute.xlu0 %8969  ;;  %v3781_v22 = vsel %vm3682_vm10, %v3749_v2, %v8936_v17  ;;  %v3685_v26 = vsel %vm3682_vm10, %v3652_v29, %v8937_v59  ;;  %v8917_v17 = vunpack.i.h.bf16 %v11363_v40  ;;  %v8916_v59 = vunpack.i.l.bf16 %v11363_v40 }
 0x229   : > { %v8942_v56 = vunpack.i.h.bf16 %v8940_v12  ;;  %v8941_v11 = vunpack.i.l.bf16 %v8940_v12  ;;  %3981 = vmatprep.mubr.f32.mxu1 %v3781_v22  ;;  %v3715_v2 = vsel %vm3616_vm7, %v10342_v4, %v8906_v51  ;;  %v9253_v29 = vpack.i.bf16 %v11442_v47, %v11235_v38 }
 0x22a   : > { %3982 = vmatmul.mubr.f32.vlgmr.msra.gmra.mrb[0].mxu1 %v3685_v26  ;;  %9244 = vrot.lane.b32.xlu1 %v9243_v44, %s13171_s2  ;;  %v2875_v4 = vmul.f32 %v10993_v20, %v11137_v13  ;;  %v8545_v51 = vpack.c.bf16 %v1347_v54, %v1346_v30  ;;  %v2806_v26 = vmul.f32 %v11070_v0, %v11137_v13  ;;  %v13375_v20 = vrot.slane %v11235_v38, 1 }
 0x22b   : > { %9249 = vrot.lane.b32.xlu0 %v9248_v58, %s13170_s18  ;;  %v3747_v24 = vsel %vm3649_vm9, %v3715_v2, %v8941_v11  ;;  %v3650_v39 = vsel %vm3649_vm9, %v3617_v55, %v8942_v56  ;;  %v9258_v58 = vpack.i.bf16 %v2842_v32, %v10937_v18  ;;  %v13376_v30 = vrot.slane %v11153_v6, 1 }
 0x22c   : > { %v11493_v31 = vpop.permute.xlu1 %8954  ;;  %v11495_v12 = vpop.permute.xlu0 %8974  ;;  %v3779_v40 = vsel %vm3682_vm10, %v3747_v24, %v8916_v59  ;;  %v3683_v22 = vsel %vm3682_vm10, %v3650_v39, %v8917_v17  ;;  %v9263_v11 = vpack.i.bf16 %v11210_v28, %v2875_v4  ;;  %v9268_v55 = vpack.i.bf16 %v2806_v26, %v11153_v6 }
 0x22d   : > { %3971 = vmatprep.mubr.f32.mxu0 %v3779_v40  ;;  %v11515_v32 = vsel %vm2649_vm3, %v13376_v30, %v13375_v20  ;;  %v8947_v17 = vunpack.i.h.bf16 %v11402_v46  ;;  %v8946_v59 = vunpack.i.l.bf16 %v11402_v46  ;;  %v13377_v2 = vrot.slane %v11235_v38, 7  ;;  %v13379_v40 = vld [vmem:[#allocation51_spill] sm:$0xff] }
 0x22e   : > { %3972 = vmatmul.mubr.f32.vlgmr.msra.gmra.mrb[32].mxu0 %v3683_v22  ;;  %9254 = vrot.lane.b32.xlu1 %v9253_v29, %s13168_s16  ;;  %v13378_v24 = vrot.slane %v11153_v6, 7  ;;  %v2844_v22 = vmul.f32 %v11296_v7, %v11303_v8  ;;  %v8927_v4 = vunpack.i.h.bf16 %v11400_v10  ;;  %v8952_v30 = vunpack.i.h.bf16 %v11419_v41 }
 0x22f   : > { %9259 = vrot.lane.b32.xlu0 %v9258_v58, %s13171_s2  ;;  %8544 = vmatpush3.bf16.msra.mxu0 %v11245_v25  ;;  %v2768_v25 = vmul.f32 %v11296_v7, %v11288_v52  ;;  %v9273_v52 = vpack.i.bf16 %v11515_v32, %v11093_v60  ;;  %v8926_v58 = vunpack.i.l.bf16 %v11400_v10 }
 0x230   : > { %v8965_v44 = vpop.permute.xlu1 %8964  ;;  %v11507_v56 = vpop.permute.xlu0 %8979  ;;  %8546 = vmatprep.subr.bf16.mxu0 %v8545_v51  ;;  %v11528_v39 = vsel %vm2525_vm2, %v13378_v24, %v13377_v2  ;;  %v13382_v2 = vrot.slane %v11217_v23, 1 }
 0x231   : > { %v8967_v13 = vunpack.i.h.bf16 %v8965_v44  ;;  %v8966_v54 = vunpack.i.l.bf16 %v8965_v44  ;;  %v9278_v20 = vpack.i.bf16 %v2768_v25, %v11528_v39  ;;  %v9283_v25 = vpack.i.bf16 %v11528_v39, %v11345_v37 }
 0x232   : > { %9264 = vrot.lane.b32.xlu1 %v9263_v11, %s13170_s18 }
 0x233   : > { %9269 = vrot.lane.b32.xlu0 %v9268_v55, %s13168_s16  ;;  %v3718_v29 = vsel %vm3616_vm7, %v10367_v21, %v8966_v54  ;;  %v3620_v46 = vsel %vm3616_vm7, %v13379_v40, %v8967_v13  ;;  %8548 = vmatpush3.bf16.msra.mxu0 %v8545_v51  ;;  %v8951_v13 = vunpack.i.l.bf16 %v11419_v41  ;;  %v9288_v51 = vpack.i.bf16 %v2844_v22, %v11005_v16  ;;  %v13383_v40 = vld [vmem:[#allocation108_spill] sm:$0xff] }
 0x234   : > { %v11541_v26 = vpop.permute.xlu1 %8984  ;;  %v11543_v44 = vpop.permute.xlu0 %8999  ;;  %v3750_v11 = vsel %vm3649_vm9, %v3718_v29, %v8946_v59  ;;  %v3653_v21 = vsel %vm3649_vm9, %v3620_v46, %v8947_v17  ;;  %v13380_v17 = vld [vmem:[#allocation110_spill] sm:$0xff]  ;;  %v13381_v59 = vrot.slane %v11345_v37, 1  ;;  %v2583_v22 = vrot.slane %v11345_v37, 7 }
 0x235   : > { %v3782_v7 = vsel %vm3682_vm10, %v3750_v11, %v8926_v58  ;;  %v3686_v10 = vsel %vm3682_vm10, %v3653_v21, %v8927_v4  ;;  %v2877_v41 = vmul.f32 %v11070_v0, %v13380_v17  ;;  %v2808_v46 = vmul.f32 %v13383_v40, %v13380_v17  ;;  %v13384_v0 = vld [vmem:[#allocation54_spill] sm:$0xff]  ;;  %v13385_v21 = vld [vmem:[#allocation63_spill] sm:$0xff] }
 0x236   : > { %9274 = vrot.lane.b32.xlu1 %v9273_v52, %s13171_s2  ;;  %3986 = vmatprep.mubr.f32.mxu1 %v3782_v7  ;;  %v11566_v24 = vsel %vm2649_vm3, %v13382_v2, %v13381_v59  ;;  %v8972_v4 = vunpack.i.h.bf16 %v11470_v5  ;;  %v8971_v58 = vunpack.i.l.bf16 %v11470_v5  ;;  %v3719_v11 = vsel %vm3616_vm7, %v13384_v0, %v8951_v13 }
 0x237   : > { %9279 = vrot.lane.b32.xlu0 %v9278_v20, %s13170_s18  ;;  %3987 = vmatmul.mubr.f32.gmra.mrb[2].mxu1 %v3686_v10  ;;  %v3621_v20 = vsel %vm3616_vm7, %v13385_v21, %v8952_v30  ;;  %v9303_v13 = vpack.i.bf16 %v11566_v24, %v11169_v36  ;;  %v8976_v0 = vunpack.i.l.bf16 %v11495_v12 }
 0x238   : > { %v8990_v54 = vpop.permute.xlu1 %8989  ;;  %v11554_v55 = vpop.permute.xlu0 %9004 }
 0x239   : > { %v8992_v29 = vunpack.i.h.bf16 %v8990_v54  ;;  %v8991_v52 = vunpack.i.l.bf16 %v8990_v54 }
 0x23a   : > { %9284 = vrot.lane.b32.xlu1 %v9283_v25, %s13168_s16  ;;  %v9293_v25 = vpack.i.bf16 %v11372_v57, %v2877_v41  ;;  %v13386_v41 = vrot.slane %v11217_v23, 7 }
 0x23b   : > { %9289 = vrot.lane.b32.xlu0 %v9288_v51, %s13171_s2  ;;  %v3751_v7 = vsel %vm3649_vm9, %v3719_v11, %v8991_v52  ;;  %v3654_v10 = vsel %vm3649_vm9, %v3621_v20, %v8992_v29  ;;  %v9298_v51 = vpack.i.bf16 %v2808_v46, %v11217_v23  ;;  %v2770_v29 = vmul.f32 %v11384_v9, %v11303_v8  ;;  %v13387_v46 = vld [vmem:[#allocation52_spill] sm:$0xff] }
 0x23c   : > { %v8995_v54 = vpop.permute.xlu1 %8994  ;;  %v11581_v17 = vpop.permute.xlu0 %9009  ;;  %v3783_v59 = vsel %vm3682_vm10, %v3751_v7, %v8971_v58  ;;  %v3687_v5 = vsel %vm3682_vm10, %v3654_v10, %v8972_v4  ;;  %v8977_v52 = vunpack.i.h.bf16 %v11495_v12  ;;  %v11597_v4 = vsel %vm2525_vm2, %v13386_v41, %v2583_v22  ;;  %v13388_v11 = vld [vmem:[#allocation56_spill] sm:$0xff] }
 0x23d   : > { %v8997_v2 = vunpack.i.h.bf16 %v8995_v54  ;;  %v8996_v30 = vunpack.i.l.bf16 %v8995_v54  ;;  %3991 = vmatprep.mubr.f32.mxu1 %v3783_v59  ;;  %v2879_v58 = vmul.f32 %v13383_v40, %v11265_v53  ;;  %v2846_v12 = vmul.f32 %v11384_v9, %v11319_v43 }
 0x23e   : > { %3992 = vmatmul.mubr.f32.gmra.mrb[4].mxu1 %v3687_v5  ;;  %9294 = vrot.lane.b32.xlu1 %v9293_v25, %s13170_s18  ;;  %v2776_v20 = vrot.slane %v11341_v33, 7  ;;  %v8957_v7 = vunpack.i.h.bf16 %v11493_v31  ;;  %v8956_v10 = vunpack.i.l.bf16 %v11493_v31  ;;  %v9308_v25 = vpack.i.bf16 %v2770_v29, %v11597_v4 }
 0x23f   : > { %9299 = vrot.lane.b32.xlu0 %v9298_v51, %s13168_s16  ;;  %v3720_v8 = vsel %vm3616_vm7, %v13387_v46, %v8996_v30  ;;  %v3622_v21 = vsel %vm3616_vm7, %v13388_v11, %v8997_v2  ;;  %v1918_v2 = vadd.s32 248, %v10289_v35  ;;  %v8982_v9 = vunpack.i.h.bf16 %v11507_v56 }
 0x240   : > { %v11611_v54 = vpop.permute.xlu1 %9014  ;;  %v11613_v40 = vpop.permute.xlu0 %9029  ;;  %v3752_v59 = vsel %vm3649_vm9, %v3720_v8, %v8976_v0  ;;  %v3655_v5 = vsel %vm3649_vm9, %v3622_v21, %v8977_v52  ;;  %v8981_v30 = vunpack.i.l.bf16 %v11507_v56  ;;  %v9318_v0 = vpack.i.bf16 %v11435_v15, %v2879_v58 }
 0x241   : > { %v3784_v51 = vsel %vm3682_vm10, %v3752_v59, %v8956_v10  ;;  %v3688_v31 = vsel %vm3682_vm10, %v3655_v5, %v8957_v7  ;;  %v9313_v41 = vpack.i.bf16 %v2846_v12, %v11075_v61  ;;  %v13389_v46 = vrot.slane %v11411_v34, 1  ;;  %v13391_v7 = vld [vmem:[#allocation111_spill] sm:$0xff] }
 0x242   : > { %9304 = vrot.lane.b32.xlu1 %v9303_v13, %s13171_s2  ;;  %3996 = vmatprep.mubr.f32.mxu1 %v3784_v51  ;;  %v13390_v56 = vrot.slane %v11341_v33, 1  ;;  %v2778_v13 = vrot.slane %v11411_v34, 7  ;;  %v11638_v11 = vsel %vm2525_vm2, %v2583_v22, %v2776_v20  ;;  %v2810_v10 = vmul.f32 %v13391_v7, %v11265_v53 }
 0x243   : > { %9309 = vrot.lane.b32.xlu0 %v9308_v25, %s13170_s18  ;;  %3997 = vmatmul.mubr.f32.gmra.mrb[6].mxu1 %v3688_v31  ;;  %v2140_v59 = vand.u32 15, %v1918_v2  ;;  %v9002_v12 = vunpack.i.h.bf16 %v11543_v44  ;;  %v9001_v5 = vunpack.i.l.bf16 %v11543_v44  ;;  %v13392_v25 = vld [vmem:[#allocation62_spill] sm:$0xff]  ;;  %v13393_v31 = vld [vmem:[#allocation68_spill] sm:$0xff]  ;;  %v2881_v53 = vmul.f32 %v13391_v7, %v11638_v11 }
 0x244   : > { %v9020_v52 = vpop.permute.xlu1 %9019  ;;  %v11626_v29 = vpop.permute.xlu0 %9034  ;;  %v11634_v8 = vsel %vm2649_vm3, %v13390_v56, %v13389_v46  ;;  %v3721_v51 = vsel %vm3616_vm7, %v13392_v25, %v8981_v30  ;;  %v3623_v46 = vsel %vm3616_vm7, %v13393_v31, %v8982_v9  ;;  %v9006_v7 = vunpack.i.l.bf16 %v11554_v55  ;;  %v13395_v31 = vld [vmem:[#allocation59_spill] sm:$0xff] }
 0x245   : > { %v9022_v21 = vunpack.i.h.bf16 %v9020_v52  ;;  %v9021_v58 = vunpack.i.l.bf16 %v9020_v52  ;;  %v9328_v30 = vpack.i.bf16 %v11634_v8, %v11235_v38  ;;  %vm2430_vm11 = vcmp.le.s32.totalorder %v2140_v59, 14 }
 0x246   : > { %9319 = vrot.lane.b32.xlu1 %v9318_v0, %s13170_s18 }
 0x247   : > { %9314 = vrot.lane.b32.xlu0 %v9313_v41, %s13171_s2  ;;  %v3753_v22 = vsel %vm3649_vm9, %v3721_v51, %v9021_v58  ;;  %v3656_v52 = vsel %vm3649_vm9, %v3623_v46, %v9022_v21  ;;  %v9323_v41 = vpack.i.bf16 %v2810_v10, %v11341_v33  ;;  %v2772_v21 = vmul.f32 %v11450_v27, %v11319_v43 }
 0x248   : > { %v9025_v2 = vpop.permute.xlu1 %9024  ;;  %v11654_v56 = vpop.permute.xlu0 %9039  ;;  %v3785_v44 = vsel %vm3682_vm10, %v3753_v22, %v9001_v5  ;;  %v3689_v0 = vsel %vm3682_vm10, %v3656_v52, %v9002_v12  ;;  %v9007_v58 = vunpack.i.h.bf16 %v11554_v55  ;;  %v11667_v12 = vsel %vm2525_vm2, %v2776_v20, %v2778_v13  ;;  %v13394_v5 = vld [vmem:[#allocation61_spill] sm:$0xff] }
 0x249   : > { %v9027_v9 = vunpack.i.h.bf16 %v9025_v2  ;;  %v9026_v25 = vunpack.i.l.bf16 %v9025_v2  ;;  %4001 = vmatprep.mubr.f32.mxu1 %v3785_v44  ;;  %v9343_v10 = vpack.i.bf16 %v11515_v32, %v2881_v53  ;;  %v8987_v46 = vunpack.i.h.bf16 %v11541_v26 }
 0x24a   : > { %4002 = vmatmul.mubr.f32.gmra.mrb[8].mxu1 %v3689_v0  ;;  %9329 = vrot.lane.b32.xlu1 %v9328_v30, %s13171_s2  ;;  %v8986_v55 = vunpack.i.l.bf16 %v11541_v26  ;;  %v9333_v2 = vpack.i.bf16 %v2772_v21, %v11667_v12  ;;  %v2848_v53 = vmul.f32 %v11450_v27, %v11392_v42  ;;  %v2852_v44 = vsel %vm2525_vm2, %v2778_v13, 0.0 }
 0x24b   : > { %9324 = vrot.lane.b32.xlu0 %v9323_v41, %s13168_s16  ;;  %v3722_v51 = vsel %vm3616_vm7, %v13394_v5, %v9026_v25  ;;  %v3624_v43 = vsel %vm3616_vm7, %v13395_v31, %v9027_v9  ;;  %v11688_v0 = vsel %vm2430_vm11, 1.0, %v13278_v45  ;;  %v9012_v26 = vunpack.i.h.bf16 %v11581_v17  ;;  %v13396_v31 = vld [vmem:[#allocation69_spill] sm:$0xff] }
 0x24c   : > { %v11677_v22 = vpop.permute.xlu1 %9044  ;;  %v11679_v52 = vpop.permute.xlu0 %9059  ;;  %v3754_v20 = vsel %vm3649_vm9, %v3722_v51, %v9006_v7  ;;  %v3657_v59 = vsel %vm3649_vm9, %v3624_v43, %v9007_v58  ;;  %v9011_v30 = vunpack.i.l.bf16 %v11581_v17  ;;  %v9348_v13 = vpack.i.bf16 %v11597_v4, %v11411_v34 }
 0x24d   : > { %v3786_v9 = vsel %vm3682_vm10, %v3754_v20, %v8986_v55  ;;  %v3690_v25 = vsel %vm3682_vm10, %v3657_v59, %v8987_v46  ;;  %v2883_v21 = vmul.f32 %v11268_v63, %v2852_v44  ;;  %v9338_v7 = vpack.i.bf16 %v2848_v53, %v11153_v6  ;;  %v13397_v46 = vld [vmem:[#allocation72_spill] sm:$0xff] }
 0x24e   : > { %9344 = vrot.lane.b32.xlu1 %v9343_v10, %s13170_s18  ;;  %4006 = vmatprep.mubr.f32.mxu1 %v3786_v9  ;;  %v2850_v5 = vmul.f32 %v11688_v0, %v11455_v14  ;;  %v9032_v51 = vunpack.i.h.bf16 %v11613_v40  ;;  %v9031_v10 = vunpack.i.l.bf16 %v11613_v40  ;;  %v3723_v43 = vsel %vm3616_vm7, %v13396_v31, %v9011_v30 }
 0x24f   : > { %9334 = vrot.lane.b32.xlu0 %v9333_v2, %s13170_s18  ;;  %4007 = vmatmul.mubr.f32.gmra.mrb[10].mxu1 %v3690_v25  ;;  %v3625_v55 = vsel %vm3616_vm7, %v13397_v46, %v9012_v26  ;;  %v9358_v44 = vpack.i.bf16 %v11566_v24, %v2883_v21  ;;  %v2812_v25 = vmul.f32 %v11268_v63, %v11638_v11  ;;  %v13398_v21 = vld [vmem:[#allocation70_spill] sm:$0xff]  ;;  %v9017_v63 = vunpack.i.h.bf16 %v11611_v54 }
 0x250   : > { %v9050_v27 = vpop.permute.xlu1 %9049  ;;  %v11696_v41 = vpop.permute.xlu0 %9064  ;;  %v9353_v26 = vpack.i.bf16 %v2850_v5, %v11217_v23  ;;  %v13399_v5 = vld [vmem:[#allocation67_spill] sm:$0xff]  ;;  %v9016_v11 = vunpack.i.l.bf16 %v11611_v54 }
 0x251   : > { %v9052_v58 = vunpack.i.h.bf16 %v9050_v27  ;;  %v9051_v17 = vunpack.i.l.bf16 %v9050_v27  ;;  %v9037_v27 = vunpack.i.h.bf16 %v11626_v29 }
 0x252   : > { %9349 = vrot.lane.b32.xlu1 %v9348_v13, %s13168_s16  ;;  %v9036_v13 = vunpack.i.l.bf16 %v11626_v29 }
 0x253   : > { %9339 = vrot.lane.b32.xlu0 %v9338_v7, %s13171_s2  ;;  %v3755_v20 = vsel %vm3649_vm9, %v3723_v43, %v9051_v17  ;;  %v3658_v59 = vsel %vm3649_vm9, %v3625_v55, %v9052_v58  ;;  %v9041_v58 = vunpack.i.l.bf16 %v11654_v56  ;;  %v9042_v17 = vunpack.i.h.bf16 %v11654_v56 }
 0x254   : > { %v9055_v2 = vpop.permute.xlu1 %9054  ;;  %v11714_v14 = vpop.permute.xlu0 %9069  ;;  %v3787_v53 = vsel %vm3682_vm10, %v3755_v20, %v9031_v10  ;;  %v3691_v40 = vsel %vm3682_vm10, %v3658_v59, %v9032_v51  ;;  %v9363_v55 = vpack.i.bf16 %v2812_v25, %v13278_v45  ;;  %v2774_v20 = vmul.f32 %v11688_v0, %v11392_v42 }
 0x255   : > { %v9057_v9 = vunpack.i.h.bf16 %v9055_v2  ;;  %v9056_v30 = vunpack.i.l.bf16 %v9055_v2  ;;  %4011 = vmatprep.mubr.f32.mxu1 %v3787_v53  ;;  %v9061_v59 = vunpack.i.l.bf16 %v11679_v52  ;;  %v13400_v53 = vld [vmem:[#allocation76_spill] sm:$0xff] }
 0x256   : > { %4012 = vmatmul.mubr.f32.gmra.mrb[12].mxu1 %v3691_v40  ;;  %9359 = vrot.lane.b32.xlu1 %v9358_v44, %s13170_s18  ;;  %v3725_v40 = vsel %vm3616_vm7, %v13400_v53, %v9041_v58  ;;  %v9368_v58 = vpack.i.bf16 %v2774_v20, %v13278_v45  ;;  %v9071_v20 = vunpack.i.l.bf16 %v11714_v14 }
 0x257   : > { %9354 = vrot.lane.b32.xlu0 %v9353_v26, %s13171_s2  ;;  %v3724_v7 = vsel %vm3616_vm7, %v13398_v21, %v9056_v30  ;;  %v3626_v51 = vsel %vm3616_vm7, %v13399_v5, %v9057_v9  ;;  %v13401_v9 = vld [vmem:[#allocation75_spill] sm:$0xff]  ;;  %v9067_v5 = vunpack.i.h.bf16 %v11696_v41 }
 0x258   : > { %v9080_v29 = vpop.permute.xlu1 %9079  ;;  %v11734_v10 = vpop.permute.xlu0 %9074  ;;  %v3756_v31 = vsel %vm3649_vm9, %v3724_v7, %v9036_v13  ;;  %v3659_v43 = vsel %vm3649_vm9, %v3626_v51, %v9037_v27  ;;  %v3627_v42 = vsel %vm3616_vm7, %v13401_v9, %v9042_v17  ;;  %v9062_v13 = vunpack.i.h.bf16 %v11679_v52  ;;  %v13403_v52 = vld [vmem:[#allocation77_spill] sm:$0xff] }
 0x259   : > { %v9082_v56 = vunpack.i.h.bf16 %v9080_v29  ;;  %v9081_v46 = vunpack.i.l.bf16 %v9080_v29  ;;  %v3788_v2 = vsel %vm3682_vm10, %v3756_v31, %v9016_v11  ;;  %v3692_v54 = vsel %vm3682_vm10, %v3659_v43, %v9017_v63  ;;  %v13402_v63 = vld [vmem:[#allocation78_spill] sm:$0xff] }
 0x25a   : > { %2978 = vrot.lane.b32.xlu1 %v11345_v37, %s13171_s2  ;;  %4016 = vmatprep.mubr.f32.mxu1 %v3788_v2  ;;  %v9066_v51 = vunpack.i.l.bf16 %v11696_v41  ;;  %v9047_v31 = vunpack.i.h.bf16 %v11677_v22  ;;  %v9046_v43 = vunpack.i.l.bf16 %v11677_v22 }
 0x25b   : > { %9364 = vrot.lane.b32.xlu0 %v9363_v55, %s13168_s16  ;;  %v3757_v44 = vsel %vm3649_vm9, %v3725_v40, %v9081_v46  ;;  %4017 = vmatmul.mubr.f32.gmra.mrb[14].mxu1 %v3692_v54  ;;  %v3660_v27 = vsel %vm3649_vm9, %v3627_v42, %v9082_v56  ;;  %v9072_v55 = vunpack.i.h.bf16 %v11714_v14  ;;  %v13404_v42 = vld [vmem:[#allocation80_spill] sm:$0xff] }
 0x25c   : > { %v9085_v30 = vpop.permute.xlu1 %9084  ;;  %v9090_v26 = vpop.permute.xlu0 %9089  ;;  %v3789_v25 = vsel %vm3682_vm10, %v3757_v44, %v9061_v59  ;;  %v3693_v17 = vsel %vm3682_vm10, %v3660_v27, %v9062_v13 }
 0x25d   : > { %v9087_v21 = vunpack.i.h.bf16 %v9085_v30  ;;  %v9086_v7 = vunpack.i.l.bf16 %v9085_v30  ;;  %4021 = vmatprep.mubr.f32.mxu1 %v3789_v25  ;;  %v9092_v44 = vunpack.i.h.bf16 %v9090_v26  ;;  %v9091_v9 = vunpack.i.l.bf16 %v9090_v26  ;;  %v13405_v25 = vld [vmem:[#allocation81_spill] sm:$0xff] }
 0x25e   : > { %3233 = vrot.lane.b32.xlu1 %v11667_v12, %s13168_s16  ;;  %v3727_v30 = vsel %vm3616_vm7, %v13404_v42, %v9071_v20  ;;  %v3629_v27 = vsel %vm3616_vm7, %v13405_v25, %v9072_v55 }
 0x25f   : > { %9369 = vrot.lane.b32.xlu0 %v9368_v58, %s13170_s18  ;;  %v3726_v11 = vsel %vm3616_vm7, %v13402_v63, %v9086_v7  ;;  %v3628_v29 = vsel %vm3616_vm7, %v13403_v52, %v9087_v21  ;;  %4022 = vmatmul.mubr.f32.gmra.mrb[16].mxu1 %v3693_v17 }
 0x260   : > { %v9095_v56 = vpop.permute.xlu0 %9094  ;;  %v11768_v41 = vpop.permute.xlu1 %9104  ;;  %v3758_v12 = vsel %vm3649_vm9, %v3726_v11, %v9066_v51  ;;  %v3661_v46 = vsel %vm3649_vm9, %v3628_v29, %v9067_v5  ;;  %v13406_v11 = vld [vmem:[#allocation84_spill] sm:$0xff]  ;;  %v13407_v29 = vld [vmem:[#allocation85_spill] sm:$0xff] }
 0x261   : > { %v3790_v59 = vsel %vm3682_vm10, %v3758_v12, %v9046_v43  ;;  %v3694_v2 = vsel %vm3682_vm10, %v3661_v46, %v9047_v31  ;;  %v9097_v26 = vunpack.i.h.bf16 %v9095_v56  ;;  %v9096_v63 = vunpack.i.l.bf16 %v9095_v56 }
 0x262   : > { %4026 = vmatprep.mubr.f32.mxu1 %v3790_v59  ;;  %v9077_v43 = vunpack.i.h.bf16 %v11734_v10  ;;  %v9076_v12 = vunpack.i.l.bf16 %v11734_v10 }
 0x263   : > { %4027 = vmatmul.mubr.f32.gmra.mrb[18].mxu1 %v3694_v2 }
 0x264   : > { %v9100_v54 = vpop.permute.xlu0 %9099  ;;  %v9110_v22 = vpop.permute.xlu1 %9109 }
 0x265   : > { %v9112_v53 = vunpack.i.h.bf16 %v9110_v22  ;;  %v9111_v40 = vunpack.i.l.bf16 %v9110_v22  ;;  %v9102_v2 = vunpack.i.h.bf16 %v9100_v54  ;;  %v9101_v56 = vunpack.i.l.bf16 %v9100_v54 }
 0x267   : > { %v3759_v14 = vsel %vm3649_vm9, %v3727_v30, %v9111_v40  ;;  %v3662_v13 = vsel %vm3649_vm9, %v3629_v27, %v9112_v53  ;;  %v13408_v27 = vld [vmem:[#allocation86_spill] sm:$0xff] }
 0x268   : > { %v9115_v21 = vpop.permute.xlu1 %9114  ;;  %v9120_v7 = vpop.permute.xlu0 %9119  ;;  %v3791_v58 = vsel %vm3682_vm10, %v3759_v14, %v9091_v9  ;;  %v3695_v5 = vsel %vm3682_vm10, %v3662_v13, %v9092_v44  ;;  %v3729_v14 = vsel %vm3616_vm7, %v13408_v27, %v9101_v56  ;;  %v13409_v13 = vld [vmem:[#allocation87_spill] sm:$0xff]  ;;  %v9107_v27 = vunpack.i.h.bf16 %v11768_v41 }
 0x269   : > { %v9117_v51 = vunpack.i.h.bf16 %v9115_v21  ;;  %v9116_v17 = vunpack.i.l.bf16 %v9115_v21  ;;  %4031 = vmatprep.mubr.f32.mxu1 %v3791_v58  ;;  %v9122_v30 = vunpack.i.h.bf16 %v9120_v7  ;;  %v9121_v25 = vunpack.i.l.bf16 %v9120_v7 }
 0x26a   : > { %4032 = vmatmul.mubr.f32.gmra.mrb[20].mxu1 %v3695_v5  ;;  %v3631_v54 = vsel %vm3616_vm7, %v13409_v13, %v9102_v2  ;;  %v8932_v21 = vunpack.i.h.bf16 %v11417_v49  ;;  %v13411_v2 = vld [vmem:[#allocation49_spill] sm:$0xff] }
 0x26b   : > { %v3728_v52 = vsel %vm3616_vm7, %v13406_v11, %v9116_v17  ;;  %v3630_v31 = vsel %vm3616_vm7, %v13407_v29, %v9117_v51  ;;  %v13410_v29 = vld [vmem:[#allocation94_spill] sm:$0xff] }
 0x26c   : > { %v11790_v46 = vpop.permute.xlu1 %9124  ;;  %v9130_v55 = vpop.permute.xlu0 %9129  ;;  %v3760_v20 = vsel %vm3649_vm9, %v3728_v52, %v9096_v63  ;;  %v3663_v59 = vsel %vm3649_vm9, %v3630_v31, %v9097_v26 }
 0x26d   : > { %v3792_v22 = vsel %vm3682_vm10, %v3760_v20, %v9076_v12  ;;  %v3696_v53 = vsel %vm3682_vm10, %v3663_v59, %v9077_v43  ;;  %v9126_v10 = vunpack.i.l.bf16 %v11790_v46  ;;  %v9132_v51 = vunpack.i.h.bf16 %v9130_v55 }
 0x26e   : > { %4036 = vmatprep.mubr.f32.mxu1 %v3792_v22  ;;  %v8931_v43 = vunpack.i.l.bf16 %v11417_v49  ;;  %v9131_v12 = vunpack.i.l.bf16 %v9130_v55  ;;  %v3618_v20 = vsel %vm3616_vm7, 0.0, %v11445_v19  ;;  %v8911_v59 = vunpack.i.l.bf16 %v11349_v1  ;;  %v13412_v22 = vld [vmem:[#allocation89_spill] sm:$0xff] }
 0x26f   : > { %4037 = vmatmul.mubr.f32.gmra.mrb[22].mxu1 %v3696_v53  ;;  %v3632_v31 = vsel %vm3616_vm7, %v13410_v29, %v9126_v10  ;;  %v13415_v29 = vld [vmem:[#allocation74_spill] sm:$0xff] }
 0x270   : > { %v9140_v40 = vpop.permute.xlu0 %9139  ;;  %v11796_v44 = vpop.permute.xlu1 %9134 }
 0x271   : > { %v9142_v9 = vunpack.i.h.bf16 %v9140_v40  ;;  %v9141_v42 = vunpack.i.l.bf16 %v9140_v40  ;;  %v3651_v40 = vsel %vm3649_vm9, %v3618_v20, %v8932_v21  ;;  %v13417_v20 = vld [vmem:[#allocation60_spill] sm:$0xff] }
 0x273   : > { %v3761_v58 = vsel %vm3649_vm9, %v3729_v14, %v9141_v42  ;;  %v3664_v5 = vsel %vm3649_vm9, %v3631_v54, %v9142_v9  ;;  %v9106_v9 = vunpack.i.l.bf16 %v11768_v41 }
 0x274   : > { %v9145_v17 = vpop.permute.xlu1 %9144  ;;  %v11806_v26 = vpop.permute.xlu0 %9149  ;;  %v3793_v63 = vsel %vm3682_vm10, %v3761_v58, %v9121_v25  ;;  %v3697_v7 = vsel %vm3682_vm10, %v3664_v5, %v9122_v30  ;;  %v3665_v30 = vsel %vm3649_vm9, %v3632_v31, %v9132_v51  ;;  %v8912_v25 = vunpack.i.h.bf16 %v11349_v1  ;;  %v13413_v1 = vld [vmem:[#allocation55_spill] sm:$0xff]  ;;  %v13416_v31 = vld [vmem:[#allocation53_spill] sm:$0xff] }
 0x275   : > { %v9147_v11 = vunpack.i.h.bf16 %v9145_v17  ;;  %v9146_v52 = vunpack.i.l.bf16 %v9145_v17  ;;  %4041 = vmatprep.mubr.f32.mxu1 %v3793_v63  ;;  %v3698_v21 = vsel %vm3682_vm10, %v3665_v30, %v9107_v27  ;;  %v9127_v51 = vunpack.i.h.bf16 %v11790_v46 }
 0x276   : > { %4042 = vmatmul.mubr.f32.gmra.mrb[24].mxu1 %v3697_v7  ;;  %v3684_v54 = vsel %vm3682_vm10, %v3651_v40, %v8912_v25  ;;  %v13414_v7 = vld [vmem:[#allocation64_spill] sm:$0xff]  ;;  %v13419_v25 = vld [vmem:[#allocation99_spill] sm:$0xff] }
 0x277   : > { %v3716_v56 = vsel %vm3616_vm7, %v13411_v2, %v9146_v52  ;;  %v3730_v53 = vsel %vm3616_vm7, %v13412_v22, %v9147_v11  ;;  %v9152_v22 = vunpack.i.h.bf16 %v11806_v26 }
 0x278   : > { %v11822_v10 = vpop.permute.xlu1 %9154  ;;  %v9160_v49 = vpop.permute.xlu0 %9159  ;;  %v3748_v55 = vsel %vm3649_vm9, %v3716_v56, %v8931_v43  ;;  %v3762_v42 = vsel %vm3649_vm9, %v3730_v53, %v9131_v12  ;;  %v2888_v43 = vmul.f32 %v13416_v31, %v13415_v29  ;;  %v3731_v56 = vsel %vm3616_vm7, %v10798_v48, %v9127_v51  ;;  %v13422_v51 = vld [vmem:[#allocation65_spill] sm:$0xff]  ;;  %v13423_v29 = vld [vmem:[#allocation79_spill] sm:$0xff] }
 0x279   : > { %v3780_v14 = vsel %vm3682_vm10, %v3748_v55, %v8911_v59  ;;  %v3794_v13 = vsel %vm3682_vm10, %v3762_v42, %v9106_v9  ;;  %v9156_v63 = vunpack.i.l.bf16 %v11822_v10  ;;  %v9161_v46 = vunpack.i.l.bf16 %v9160_v49  ;;  %v13418_v9 = vld [vmem:[#allocation90_spill] sm:$0xff] }
 0x27a   : > { %3976 = vmatprep.mubr.f32.mxu0 %v3780_v14  ;;  %4046 = vmatprep.mubr.f32.mxu1 %v3794_v13  ;;  %v9151_v53 = vunpack.i.l.bf16 %v11806_v26  ;;  %v9162_v40 = vunpack.i.h.bf16 %v9160_v49  ;;  %v9136_v14 = vunpack.i.l.bf16 %v11796_v44 }
 0x27b   : > { %3977 = vmatmul.mubr.f32.gmra.mrb[34].mxu0 %v3684_v54  ;;  %4047 = vmatmul.mubr.f32.gmra.mrb[26].mxu1 %v3698_v21  ;;  %v3634_v27 = vsel %vm3616_vm7, %v13419_v25, %v9156_v63  ;;  %v13420_v54 = vld [vmem:[#allocation71_spill] sm:$0xff] }
 0x27c   : > { %v9170_v58 = vpop.permute.xlu0 %9169  ;;  %v11833_v5 = vpop.permute.xlu1 %9164  ;;  %8253 = vmatprep.mubr.msk.f32.mxu0 %vm3616_vm7, %v13413_v1 }
 0x27d   : > { %v9172_v41 = vunpack.i.h.bf16 %v9170_v58  ;;  %v9171_v17 = vunpack.i.l.bf16 %v9170_v58  ;;  %v13421_v58 = vld [vmem:[#allocation83_spill] sm:$0xff] }
 0x27e   : > { %v2890_v1 = vmul.f32 %v13422_v51, %v13421_v58  ;;  %v13431_v51 = vld [vmem:[#allocation105_spill] sm:$0xff] }
 0x27f   : > { %8254 = vmatmul.mubr.msk.f32.vlgmr.msra.gmra.mrb[36].mxu0 %vm3616_vm7, %v13414_v7  ;;  %v3732_v12 = vsel %vm3616_vm7, %v10871_v50, %v9172_v41  ;;  %v3633_v55 = vsel %vm3616_vm7, %v13418_v9, %v9171_v17  ;;  %v3667_v41 = vsel %vm3649_vm9, %v3634_v27, %v9162_v40  ;;  %v9137_v17 = vunpack.i.h.bf16 %v11796_v44 }
 0x280   : > { %v9175_v11 = vpop.permute.xlu1 %9174  ;;  %v11841_v52 = vpop.permute.xlu0 %9179  ;;  %8256 = vmatprep.mubr.msk.f32.mxu0 %vm3616_vm7, %v13417_v20  ;;  %v3764_v30 = vsel %vm3649_vm9, %v3732_v12, %v9161_v46  ;;  %v13424_v46 = vld [vmem:[#allocation92_spill] sm:$0xff]  ;;  %v13425_v20 = vld [vmem:[#allocation73_spill] sm:$0xff] }
 0x281   : > { %v9177_v59 = vunpack.i.h.bf16 %v9175_v11  ;;  %v9176_v2 = vunpack.i.l.bf16 %v9175_v11  ;;  %v3796_v21 = vsel %vm3682_vm10, %v3764_v30, %v9136_v14  ;;  %v9157_v11 = vunpack.i.h.bf16 %v11822_v10  ;;  %v13427_v10 = vld [vmem:[#allocation82_spill] sm:$0xff]  ;;  %v13429_v30 = vld [vmem:[#allocation93_spill] sm:$0xff] }
 0x282   : > { %v9182_v27 = vunpack.i.h.bf16 %v11841_v52  ;;  %v9181_v14 = vunpack.i.l.bf16 %v11841_v52 }
 0x283   : > { %v3763_v42 = vsel %vm3649_vm9, %v3731_v56, %v9176_v2  ;;  %v3666_v50 = vsel %vm3649_vm9, %v3633_v55, %v9177_v59  ;;  %8257 = vmatmul.mubr.msk.f32.gmra.mrb[38].mxu0 %vm3616_vm7, %v2888_v43  ;;  %v3700_v43 = vsel %vm3682_vm10, %v3667_v41, %v9137_v17  ;;  %v2892_v59 = vmul.f32 %v13425_v20, %v13424_v46  ;;  %v13428_v55 = vld [vmem:[#allocation88_spill] sm:$0xff] }
 0x284   : > { %v11862_v48 = vpop.permute.xlu1 %9184  ;;  %v9190_v26 = vpop.permute.xlu0 %9189  ;;  %v3795_v49 = vsel %vm3682_vm10, %v3763_v42, %v9151_v53  ;;  %v3699_v13 = vsel %vm3682_vm10, %v3666_v50, %v9152_v22  ;;  %8259 = vmatprep.mubr.msk.f32.mxu0 %vm3616_vm7, %v13420_v54  ;;  %v13426_v22 = vld [vmem:[#allocation98_spill] sm:$0xff]  ;;  %v3733_v25 = vsel %vm3616_vm7, %v13429_v30, %v9157_v11  ;;  %v9166_v41 = vunpack.i.l.bf16 %v11833_v5  ;;  %v13432_v11 = vld [vmem:[#allocation96_spill] sm:$0xff] }
 0x285   : > { %4051 = vmatprep.mubr.f32.mxu1 %v3795_v49  ;;  %v9186_v44 = vunpack.i.l.bf16 %v11862_v48  ;;  %v2894_v53 = vmul.f32 %v13427_v10, %v13426_v22  ;;  %v9191_v9 = vunpack.i.l.bf16 %v9190_v26  ;;  %v9192_v49 = vunpack.i.h.bf16 %v9190_v26  ;;  %v13435_v22 = vld [vmem:[#allocation102_spill] sm:$0xff] }
 0x286   : > { %4052 = vmatmul.mubr.f32.gmra.mrb[28].mxu1 %v3699_v13  ;;  %v13430_v13 = vld [vmem:[#allocation95_spill] sm:$0xff]  ;;  %v9167_v20 = vunpack.i.h.bf16 %v11833_v5 }
 0x287   : > { %4056 = vmatprep.mubr.f32.mxu1 %v3796_v21  ;;  %8260 = vmatmul.mubr.msk.f32.gmra.mrb[40].mxu0 %vm3616_vm7, %v2890_v1  ;;  %v3636_v1 = vsel %vm3616_vm7, %v13431_v51, %v9186_v44 }
 0x288   : > { %v9200_v63 = vpop.permute.xlu0 %9199  ;;  %v11874_v7 = vpop.permute.xlu1 %9194  ;;  %8262 = vmatprep.mubr.msk.f32.mxu0 %vm3616_vm7, %v13423_v29  ;;  %v3669_v46 = vsel %vm3649_vm9, %v3636_v1, %v9192_v49  ;;  %v13439_v1 = vld [vmem:[#allocation107_spill] sm:$0xff] }
 0x289   : > { %v9202_v31 = vunpack.i.h.bf16 %v9200_v63  ;;  %v9201_v12 = vunpack.i.l.bf16 %v9200_v63 }
 0x28a   : > { %4057 = vmatmul.mubr.f32.gmra.mrb[30].mxu1 %v3700_v43  ;;  %v13434_v43 = vld [vmem:[#allocation91_spill] sm:$0xff] }
 0x28b   : > { %8263 = vmatmul.mubr.msk.f32.gmra.mrb[42].mxu0 %vm3616_vm7, %v2892_v59  ;;  %v3734_v40 = vsel %vm3616_vm7, %v10946_v62, %v9202_v31  ;;  %v3635_v54 = vsel %vm3616_vm7, %v13430_v13, %v9201_v12  ;;  %v13433_v31 = vld [vmem:[#allocation100_spill] sm:$0xff] }
 0x28c   : > { %v9205_v2 = vpop.permute.xlu1 %9204  ;;  %v11884_v56 = vpop.permute.xlu0 %9209  ;;  %8265 = vmatprep.mubr.msk.f32.mxu0 %vm3616_vm7, %v13428_v55  ;;  %v3766_v58 = vsel %vm3649_vm9, %v3734_v40, %v9191_v9  ;;  %v2896_v12 = vmul.f32 %v13434_v43, %v13433_v31  ;;  %v13436_v55 = vld [vmem:[#allocation114_spill] sm:$0xff] }
 0x28d   : > { %v9207_v42 = vunpack.i.h.bf16 %v9205_v2  ;;  %v9206_v50 = vunpack.i.l.bf16 %v9205_v2  ;;  %v3798_v29 = vsel %vm3682_vm10, %v3766_v58, %v9166_v41  ;;  %v9187_v2 = vunpack.i.h.bf16 %v11862_v48  ;;  %v13437_v48 = vld [vmem:[#allocation103_spill] sm:$0xff] }
 0x28e   : > { %v9212_v49 = vunpack.i.h.bf16 %v11884_v56  ;;  %v9211_v13 = vunpack.i.l.bf16 %v11884_v56 }
 0x28f   : > { %v3765_v21 = vsel %vm3649_vm9, %v3733_v25, %v9206_v50  ;;  %v3668_v62 = vsel %vm3649_vm9, %v3635_v54, %v9207_v42  ;;  %8266 = vmatmul.mubr.msk.f32.gmra.mrb[44].mxu0 %vm3616_vm7, %v2894_v53  ;;  %v3702_v53 = vsel %vm3682_vm10, %v3669_v46, %v9167_v20  ;;  %v13442_v46 = vld [vmem:[#allocation117_spill] sm:$0xff] }
 0x290   : > { %v11905_v17 = vpop.permute.xlu1 %9214  ;;  %v9220_v52 = vpop.permute.xlu0 %9219  ;;  %v3797_v26 = vsel %vm3682_vm10, %v3765_v21, %v9181_v14  ;;  %v3701_v63 = vsel %vm3682_vm10, %v3668_v62, %v9182_v27  ;;  %8268 = vmatprep.mubr.msk.f32.mxu0 %vm3616_vm7, %v13432_v11  ;;  %v3735_v14 = vsel %vm3616_vm7, %v10937_v18, %v9187_v2  ;;  %v13438_v21 = vld [vmem:[#allocation97_spill] sm:$0xff]  ;;  %v13440_v18 = vld [vmem:[#allocation115_spill] sm:$0xff]  ;;  %v13441_v11 = vld [vmem:[#allocation106_spill] sm:$0xff] }
 0x291   : > { %4061 = vmatprep.mubr.f32.mxu1 %v3797_v26  ;;  %v9216_v9 = vunpack.i.l.bf16 %v11905_v17  ;;  %v9221_v30 = vunpack.i.l.bf16 %v9220_v52  ;;  %v9222_v54 = vunpack.i.h.bf16 %v9220_v52  ;;  %v9196_v26 = vunpack.i.l.bf16 %v11874_v7 }
 0x292   : > { %4062 = vmatmul.mubr.f32.gmra.mrb[32].mxu1 %v3701_v63 }
 0x293   : > { %4066 = vmatprep.mubr.f32.mxu1 %v3798_v29  ;;  %8269 = vmatmul.mubr.msk.f32.gmra.mrb[46].mxu0 %vm3616_vm7, %v2896_v12  ;;  %v3638_v41 = vsel %vm3616_vm7, %v13439_v1, %v9216_v9  ;;  %v9197_v12 = vunpack.i.h.bf16 %v11874_v7  ;;  %v13443_v7 = vld [vmem:[#allocation118_spill] sm:$0xff] }
 0x294   : > { %v9230_v59 = vpop.permute.xlu0 %9229  ;;  %v11917_v44 = vpop.permute.xlu1 %9224  ;;  %8271 = vmatprep.mubr.msk.f32.mxu0 %vm3616_vm7, %v13435_v22  ;;  %v3671_v43 = vsel %vm3649_vm9, %v3638_v41, %v9222_v54 }
 0x295   : > { %v9232_v10 = vunpack.i.h.bf16 %v9230_v59  ;;  %v9231_v40 = vunpack.i.l.bf16 %v9230_v59  ;;  %v9217_v59 = vunpack.i.h.bf16 %v11905_v17  ;;  %v3704_v22 = vsel %vm3682_vm10, %v3671_v43, %v9197_v12  ;;  %v13448_v12 = vld [vmem:[#allocation121_spill] sm:$0xff] }
 0x296   : > { %4067 = vmatmul.mubr.f32.gmra.mrb[34].mxu1 %v3702_v53 }
 0x297   : > { %8272 = vmatmul.mubr.msk.f32.gmra.mrb[48].mxu0 %vm3616_vm7, %v13436_v55  ;;  %v3736_v50 = vsel %vm3616_vm7, %v11018_v3, %v9232_v10  ;;  %v3637_v62 = vsel %vm3616_vm7, %v13438_v21, %v9231_v40  ;;  %v13445_v21 = vld [vmem:[#allocation113_spill] sm:$0xff] }
 0x298   : > { %v9235_v5 = vpop.permute.xlu1 %9234  ;;  %v9240_v42 = vpop.permute.xlu0 %9239  ;;  %8274 = vmatprep.mubr.msk.f32.mxu0 %vm3616_vm7, %v13437_v48  ;;  %v3768_v51 = vsel %vm3649_vm9, %v3736_v50, %v9221_v30  ;;  %v3737_v30 = vsel %vm3616_vm7, %v11005_v16, %v9217_v59 }
 0x299   : > { %v9237_v25 = vunpack.i.h.bf16 %v9235_v5  ;;  %v9236_v27 = vunpack.i.l.bf16 %v9235_v5  ;;  %v3800_v31 = vsel %vm3682_vm10, %v3768_v51, %v9196_v26  ;;  %v9242_v48 = vunpack.i.h.bf16 %v9240_v42 }
 0x29a   : > { %v9227_v26 = vunpack.i.h.bf16 %v11917_v44 }
 0x29b   : > { %v3767_v58 = vsel %vm3649_vm9, %v3735_v14, %v9236_v27  ;;  %v3670_v3 = vsel %vm3649_vm9, %v3637_v62, %v9237_v25  ;;  %8275 = vmatmul.mubr.msk.f32.gmra.mrb[50].mxu0 %vm3616_vm7, %v13440_v18  ;;  %v9241_v25 = vunpack.i.l.bf16 %v9240_v42  ;;  %v13444_v14 = vld [vmem:[#allocation101_spill] sm:$0xff]  ;;  %v9226_v62 = vunpack.i.l.bf16 %v11917_v44  ;;  %v13447_v18 = vld [vmem:[#allocation120_spill] sm:$0xff] }
 0x29c   : > { %v11944_v63 = vpop.permute.xlu1 %9244  ;;  %v3799_v56 = vsel %vm3682_vm10, %v3767_v58, %v9211_v13  ;;  %v3703_v52 = vsel %vm3682_vm10, %v3670_v3, %v9212_v49  ;;  %8277 = vmatprep.mubr.msk.f32.mxu0 %vm3616_vm7, %v13441_v11  ;;  %v13446_v58 = vld [vmem:[#allocation119_spill] sm:$0xff] }
 0x29d   : > { %v9250_v29 = vpop.permute.xlu0 %9249  ;;  %4071 = vmatprep.mubr.f32.mxu1 %v3799_v56  ;;  %v9246_v40 = vunpack.i.l.bf16 %v11944_v63 }
 0x29e   : > { %4072 = vmatmul.mubr.f32.gmra.mrb[36].mxu1 %v3703_v52  ;;  %v9251_v5 = vunpack.i.l.bf16 %v9250_v29  ;;  %v9252_v27 = vunpack.i.h.bf16 %v9250_v29  ;;  %v9247_v52 = vunpack.i.h.bf16 %v11944_v63 }
 0x29f   : > { %4076 = vmatprep.mubr.f32.mxu1 %v3800_v31  ;;  %8278 = vmatmul.mubr.msk.f32.gmra.mrb[52].mxu0 %vm3616_vm7, %v13442_v46 }
 0x2a0   : > { %v11955_v20 = vpop.permute.xlu1 %9254  ;;  %8280 = vmatprep.mubr.msk.f32.mxu0 %vm3616_vm7, %v11210_v28 }
 0x2a1   : > { %v9260_v2 = vpop.permute.xlu0 %9259 }
 0x2a2   : > { %v9262_v10 = vunpack.i.h.bf16 %v9260_v2  ;;  %v9261_v53 = vunpack.i.l.bf16 %v9260_v2  ;;  %4077 = vmatmul.mubr.f32.gmra.mrb[38].mxu1 %v3704_v22 }
 0x2a3   : > { %8281 = vmatmul.mubr.msk.f32.gmra.mrb[54].mxu0 %vm3616_vm7, %v13443_v7  ;;  %v13449_v7 = vld [vmem:[#allocation104_spill] sm:$0xff] }
 0x2a4   : > { %v9265_v9 = vpop.permute.xlu1 %9264  ;;  %v3738_v55 = vsel %vm3616_vm7, %v11093_v60, %v9262_v10  ;;  %8283 = vmatprep.mubr.msk.f32.mxu0 %vm3616_vm7, %v11372_v57  ;;  %v3639_v49 = vsel %vm3616_vm7, %v13444_v14, %v9261_v53  ;;  %v3640_v57 = vsel %vm3616_vm7, %v13445_v21, %v9246_v40 }
 0x2a5   : > { %v9267_v28 = vunpack.i.h.bf16 %v9265_v9  ;;  %v9266_v17 = vunpack.i.l.bf16 %v9265_v9  ;;  %v9270_v50 = vpop.permute.xlu0 %9269  ;;  %v3770_v54 = vsel %vm3649_vm9, %v3738_v55, %v9251_v5  ;;  %v3673_v41 = vsel %vm3649_vm9, %v3640_v57, %v9252_v27 }
 0x2a6   : > { %v3802_v1 = vsel %vm3682_vm10, %v3770_v54, %v9226_v62  ;;  %v3706_v11 = vsel %vm3682_vm10, %v3673_v41, %v9227_v26  ;;  %v9272_v10 = vunpack.i.h.bf16 %v9270_v50  ;;  %v9271_v53 = vunpack.i.l.bf16 %v9270_v50  ;;  %v13452_v54 = vld [vmem:[#allocation124_spill] sm:$0xff] }
 0x2a7   : > { %v3769_v13 = vsel %vm3649_vm9, %v3737_v30, %v9266_v17  ;;  %v3672_v60 = vsel %vm3649_vm9, %v3639_v49, %v9267_v28  ;;  %8284 = vmatmul.mubr.msk.f32.gmra.mrb[56].mxu0 %vm3616_vm7, %v13446_v58  ;;  %v13450_v28 = vld [vmem:[#allocation122_spill] sm:$0xff]  ;;  %v13451_v30 = vld [vmem:[#allocation123_spill] sm:$0xff]  ;;  %v2916_v57 = vmul.f32 0.0, %v11688_v0 }
 0x2a8   : > { %v9275_v16 = vpop.permute.xlu1 %9274  ;;  %v3801_v42 = vsel %vm3682_vm10, %v3769_v13, %v9241_v25  ;;  %v3705_v3 = vsel %vm3682_vm10, %v3672_v60, %v9242_v48  ;;  %8286 = vmatprep.mubr.msk.f32.mxu0 %vm3616_vm7, %v11435_v15  ;;  %v9257_v13 = vunpack.i.h.bf16 %v11955_v20 }
 0x2a9   : > { %v9280_v51 = vpop.permute.xlu0 %9279  ;;  %4081 = vmatprep.mubr.f32.mxu1 %v3801_v42  ;;  %v9276_v43 = vunpack.i.l.bf16 %v9275_v16  ;;  %v9277_v25 = vunpack.i.h.bf16 %v9275_v16 }
 0x2aa   : > { %4082 = vmatmul.mubr.f32.gmra.mrb[40].mxu1 %v3705_v3  ;;  %v9281_v59 = vunpack.i.l.bf16 %v9280_v51  ;;  %v9282_v40 = vunpack.i.h.bf16 %v9280_v51 }
 0x2ab   : > { %4086 = vmatprep.mubr.f32.mxu1 %v3802_v1  ;;  %8287 = vmatmul.mubr.msk.f32.gmra.mrb[58].mxu0 %vm3616_vm7, %v13447_v18  ;;  %v3642_v17 = vsel %vm3616_vm7, %v13450_v28, %v9276_v43  ;;  %v3741_v42 = vsel %vm3616_vm7, %v11153_v6, %v9277_v25 }
 0x2ac   : > { %v11989_v56 = vpop.permute.xlu1 %9284  ;;  %8289 = vmatprep.mubr.msk.f32.mxu0 %vm3616_vm7, %v11515_v32  ;;  %v3739_v32 = vsel %vm3616_vm7, %v11075_v61, %v9247_v52  ;;  %v3675_v49 = vsel %vm3649_vm9, %v3642_v17, %v9282_v40 }
 0x2ad   : > { %v9290_v15 = vpop.permute.xlu0 %9289 }
 0x2ae   : > { %v9292_v29 = vunpack.i.h.bf16 %v9290_v15  ;;  %v9291_v31 = vunpack.i.l.bf16 %v9290_v15  ;;  %4087 = vmatmul.mubr.f32.gmra.mrb[42].mxu1 %v3706_v11  ;;  %v13453_v11 = vld [vmem:[#allocation109_spill] sm:$0xff] }
 0x2af   : > { %8290 = vmatmul.mubr.msk.f32.gmra.mrb[60].mxu0 %vm3616_vm7, %v13448_v12 }
 0x2b0   : > { %v9295_v44 = vpop.permute.xlu1 %9294  ;;  %v3740_v46 = vsel %vm3616_vm7, %v11169_v36, %v9292_v29  ;;  %8292 = vmatprep.mubr.msk.f32.mxu0 %vm3616_vm7, %v11566_v24  ;;  %v3641_v9 = vsel %vm3616_vm7, %v13449_v7, %v9291_v31  ;;  %v9256_v24 = vunpack.i.l.bf16 %v11955_v20  ;;  %v9286_v20 = vunpack.i.l.bf16 %v11989_v56 }
 0x2b1   : > { %v9297_v2 = vunpack.i.h.bf16 %v9295_v44  ;;  %v9296_v63 = vunpack.i.l.bf16 %v9295_v44  ;;  %v9300_v22 = vpop.permute.xlu0 %9299  ;;  %v3772_v5 = vsel %vm3649_vm9, %v3740_v46, %v9281_v59 }
 0x2b2   : > { %v3804_v14 = vsel %vm3682_vm10, %v3772_v5, %v9256_v24  ;;  %v9301_v3 = vunpack.i.l.bf16 %v9300_v22  ;;  %v9302_v41 = vunpack.i.h.bf16 %v9300_v22 }
 0x2b3   : > { %v3771_v55 = vsel %vm3649_vm9, %v3739_v32, %v9296_v63  ;;  %v3674_v36 = vsel %vm3649_vm9, %v3641_v9, %v9297_v2  ;;  %8293 = vmatmul.mubr.msk.f32.gmra.mrb[62].mxu0 %vm3616_vm7, %v13451_v30 }
 0x2b4   : > { %v9305_v61 = vpop.permute.xlu1 %9304  ;;  %v3803_v50 = vsel %vm3682_vm10, %v3771_v55, %v9271_v53  ;;  %v3707_v48 = vsel %vm3682_vm10, %v3674_v36, %v9272_v10  ;;  %8295 = vmatprep.mubr.msk.f32.mxu0 %vm3616_vm7, %v11634_v8  ;;  %v3708_v8 = vsel %vm3682_vm10, %v3675_v49, %v9257_v13 }
 0x2b5   : > { %v9310_v27 = vpop.permute.xlu0 %9309  ;;  %4091 = vmatprep.mubr.f32.mxu1 %v3803_v50  ;;  %v9306_v60 = vunpack.i.l.bf16 %v9305_v61  ;;  %v9307_v46 = vunpack.i.h.bf16 %v9305_v61 }
 0x2b6   : > { %4092 = vmatmul.mubr.f32.gmra.mrb[44].mxu1 %v3707_v48  ;;  %v9312_v26 = vunpack.i.h.bf16 %v9310_v27  ;;  %v9311_v18 = vunpack.i.l.bf16 %v9310_v27  ;;  %v13454_v48 = vld [vmem:[#allocation112_spill] sm:$0xff] }
 0x2b7   : > { %4096 = vmatprep.mubr.f32.mxu1 %v3804_v14  ;;  %8296 = vmatmul.mubr.msk.f32.gmra.mrb[64].mxu0 %vm3616_vm7, %v13452_v54  ;;  %v3644_v31 = vsel %vm3616_vm7, %v11442_v47, %v9306_v60  ;;  %v3743_v40 = vsel %vm3616_vm7, %v11217_v23, %v9307_v46 }
 0x2b8   : > { %v9320_v21 = vpop.permute.xlu1 %9319  ;;  %8298 = vmatprep.mubr.f32.mxu0 %v13278_v45  ;;  %v3677_v63 = vsel %vm3649_vm9, %v3644_v31, %v9312_v26  ;;  %v13455_v26 = vld [vmem:[#allocation116_spill] sm:$0xff] }
 0x2b9   : > { %v9315_v62 = vpop.permute.xlu0 %9314  ;;  %v9322_v58 = vunpack.i.h.bf16 %v9320_v21  ;;  %v9321_v16 = vunpack.i.l.bf16 %v9320_v21 }
 0x2ba   : > { %v9317_v51 = vunpack.i.h.bf16 %v9315_v62  ;;  %v9316_v1 = vunpack.i.l.bf16 %v9315_v62  ;;  %4097 = vmatmul.mubr.f32.gmra.mrb[46].mxu1 %v3708_v8 }
 0x2bb   : > { %v3773_v0 = vsel %vm3649_vm9, %v3741_v42, %v9321_v16  ;;  %8299 = vmatmul.mubr.msk.f32.gmra.mrb[66].mxu0 %vm3616_vm7, %v2916_v57 }
 0x2bc   : > { %v9330_v52 = vpop.permute.xlu1 %9329  ;;  %v3805_v15 = vsel %vm3682_vm10, %v3773_v0, %v9301_v3  ;;  %v3643_v29 = vsel %vm3616_vm7, %v13453_v11, %v9316_v1  ;;  %v3742_v6 = vsel %vm3616_vm7, %v11235_v38, %v9317_v51  ;;  %v9287_v38 = vunpack.i.h.bf16 %v11989_v56 }
 0x2bd   : > { %v9325_v43 = vpop.permute.xlu0 %9324  ;;  %4101 = vmatprep.mubr.f32.mxu1 %v3805_v15  ;;  %v3676_v12 = vsel %vm3649_vm9, %v3643_v29, %v9322_v58  ;;  %v3774_v44 = vsel %vm3649_vm9, %v3742_v6, %v9311_v18  ;;  %v9331_v28 = vunpack.i.l.bf16 %v9330_v52  ;;  %v9332_v27 = vunpack.i.h.bf16 %v9330_v52 }
 0x2be   : > { %v3709_v59 = vsel %vm3682_vm10, %v3676_v12, %v9302_v41  ;;  %v3806_v2 = vsel %vm3682_vm10, %v3774_v44, %v9286_v20  ;;  %v9326_v10 = vunpack.i.l.bf16 %v9325_v43  ;;  %v3710_v53 = vsel %vm3682_vm10, %v3677_v63, %v9287_v38 }
 0x2bf   : > { %4102 = vmatmul.mubr.f32.gmra.mrb[48].mxu1 %v3709_v59  ;;  %v9327_v30 = vunpack.i.h.bf16 %v9325_v43  ;;  %v3646_v16 = vsel %vm3616_vm7, %v11528_v39, %v9331_v28  ;;  %v3745_v20 = vsel %vm3616_vm7, %v11341_v33, %v9332_v27 }
 0x2c0   : > { %4106 = vmatprep.mubr.f32.mxu1 %v3806_v2  ;;  %v9345_v47 = vpop.permute.xlu1 %9344 }
 0x2c1   : > { %v9335_v22 = vpop.permute.xlu0 %9334  ;;  %v9346_v32 = vunpack.i.l.bf16 %v9345_v47  ;;  %v9347_v24 = vunpack.i.h.bf16 %v9345_v47 }
 0x2c2   : > { %v9336_v17 = vunpack.i.l.bf16 %v9335_v22  ;;  %v9337_v14 = vunpack.i.h.bf16 %v9335_v22 }
 0x2c3   : > { %4107 = vmatmul.mubr.f32.gmra.mrb[50].mxu1 %v3710_v53  ;;  %v3775_v7 = vsel %vm3649_vm9, %v3743_v40, %v9346_v32 }
 0x2c4   : > { %v9350_v9 = vpop.permute.xlu1 %9349  ;;  %v3807_v55 = vsel %vm3682_vm10, %v3775_v7, %v9326_v10  ;;  %v3679_v42 = vsel %vm3649_vm9, %v3646_v16, %v9337_v14 }
 0x2c5   : > { %v9340_v36 = vpop.permute.xlu0 %9339  ;;  %4111 = vmatprep.mubr.f32.mxu1 %v3807_v55  ;;  %v9351_v61 = vunpack.i.l.bf16 %v9350_v9  ;;  %v9352_v54 = vunpack.i.h.bf16 %v9350_v9 }
 0x2c6   : > { %v9342_v5 = vunpack.i.h.bf16 %v9340_v36  ;;  %v9341_v56 = vunpack.i.l.bf16 %v9340_v36 }
 0x2c7   : > { %v3712_v41 = vsel %vm3682_vm10, %v3679_v42, %v9352_v54  ;;  %v4519_v54 = vld [vmem:[%s9827_s14] sm:$0xff] }
 0x2c8   : > { %v9360_v50 = vpop.permute.xlu1 %9359  ;;  %v3645_v25 = vsel %vm3616_vm7, %v13454_v48, %v9341_v56  ;;  %v3744_v23 = vsel %vm3616_vm7, %v11345_v37, %v9342_v5 }
 0x2c9   : > { %v9355_v49 = vpop.permute.xlu0 %9354  ;;  %v3678_v13 = vsel %vm3649_vm9, %v3645_v25, %v9347_v24  ;;  %v3776_v60 = vsel %vm3649_vm9, %v3744_v23, %v9336_v17  ;;  %v9361_v58 = vunpack.i.l.bf16 %v9360_v50  ;;  %v9362_v37 = vunpack.i.h.bf16 %v9360_v50 }
 0x2ca   : > { %v9356_v21 = vunpack.i.l.bf16 %v9355_v49  ;;  %v3711_v57 = vsel %vm3682_vm10, %v3678_v13, %v9327_v30  ;;  %v3808_v62 = vsel %vm3682_vm10, %v3776_v60, %v9351_v61  ;;  %v9357_v0 = vunpack.i.h.bf16 %v9355_v49 }
 0x2cb   : > { %4112 = vmatmul.mubr.f32.gmra.mrb[52].mxu1 %v3711_v57  ;;  %v3777_v39 = vsel %vm3649_vm9, %v3745_v20, %v9361_v58 }
 0x2cc   : > { %4116 = vmatprep.mubr.f32.mxu1 %v3808_v62  ;;  %v2979_v3 = vpop.permute.xlu1 %2978  ;;  %v3647_v18 = vsel %vm3616_vm7, %v13455_v26, %v9356_v21  ;;  %v3746_v43 = vsel %vm3616_vm7, %v11411_v34, %v9357_v0  ;;  %v4520_v21 = vld [vmem:[%s9827_s14 + $0x8] sm:$0xff] }
 0x2cd   : > { %v9365_v8 = vpop.permute.xlu0 %9364  ;;  %v3680_v33 = vsel %vm3649_vm9, %v3647_v18, %v9362_v37  ;;  %v3648_v31 = vsel %vm3616_vm7, %v11597_v4, %v2979_v3  ;;  %v8549_v58 = vpack.c.bf16 %v4520_v21, %v4519_v54  ;;  %v4521_v37 = vld [vmem:[%s9827_s14 + $0x10] sm:$0xff] }
 0x2ce   : > { %v9367_v51 = vunpack.i.h.bf16 %v9365_v8  ;;  %v12061_v1 = vunpack.i.l.bf16 %v9365_v8 }
 0x2cf   : > { %4117 = vmatmul.mubr.f32.gmra.mrb[54].mxu1 %v3712_v41  ;;  %8550 = vmatprep.subr.bf16.mxu0 %v8549_v58 }
 0x2d0   : > { %v3809_v52 = vsel %vm3682_vm10, %v3777_v39, %v12061_v1  ;;  %v3713_v6 = vsel %vm3682_vm10, %v3680_v33, %v9367_v51  ;;  %v3234_v12 = vpop.permute.xlu1 %3233  ;;  %8552 = vmatpush3.bf16.msra.mxu0 %v8549_v58 }
 0x2d1   : > { %4121 = vmatprep.mubr.f32.mxu1 %v3809_v52  ;;  %v9370_v15 = vpop.permute.xlu0 %9369  ;;  %8305 = vmatprep.subr.mxu0 %v4521_v37 }
 0x2d2   : > { %v9372_v11 = vunpack.i.h.bf16 %v9370_v15  ;;  %v9371_v29 = vunpack.i.l.bf16 %v9370_v15 }
 0x2d3   : > { %4122 = vmatmul.mubr.f32.gmra.mrb[56].mxu1 %v3713_v6 }
 0x2d4   : > { %v3778_v44 = vsel %vm3649_vm9, %v3746_v43, %v9371_v29  ;;  %v3681_v46 = vsel %vm3649_vm9, %v3648_v31, %v9372_v11  ;;  %8306 = vmatpush3.msra.mxu0 %v4521_v37 }
 0x2d5   : > { %v3810_v59 = vsel %vm3682_vm10, %v3778_v44, %v12061_v1  ;;  %v3714_v2 = vsel %vm3682_vm10, %v3681_v46, %v3234_v12 }
 0x2d6   : > { %4126 = vmatprep.mubr.f32.mxu1 %v3810_v59 }
 0x2d7   : > { %4127 = vmatmul.mubr.f32.gmra.mrb[58].mxu1 %v3714_v2 }
 0x2fd   : > { %v3983_v63 = vpop.f32.mrb[0].mxu1 }
 0x2fe   : > { %v3985_v38 = vpop.f32.mrb[1].mxu1 }
 0x301   : > { %v3973_v47 = vpop.f32.mrb[32].mxu0 }
 0x302   : > { %v3975_v4 = vpop.f32.mrb[33].mxu0 }
 0x30a   : > { %v3988_v22 = vpop.f32.mrb[2].mxu1 }
 0x30b   : > { %v3990_v32 = vpop.f32.mrb[3].mxu1 }
 0x311   : > { %v3993_v10 = vpop.f32.mrb[4].mxu1 }
 0x312   : > { %v3995_v34 = vpop.f32.mrb[5].mxu1 }
 0x316   : > { %v3998_v53 = vpop.f32.mrb[6].mxu1 }
 0x317   : > { %v4000_v40 = vpop.f32.mrb[7].mxu1 }
 0x31d   : > { %v4003_v7 = vpop.f32.mrb[8].mxu1 }
 0x31e   : > { %v4005_v9 = vpop.f32.mrb[9].mxu1 }
 0x322   : > { %v4008_v55 = vpop.f32.mrb[10].mxu1 }
 0x323   : > { %v4010_v36 = vpop.f32.mrb[11].mxu1 }
 0x329   : > { %v4013_v5 = vpop.f32.mrb[12].mxu1 }
 0x32a   : > { %v4015_v56 = vpop.f32.mrb[13].mxu1 }
 0x32e   : > { %v4018_v28 = vpop.f32.mrb[14].mxu1 }
 0x32f   : > { %v4020_v17 = vpop.f32.mrb[15].mxu1 }
 0x332   : > { %v4023_v24 = vpop.f32.mrb[16].mxu1 }
 0x333   : > { %v4025_v30 = vpop.f32.mrb[17].mxu1 }
 0x336   : > { %v4028_v61 = vpop.f32.mrb[18].mxu1 }
 0x337   : > { %v4030_v50 = vpop.f32.mrb[19].mxu1 }
 0x33d   : > { %v12080_v48 = vpop.f32.mrb[20].mxu1 }
 0x33e   : > { %v4035_v25 = vpop.f32.mrb[21].mxu1 }
 0x342   : > { %v4038_v23 = vpop.f32.mrb[22].mxu1 }
 0x343   : > { %v4040_v27 = vpop.f32.mrb[23].mxu1 }
 0x349   : > { %v12082_v14 = vpop.f32.mrb[24].mxu1 }
 0x34a   : > { %v4045_v49 = vpop.f32.mrb[25].mxu1 }
 0x34e   : > { %v3978_v13 = vpop.f32.mrb[34].mxu0  ;;  %v12084_v60 = vpop.f32.mrb[26].mxu1 }
 0x34f   : > { %v3980_v57 = vpop.f32.mrb[35].mxu0  ;;  %v4050_v62 = vpop.f32.mrb[27].mxu1 }
 0x352   : > { %v8255_v16 = vpop.f32.mrb[36].mxu0 }
 0x353   : > { %v4204_v8 = vadd.f32 %v8255_v16, %v3978_v13  ;;  %v4198_v42 = vpop.f32.mrb[37].mxu0 }
 0x354   : > { %v4199_v20 = vadd.f32 %v4198_v42, %v3973_v47 }
 0x355   : > { %4391 = vrot.lane.b32.xlu1 %v4204_v8, %s9767_s22 }
 0x356   : > { %v8258_v3 = vpop.f32.mrb[38].mxu0  ;;  %4389 = vrot.lane.b32.xlu0 %v4199_v20, %s9767_s22 }
 0x357   : > { %v4214_v51 = vadd.f32 %v8258_v3, %v3988_v22  ;;  %v4208_v41 = vpop.f32.mrb[39].mxu0 }
 0x358   : > { %v4209_v26 = vadd.f32 %v4208_v41, %v3983_v63 }
 0x359   : > { %v4053_v18 = vpop.f32.mrb[28].mxu1  ;;  %4395 = vrot.lane.b32.xlu1 %v4214_v51, %s9767_s22 }
 0x35a   : > { %v4055_v0 = vpop.f32.mrb[29].mxu1  ;;  %v8261_v39 = vpop.f32.mrb[40].mxu0  ;;  %4393 = vrot.lane.b32.xlu0 %v4209_v26, %s9767_s22 }
 0x35b   : > { %v4224_v52 = vadd.f32 %v8261_v39, %v3998_v53  ;;  %v4218_v15 = vpop.f32.mrb[41].mxu0 }
 0x35c   : > { %v4219_v33 = vadd.f32 %v4218_v15, %v3993_v10 }
 0x35d   : > { %v4058_v11 = vpop.f32.mrb[30].mxu1  ;;  %4399 = vrot.lane.b32.xlu1 %v4224_v52, %s9767_s22 }
 0x35e   : > { %v4060_v29 = vpop.f32.mrb[31].mxu1  ;;  %v8264_v6 = vpop.f32.mrb[42].mxu0  ;;  %4397 = vrot.lane.b32.xlu0 %v4219_v33, %s9767_s22 }
 0x35f   : > { %v4234_v31 = vadd.f32 %v8264_v6, %v4008_v55  ;;  %v4228_v43 = vpop.f32.mrb[43].mxu0 }
 0x360   : > { %v4229_v12 = vadd.f32 %v4228_v43, %v4003_v7 }
 0x361   : > { %4403 = vrot.lane.b32.xlu1 %v4234_v31, %s9767_s22 }
 0x362   : > { %v8267_v44 = vpop.f32.mrb[44].mxu0  ;;  %4401 = vrot.lane.b32.xlu0 %v4229_v12, %s9767_s22 }
 0x363   : > { %v4244_v46 = vadd.f32 %v8267_v44, %v4018_v28  ;;  %v4238_v59 = vpop.f32.mrb[45].mxu0 }
 0x364   : > { %v4239_v2 = vadd.f32 %v4238_v59, %v4013_v5 }
 0x365   : > { %v4063_v63 = vpop.f32.mrb[32].mxu1  ;;  %4407 = vrot.lane.b32.xlu1 %v4244_v46, %s9767_s22 }
 0x366   : > { %v4065_v38 = vpop.f32.mrb[33].mxu1  ;;  %v8270_v47 = vpop.f32.mrb[46].mxu0  ;;  %4405 = vrot.lane.b32.xlu0 %v4239_v2, %s9767_s22 }
 0x367   : > { %v4254_v4 = vadd.f32 %v8270_v47, %v4028_v61  ;;  %v4248_v22 = vpop.f32.mrb[47].mxu0 }
 0x368   : > { %v4249_v32 = vadd.f32 %v4248_v22, %v4023_v24 }
 0x369   : > { %v4068_v10 = vpop.f32.mrb[34].mxu1  ;;  %4411 = vrot.lane.b32.xlu1 %v4254_v4, %s9767_s22 }
 0x36a   : > { %v4070_v34 = vpop.f32.mrb[35].mxu1  ;;  %v8273_v53 = vpop.f32.mrb[48].mxu0  ;;  %4409 = vrot.lane.b32.xlu0 %v4249_v32, %s9767_s22 }
 0x36b   : > { %v4264_v40 = vadd.f32 %v8273_v53, %v4038_v23  ;;  %v4258_v7 = vpop.f32.mrb[49].mxu0 }
 0x36c   : > { %v4259_v9 = vadd.f32 %v4258_v7, %v12080_v48 }
 0x36d   : > { %4415 = vrot.lane.b32.xlu1 %v4264_v40, %s9767_s22 }
 0x36e   : > { %v8276_v55 = vpop.f32.mrb[50].mxu0  ;;  %4413 = vrot.lane.b32.xlu0 %v4259_v9, %s9767_s22 }
 0x36f   : > { %v4274_v36 = vadd.f32 %v8276_v55, %v12084_v60  ;;  %v4268_v5 = vpop.f32.mrb[51].mxu0  ;;  %v12125_v55 = vld [vmem:[%s13456_s3] ss:$0 sm:$0xff]  ;;  %s9770_s3 = smov 10  }
 0x370   : > { %v4269_v56 = vadd.f32 %v4268_v5, %v12082_v14  ;;  %v12128_v5 = vld [vmem:[%s13457_s8] ss:$0 sm:$0xff] }
 0x371   : > { %v4073_v28 = vpop.f32.mrb[36].mxu1  ;;  %4419 = vrot.lane.b32.xlu1 %v4274_v36, %s9767_s22 }
 0x372   : > { %v4075_v17 = vpop.f32.mrb[37].mxu1  ;;  %v8279_v24 = vpop.f32.mrb[52].mxu0  ;;  %4417 = vrot.lane.b32.xlu0 %v4269_v56, %s9767_s22  ;;  %v9530_v56 = vld [vmem:[%s10115_s1 + $0x8] sm:$0xff] }
 0x373   : > { %v4284_v30 = vadd.f32 %v8279_v24, %v4058_v11  ;;  %v4278_v61 = vpop.f32.mrb[53].mxu0 }
 0x374   : > { %v4279_v50 = vadd.f32 %v4278_v61, %v4053_v18 }
 0x375   : > { %v4078_v48 = vpop.f32.mrb[38].mxu1  ;;  %4423 = vrot.lane.b32.xlu1 %v4284_v30, %s9767_s22  ;;  %v9531_v30 = vld [vmem:[%s10115_s1] sm:$0xff] }
 0x376   : > { %v4080_v25 = vpop.f32.mrb[39].mxu1  ;;  %v8282_v23 = vpop.f32.mrb[54].mxu0  ;;  %4421 = vrot.lane.b32.xlu0 %v4279_v50, %s9767_s22 }
 0x377   : > { %v4294_v27 = vadd.f32 %v8282_v23, %v4068_v10  ;;  %v4288_v49 = vpop.f32.mrb[55].mxu0 }
 0x378   : > { %v4289_v14 = vadd.f32 %v4288_v49, %v4063_v63 }
 0x379   : > { %4427 = vrot.lane.b32.xlu1 %v4294_v27, %s9767_s22  ;;  %v9532_v27 = vld [vmem:[%s10115_s1 + $0x18] sm:$0xff] }
 0x37a   : > { %v8285_v13 = vpop.f32.mrb[56].mxu0  ;;  %4425 = vrot.lane.b32.xlu0 %v4289_v14, %s9767_s22 }
 0x37b   : > { %v4304_v60 = vadd.f32 %v8285_v13, %v4078_v48  ;;  %v4298_v54 = vpop.f32.mrb[57].mxu0 }
 0x37c   : > { %v4299_v21 = vadd.f32 %v4298_v54, %v4073_v28 }
 0x37d   : > { %v4083_v57 = vpop.f32.mrb[40].mxu1  ;;  %4431 = vrot.lane.b32.xlu1 %v4304_v60, %s9767_s22  ;;  %v9533_v60 = vld [vmem:[%s10115_s1 + $0x10] sm:$0xff] }
 0x37e   : > { %v4085_v62 = vpop.f32.mrb[41].mxu1  ;;  %v8288_v58 = vpop.f32.mrb[58].mxu0  ;;  %4429 = vrot.lane.b32.xlu0 %v4299_v21, %s9767_s22 }
 0x37f   : > { %v4308_v16 = vpop.f32.mrb[59].mxu0 }
 0x380   : > { %v4309_v37 = vadd.f32 %v4308_v16, %v4083_v57 }
 0x381   : > { %v4088_v8 = vpop.f32.mrb[42].mxu1 }
 0x382   : > { %v4314_v42 = vadd.f32 %v8288_v58, %v4088_v8  ;;  %v4090_v20 = vpop.f32.mrb[43].mxu1  ;;  %v8291_v3 = vpop.f32.mrb[60].mxu0  ;;  %4433 = vrot.lane.b32.xlu0 %v4309_v37, %s9767_s22  ;;  %v9534_v8 = vld [vmem:[%s10115_s1 + $0x28] sm:$0xff] }
 0x383   : > { %v4318_v51 = vpop.f32.mrb[61].mxu0 }
 0x384   : > { %4435 = vrot.lane.b32.xlu1 %v4314_v42, %s9767_s22 }
 0x386   : > { %v8294_v41 = vpop.f32.mrb[62].mxu0 }
 0x387   : > { %v4328_v26 = vpop.f32.mrb[63].mxu0 }
 0x389   : > { %v4093_v18 = vpop.f32.mrb[44].mxu1 }
 0x38a   : > { %v4319_v0 = vadd.f32 %v4318_v51, %v4093_v18  ;;  %v4095_v39 = vpop.f32.mrb[45].mxu1  ;;  %v8297_v52 = vpop.f32.mrb[64].mxu0  ;;  %v9535_v51 = vld [vmem:[%s10115_s1 + $0x20] sm:$0xff] }
 0x38b   : > { %v4338_v15 = vpop.f32.mrb[65].mxu0 }
 0x38c   : > { %4437 = vrot.lane.b32.xlu0 %v4319_v0, %s9767_s22 }
 0x38d   : > { %v4098_v33 = vpop.f32.mrb[46].mxu1 }
 0x38e   : > { %v4324_v11 = vadd.f32 %v8291_v3, %v4098_v33  ;;  %v4100_v29 = vpop.f32.mrb[47].mxu1  ;;  %v8300_v6 = vpop.f32.mrb[66].mxu0  ;;  %v9536_v33 = vld [vmem:[%s10115_s1 + $0x38] sm:$0xff] }
 0x38f   : > { %v4348_v31 = vpop.f32.mrb[67].mxu0 }
 0x390   : > { %4439 = vrot.lane.b32.xlu1 %v4324_v11, %s9767_s22 }
 0x392   : > { %v4103_v43 = vpop.f32.mrb[48].mxu1 }
 0x393   : > { %v4329_v12 = vadd.f32 %v4328_v26, %v4103_v43  ;;  %v4105_v44 = vpop.f32.mrb[49].mxu1 }
 0x395   : > { %4441 = vrot.lane.b32.xlu0 %v4329_v12, %s9767_s22 }
 0x396   : > { %v4108_v46 = vpop.f32.mrb[50].mxu1 }
 0x397   : > { %v4334_v59 = vadd.f32 %v8294_v41, %v4108_v46  ;;  %v4110_v2 = vpop.f32.mrb[51].mxu1 }
 0x399   : > { %4443 = vrot.lane.b32.xlu1 %v4334_v59, %s9767_s22 }
 0x39e   : > { %v4113_v63 = vpop.f32.mrb[52].mxu1 }
 0x39f   : > { %v4339_v38 = vadd.f32 %v4338_v15, %v4113_v63  ;;  %v4115_v47 = vpop.f32.mrb[53].mxu1 }
 0x3a1   : > { %4445 = vrot.lane.b32.xlu0 %v4339_v38, %s9767_s22  ;;  %v9538_v38 = vld [vmem:[%s10115_s1 + $0x48] sm:$0xff] }
 0x3a2   : > { %v4118_v4 = vpop.f32.mrb[54].mxu1 }
 0x3a3   : > { %v4344_v22 = vadd.f32 %v8297_v52, %v4118_v4  ;;  %v4120_v32 = vpop.f32.mrb[55].mxu1 }
 0x3a4   : > { %v9539_v32 = vld [vmem:[%s10115_s1 + $0x40] sm:$0xff] }
 0x3a5   : > { %4447 = vrot.lane.b32.xlu1 %v4344_v22, %s9767_s22 }
 0x3a6   : > { %v4123_v10 = vpop.f32.mrb[56].mxu1 }
 0x3a7   : > { %v4349_v34 = vadd.f32 %v4348_v31, %v4123_v10  ;;  %v4125_v53 = vpop.f32.mrb[57].mxu1  ;;  %v9537_v31 = vld [vmem:[%s10115_s1 + $0x30] sm:$0xff] }
 0x3a9   : > { %4449 = vrot.lane.b32.xlu0 %v4349_v34, %s9767_s22 }
 0x3aa   : > { %v4128_v40 = vpop.f32.mrb[58].mxu1 }
 0x3ab   : > { %v4354_v7 = vadd.f32 %v8300_v6, %v4128_v40  ;;  %v4130_v9 = vpop.f32.mrb[59].mxu1 }
 0x3ad   : > { %4451 = vrot.lane.b32.xlu1 %v4354_v7, %s9767_s22  ;;  %s9769_s22 = smov 12  }
 0x3c7   : > { %v4392_v36 = vpop.permute.xlu1 %4391 }
 0x3c8   : > { %v4486_v28 = vsel %vm1456_vm0, %v9530_v56, %v4392_v36  ;;  %v4390_v17 = vpop.permute.xlu0 %4389  ;;  %v9540_v56 = vld [vmem:[%s10115_s1 + $0x58] sm:$0xff] }
 0x3c9   : > { %v4545_v24 = vmul.f32 %v12125_v55, %v4486_v28  ;;  %v4485_v61 = vsel %vm1456_vm0, %v9531_v30, %v4390_v17  ;;  %v9541_v30 = vld [vmem:[%s10115_s1 + $0x50] sm:$0xff] }
 0x3ca   : > { %v4544_v50 = vmul.f32 %v12125_v55, %v4485_v61 }
 0x3cb   : > { %v4583_v48 = vadd.f32 %v12128_v5, %v4545_v24  ;;  %v4396_v25 = vpop.permute.xlu1 %4395 }
 0x3cc   : > { %v4582_v23 = vadd.f32 %v12128_v5, %v4544_v50  ;;  %v4488_v49 = vsel %vm1456_vm0, %v9532_v27, %v4396_v25  ;;  %v4394_v14 = vpop.permute.xlu0 %4393 }
 0x3cd   : > { %v4547_v13 = vmul.f32 %v12125_v55, %v4488_v49  ;;  %v4487_v54 = vsel %vm1456_vm0, %v9533_v60, %v4394_v14  ;;  %v4615_v62 = vmax.f32 %v4583_v48, 0.0  ;;  %v9542_v14 = vld [vmem:[%s10115_s1 + $0x68] sm:$0xff] }
 0x3ce   : > { %v4614_v21 = vmax.f32 %v4582_v23, 0.0  ;;  %v4546_v57 = vmul.f32 %v12125_v55, %v4487_v54 }
 0x3cf   : > { %v4585_v58 = vadd.f32 %v12128_v5, %v4547_v13  ;;  %v4400_v16 = vpop.permute.xlu1 %4399 }
 0x3d0   : > { %v4584_v37 = vadd.f32 %v12128_v5, %v4546_v57  ;;  %v4490_v42 = vsel %vm1456_vm0, %v9534_v8, %v4400_v16  ;;  %8307 = vmatprep.mubr.msk.f32.mxu0 %vm4646_vm12, %v4614_v21  ;;  %v4398_v20 = vpop.permute.xlu0 %4397  ;;  %v9543_v21 = vld [vmem:[%s10115_s1 + $0x60] sm:$0xff] }
 0x3d1   : > { %v4549_v3 = vmul.f32 %v12125_v55, %v4490_v42  ;;  %v4489_v41 = vsel %vm1456_vm0, %v9535_v51, %v4398_v20  ;;  %8308 = vmatmul.mubr.msk.f32.vlgmr.msra.gmra.mrb[68].mxu0 %vm4646_vm12, %v4615_v62  ;;  %v4617_v0 = vmax.f32 %v4585_v58, 0.0  ;;  %v9544_v20 = vld [vmem:[%s10115_s1 + $0x78] sm:$0xff] }
 0x3d2   : > { %v4616_v26 = vmax.f32 %v4584_v37, 0.0  ;;  %v4548_v18 = vmul.f32 %v12125_v55, %v4489_v41 }
 0x3d3   : > { %v4587_v39 = vadd.f32 %v12128_v5, %v4549_v3  ;;  %v4404_v52 = vpop.permute.xlu1 %4403 }
 0x3d4   : > { %v4586_v15 = vadd.f32 %v12128_v5, %v4548_v18  ;;  %v4492_v11 = vsel %vm1456_vm0, %v9536_v33, %v4404_v52  ;;  %8310 = vmatprep.mubr.msk.f32.mxu0 %vm4646_vm12, %v4616_v26  ;;  %v4402_v29 = vpop.permute.xlu0 %4401  ;;  %v9545_v26 = vld [vmem:[%s10115_s1 + $0x70] sm:$0xff] }
 0x3d5   : > { %v4551_v6 = vmul.f32 %v12125_v55, %v4492_v11  ;;  %v4491_v43 = vsel %vm1456_vm0, %v9537_v31, %v4402_v29  ;;  %8311 = vmatmul.mubr.msk.f32.gmra.mrb[70].mxu0 %vm4646_vm12, %v4617_v0  ;;  %v4619_v46 = vmax.f32 %v4587_v39, 0.0  ;;  %v9546_v29 = vld [vmem:[%s10115_s1 + $0x88] sm:$0xff] }
 0x3d6   : > { %v4618_v12 = vmax.f32 %v4586_v15, 0.0  ;;  %v4550_v44 = vmul.f32 %v12125_v55, %v4491_v43 }
 0x3d7   : > { %v4589_v59 = vadd.f32 %v12128_v5, %v4551_v6  ;;  %v4408_v2 = vpop.permute.xlu1 %4407 }
 0x3d8   : > { %v4588_v63 = vadd.f32 %v12128_v5, %v4550_v44  ;;  %v4494_v47 = vsel %vm1456_vm0, %v9538_v38, %v4408_v2  ;;  %8313 = vmatprep.mubr.msk.f32.mxu0 %vm4646_vm12, %v4618_v12  ;;  %v4406_v4 = vpop.permute.xlu0 %4405  ;;  %v9547_v12 = vld [vmem:[%s10115_s1 + $0x80] sm:$0xff] }
 0x3d9   : > { %v4553_v22 = vmul.f32 %v12125_v55, %v4494_v47  ;;  %v4493_v10 = vsel %vm1456_vm0, %v9539_v32, %v4406_v4  ;;  %8314 = vmatmul.mubr.msk.f32.gmra.mrb[72].mxu0 %vm4646_vm12, %v4619_v46  ;;  %v4621_v40 = vmax.f32 %v4589_v59, 0.0  ;;  %v9548_v4 = vld [vmem:[%s10115_s1 + $0x98] sm:$0xff] }
 0x3da   : > { %v4620_v34 = vmax.f32 %v4588_v63, 0.0  ;;  %v4552_v53 = vmul.f32 %v12125_v55, %v4493_v10 }
 0x3db   : > { %v4591_v7 = vadd.f32 %v12128_v5, %v4553_v22  ;;  %v4412_v9 = vpop.permute.xlu1 %4411 }
 0x3dc   : > { %v4590_v36 = vadd.f32 %v12128_v5, %v4552_v53  ;;  %v4496_v28 = vsel %vm1456_vm0, %v9540_v56, %v4412_v9  ;;  %8316 = vmatprep.mubr.msk.f32.mxu0 %vm4646_vm12, %v4620_v34  ;;  %v4410_v17 = vpop.permute.xlu0 %4409  ;;  %v9549_v34 = vld [vmem:[%s10115_s1 + $0x90] sm:$0xff] }
 0x3dd   : > { %v4555_v24 = vmul.f32 %v12125_v55, %v4496_v28  ;;  %v4495_v61 = vsel %vm1456_vm0, %v9541_v30, %v4410_v17  ;;  %8317 = vmatmul.mubr.msk.f32.gmra.mrb[74].mxu0 %vm4646_vm12, %v4621_v40  ;;  %v4623_v25 = vmax.f32 %v4591_v7, 0.0  ;;  %v9550_v17 = vld [vmem:[%s10115_s1 + $0xa8] sm:$0xff] }
 0x3de   : > { %v4622_v50 = vmax.f32 %v4590_v36, 0.0  ;;  %v4554_v48 = vmul.f32 %v12125_v55, %v4495_v61 }
 0x3df   : > { %v4593_v23 = vadd.f32 %v12128_v5, %v4555_v24  ;;  %v4416_v27 = vpop.permute.xlu1 %4415 }
 0x3e0   : > { %v4592_v49 = vadd.f32 %v12128_v5, %v4554_v48  ;;  %v4498_v13 = vsel %vm1456_vm0, %v9542_v14, %v4416_v27  ;;  %8319 = vmatprep.mubr.msk.f32.mxu0 %vm4646_vm12, %v4622_v50  ;;  %v4414_v60 = vpop.permute.xlu0 %4413  ;;  %v9551_v50 = vld [vmem:[%s10115_s1 + $0xa0] sm:$0xff] }
 0x3e1   : > { %v4557_v54 = vmul.f32 %v12125_v55, %v4498_v13  ;;  %v4497_v57 = vsel %vm1456_vm0, %v9543_v21, %v4414_v60  ;;  %8320 = vmatmul.mubr.msk.f32.gmra.mrb[76].mxu0 %vm4646_vm12, %v4623_v25  ;;  %v4625_v16 = vmax.f32 %v4593_v23, 0.0  ;;  %v9552_v60 = vld [vmem:[%s10115_s1 + $0xb0] sm:$0xff] }
 0x3e2   : > { %v4624_v62 = vmax.f32 %v4592_v49, 0.0  ;;  %v4556_v58 = vmul.f32 %v12125_v55, %v4497_v57 }
 0x3e3   : > { %v4595_v37 = vadd.f32 %v12128_v5, %v4557_v54  ;;  %v4420_v8 = vpop.permute.xlu1 %4419 }
 0x3e4   : > { %v4594_v42 = vadd.f32 %v12128_v5, %v4556_v58  ;;  %v4500_v3 = vsel %vm1456_vm0, %v9544_v20, %v4420_v8  ;;  %8322 = vmatprep.mubr.msk.f32.mxu0 %vm4646_vm12, %v4624_v62  ;;  %v4418_v51 = vpop.permute.xlu0 %4417  ;;  %v9553_v58 = vld [vmem:[%s10115_s1 + $0xb8] sm:$0xff] }
 0x3e5   : > { %v4559_v41 = vmul.f32 %v12125_v55, %v4500_v3  ;;  %v4499_v18 = vsel %vm1456_vm0, %v9545_v26, %v4418_v51  ;;  %8323 = vmatmul.mubr.msk.f32.gmra.mrb[78].mxu0 %vm4646_vm12, %v4625_v16  ;;  %v4627_v52 = vmax.f32 %v4595_v37, 0.0  ;;  %v9554_v26 = vld [vmem:[%s10115_s1 + $0xc0] sm:$0xff] }
 0x3e6   : > { %v4626_v0 = vmax.f32 %v4594_v42, 0.0  ;;  %v4558_v39 = vmul.f32 %v12125_v55, %v4499_v18 }
 0x3e7   : > { %v4597_v15 = vadd.f32 %v12128_v5, %v4559_v41  ;;  %v4424_v33 = vpop.permute.xlu1 %4423 }
 0x3e8   : > { %v4596_v11 = vadd.f32 %v12128_v5, %v4558_v39  ;;  %v4502_v6 = vsel %vm1456_vm0, %v9546_v29, %v4424_v33  ;;  %8325 = vmatprep.mubr.msk.f32.mxu0 %vm4646_vm12, %v4626_v0  ;;  %v4422_v31 = vpop.permute.xlu0 %4421 }
 0x3e9   : > { %v4561_v43 = vmul.f32 %v12125_v55, %v4502_v6  ;;  %v4501_v44 = vsel %vm1456_vm0, %v9547_v12, %v4422_v31  ;;  %8326 = vmatmul.mubr.msk.f32.gmra.mrb[80].mxu0 %vm4646_vm12, %v4627_v52  ;;  %v4629_v2 = vmax.f32 %v4597_v15, 0.0  ;;  %v9555_v15 = vld [vmem:[%s10115_s1 + $0xc8] sm:$0xff]  ;;  %v9556_v12 = vld [vmem:[%s10115_s1 + $0xd0] sm:$0xff] }
 0x3ea   : > { %v4628_v46 = vmax.f32 %v4596_v11, 0.0  ;;  %v4560_v59 = vmul.f32 %v12125_v55, %v4501_v44 }
 0x3eb   : > { %v4599_v63 = vadd.f32 %v12128_v5, %v4561_v43  ;;  %v4428_v38 = vpop.permute.xlu1 %4427 }
 0x3ec   : > { %v4598_v47 = vadd.f32 %v12128_v5, %v4560_v59  ;;  %v4504_v22 = vsel %vm1456_vm0, %v9548_v4, %v4428_v38  ;;  %8328 = vmatprep.mubr.msk.f32.mxu0 %vm4646_vm12, %v4628_v46  ;;  %v4426_v32 = vpop.permute.xlu0 %4425 }
 0x3ed   : > { %v4563_v10 = vmul.f32 %v12125_v55, %v4504_v22  ;;  %v4503_v53 = vsel %vm1456_vm0, %v9549_v34, %v4426_v32  ;;  %8329 = vmatmul.mubr.msk.f32.gmra.mrb[82].mxu0 %vm4646_vm12, %v4629_v2  ;;  %v4631_v9 = vmax.f32 %v4599_v63, 0.0  ;;  %v9557_v63 = vld [vmem:[%s10115_s1 + $0xd8] sm:$0xff]  ;;  %v9558_v34 = vld [vmem:[%s10115_s1 + $0xe0] sm:$0xff] }
 0x3ee   : > { %v4630_v40 = vmax.f32 %v4598_v47, 0.0  ;;  %v4562_v7 = vmul.f32 %v12125_v55, %v4503_v53 }
 0x3ef   : > { %v4601_v36 = vadd.f32 %v12128_v5, %v4563_v10  ;;  %v4432_v56 = vpop.permute.xlu1 %4431 }
 0x3f0   : > { %v4600_v28 = vadd.f32 %v12128_v5, %v4562_v7  ;;  %v4506_v24 = vsel %vm1456_vm0, %v9550_v17, %v4432_v56  ;;  %8331 = vmatprep.mubr.msk.f32.mxu0 %vm4646_vm12, %v4630_v40  ;;  %v4430_v30 = vpop.permute.xlu0 %4429 }
 0x3f1   : > { %v4565_v61 = vmul.f32 %v12125_v55, %v4506_v24  ;;  %v4505_v48 = vsel %vm1456_vm0, %v9551_v50, %v4430_v30  ;;  %8332 = vmatmul.mubr.msk.f32.gmra.mrb[84].mxu0 %vm4646_vm12, %v4631_v9  ;;  %v4633_v27 = vmax.f32 %v4601_v36, 0.0  ;;  %v9559_v36 = vld [vmem:[%s10115_s1 + $0xe8] sm:$0xff] }
 0x3f2   : > { %v4632_v25 = vmax.f32 %v4600_v28, 0.0  ;;  %v4564_v23 = vmul.f32 %v12125_v55, %v4505_v48 }
 0x3f3   : > { %v4603_v49 = vadd.f32 %v12128_v5, %v4565_v61  ;;  %v9560_v61 = vld [vmem:[%s10115_s1 + $0xf0] sm:$0xff] }
 0x3f4   : > { %v4602_v14 = vadd.f32 %v12128_v5, %v4564_v23  ;;  %8334 = vmatprep.mubr.msk.f32.mxu0 %vm4646_vm12, %v4632_v25  ;;  %v4434_v13 = vpop.permute.xlu0 %4433 }
 0x3f5   : > { %v4507_v54 = vsel %vm1456_vm0, %v9552_v60, %v4434_v13  ;;  %8335 = vmatmul.mubr.msk.f32.gmra.mrb[86].mxu0 %vm4646_vm12, %v4633_v27  ;;  %v4635_v37 = vmax.f32 %v4603_v49, 0.0  ;;  %v9561_v49 = vld [vmem:[%s10115_s1 + $0xf8] sm:$0xff]  ;;  %s13501_s1 = sld [smem:[#allocation22_spill]] }
 0x3f6   : > { %v4436_v21 = vpop.permute.xlu1 %4435  ;;  %v4634_v57 = vmax.f32 %v4602_v14, 0.0  ;;  %v4566_v62 = vmul.f32 %v12125_v55, %v4507_v54 }
 0x3f7   : > { %v4508_v16 = vsel %vm1456_vm0, %v9553_v58, %v4436_v21 }
 0x3f8   : > { %v4567_v8 = vmul.f32 %v12125_v55, %v4508_v16  ;;  %v4604_v42 = vadd.f32 %v12128_v5, %v4566_v62  ;;  %8337 = vmatprep.mubr.msk.f32.mxu0 %vm4646_vm12, %v4634_v57  ;;  %v4523_v57 = vld [vmem:[%s9832_s19 + $0x8] sm:$0xff] }
 0x3f9   : > { %8338 = vmatmul.mubr.msk.f32.gmra.mrb[88].mxu0 %vm4646_vm12, %v4635_v37  ;;  %5032 = vmatprep.mubr.f32.mxu1 %v4523_v57  ;;  %v4535_v57 = vld [vmem:[%s9832_s19 + $0x68] sm:$0xff] }
 0x3fa   : > { %v4605_v20 = vadd.f32 %v12128_v5, %v4567_v8  ;;  %v4636_v3 = vmax.f32 %v4604_v42, 0.0 }
 0x3fc   : > { %v4637_v51 = vmax.f32 %v4605_v20, 0.0  ;;  %8340 = vmatprep.mubr.msk.f32.mxu0 %vm4646_vm12, %v4636_v3 }
 0x3fe   : > { %8341 = vmatmul.mubr.msk.f32.gmra.mrb[90].mxu0 %vm4646_vm12, %v4637_v51  ;;  %v4438_v41 = vpop.permute.xlu0 %4437 }
 0x3ff   : > { %v4509_v18 = vsel %vm1456_vm0, %v9554_v26, %v4438_v41 }
 0x400   : > { %v4568_v0 = vmul.f32 %v12125_v55, %v4509_v18 }
 0x402   : > { %v4606_v39 = vadd.f32 %v12128_v5, %v4568_v0  ;;  %v4440_v52 = vpop.permute.xlu1 %4439 }
 0x403   : > { %v4510_v33 = vsel %vm1456_vm0, %v9555_v15, %v4440_v52 }
 0x404   : > { %v4638_v11 = vmax.f32 %v4606_v39, 0.0  ;;  %v4569_v29 = vmul.f32 %v12125_v55, %v4510_v33 }
 0x406   : > { %v4607_v6 = vadd.f32 %v12128_v5, %v4569_v29  ;;  %8343 = vmatprep.mubr.msk.f32.mxu0 %vm4646_vm12, %v4638_v11 }
 0x407   : > { %v4442_v31 = vpop.permute.xlu0 %4441 }
 0x408   : > { %v4639_v43 = vmax.f32 %v4607_v6, 0.0  ;;  %v4511_v44 = vsel %vm1456_vm0, %v9556_v12, %v4442_v31 }
 0x409   : > { %v4570_v46 = vmul.f32 %v12125_v55, %v4511_v44 }
 0x40a   : > { %8344 = vmatmul.mubr.msk.f32.gmra.mrb[92].mxu0 %vm4646_vm12, %v4639_v43 }
 0x40b   : > { %v4608_v59 = vadd.f32 %v12128_v5, %v4570_v46  ;;  %v4444_v2 = vpop.permute.xlu1 %4443 }
 0x40c   : > { %v4512_v38 = vsel %vm1456_vm0, %v9557_v63, %v4444_v2 }
 0x40d   : > { %v4640_v47 = vmax.f32 %v4608_v59, 0.0  ;;  %v4571_v4 = vmul.f32 %v12125_v55, %v4512_v38 }
 0x40f   : > { %v4609_v22 = vadd.f32 %v12128_v5, %v4571_v4  ;;  %8346 = vmatprep.mubr.msk.f32.mxu0 %vm4646_vm12, %v4640_v47 }
 0x411   : > { %v4641_v32 = vmax.f32 %v4609_v22, 0.0 }
 0x413   : > { %8347 = vmatmul.mubr.msk.f32.gmra.mrb[94].mxu0 %vm4646_vm12, %v4641_v32  ;;  %v4446_v10 = vpop.permute.xlu0 %4445 }
 0x414   : > { %v4513_v53 = vsel %vm1456_vm0, %v9558_v34, %v4446_v10 }
 0x415   : > { %v4572_v40 = vmul.f32 %v12125_v55, %v4513_v53 }
 0x417   : > { %v4610_v7 = vadd.f32 %v12128_v5, %v4572_v40  ;;  %v4448_v9 = vpop.permute.xlu1 %4447 }
 0x418   : > { %v4514_v56 = vsel %vm1456_vm0, %v9559_v36, %v4448_v9 }
 0x419   : > { %v4642_v28 = vmax.f32 %v4610_v7, 0.0  ;;  %v4573_v17 = vmul.f32 %v12125_v55, %v4514_v56 }
 0x41b   : > { %v4611_v24 = vadd.f32 %v12128_v5, %v4573_v17  ;;  %8349 = vmatprep.mubr.msk.f32.mxu0 %vm4646_vm12, %v4642_v28  ;;  %v4450_v30 = vpop.permute.xlu0 %4449 }
 0x41c   : > { %v4515_v50 = vsel %vm1456_vm0, %v9560_v61, %v4450_v30 }
 0x41d   : > { %v4643_v48 = vmax.f32 %v4611_v24, 0.0  ;;  %v4574_v25 = vmul.f32 %v12125_v55, %v4515_v50  ;;  %v4522_v50 = vld [vmem:[%s9832_s19] sm:$0xff] }
 0x41f   : > { %v4612_v23 = vadd.f32 %v12128_v5, %v4574_v25  ;;  %8350 = vmatmul.mubr.msk.f32.gmra.mrb[96].mxu0 %vm4646_vm12, %v4643_v48  ;;  %v4452_v27 = vpop.permute.xlu1 %4451  ;;  %v4525_v48 = vld [vmem:[%s9832_s19 + $0x18] sm:$0xff]  ;;  %v4524_v25 = vld [vmem:[%s9832_s19 + $0x10] sm:$0xff] }
 0x420   : > { %v4516_v14 = vsel %vm1456_vm0, %v9561_v49, %v4452_v27  ;;  %v4526_v27 = vld [vmem:[%s9832_s19 + $0x20] sm:$0xff]  ;;  %v4529_v49 = vld [vmem:[%s9832_s19 + $0x38] sm:$0xff] }
 0x421   : > { %v4644_v13 = vmax.f32 %v4612_v23, 0.0  ;;  %v4575_v60 = vmul.f32 %v12125_v55, %v4516_v14  ;;  %v4527_v23 = vld [vmem:[%s9832_s19 + $0x28] sm:$0xff]  ;;  %v4528_v14 = vld [vmem:[%s9832_s19 + $0x30] sm:$0xff] }
 0x423   : > { %v4613_v54 = vadd.f32 %v12128_v5, %v4575_v60  ;;  %8352 = vmatprep.mubr.msk.f32.mxu0 %vm4646_vm12, %v4644_v13  ;;  %v4531_v13 = vld [vmem:[%s9832_s19 + $0x48] sm:$0xff]  ;;  %v4530_v60 = vld [vmem:[%s9832_s19 + $0x40] sm:$0xff] }
 0x425   : > { %v4645_v21 = vmax.f32 %v4613_v54, 0.0  ;;  %v4533_v54 = vld [vmem:[%s9832_s19 + $0x58] sm:$0xff] }
 0x427   : > { %8353 = vmatmul.mubr.msk.f32.gmra.mrb[98].mxu0 %vm4646_vm12, %v4645_v21  ;;  %v4532_v21 = vld [vmem:[%s9832_s19 + $0x50] sm:$0xff] }
 0x4a4   : > { %v8309_v62 = vpop.f32.mrb[68].mxu0 }
 0x4a5   : > { %v4809_v58 = vpop.f32.mrb[69].mxu0 }
 0x4a6   : > { %v8555_v16 = vpack.c.bf16 %v8309_v62, %v4809_v58  ;;  %v4534_v62 = vld [vmem:[%s9832_s19 + $0x60] sm:$0xff]  ;;  %v4537_v58 = vld [vmem:[%s9832_s19 + $0x78] sm:$0xff] }
 0x4a8   : > { %v8312_v37 = vpop.f32.mrb[70].mxu0 }
 0x4a9   : > { %v4819_v8 = vpop.f32.mrb[71].mxu0 }
 0x4aa   : > { %v8559_v42 = vpack.c.bf16 %v8312_v37, %v4819_v8  ;;  %v5075_v37 = vld [vmem:[%s13206_s6] sm:$0xff]  ;;  %v5076_v8 = vld [vmem:[%s13206_s6 + $0x8] sm:$0xf] }
 0x4ac   : > { %v8315_v20 = vpop.f32.mrb[72].mxu0 }
 0x4ad   : > { %v4829_v3 = vpop.f32.mrb[73].mxu0 }
 0x4ae   : > { %v8563_v51 = vpack.c.bf16 %v8315_v20, %v4829_v3 }
 0x4b0   : > { %v8318_v41 = vpop.f32.mrb[74].mxu0 }
 0x4b1   : > { %v4839_v55 = vpop.f32.mrb[75].mxu0 }
 0x4b2   : > { %v8567_v26 = vpack.c.bf16 %v8318_v41, %v4839_v55  ;;  %v7745_v55 = vld [vmem:[%s13458_s7] ss:$0 sm:$0xff]  ;;  %s13502_s7 = sld [smem:[#allocation20_spill]] }
 0x4b4   : > { %v8321_v5 = vpop.f32.mrb[76].mxu0 }
 0x4b5   : > { %v4849_v18 = vpop.f32.mrb[77].mxu0 }
 0x4b6   : > { %v8571_v0 = vpack.c.bf16 %v8321_v5, %v4849_v18 }
 0x4b8   : > { %v8324_v39 = vpop.f32.mrb[78].mxu0 }
 0x4b9   : > { %v4859_v52 = vpop.f32.mrb[79].mxu0 }
 0x4ba   : > { %v8575_v15 = vpack.c.bf16 %v8324_v39, %v4859_v52 }
 0x4bc   : > { %v8327_v33 = vpop.f32.mrb[80].mxu0 }
 0x4bd   : > { %v4869_v11 = vpop.f32.mrb[81].mxu0 }
 0x4be   : > { %v8579_v29 = vpack.c.bf16 %v8327_v33, %v4869_v11 }
 0x4c0   : > { %v8330_v6 = vpop.f32.mrb[82].mxu0 }
 0x4c1   : > { %v4879_v31 = vpop.f32.mrb[83].mxu0 }
 0x4c2   : > { %v8583_v43 = vpack.c.bf16 %v8330_v6, %v4879_v31 }
 0x4c4   : > { %v8333_v12 = vpop.f32.mrb[84].mxu0 }
 0x4c5   : > { %v4889_v44 = vpop.f32.mrb[85].mxu0 }
 0x4c6   : > { %v8553_v46 = vpack.c.bf16 %v8333_v12, %v4889_v44 }
 0x4c8   : > { %v8336_v59 = vpop.f32.mrb[86].mxu0  ;;  %8554 = vmatprep.subr.bf16.mxu1 %v8553_v46 }
 0x4c9   : > { %v4899_v2 = vpop.f32.mrb[87].mxu0  ;;  %8556 = vmatpush3.bf16.msra.mxu1 %v8555_v16  ;;  %v4536_v16 = vld [vmem:[%s9832_s19 + $0x70] sm:$0xff] }
 0x4ca   : > { %v8557_v63 = vpack.c.bf16 %v8336_v59, %v4899_v2 }
 0x4cc   : > { %v8339_v38 = vpop.f32.mrb[88].mxu0  ;;  %8558 = vmatprep.subr.bf16.mxu1 %v8557_v63 }
 0x4cd   : > { %v4909_v47 = vpop.f32.mrb[89].mxu0  ;;  %8560 = vmatpush3.bf16.msra.mxu1 %v8559_v42  ;;  %v8585_v42 = vpack.c.bf16 %v5076_v8, %v5075_v37 }
 0x4ce   : > { %v8561_v4 = vpack.c.bf16 %v8339_v38, %v4909_v47 }
 0x4cf   : > { %8587 = vmatprep.subr.msk.bf16.mxu0 %vm8586_vm15, %v8585_v42 }
 0x4d0   : > { %8562 = vmatprep.subr.bf16.mxu1 %v8561_v4  ;;  %8590 = vmatpush3.bf16.msk.msra.mxu0 %vm8586_vm15, %v8585_v42  ;;  %v5079_v42 = vld [vmem:[%s13459_s23] sm:$0xff] }
 0x4d1   : > { %v8342_v22 = vpop.f32.mrb[90].mxu0  ;;  %8564 = vmatpush3.bf16.msra.mxu1 %v8563_v51  ;;  %v7744_v51 = vld [vmem:[%s9837_s24] ss:$0 sm:$0xff] }
 0x4d2   : > { %v4919_v32 = vpop.f32.mrb[91].mxu0 }
 0x4d3   : > { %v8565_v10 = vpack.c.bf16 %v8342_v22, %v4919_v32 }
 0x4d5   : > { %8566 = vmatprep.subr.bf16.mxu1 %v8565_v10 }
 0x4d6   : > { %8568 = vmatpush3.bf16.msra.mxu1 %v8567_v26 }
 0x4dd   : > { %v8345_v34 = vpop.f32.mrb[92].mxu0 }
 0x4de   : > { %v4929_v53 = vpop.f32.mrb[93].mxu0 }
 0x4df   : > { %v8569_v40 = vpack.c.bf16 %v8345_v34, %v4929_v53 }
 0x4e1   : > { %8570 = vmatprep.subr.bf16.mxu1 %v8569_v40 }
 0x4e2   : > { %8572 = vmatpush3.bf16.msra.mxu1 %v8571_v0 }
 0x4e6   : > { %v8348_v7 = vpop.f32.mrb[94].mxu0 }
 0x4e7   : > { %v4939_v9 = vpop.f32.mrb[95].mxu0 }
 0x4e8   : > { %v8573_v36 = vpack.c.bf16 %v8348_v7, %v4939_v9 }
 0x4ea   : > { %8574 = vmatprep.subr.bf16.mxu1 %v8573_v36 }
 0x4eb   : > { %8576 = vmatpush3.bf16.msra.mxu1 %v8575_v15 }
 0x4f2   : > { %v8351_v56 = vpop.f32.mrb[96].mxu0 }
 0x4f3   : > { %v4949_v28 = vpop.f32.mrb[97].mxu0 }
 0x4f4   : > { %v8577_v17 = vpack.c.bf16 %v8351_v56, %v4949_v28 }
 0x4f6   : > { %8578 = vmatprep.subr.bf16.mxu1 %v8577_v17 }
 0x4f7   : > { %8580 = vmatpush3.bf16.msra.mxu1 %v8579_v29 }
 0x4fa   : > { %v8354_v24 = vpop.f32.mrb[98].mxu0 }
 0x4fb   : > { %v4959_v30 = vpop.f32.mrb[99].mxu0 }
 0x4fc   : > { %v8581_v61 = vpack.c.bf16 %v8354_v24, %v4959_v30 }
 0x4fe   : > { %8582 = vmatprep.subr.bf16.mxu1 %v8581_v61 }
 0x4ff   : > { %8584 = vmatpush3.bf16.msra.mxu1 %v8583_v43 }
 0x502   : > { %5033 = vmatmul.mubr.f32.vlgmr.msra.gmra.mrb[60].mxu1 %v4522_v50 }
 0x503   : > { %5037 = vmatprep.mubr.f32.mxu1 %v4525_v48 }
 0x506   : > { %5038 = vmatmul.mubr.f32.gmra.mrb[62].mxu1 %v4524_v25 }
 0x507   : > { %5042 = vmatprep.mubr.f32.mxu1 %v4527_v23 }
 0x50a   : > { %5043 = vmatmul.mubr.f32.gmra.mrb[64].mxu1 %v4526_v27 }
 0x50b   : > { %5047 = vmatprep.mubr.f32.mxu1 %v4529_v49 }
 0x50e   : > { %5048 = vmatmul.mubr.f32.gmra.mrb[66].mxu1 %v4528_v14 }
 0x50f   : > { %5052 = vmatprep.mubr.f32.mxu1 %v4531_v13 }
 0x512   : > { %5053 = vmatmul.mubr.f32.gmra.mrb[68].mxu1 %v4530_v60  ;;  %v5111_v60 = vld [vmem:[%s13459_s23 + $0x100] sm:$0xff] }
 0x513   : > { %5057 = vmatprep.mubr.f32.mxu1 %v4533_v54  ;;  %v5112_v54 = vld [vmem:[%s13459_s23 + $0x108] sm:$0xff] }
 0x516   : > { %5058 = vmatmul.mubr.f32.gmra.mrb[70].mxu1 %v4532_v21  ;;  %v5113_v21 = vld [vmem:[%s13459_s23 + $0x110] sm:$0xff] }
 0x517   : > { %5062 = vmatprep.mubr.f32.mxu1 %v4535_v57  ;;  %v8623_v57 = vpack.c.bf16 %v5112_v54, %v5111_v60  ;;  %v13466_v60 = vld [vmem:[#allocation57_spill] sm:$0xff] }
 0x518   : > { %v5360_v54 = vand.u32 7, %v13466_v60 }
 0x519   : > { %8624 = vmatprep.subr.bf16.mxu0 %v8623_v57 }
 0x51a   : > { %5063 = vmatmul.mubr.f32.gmra.mrb[72].mxu1 %v4534_v62  ;;  %v5114_v62 = vld [vmem:[%s13459_s23 + $0x118] sm:$0xff] }
 0x51b   : > { %5067 = vmatprep.mubr.f32.mxu1 %v4537_v58  ;;  %v5095_v58 = vld [vmem:[%s13459_s23 + $0x80] sm:$0xff]  ;;  %v8627_v37 = vpack.c.bf16 %v5114_v62, %v5113_v21  ;;  %v5094_v62 = vld [vmem:[%s13459_s23 + $0x78] sm:$0xff] }
 0x51e   : > { %5068 = vmatmul.mubr.f32.gmra.mrb[74].mxu1 %v4536_v16  ;;  %v5096_v16 = vld [vmem:[%s13459_s23 + $0x88] sm:$0xff] }
 0x51f   : > { %v8591_v8 = vpack.c.bf16 %v5096_v16, %v5095_v58  ;;  %v5105_v58 = vld [vmem:[%s13459_s23 + $0xd0] sm:$0xff]  ;;  %v5106_v16 = vld [vmem:[%s13459_s23 + $0xd8] sm:$0xff] }
 0x521   : > { %8592 = vmatprep.subr.bf16.mxu1 %v8591_v8  ;;  %v13471_v8 = vld [vmem:[#allocation66_spill] sm:$0xff] }
 0x5d5   : > { %v7967_v20 = vpop.f32.mrb[60].mxu1 }
 0x5d6   : > { %v7968_v3 = vpop.f32.mrb[61].mxu1 }
 0x5d7   : > { %v12311_v41 = vadd.f32 %v7968_v3, %v7967_v20  ;;  %v5080_v20 = vld [vmem:[%s13459_s23 + $0x8] sm:$0xff]  ;;  %v5097_v3 = vld [vmem:[%s13459_s23 + $0x90] sm:$0xff] }
 0x5d9   : > { %v5121_v26 = vmul.f32 %v12311_v41, %v7744_v51  ;;  %v7970_v5 = vpop.f32.mrb[62].mxu1 }
 0x5da   : > { %v7971_v18 = vpop.f32.mrb[63].mxu1 }
 0x5db   : > { %v5135_v0 = vadd.f32 %v7745_v55, %v5121_v26  ;;  %v12315_v39 = vadd.f32 %v7971_v18, %v7970_v5  ;;  %v5081_v26 = vld [vmem:[%s13459_s23 + $0x10] sm:$0xff]  ;;  %v5082_v5 = vld [vmem:[%s13459_s23 + $0x18] sm:$0xff] }
 0x5dd   : > { %v5143_v52 = vmax.f32 %v5135_v0, 0.0  ;;  %v5122_v15 = vmul.f32 %v12315_v39, %v7744_v51  ;;  %v7973_v33 = vpop.f32.mrb[64].mxu1  ;;  %v5099_v0 = vld [vmem:[%s13459_s23 + $0xa0] sm:$0xff] }
 0x5de   : > { %v7974_v11 = vpop.f32.mrb[65].mxu1 }
 0x5df   : > { %v5136_v29 = vadd.f32 %v7745_v55, %v5122_v15  ;;  %v12318_v6 = vadd.f32 %v7974_v11, %v7973_v33  ;;  %8359 = vmatprep.mubr.msk.f32.mxu0 %vm5151_vm1, %v5143_v52  ;;  %v5100_v52 = vld [vmem:[%s13459_s23 + $0xa8] sm:$0xff]  ;;  %v8597_v15 = vpack.c.bf16 %v5082_v5, %v5081_v26  ;;  %v5083_v11 = vld [vmem:[%s13459_s23 + $0x20] sm:$0xff] }
 0x5e0   : > { %v8599_v33 = vpack.c.bf16 %v5100_v52, %v5099_v0  ;;  %v5107_v52 = vld [vmem:[%s13459_s23 + $0xe0] sm:$0xff] }
 0x5e1   : > { %v5144_v31 = vmax.f32 %v5136_v29, 0.0  ;;  %v5123_v43 = vmul.f32 %v12318_v6, %v7744_v51  ;;  %v7976_v12 = vpop.f32.mrb[66].mxu1  ;;  %v5084_v29 = vld [vmem:[%s13459_s23 + $0x28] sm:$0xff] }
 0x5e2   : > { %v7977_v44 = vpop.f32.mrb[67].mxu1 }
 0x5e3   : > { %v5137_v46 = vadd.f32 %v7745_v55, %v5123_v43  ;;  %v12322_v59 = vadd.f32 %v7977_v44, %v7976_v12  ;;  %8360 = vmatmul.mubr.msk.f32.vlgmr.msra.gmra.mrb[100].mxu0 %vm5151_vm1, %v5144_v31  ;;  %v5101_v31 = vld [vmem:[%s13459_s23 + $0xb0] sm:$0xff]  ;;  %v5102_v43 = vld [vmem:[%s13459_s23 + $0xb8] sm:$0xff]  ;;  %v8601_v12 = vpack.c.bf16 %v5084_v29, %v5083_v11 }
 0x5e4   : > { %8626 = vmatpush3.bf16.msra.mxu0 %v8623_v57  ;;  %v8603_v44 = vpack.c.bf16 %v5102_v43, %v5101_v31 }
 0x5e5   : > { %v5145_v2 = vmax.f32 %v5137_v46, 0.0  ;;  %v5124_v63 = vmul.f32 %v12322_v59, %v7744_v51  ;;  %v7979_v38 = vpop.f32.mrb[68].mxu1  ;;  %8628 = vmatprep.subr.bf16.mxu0 %v8627_v37  ;;  %v5085_v46 = vld [vmem:[%s13459_s23 + $0x30] sm:$0xff] }
 0x5e6   : > { %v7980_v47 = vpop.f32.mrb[69].mxu1 }
 0x5e7   : > { %v5138_v4 = vadd.f32 %v7745_v55, %v5124_v63  ;;  %8362 = vmatprep.mubr.msk.f32.mxu0 %vm5151_vm1, %v5145_v2  ;;  %v12327_v22 = vadd.f32 %v7980_v47, %v7979_v38  ;;  %v5086_v2 = vld [vmem:[%s13459_s23 + $0x38] sm:$0xff]  ;;  %v5103_v63 = vld [vmem:[%s13459_s23 + $0xc0] sm:$0xff]  ;;  %v5104_v38 = vld [vmem:[%s13459_s23 + $0xc8] sm:$0xff] }
 0x5e8   : > { %8630 = vmatpush3.bf16.msra.mxu0 %v8627_v37  ;;  %v8605_v47 = vpack.c.bf16 %v5086_v2, %v5085_v46  ;;  %v5089_v37 = vld [vmem:[%s13459_s23 + $0x50] sm:$0xff] }
 0x5e9   : > { %v5146_v32 = vmax.f32 %v5138_v4, 0.0  ;;  %v5125_v10 = vmul.f32 %v12327_v22, %v7744_v51  ;;  %v7982_v34 = vpop.f32.mrb[70].mxu1  ;;  %v8607_v4 = vpack.c.bf16 %v5104_v38, %v5103_v63 }
 0x5ea   : > { %v7983_v53 = vpop.f32.mrb[71].mxu1 }
 0x5eb   : > { %8363 = vmatmul.mubr.msk.f32.gmra.mrb[102].mxu0 %vm5151_vm1, %v5146_v32  ;;  %v5139_v40 = vadd.f32 %v7745_v55, %v5125_v10  ;;  %v12331_v7 = vadd.f32 %v7983_v53, %v7982_v34  ;;  %v5087_v32 = vld [vmem:[%s13459_s23 + $0x40] sm:$0xff]  ;;  %v5088_v10 = vld [vmem:[%s13459_s23 + $0x48] sm:$0xff] }
 0x5ec   : > { %v8609_v34 = vpack.c.bf16 %v5088_v10, %v5087_v32  ;;  %v12369_v53 = vld [vmem:[%s13460_s11] ss:$0 sm:$0xff]  ;;  %s13503_s11 = sld [smem:[#allocation21_spill]] }
 0x5ed   : > { %v5147_v9 = vmax.f32 %v5139_v40, 0.0  ;;  %v5126_v36 = vmul.f32 %v12331_v7, %v7744_v51  ;;  %v7985_v56 = vpop.f32.mrb[72].mxu1  ;;  %v5325_v40 = vand.u32 7, %v10289_v35 }
 0x5ee   : > { %v7986_v28 = vpop.f32.mrb[73].mxu1 }
 0x5ef   : > { %v5140_v17 = vadd.f32 %v7745_v55, %v5126_v36  ;;  %8365 = vmatprep.mubr.msk.f32.mxu0 %vm5151_vm1, %v5147_v9  ;;  %v12335_v24 = vadd.f32 %v7986_v28, %v7985_v56  ;;  %v12373_v9 = vld [vmem:[%s13461_s26] ss:$0 sm:$0xff]  ;;  %vm12383_vm4 = vcmp.ge.s32.totalorder %v5325_v40, 1  ;;  %vm12388_vm5 = vcmp.le.s32.totalorder %v5325_v40, 6  ;;  %s13504_s26 = sld [smem:[#allocation23_spill]] }
 0x5f0   : > { %v12419_v11 = vsel %vm12383_vm4, 1.0, %v13278_v45  ;;  %v12425_v31 = vsel %vm12388_vm5, 1.0, %v13278_v45 }
 0x5f1   : > { %v5148_v30 = vmax.f32 %v5140_v17, 0.0  ;;  %v5127_v61 = vmul.f32 %v12335_v24, %v7744_v51  ;;  %v7988_v50 = vpop.f32.mrb[74].mxu1  ;;  %v13462_v17 = vld [vmem:[#allocation47_spill] sm:$0xff] }
 0x5f2   : > { %v7989_v48 = vpop.f32.mrb[75].mxu1 }
 0x5f3   : > { %8366 = vmatmul.mubr.msk.f32.gmra.mrb[104].mxu0 %vm5151_vm1, %v5148_v30  ;;  %v5141_v25 = vadd.f32 %v7745_v55, %v5127_v61  ;;  %v12339_v23 = vadd.f32 %v7989_v48, %v7988_v50  ;;  %v5332_v30 = vand.u32 7, %v13462_v17  ;;  %v13463_v61 = vld [vmem:[#allocation46_spill] sm:$0xff] }
 0x5f4   : > { %v5339_v50 = vand.u32 7, %v13463_v61  ;;  %v5110_v61 = vld [vmem:[%s13459_s23 + $0xf8] sm:$0xff] }
 0x5f5   : > { %v5149_v27 = vmax.f32 %v5141_v25, 0.0  ;;  %v5128_v49 = vmul.f32 %v12339_v23, %v7744_v51  ;;  %v8593_v51 = vpack.c.bf16 %v5080_v20, %v5079_v42  ;;  %v13464_v25 = vld [vmem:[#allocation48_spill] sm:$0xff]  ;;  %v5374_v42 = vand.u32 7, %v13471_v8 }
 0x5f6   : > { %vm12398_vm6 = vcmp.ge.s32.totalorder %v5332_v30, 1  ;;  %vm12405_vm8 = vcmp.le.s32.totalorder %v5339_v50, 6  ;;  %vm12409_vm11 = vcmp.ge.s32.totalorder %v5339_v50, 1  ;;  %vm12441_vm12 = vcmp.le.s32.totalorder %v5332_v30, 6  ;;  %v5109_v30 = vld [vmem:[%s13459_s23 + $0xf0] sm:$0xff] }
 0x5f7   : > { %v5142_v14 = vadd.f32 %v7745_v55, %v5128_v49  ;;  %8368 = vmatprep.mubr.msk.f32.mxu0 %vm5151_vm1, %v5149_v27  ;;  %v5098_v55 = vld [vmem:[%s13459_s23 + $0x98] sm:$0xff]  ;;  %8594 = vmatpush3.bf16.msra.mxu1 %v8593_v51  ;;  %v5346_v27 = vand.u32 7, %v13464_v25  ;;  %v13465_v49 = vld [vmem:[#allocation50_spill] sm:$0xff]  ;;  %v8611_v51 = vpack.c.bf16 %v5106_v16, %v5105_v58  ;;  %v12433_v63 = vsel %vm12398_vm6, 1.0, %v13278_v45 }
 0x5f8   : > { %v8595_v18 = vpack.c.bf16 %v5098_v55, %v5097_v3  ;;  %v5090_v55 = vld [vmem:[%s13459_s23 + $0x58] sm:$0xff]  ;;  %v12439_v32 = vsel %vm12405_vm8, 1.0, %v13278_v45  ;;  %v8619_v3 = vpack.c.bf16 %v5110_v61, %v5109_v30  ;;  %vm12588_vm8 = vcmp.ge.s32.totalorder %v5360_v54, 1 }
 0x5f9   : > { %v5150_v13 = vmax.f32 %v5142_v14, 0.0  ;;  %v5353_v14 = vand.u32 7, %v13465_v49  ;;  %v8613_v0 = vpack.c.bf16 %v5090_v55, %v5089_v37  ;;  %vm12468_vm15 = vcmp.ge.s32.totalorder %v5346_v27, 1 }
 0x5fa   : > { %8596 = vmatprep.subr.bf16.mxu1 %v8595_v18  ;;  %v12505_v10 = vsel %vm12468_vm15, 1.0, %v13278_v45  ;;  %vm12545_vm6 = vcmp.le.s32.totalorder %v5346_v27, 6  ;;  %vm12621_vm15 = vcmp.le.s32.totalorder %v5360_v54, 6 }
 0x5fb   : > { %8369 = vmatmul.mubr.msk.f32.gmra.mrb[106].mxu0 %vm5151_vm1, %v5150_v13  ;;  %8598 = vmatpush3.bf16.msra.mxu1 %v8597_v15  ;;  %v5108_v15 = vld [vmem:[%s13459_s23 + $0xe8] sm:$0xff]  ;;  %vm12477_vm4 = vcmp.le.s32.totalorder %v5353_v14, 6  ;;  %vm12514_vm5 = vcmp.ge.s32.totalorder %v5353_v14, 1 }
 0x5fc   : > { %8600 = vmatprep.subr.bf16.mxu1 %v8599_v33  ;;  %v5091_v33 = vld [vmem:[%s13459_s23 + $0x60] sm:$0xff]  ;;  %v8615_v43 = vpack.c.bf16 %v5108_v15, %v5107_v52 }
 0x5ff   : > { %8602 = vmatpush3.bf16.msra.mxu1 %v8601_v12  ;;  %v5092_v12 = vld [vmem:[%s13459_s23 + $0x68] sm:$0xff] }
 0x600   : > { %8604 = vmatprep.subr.bf16.mxu1 %v8603_v44  ;;  %v8617_v38 = vpack.c.bf16 %v5092_v12, %v5091_v33 }
 0x603   : > { %8606 = vmatpush3.bf16.msra.mxu1 %v8605_v47 }
 0x604   : > { %8608 = vmatprep.subr.bf16.mxu1 %v8607_v4 }
 0x607   : > { %8610 = vmatpush3.bf16.msra.mxu1 %v8609_v34  ;;  %v12448_v34 = vsel %vm12409_vm11, 1.0, %v13278_v45  ;;  %vm12600_vm11 = vcmp.le.s32.totalorder %v5374_v42, 6 }
 0x608   : > { %8612 = vmatprep.subr.bf16.mxu1 %v8611_v51 }
 0x60b   : > { %8614 = vmatpush3.bf16.msra.mxu1 %v8613_v0 }
 0x60c   : > { %8616 = vmatprep.subr.bf16.mxu1 %v8615_v43 }
 0x60f   : > { %8618 = vmatpush3.bf16.msra.mxu1 %v8617_v38 }
 0x610   : > { %8620 = vmatprep.subr.bf16.mxu1 %v8619_v3 }
 0x6b6   : > { %v8361_v36 = vpop.f32.mrb[100].mxu0 }
 0x6b7   : > { %v5292_v56 = vmul.f32 %v8361_v36, %v12369_v53  ;;  %v5246_v28 = vpop.f32.mrb[101].mxu0 }
 0x6b8   : > { %v5291_v48 = vmul.f32 %v12369_v53, %v5246_v28 }
 0x6b9   : > { %v5306_v13 = vadd.f32 %v12373_v9, %v5292_v56 }
 0x6ba   : > { %v5305_v57 = vadd.f32 %v12373_v9, %v5291_v48 }
 0x6bb   : > { %v12396_v20 = vmax.f32 %v5306_v13, 0.0 }
 0x6bc   : > { %v12403_v26 = vmax.f32 %v5305_v57, 0.0  ;;  %v5093_v57 = vld [vmem:[%s13459_s23 + $0x70] sm:$0xff] }
 0x6bd   : > { %v5473_v29 = vrot.slane %v12396_v20, 7  ;;  %v5503_v16 = vrot.slane %v12396_v20, 1  ;;  %v8621_v15 = vpack.c.bf16 %v5094_v62, %v5093_v57 }
 0x6be   : > { %v5472_v44 = vrot.slane %v12403_v26, 7  ;;  %v5502_v46 = vrot.slane %v12403_v26, 1  ;;  %v8364_v2 = vpop.f32.mrb[102].mxu0 }
 0x6bf   : > { %v5294_v47 = vmul.f32 %v8364_v2, %v12369_v53  ;;  %v5256_v4 = vpop.f32.mrb[103].mxu0  ;;  %8622 = vmatpush3.bf16.msra.mxu1 %v8621_v15 }
 0x6c0   : > { %v5293_v40 = vmul.f32 %v12369_v53, %v5256_v4  ;;  %v5474_v36 = vsel %vm2525_vm2, %v5472_v44, %v5473_v29  ;;  %v5525_v56 = vsel %vm2649_vm3, 0.0, %v5502_v46  ;;  %v5492_v28 = vsel %vm2525_vm2, 0.0, %v5472_v44 }
 0x6c1   : > { %v5308_v50 = vadd.f32 %v12373_v9, %v5294_v47  ;;  %v5526_v48 = vmul.f32 %v12425_v31, %v5525_v56  ;;  %v5557_v13 = vmul.f32 %v12419_v11, %v5474_v36  ;;  %v5537_v21 = vmul.f32 %v12419_v11, %v5492_v28 }
 0x6c2   : > { %v5307_v58 = vadd.f32 %v12373_v9, %v5293_v40  ;;  %v5538_v52 = vmul.f32 %v12433_v63, %v5474_v36  ;;  %v12485_v33 = vmul.f32 %v12433_v63, %v5492_v28  ;;  %v7766_v44 = vsel %vm12441_vm12, 1.0, %v13278_v45 }
 0x6c3   : > { %v12472_v51 = vmax.f32 %v5308_v50, 0.0  ;;  %v9373_v55 = vpack.i.bf16 %v5526_v48, %v5557_v13  ;;  %v9378_v5 = vpack.i.bf16 %v5537_v21, %v12396_v20  ;;  %v12495_v2 = vmul.f32 %v12448_v34, %v5474_v36 }
 0x6c4   : > { %v12481_v0 = vmax.f32 %v5307_v58, 0.0  ;;  %v5504_v56 = vsel %vm2649_vm3, %v5502_v46, %v5503_v16  ;;  %v12510_v36 = vsel %vm12477_vm4, 1.0, %v13278_v45 }
 0x6c5   : > { %v5477_v43 = vrot.slane %v12472_v51, 7  ;;  %v5507_v12 = vrot.slane %v12472_v51, 1  ;;  %9374 = vrot.lane.b32.xlu1 %v9373_v55, %s13170_s18  ;;  %9379 = vrot.lane.b32.xlu0 %v9378_v5, %s13168_s16  ;;  %v5547_v14 = vmul.f32 %v12425_v31, %v5504_v56  ;;  %v5527_v15 = vmul.f32 %v7766_v44, %v5504_v56 }
 0x6c6   : > { %v5475_v38 = vrot.slane %v12481_v0, 7  ;;  %v5505_v47 = vrot.slane %v12481_v0, 1  ;;  %v9383_v4 = vpack.i.bf16 %v5538_v52, %v12481_v0  ;;  %v8367_v40 = vpop.f32.mrb[104].mxu0 }
 0x6c7   : > { %v5296_v28 = vmul.f32 %v8367_v40, %v12369_v53  ;;  %v5266_v30 = vpop.f32.mrb[105].mxu0 }
 0x6c8   : > { %v5295_v46 = vmul.f32 %v12369_v53, %v5266_v30  ;;  %v12520_v50 = vsel %vm2649_vm3, %v5505_v47, %v5507_v12  ;;  %v5506_v48 = vsel %vm2649_vm3, %v5503_v16, %v5505_v47  ;;  %v5478_v13 = vsel %vm2525_vm2, %v5475_v38, %v5477_v43 }
 0x6c9   : > { %9384 = vrot.lane.b32.xlu1 %v9383_v4, %s13168_s16  ;;  %v5310_v21 = vadd.f32 %v12373_v9, %v5296_v28  ;;  %v5549_v49 = vmul.f32 %v12439_v32, %v12520_v50  ;;  %v5548_v57 = vmul.f32 %v7766_v44, %v5506_v48  ;;  %v5528_v58 = vmul.f32 %v12439_v32, %v5506_v48 }
 0x6ca   : > { %v5309_v62 = vadd.f32 %v12373_v9, %v5295_v46  ;;  %v5559_v16 = vmul.f32 %v12448_v34, %v5478_v13  ;;  %v5476_v37 = vsel %vm2525_vm2, %v5473_v29, %v5475_v38  ;;  %v12552_v29 = vsel %vm12514_vm5, 1.0, %v13278_v45 }
 0x6cb   : > { %v12537_v3 = vmax.f32 %v5310_v21, 0.0  ;;  %v9393_v55 = vpack.i.bf16 %v5549_v49, %v12403_v26  ;;  %v9388_v5 = vpack.i.bf16 %v5548_v57, %v5547_v14  ;;  %v5558_v18 = vmul.f32 %v12433_v63, %v5476_v37 }
 0x6cc   : > { %v12541_v52 = vmax.f32 %v5309_v62, 0.0  ;;  %v5566_v63 = vmul.f32 %v7766_v44, %v12520_v50  ;;  %v9403_v4 = vpack.i.bf16 %v5528_v58, %v5559_v16  ;;  %v5539_v25 = vmul.f32 %v12448_v34, %v5476_v37  ;;  %v13488_v62 = vld [vmem:[#allocation58_spill] sm:$0xff] }
 0x6cd   : > { %v5511_v38 = vrot.slane %v12537_v3, 1  ;;  %9394 = vrot.lane.b32.xlu1 %v9393_v55, %s13171_s2  ;;  %9389 = vrot.lane.b32.xlu0 %v9388_v5, %s13171_s2  ;;  %v5481_v27 = vrot.slane %v12537_v3, 7  ;;  %v9398_v28 = vpack.i.bf16 %v5527_v15, %v5558_v18  ;;  %v5565_v21 = vmul.f32 %v12425_v31, %v5506_v48 }
 0x6ce   : > { %v5479_v40 = vrot.slane %v12541_v52, 7  ;;  %v5509_v56 = vrot.slane %v12541_v52, 1  ;;  %v8370_v30 = vpop.f32.mrb[106].mxu0  ;;  %v12565_v44 = vmul.f32 %v12505_v10, %v5476_v37  ;;  %v12568_v49 = vmul.f32 %v12552_v29, %v5478_v13 }
 0x6cf   : > { %v5298_v61 = vmul.f32 %v8370_v30, %v12369_v53  ;;  %v5276_v46 = vpop.f32.mrb[107].mxu0  ;;  %v5367_v58 = vand.u32 7, %v13488_v62  ;;  %v5540_v31 = vmul.f32 %v12505_v10, %v5478_v13  ;;  %v7768_v16 = vsel %vm12545_vm6, 1.0, %v13278_v45  ;;  %8379 = vmatprep.mubr.msk.f32.mxu0 %vm3616_vm7, %v5565_v21 }
 0x6d0   : > { %v5297_v34 = vmul.f32 %v12369_v53, %v5276_v46  ;;  %v12572_v14 = vsel %vm2649_vm3, %v5509_v56, %v5511_v38  ;;  %v5510_v57 = vsel %vm2649_vm3, %v5507_v12, %v5509_v56  ;;  %v9408_v13 = vpack.i.bf16 %v5539_v25, %v12472_v51  ;;  %8380 = vmatmul.mubr.msk.f32.vlgmr.msra.gmra.mrb[108].mxu0 %vm3616_vm7, %v5566_v63 }
 0x6d1   : > { %9404 = vrot.lane.b32.xlu1 %v9403_v4, %s13170_s18  ;;  %9399 = vrot.lane.b32.xlu0 %v9398_v28, %s13170_s18  ;;  %v5312_v48 = vadd.f32 %v12373_v9, %v5298_v61  ;;  %v5551_v37 = vmul.f32 %v12510_v36, %v12572_v14  ;;  %v5550_v12 = vmul.f32 %v7768_v16, %v5510_v57  ;;  %vm12612_vm12 = vcmp.le.s32.totalorder %v5367_v58, 6 }
 0x6d2   : > { %v5311_v53 = vadd.f32 %v12373_v9, %v5297_v34  ;;  %v9413_v5 = vpack.i.bf16 %v5540_v31, %v12541_v52  ;;  %v5482_v9 = vsel %vm2525_vm2, %v5479_v40, %v5481_v27  ;;  %v5480_v4 = vsel %vm2525_vm2, %v5477_v43, %v5479_v40 }
 0x6d3   : > { %v12605_v15 = vmax.f32 %v5312_v48, 0.0  ;;  %v5530_v56 = vmul.f32 %v12510_v36, %v5510_v57  ;;  %vm12625_vm4 = vcmp.ge.s32.totalorder %v5367_v58, 1  ;;  %vm12631_vm5 = vcmp.ge.s32.totalorder %v5374_v42, 1 }
 0x6d4   : > { %v12607_v47 = vmax.f32 %v5311_v53, 0.0  ;;  %v9423_v30 = vpack.i.bf16 %v5551_v37, %v12481_v0  ;;  %v9418_v60 = vpack.i.bf16 %v5550_v12, %v12396_v20  ;;  %v5561_v54 = vmul.f32 %v12552_v29, %v5482_v9 }
 0x6d5   : > { %9409 = vrot.lane.b32.xlu0 %v9408_v13, %s13168_s16  ;;  %9414 = vrot.lane.b32.xlu1 %v9413_v5, %s13168_s16  ;;  %v5560_v61 = vmul.f32 %v12505_v10, %v5480_v4  ;;  %v5567_v21 = vmul.f32 %v12439_v32, %v5510_v57  ;;  %v5568_v8 = vmul.f32 %v7768_v16, %v12572_v14  ;;  %v5515_v42 = vrot.slane %v12605_v15, 1 }
 0x6d6   : > { %v5513_v40 = vrot.slane %v12607_v47, 1  ;;  %v5483_v46 = vrot.slane %v12607_v47, 7  ;;  %v7762_v34 = vsel %vm12588_vm8, 1.0, %v13278_v45  ;;  %v5529_v62 = vmul.f32 %v7768_v16, %v12520_v50 }
 0x6d7   : > { %v7772_v10 = vsel %vm12600_vm11, 1.0, %v13278_v45  ;;  %v7771_v32 = vsel %vm12612_vm12, 1.0, %v13278_v45  ;;  %v5541_v58 = vmul.f32 %v12552_v29, %v5480_v4  ;;  %v7770_v31 = vsel %vm12621_vm15, 1.0, %v13278_v45  ;;  %8382 = vmatprep.mubr.msk.f32.mxu0 %vm3616_vm7, %v5567_v21 }
 0x6d8   : > { %v5514_v57 = vsel %vm2649_vm3, %v5511_v38, %v5513_v40  ;;  %v7763_v50 = vsel %vm12625_vm4, 1.0, %v13278_v45  ;;  %v7764_v48 = vsel %vm12631_vm5, 1.0, %v13278_v45  ;;  %v9433_v16 = vpack.i.bf16 %v5530_v56, %v5561_v54  ;;  %8383 = vmatmul.mubr.msk.f32.gmra.mrb[110].mxu0 %vm3616_vm7, %v5568_v8 }
 0x6d9   : > { %9424 = vrot.lane.b32.xlu1 %v9423_v30, %s13171_s2  ;;  %9419 = vrot.lane.b32.xlu0 %v9418_v60, %s13171_s2  ;;  %v9428_v53 = vpack.i.bf16 %v5529_v62, %v5560_v61  ;;  %v5542_v37 = vmul.f32 %v7762_v34, %v5482_v9  ;;  %v5484_v29 = vsel %vm2525_vm2, %v5481_v27, %v5483_v46  ;;  %v5534_v38 = vrot.slane %v12605_v15, 7 }
 0x6da   : > { %v5546_v12 = vsel %vm2649_vm3, %v5515_v42, 0.0  ;;  %v5516_v55 = vsel %vm2649_vm3, %v5513_v40, %v5515_v42  ;;  %v5569_v13 = vmul.f32 %v12510_v36, %v5514_v57  ;;  %v9438_v18 = vpack.i.bf16 %v5541_v58, %v12537_v3 }
 0x6db   : > { %v5570_v5 = vmul.f32 %v7770_v31, %v5516_v55  ;;  %v5571_v27 = vmul.f32 %v7771_v32, %v5546_v12  ;;  %v12680_v25 = vmul.f32 %v7764_v48, %v5484_v29  ;;  %v12682_v56 = vmul.f32 %v7762_v34, %v5480_v4 }
 0x6dc   : > { %8385 = vmatprep.mubr.msk.f32.mxu0 %vm3616_vm7, %v5569_v13  ;;  %v9443_v63 = vpack.i.bf16 %v5542_v37, %v12607_v47  ;;  %v5554_v28 = vmul.f32 %v7772_v10, %v5546_v12  ;;  %v5553_v43 = vmul.f32 %v7771_v32, %v5516_v55  ;;  %v12686_v36 = vmul.f32 %v7763_v50, %v5482_v9 }
 0x6dd   : > { %9434 = vrot.lane.b32.xlu1 %v9433_v16, %s13170_s18  ;;  %9429 = vrot.lane.b32.xlu0 %v9428_v53, %s13170_s18  ;;  %v5535_v40 = vsel %vm2525_vm2, %v5483_v46, %v5534_v38  ;;  %v5552_v30 = vmul.f32 %v7770_v31, %v5514_v57  ;;  %v5532_v54 = vmul.f32 %v7771_v32, %v5514_v57  ;;  %v5572_v42 = vmul.f32 0.0, %v7772_v10 }
 0x6de   : > { %8386 = vmatmul.mubr.msk.f32.gmra.mrb[112].mxu0 %vm3616_vm7, %v5570_v5  ;;  %v9448_v4 = vpack.i.bf16 %v5554_v28, %v12537_v3  ;;  %v9458_v60 = vpack.i.bf16 %v5553_v43, %v12541_v52  ;;  %v5563_v61 = vmul.f32 %v7763_v50, %v5535_v40  ;;  %v5562_v21 = vmul.f32 %v7762_v34, %v5484_v29 }
 0x6df   : > { %8388 = vmatprep.mubr.msk.f32.mxu0 %vm3616_vm7, %v5571_v27  ;;  %v9453_v9 = vpack.i.bf16 %v5552_v30, %v12472_v51  ;;  %v5531_v8 = vmul.f32 %v7770_v31, %v12572_v14  ;;  %v5543_v58 = vmul.f32 %v7763_v50, %v5484_v29  ;;  %v5556_v32 = vsel %vm2525_vm2, %v5534_v38, 0.0 }
 0x6e0   : > { %v9468_v46 = vpack.i.bf16 %v5532_v54, %v5563_v61  ;;  %v5533_v57 = vmul.f32 %v7772_v10, %v5516_v55  ;;  %v5564_v16 = vmul.f32 %v7764_v48, %v5556_v32  ;;  %v5544_v53 = vmul.f32 %v7764_v48, %v5535_v40 }
 0x6e1   : > { %9439 = vrot.lane.b32.xlu0 %v9438_v18, %s13168_s16  ;;  %9444 = vrot.lane.b32.xlu1 %v9443_v63, %s13168_s16  ;;  %v9463_v62 = vpack.i.bf16 %v5531_v8, %v5562_v21  ;;  %v9473_v34 = vpack.i.bf16 %v5543_v58, %v12605_v15  ;;  %v5493_v29 = vmul.f32 0.0, %v12419_v11  ;;  %vm6108_vm6 = vcmask 162816  }
 0x6e2   : > { %8389 = vmatmul.mubr.msk.f32.gmra.mrb[114].mxu0 %vm3616_vm7, %v5572_v42  ;;  %v9478_v14 = vpack.i.bf16 %v5533_v57, %v5564_v16  ;;  %vm6382_vm11 = vcmask 80896   ;;  %vm6524_vm5 = vcmask 1044480  }
 0x6e3   : > { %v5743_v48 = vsel %vm3616_vm7, %v5493_v29, %v11445_v19 }
 0x6e5   : > { %9449 = vrot.lane.b32.xlu0 %v9448_v4, %s13171_s2  ;;  %9459 = vrot.lane.b32.xlu1 %v9458_v60, %s13171_s2 }
 0x6e9   : > { %9454 = vrot.lane.b32.xlu0 %v9453_v9, %s13171_s2  ;;  %9469 = vrot.lane.b32.xlu1 %v9468_v46, %s13170_s18 }
 0x6ed   : > { %5585 = vrot.lane.b32.xlu1 %v12607_v47, %s13171_s2  ;;  %9464 = vrot.lane.b32.xlu0 %v9463_v62, %s13170_s18 }
 0x6f1   : > { %9474 = vrot.lane.b32.xlu0 %v9473_v34, %s13168_s16  ;;  %5648 = vrot.lane.b32.xlu1 %v5544_v53, %s13168_s16  ;;  %s13508_s16 = sld [smem:[#allocation29_spill]] }
 0x6f5   : > { %9479 = vrot.lane.b32.xlu0 %v9478_v14, %s13170_s18 }
 0x737   : > { %v9375_v31 = vpop.permute.xlu1 %9374  ;;  %v9380_v50 = vpop.permute.xlu0 %9379 }
 0x738   : > { %v9377_v38 = vunpack.i.h.bf16 %v9375_v31  ;;  %v9376_v18 = vunpack.i.l.bf16 %v9375_v31  ;;  %v9382_v55 = vunpack.i.h.bf16 %v9380_v50  ;;  %v9381_v43 = vunpack.i.l.bf16 %v9380_v50 }
 0x73a   : > { %v5751_v28 = vsel %vm3649_vm9, %v5743_v48, %v9377_v38 }
 0x73b   : > { %v9385_v37 = vpop.permute.xlu1 %9384 }
 0x73c   : > { %v9386_v61 = vunpack.i.l.bf16 %v9385_v37  ;;  %v9387_v34 = vunpack.i.h.bf16 %v9385_v37 }
 0x73f   : > { %v9395_v12 = vpop.permute.xlu1 %9394  ;;  %v9390_v13 = vpop.permute.xlu0 %9389 }
 0x740   : > { %v9391_v5 = vunpack.i.l.bf16 %v9390_v13  ;;  %v9392_v10 = vunpack.i.h.bf16 %v9390_v13  ;;  %v9396_v27 = vunpack.i.l.bf16 %v9395_v12  ;;  %v9397_v4 = vunpack.i.h.bf16 %v9395_v12 }
 0x742   : > { %v5767_v63 = vsel %vm3616_vm7, %v12403_v26, %v9391_v5  ;;  %v5768_v19 = vsel %vm3616_vm7, %v12396_v20, %v9392_v10  ;;  %v5759_v26 = vsel %vm3682_vm10, %v5751_v28, %v9382_v55  ;;  %v5744_v8 = vsel %vm3616_vm7, %v12485_v33, %v9396_v27 }
 0x743   : > { %v9405_v40 = vpop.permute.xlu1 %9404  ;;  %v9400_v30 = vpop.permute.xlu0 %9399  ;;  %v5775_v11 = vsel %vm3649_vm9, %v5767_v63, %v9376_v18  ;;  %v5769_v20 = vsel %vm3616_vm7, %v12481_v0, %v9397_v4 }
 0x744   : > { %v9402_v60 = vunpack.i.h.bf16 %v9400_v30  ;;  %v9401_v54 = vunpack.i.l.bf16 %v9400_v30  ;;  %v9406_v9 = vunpack.i.l.bf16 %v9405_v40  ;;  %v5783_v46 = vsel %vm3682_vm10, %v5775_v11, %v9381_v43 }
 0x745   : > { %5879 = vmatprep.mubr.f32.mxu1 %v5783_v46  ;;  %v9407_v29 = vunpack.i.h.bf16 %v9405_v40 }
 0x746   : > { %v5776_v21 = vsel %vm3649_vm9, %v5768_v19, %v9401_v54  ;;  %5880 = vmatmul.mubr.f32.vlgmr.msra.gmra.mrb[76].mxu1 %v5759_v26  ;;  %v5752_v32 = vsel %vm3649_vm9, %v5744_v8, %v9402_v60  ;;  %v5777_v16 = vsel %vm3649_vm9, %v5769_v20, %v9406_v9 }
 0x747   : > { %v9410_v42 = vpop.permute.xlu0 %9409  ;;  %v9415_v62 = vpop.permute.xlu1 %9414  ;;  %v5784_v58 = vsel %vm3682_vm10, %v5776_v21, %v9386_v61  ;;  %v5760_v53 = vsel %vm3682_vm10, %v5752_v32, %v9387_v34 }
 0x748   : > { %v9411_v57 = vunpack.i.l.bf16 %v9410_v42  ;;  %5884 = vmatprep.mubr.f32.mxu1 %v5784_v58  ;;  %v9412_v13 = vunpack.i.h.bf16 %v9410_v42  ;;  %v9417_v5 = vunpack.i.h.bf16 %v9415_v62  ;;  %v9416_v48 = vunpack.i.l.bf16 %v9415_v62 }
 0x74a   : > { %v5785_v14 = vsel %vm3682_vm10, %v5777_v16, %v9411_v57  ;;  %5885 = vmatmul.mubr.f32.gmra.mrb[78].mxu1 %v5760_v53 }
 0x74b   : > { %v9425_v33 = vpop.permute.xlu1 %9424  ;;  %v9420_v31 = vpop.permute.xlu0 %9419  ;;  %5889 = vmatprep.mubr.f32.mxu1 %v5785_v14 }
 0x74c   : > { %v9421_v50 = vunpack.i.l.bf16 %v9420_v31  ;;  %v9426_v38 = vunpack.i.l.bf16 %v9425_v33  ;;  %v9422_v12 = vunpack.i.h.bf16 %v9420_v31  ;;  %v9427_v55 = vunpack.i.h.bf16 %v9425_v33 }
 0x74e   : > { %v5745_v37 = vsel %vm3616_vm7, %v12495_v2, %v9421_v50  ;;  %v5770_v40 = vsel %vm3616_vm7, %v12472_v51, %v9422_v12  ;;  %v5746_v30 = vsel %vm3616_vm7, %v12565_v44, %v9426_v38  ;;  %v5771_v46 = vsel %vm3616_vm7, %v12541_v52, %v9427_v55 }
 0x74f   : > { %v9435_v0 = vpop.permute.xlu1 %9434  ;;  %v9430_v18 = vpop.permute.xlu0 %9429  ;;  %v5753_v10 = vsel %vm3649_vm9, %v5745_v37, %v9407_v29 }
 0x750   : > { %v9432_v27 = vunpack.i.h.bf16 %v9430_v18  ;;  %v9431_v63 = vunpack.i.l.bf16 %v9430_v18  ;;  %v9436_v28 = vunpack.i.l.bf16 %v9435_v0  ;;  %v5761_v43 = vsel %vm3682_vm10, %v5753_v10, %v9412_v13 }
 0x751   : > { %5890 = vmatmul.mubr.f32.gmra.mrb[80].mxu1 %v5761_v43  ;;  %v9437_v42 = vunpack.i.h.bf16 %v9435_v0 }
 0x752   : > { %v5778_v2 = vsel %vm3649_vm9, %v5770_v40, %v9431_v63  ;;  %v5754_v11 = vsel %vm3649_vm9, %v5746_v30, %v9432_v27  ;;  %v5779_v51 = vsel %vm3649_vm9, %v5771_v46, %v9436_v28 }
 0x753   : > { %v9440_v4 = vpop.permute.xlu0 %9439  ;;  %v9445_v60 = vpop.permute.xlu1 %9444  ;;  %v5786_v54 = vsel %vm3682_vm10, %v5778_v2, %v9416_v48  ;;  %v5762_v61 = vsel %vm3682_vm10, %v5754_v11, %v9417_v5 }
 0x754   : > { %v9441_v9 = vunpack.i.l.bf16 %v9440_v4  ;;  %5894 = vmatprep.mubr.f32.mxu1 %v5786_v54  ;;  %v9442_v32 = vunpack.i.h.bf16 %v9440_v4  ;;  %v9447_v20 = vunpack.i.h.bf16 %v9445_v60  ;;  %v9446_v50 = vunpack.i.l.bf16 %v9445_v60 }
 0x755   : > { %5895 = vmatmul.mubr.f32.gmra.mrb[82].mxu1 %v5762_v61 }
 0x756   : > { %v5787_v44 = vsel %vm3682_vm10, %v5779_v51, %v9441_v9 }
 0x757   : > { %5899 = vmatprep.mubr.f32.mxu1 %v5787_v44  ;;  %v9450_v19 = vpop.permute.xlu0 %9449  ;;  %v9460_v26 = vpop.permute.xlu1 %9459 }
 0x758   : > { %v9461_v62 = vunpack.i.l.bf16 %v9460_v26  ;;  %v9462_v53 = vunpack.i.h.bf16 %v9460_v26  ;;  %v9451_v37 = vunpack.i.l.bf16 %v9450_v19  ;;  %v9452_v63 = vunpack.i.h.bf16 %v9450_v19 }
 0x75a   : > { %v5748_v12 = vsel %vm3616_vm7, %v12682_v56, %v9461_v62  ;;  %v5749_v43 = vsel %vm3616_vm7, %v12686_v36, %v9451_v37  ;;  %v5774_v60 = vsel %vm3616_vm7, %v12605_v15, %v9452_v63 }
 0x75b   : > { %v9455_v21 = vpop.permute.xlu0 %9454  ;;  %v9470_v34 = vpop.permute.xlu1 %9469 }
 0x75c   : > { %v9456_v8 = vunpack.i.l.bf16 %v9455_v21  ;;  %v9457_v58 = vunpack.i.h.bf16 %v9455_v21  ;;  %v9471_v29 = vunpack.i.l.bf16 %v9470_v34  ;;  %v9472_v5 = vunpack.i.h.bf16 %v9470_v34  ;;  %v6068_v34 = vld [vmem:[%s13501_s1 + $0x8] sm:$0xff] }
 0x75e   : > { %v5747_v57 = vsel %vm3616_vm7, %v12568_v49, %v9456_v8  ;;  %v5772_v38 = vsel %vm3616_vm7, %v12537_v3, %v9457_v58  ;;  %v5773_v3 = vsel %vm3616_vm7, %v12607_v47, %v9462_v53  ;;  %v5757_v30 = vsel %vm3649_vm9, %v5749_v43, %v9472_v5 }
 0x75f   : > { %v9465_v52 = vpop.permute.xlu0 %9464  ;;  %v5755_v16 = vsel %vm3649_vm9, %v5747_v57, %v9437_v42  ;;  %v5586_v48 = vpop.permute.xlu1 %5585  ;;  %v5781_v56 = vsel %vm3649_vm9, %v5773_v3, %v9471_v29 }
 0x760   : > { %v9467_v14 = vunpack.i.h.bf16 %v9465_v52  ;;  %v9466_v33 = vunpack.i.l.bf16 %v9465_v52  ;;  %v5763_v31 = vsel %vm3682_vm10, %v5755_v16, %v9442_v32  ;;  %v5750_v47 = vsel %vm3616_vm7, %v12680_v25, %v5586_v48  ;;  %v6067_v32 = vld [vmem:[%s13501_s1] sm:$0xff]  ;;  %v6069_v52 = vld [vmem:[%s13501_s1 + $0x10] sm:$0xf]  ;;  %s13516_s1 = sld [smem:[#allocation31_spill]] }
 0x761   : > { %5900 = vmatmul.mubr.f32.gmra.mrb[84].mxu1 %v5763_v31 }
 0x762   : > { %v5780_v49 = vsel %vm3649_vm9, %v5772_v38, %v9466_v33  ;;  %v5756_v13 = vsel %vm3649_vm9, %v5748_v12, %v9467_v14 }
 0x763   : > { %v9475_v0 = vpop.permute.xlu0 %9474  ;;  %v5788_v18 = vsel %vm3682_vm10, %v5780_v49, %v9446_v50  ;;  %v5764_v10 = vsel %vm3682_vm10, %v5756_v13, %v9447_v20  ;;  %v5649_v54 = vpop.permute.xlu1 %5648 }
 0x764   : > { %v9477_v55 = vunpack.i.h.bf16 %v9475_v0  ;;  %v9476_v27 = vunpack.i.l.bf16 %v9475_v0  ;;  %5904 = vmatprep.mubr.f32.mxu1 %v5788_v18 }
 0x765   : > { %5905 = vmatmul.mubr.f32.gmra.mrb[86].mxu1 %v5764_v10 }
 0x766   : > { %v5789_v28 = vsel %vm3682_vm10, %v5781_v56, %v9476_v27  ;;  %v5765_v4 = vsel %vm3682_vm10, %v5757_v30, %v9477_v55 }
 0x767   : > { %v9480_v40 = vpop.permute.xlu0 %9479  ;;  %5909 = vmatprep.mubr.f32.mxu1 %v5789_v28 }
 0x768   : > { %v9482_v2 = vunpack.i.h.bf16 %v9480_v40  ;;  %v9481_v11 = vunpack.i.l.bf16 %v9480_v40 }
 0x769   : > { %5910 = vmatmul.mubr.f32.gmra.mrb[88].mxu1 %v5765_v4 }
 0x76a   : > { %v5782_v61 = vsel %vm3649_vm9, %v5774_v60, %v9481_v11  ;;  %v5758_v36 = vsel %vm3649_vm9, %v5750_v47, %v9482_v2  ;;  %v7781_v11 = vld [vmem:[%s13502_s7] ss:$0 sm:$0xff]  ;;  %s13506_s7 = sld [smem:[#allocation24_spill]] }
 0x76b   : > { %v5790_v9 = vsel %vm3682_vm10, %v5782_v61, %v12061_v1  ;;  %v5766_v46 = vsel %vm3682_vm10, %v5758_v36, %v5649_v54  ;;  %v8631_v1 = vpack.c.bf16 %v6068_v34, %v6067_v32  ;;  %v7782_v47 = vld [vmem:[%s13503_s11] ss:$0 sm:$0xff]  ;;  %s13507_s11 = sld [smem:[#allocation25_spill]] }
 0x76c   : > { %5914 = vmatprep.mubr.f32.mxu1 %v5790_v9 }
 0x76d   : > { %5915 = vmatmul.mubr.f32.gmra.mrb[90].mxu1 %v5766_v46  ;;  %8632 = vmatprep.subr.bf16.mxu0 %v8631_v1 }
 0x76e   : > { %8634 = vmatpush3.bf16.msra.mxu0 %v8631_v1 }
 0x76f   : > { %8395 = vmatprep.subr.msk.mxu0 %vm5176_vm13, %v6069_v52 }
 0x772   : > { %8396 = vmatpush3.msk.msra.mxu0 %vm5176_vm13, %v6069_v52 }
 0x7a3   : > { %v8381_v51 = vpop.f32.mrb[108].mxu0 }
 0x7a4   : > { %v5986_v25 = vpop.f32.mrb[109].mxu0 }
 0x7ab   : > { %v8384_v44 = vpop.f32.mrb[110].mxu0 }
 0x7ac   : > { %v5996_v19 = vpop.f32.mrb[111].mxu0 }
 0x7b1   : > { %v8387_v15 = vpop.f32.mrb[112].mxu0 }
 0x7b2   : > { %v6006_v26 = vpop.f32.mrb[113].mxu0 }
 0x7b5   : > { %v8390_v21 = vpop.f32.mrb[114].mxu0 }
 0x7b6   : > { %v6016_v8 = vpop.f32.mrb[115].mxu0 }
 0x819   : > { %v8033_v42 = vpop.f32.mrb[76].mxu1 }
 0x81a   : > { %v8034_v62 = vpop.f32.mrb[77].mxu1 }
 0x81b   : > { %v8035_v58 = vadd.f32 %v8034_v62, %v8033_v42 }
 0x81d   : > { %v5987_v57 = vadd.f32 %v8035_v58, %v5986_v25  ;;  %v8036_v20 = vpop.f32.mrb[78].mxu1 }
 0x81e   : > { %v8037_v16 = vpop.f32.mrb[79].mxu1 }
 0x81f   : > { %v8038_v53 = vadd.f32 %v8037_v16, %v8036_v20  ;;  %6033 = vrot.lane.b32.xlu0 %v5987_v57, %s9769_s22 }
 0x821   : > { %v5992_v14 = vadd.f32 %v8381_v51, %v8038_v53 }
 0x823   : > { %6035 = vrot.lane.b32.xlu1 %v5992_v14, %s9769_s22 }
 0x824   : > { %v8039_v33 = vpop.f32.mrb[80].mxu1 }
 0x825   : > { %v8040_v31 = vpop.f32.mrb[81].mxu1 }
 0x826   : > { %v8041_v50 = vadd.f32 %v8040_v31, %v8039_v33 }
 0x828   : > { %v5997_v29 = vadd.f32 %v8041_v50, %v5996_v19  ;;  %v8042_v38 = vpop.f32.mrb[82].mxu1 }
 0x829   : > { %v8043_v12 = vpop.f32.mrb[83].mxu1 }
 0x82a   : > { %v8044_v37 = vadd.f32 %v8043_v12, %v8042_v38  ;;  %6037 = vrot.lane.b32.xlu0 %v5997_v29, %s9769_s22 }
 0x82c   : > { %v6002_v49 = vadd.f32 %v8384_v44, %v8044_v37 }
 0x82e   : > { %6039 = vrot.lane.b32.xlu1 %v6002_v49, %s9769_s22  ;;  %v6070_v49 = vld [vmem:[%s13504_s26] sm:$0xff] }
 0x834   : > { %v8045_v13 = vpop.f32.mrb[84].mxu1 }
 0x835   : > { %v8046_v5 = vpop.f32.mrb[85].mxu1 }
 0x836   : > { %v8047_v0 = vadd.f32 %v8046_v5, %v8045_v13 }
 0x838   : > { %v6007_v18 = vadd.f32 %v8047_v0, %v6006_v26  ;;  %v8048_v10 = vpop.f32.mrb[86].mxu1 }
 0x839   : > { %v8049_v48 = vpop.f32.mrb[87].mxu1 }
 0x83a   : > { %v8050_v55 = vadd.f32 %v8049_v48, %v8048_v10  ;;  %6041 = vrot.lane.b32.xlu0 %v6007_v18, %s9769_s22 }
 0x83c   : > { %v6012_v27 = vadd.f32 %v8387_v15, %v8050_v55  ;;  %v8051_v3 = vpop.f32.mrb[88].mxu1 }
 0x83d   : > { %v8052_v63 = vpop.f32.mrb[89].mxu1 }
 0x83e   : > { %v8053_v56 = vadd.f32 %v8052_v63, %v8051_v3  ;;  %6043 = vrot.lane.b32.xlu1 %v6012_v27, %s9769_s22 }
 0x840   : > { %v6017_v28 = vadd.f32 %v8053_v56, %v6016_v8  ;;  %v8054_v43 = vpop.f32.mrb[90].mxu1  ;;  %v6071_v56 = vld [vmem:[%s13504_s26 + $0x8] sm:$0xff] }
 0x841   : > { %v8055_v40 = vpop.f32.mrb[91].mxu1 }
 0x842   : > { %v8056_v30 = vadd.f32 %v8055_v40, %v8054_v43  ;;  %6045 = vrot.lane.b32.xlu0 %v6017_v28, %s9769_s22 }
 0x844   : > { %v6022_v2 = vadd.f32 %v8390_v21, %v8056_v30  ;;  %v7794_v30 = vld [vmem:[%s13506_s7] ss:$0 sm:$0xff]  ;;  %s13509_s7 = sld [smem:[#allocation27_spill]] }
 0x846   : > { %6047 = vrot.lane.b32.xlu1 %v6022_v2, %s9769_s22  ;;  %s13505_s22 = sld [smem:[#allocation26_spill]] }
 0x84c   : > { %v6324_v28 = vld [vmem:[%s13505_s22] sm:$0xff]  ;;  %v6325_v43 = vld [vmem:[%s13505_s22 + $0x8] sm:$0x3] }
 0x84d   : > { %v8651_v40 = vpack.c.bf16 %v6325_v43, %v6324_v28 }
 0x891   : > { %v6034_v4 = vpop.permute.xlu0 %6033 }
 0x892   : > { %v6057_v60 = vsel %vm5151_vm1, %v12311_v41, %v6034_v4 }
 0x893   : > { %v6078_v54 = vmul.f32 %v7781_v11, %v6057_v60 }
 0x895   : > { %v6092_v61 = vadd.f32 %v7782_v47, %v6078_v54  ;;  %v6036_v36 = vpop.permute.xlu1 %6035 }
 0x896   : > { %v6058_v9 = vsel %vm5151_vm1, %v12315_v39, %v6036_v36 }
 0x897   : > { %v6100_v46 = vmax.f32 %v6092_v61, 0.0  ;;  %v6079_v51 = vmul.f32 %v7781_v11, %v6058_v9 }
 0x899   : > { %v6093_v25 = vadd.f32 %v7782_v47, %v6079_v51  ;;  %8397 = vmatprep.mubr.msk.f32.mxu0 %vm6108_vm6, %v6100_v46  ;;  %v6360_v46 = vld [vmem:[%s13508_s16 + $0x100] sm:$0xff]  ;;  %v6361_v51 = vld [vmem:[%s13508_s16 + $0x108] sm:$0xff] }
 0x89b   : > { %v6101_v44 = vmax.f32 %v6093_v25, 0.0  ;;  %v6362_v25 = vld [vmem:[%s13508_s16 + $0x110] sm:$0xff] }
 0x89c   : > { %v6038_v19 = vpop.permute.xlu0 %6037 }
 0x89d   : > { %v6059_v15 = vsel %vm5151_vm1, %v12318_v6, %v6038_v19  ;;  %8398 = vmatmul.mubr.msk.f32.vlgmr.msra.gmra.mrb[116].mxu0 %vm6108_vm6, %v6101_v44  ;;  %v8689_v44 = vpack.c.bf16 %v6361_v51, %v6360_v46  ;;  %v6363_v19 = vld [vmem:[%s13508_s16 + $0x118] sm:$0xff] }
 0x89e   : > { %v6080_v41 = vmul.f32 %v7781_v11, %v6059_v15  ;;  %v6344_v15 = vld [vmem:[%s13508_s16 + $0x80] sm:$0xff] }
 0x8a0   : > { %v6094_v26 = vadd.f32 %v7782_v47, %v6080_v41  ;;  %v6040_v21 = vpop.permute.xlu1 %6039  ;;  %v6345_v41 = vld [vmem:[%s13508_s16 + $0x88] sm:$0xff] }
 0x8a1   : > { %v6060_v8 = vsel %vm5151_vm1, %v12322_v59, %v6040_v21  ;;  %v8657_v21 = vpack.c.bf16 %v6345_v41, %v6344_v15 }
 0x8a2   : > { %v6102_v39 = vmax.f32 %v6094_v26, 0.0  ;;  %v6081_v42 = vmul.f32 %v7781_v11, %v6060_v8  ;;  %v8693_v26 = vpack.c.bf16 %v6363_v19, %v6362_v25  ;;  %v6328_v8 = vld [vmem:[%s13508_s16] sm:$0xff] }
 0x8a3   : > { %8658 = vmatprep.subr.bf16.mxu1 %v8657_v21 }
 0x8a4   : > { %v6095_v62 = vadd.f32 %v7782_v47, %v6081_v42  ;;  %8400 = vmatprep.mubr.msk.f32.mxu0 %vm6108_vm6, %v6102_v39  ;;  %v6329_v39 = vld [vmem:[%s13508_s16 + $0x8] sm:$0xff]  ;;  %v6346_v42 = vld [vmem:[%s13508_s16 + $0x90] sm:$0xff] }
 0x8a6   : > { %v6103_v58 = vmax.f32 %v6095_v62, 0.0  ;;  %v8659_v62 = vpack.c.bf16 %v6329_v39, %v6328_v8 }
 0x8a8   : > { %8401 = vmatmul.mubr.msk.f32.gmra.mrb[118].mxu0 %vm6108_vm6, %v6103_v58  ;;  %v6347_v58 = vld [vmem:[%s13508_s16 + $0x98] sm:$0xff]  ;;  %8660 = vmatpush3.bf16.msra.mxu1 %v8659_v62 }
 0x8ac   : > { %v6042_v32 = vpop.permute.xlu0 %6041 }
 0x8ad   : > { %v6061_v6 = vsel %vm5151_vm1, %v12327_v22, %v6042_v32  ;;  %v6330_v32 = vld [vmem:[%s13508_s16 + $0x10] sm:$0xff] }
 0x8ae   : > { %v6082_v34 = vmul.f32 %v7781_v11, %v6061_v6  ;;  %v6331_v6 = vld [vmem:[%s13508_s16 + $0x18] sm:$0xff] }
 0x8b0   : > { %v6096_v1 = vadd.f32 %v7782_v47, %v6082_v34  ;;  %v6044_v57 = vpop.permute.xlu1 %6043  ;;  %v8661_v34 = vpack.c.bf16 %v6347_v58, %v6346_v42 }
 0x8b1   : > { %v6062_v20 = vsel %vm5151_vm1, %v12331_v7, %v6044_v57  ;;  %v6349_v57 = vld [vmem:[%s13508_s16 + $0xa8] sm:$0xff] }
 0x8b2   : > { %v6104_v52 = vmax.f32 %v6096_v1, 0.0  ;;  %v6083_v59 = vmul.f32 %v7781_v11, %v6062_v20  ;;  %v6348_v1 = vld [vmem:[%s13508_s16 + $0xa0] sm:$0xff]  ;;  %v8663_v20 = vpack.c.bf16 %v6331_v6, %v6330_v32  ;;  %8662 = vmatprep.subr.bf16.mxu1 %v8661_v34 }
 0x8b4   : > { %v6097_v16 = vadd.f32 %v7782_v47, %v6083_v59  ;;  %8403 = vmatprep.mubr.msk.f32.mxu0 %vm6108_vm6, %v6104_v52  ;;  %v6046_v53 = vpop.permute.xlu0 %6045  ;;  %v8665_v52 = vpack.c.bf16 %v6349_v57, %v6348_v1  ;;  %v6332_v59 = vld [vmem:[%s13508_s16 + $0x20] sm:$0xff]  ;;  %8664 = vmatpush3.bf16.msra.mxu1 %v8663_v20 }
 0x8b5   : > { %v6063_v14 = vsel %vm5151_vm1, %v12335_v24, %v6046_v53  ;;  %v6350_v53 = vld [vmem:[%s13508_s16 + $0xb0] sm:$0xff] }
 0x8b6   : > { %v6105_v33 = vmax.f32 %v6097_v16, 0.0  ;;  %v6084_v31 = vmul.f32 %v7781_v11, %v6063_v14  ;;  %v6333_v16 = vld [vmem:[%s13508_s16 + $0x28] sm:$0xff]  ;;  %v6351_v14 = vld [vmem:[%s13508_s16 + $0xb8] sm:$0xff]  ;;  %8666 = vmatprep.subr.bf16.mxu1 %v8665_v52 }
 0x8b8   : > { %v6098_v50 = vadd.f32 %v7782_v47, %v6084_v31  ;;  %8404 = vmatmul.mubr.msk.f32.gmra.mrb[120].mxu0 %vm6108_vm6, %v6105_v33  ;;  %v6048_v22 = vpop.permute.xlu1 %6047  ;;  %v8667_v33 = vpack.c.bf16 %v6333_v16, %v6332_v59  ;;  %v8669_v31 = vpack.c.bf16 %v6351_v14, %v6350_v53  ;;  %v6340_v14 = vld [vmem:[%s13508_s16 + $0x60] sm:$0xff] }
 0x8b9   : > { %v6064_v29 = vsel %vm5151_vm1, %v12339_v23, %v6048_v22  ;;  %vm6389_vm1 = vcmask 1041408   ;;  %v6335_v22 = vld [vmem:[%s13508_s16 + $0x38] sm:$0xff] }
 0x8ba   : > { %v6106_v7 = vmax.f32 %v6098_v50, 0.0  ;;  %v6085_v38 = vmul.f32 %v7781_v11, %v6064_v29  ;;  %vm8652_vm8 = vmpackc.low %vm6389_vm1, %vm9768_vm14  ;;  %v7795_v11 = vld [vmem:[%s13507_s11] ss:$0 sm:$0xff]  ;;  %v6334_v50 = vld [vmem:[%s13508_s16 + $0x30] sm:$0xff]  ;;  %8668 = vmatpush3.bf16.msra.mxu1 %v8667_v33  ;;  %s13510_s11 = sld [smem:[#allocation28_spill]] }
 0x8bb   : > { %v6352_v29 = vld [vmem:[%s13508_s16 + $0xc0] sm:$0xff]  ;;  %8670 = vmatprep.subr.bf16.mxu1 %v8669_v31 }
 0x8bc   : > { %v6099_v12 = vadd.f32 %v7782_v47, %v6085_v38  ;;  %8406 = vmatprep.mubr.msk.f32.mxu0 %vm6108_vm6, %v6106_v7  ;;  %v6353_v7 = vld [vmem:[%s13508_s16 + $0xc8] sm:$0xff]  ;;  %v8671_v38 = vpack.c.bf16 %v6335_v22, %v6334_v50 }
 0x8bd   : > { %v6341_v22 = vld [vmem:[%s13508_s16 + $0x68] sm:$0xff] }
 0x8be   : > { %v6107_v37 = vmax.f32 %v6099_v12, 0.0  ;;  %v8673_v12 = vpack.c.bf16 %v6353_v7, %v6352_v29  ;;  %8672 = vmatpush3.bf16.msra.mxu1 %v8671_v38  ;;  %v6358_v29 = vld [vmem:[%s13508_s16 + $0xf0] sm:$0xff]  ;;  %v6359_v7 = vld [vmem:[%s13508_s16 + $0xf8] sm:$0xff] }
 0x8c0   : > { %8407 = vmatmul.mubr.msk.f32.gmra.mrb[122].mxu0 %vm6108_vm6, %v6107_v37  ;;  %v6336_v37 = vld [vmem:[%s13508_s16 + $0x40] sm:$0xff]  ;;  %8674 = vmatprep.subr.bf16.mxu1 %v8673_v12  ;;  %vm6538_vm6 = vcmask 1042432  }
 0x8c1   : > { %8425 = vmatprep.mubr.msk.f32.mxu0 %vm3649_vm9, %v6070_v49  ;;  %v6337_v49 = vld [vmem:[%s13508_s16 + $0x48] sm:$0xff] }
 0x970   : > { %v8399_v24 = vpop.f32.mrb[116].mxu0 }
 0x971   : > { %v6202_v13 = vpop.f32.mrb[117].mxu0 }
 0x972   : > { %v8635_v5 = vpack.c.bf16 %v8399_v24, %v6202_v13  ;;  %v6354_v24 = vld [vmem:[%s13508_s16 + $0xd0] sm:$0xff]  ;;  %v6355_v13 = vld [vmem:[%s13508_s16 + $0xd8] sm:$0xff] }
 0x974   : > { %8636 = vmatprep.subr.bf16.mxu0 %v8635_v5 }
 0x975   : > { %8638 = vmatpush3.bf16.msra.mxu0 %v8635_v5  ;;  %v8675_v5 = vpack.c.bf16 %v6337_v49, %v6336_v37 }
 0x977   : > { %8676 = vmatpush3.bf16.msra.mxu1 %v8675_v5  ;;  %v6342_v5 = vld [vmem:[%s13508_s16 + $0x70] sm:$0xff] }
 0x97b   : > { %v8402_v0 = vpop.f32.mrb[118].mxu0 }
 0x97c   : > { %v6212_v18 = vpop.f32.mrb[119].mxu0 }
 0x97d   : > { %v8639_v23 = vpack.c.bf16 %v8402_v0, %v6212_v18  ;;  %v8677_v0 = vpack.c.bf16 %v6355_v13, %v6354_v24  ;;  %v6338_v18 = vld [vmem:[%s13508_s16 + $0x50] sm:$0xff] }
 0x97f   : > { %8640 = vmatprep.subr.bf16.mxu0 %v8639_v23  ;;  %8678 = vmatprep.subr.bf16.mxu1 %v8677_v0  ;;  %v6343_v0 = vld [vmem:[%s13508_s16 + $0x78] sm:$0xff] }
 0x980   : > { %8642 = vmatpush3.bf16.msra.mxu0 %v8639_v23  ;;  %v6339_v23 = vld [vmem:[%s13508_s16 + $0x58] sm:$0xff] }
 0x98b   : > { %v8405_v10 = vpop.f32.mrb[120].mxu0 }
 0x98c   : > { %v6222_v48 = vpop.f32.mrb[121].mxu0 }
 0x98d   : > { %v8643_v55 = vpack.c.bf16 %v8405_v10, %v6222_v48  ;;  %v8679_v10 = vpack.c.bf16 %v6339_v23, %v6338_v18  ;;  %v6490_v48 = vand.u32 3, %v10289_v35 }
 0x98f   : > { %8644 = vmatprep.subr.bf16.mxu0 %v8643_v55  ;;  %8680 = vmatpush3.bf16.msra.mxu1 %v8679_v10  ;;  %vm6516_vm12 = vcmp.le.s32.totalorder %v6490_v48, 2  ;;  %vm6510_vm15 = vcmp.ge.s32.totalorder %v6490_v48, 1  ;;  %v8683_v10 = vpack.c.bf16 %v6341_v22, %v6340_v14  ;;  %v8685_v48 = vpack.c.bf16 %v6359_v7, %v6358_v29 }
 0x990   : > { %8646 = vmatpush3.bf16.msra.mxu0 %v8643_v55  ;;  %v7799_v55 = vld [vmem:[%s13509_s7] ss:$0 sm:$0xff]  ;;  %s13511_s7 = smov 96  }
 0x993   : > { %v8408_v27 = vpop.f32.mrb[122].mxu0 }
 0x994   : > { %v6232_v3 = vpop.f32.mrb[123].mxu0 }
 0x995   : > { %v8647_v63 = vpack.c.bf16 %v8408_v27, %v6232_v3  ;;  %v6497_v27 = vand.u32 3, %v13462_v17  ;;  %v7800_v3 = vld [vmem:[%s13510_s11] ss:$0 sm:$0xff]  ;;  %s13513_s11 = sld [smem:[#allocation32_spill]] }
 0x996   : > { %v6356_v17 = vld [vmem:[%s13508_s16 + $0xe0] sm:$0xff] }
 0x997   : > { %8648 = vmatprep.subr.bf16.mxu0 %v8647_v63  ;;  %vm6517_vm4 = vcmp.le.s32.totalorder %v6497_v27, 2 }
 0x998   : > { %8650 = vmatpush3.bf16.msra.mxu0 %v8647_v63 }
 0x999   : > { %8653 = vmatprep.subr.msk.bf16.mxu0 %vm8652_vm8, %v8651_v40 }
 0x99b   : > { %8426 = vmatmul.mubr.msk.f32.vlgmr.msra.gmra.mrb[124].mxu0 %vm3649_vm9, %v6071_v56  ;;  %v6799_v22 = vld [vmem:[%s13513_s11] sm:$0xff] }
 0x99c   : > { %8656 = vmatpush3.bf16.msk.msra.mxu0 %vm8652_vm8, %v8651_v40  ;;  %vm6511_vm8 = vcmp.ge.s32.totalorder %v6497_v27, 1 }
 0x99d   : > { %8690 = vmatprep.subr.bf16.mxu0 %v8689_v44  ;;  %v7802_v39 = vsel %vm6511_vm8, 1.0, %v13278_v45 }
 0xa6e   : > { %v12823_v2 = vpop.f32.mrb[124].mxu0 }
 0xa6f   : > { %v6371_v4 = vmul.f32 %v12823_v2, %v7794_v30  ;;  %v12827_v47 = vpop.f32.mrb[125].mxu0 }
 0xa70   : > { %v6370_v60 = vmul.f32 %v7794_v30, %v12827_v47 }
 0xa71   : > { %v6379_v54 = vadd.f32 %v7795_v11, %v6371_v4 }
 0xa72   : > { %v6378_v61 = vadd.f32 %v7795_v11, %v6370_v60  ;;  %v7803_v11 = vsel %vm6516_vm12, 1.0, %v13278_v45  ;;  %v7801_v60 = vsel %vm6510_vm15, 1.0, %v13278_v45 }
 0xa73   : > { %v6381_v9 = vmax.f32 %v6379_v54, 0.0  ;;  %v6357_v54 = vld [vmem:[%s13508_s16 + $0xe8] sm:$0xff] }
 0xa74   : > { %v6380_v36 = vmax.f32 %v6378_v61, 0.0 }
 0xa76   : > { %8432 = vmatprep.mubr.msk.f32.mxu0 %vm6382_vm11, %v6380_v36  ;;  %v7804_v36 = vsel %vm6517_vm4, 1.0, %v13278_v45 }
 0xa77   : > { %8433 = vmatmul.mubr.msk.f32.vlgmr.msra.gmra.mrb[126].mxu0 %vm6382_vm11, %v6381_v9  ;;  %v8681_v9 = vpack.c.bf16 %v6357_v54, %v6356_v17 }
 0xa78   : > { %8692 = vmatpush3.bf16.msra.mxu0 %v8689_v44 }
 0xa79   : > { %8694 = vmatprep.subr.bf16.mxu0 %v8693_v26  ;;  %8682 = vmatprep.subr.bf16.mxu1 %v8681_v9 }
 0xa7a   : > { %8684 = vmatpush3.bf16.msra.mxu1 %v8683_v10 }
 0xa7b   : > { %8686 = vmatprep.subr.bf16.mxu1 %v8685_v48 }
 0xa7c   : > { %8696 = vmatpush3.bf16.msra.mxu0 %v8693_v26 }
 0xb4a   : > { %v8434_v63 = vpop.f32.mrb[126].mxu0 }
 0xb4b   : > { %v6475_v56 = vmul.f32 %v8434_v63, %v7799_v55  ;;  %v6459_v28 = vpop.f32.mrb[127].mxu0 }
 0xb4c   : > { %v6474_v43 = vmul.f32 %v7799_v55, %v6459_v28 }
 0xb4d   : > { %v6483_v40 = vadd.f32 %v7800_v3, %v6475_v56  ;;  %v8687_v56 = vpack.c.bf16 %v6343_v0, %v6342_v5  ;;  %v7808_v0 = vld [vmem:[%s13516_s1] ss:$0 sm:$0xff]  ;;  %s13521_s1 = sld [smem:[#allocation39_spill]] }
 0xb4e   : > { %v6482_v30 = vadd.f32 %v7800_v3, %v6474_v43 }
 0xb4f   : > { %v12865_v4 = vmax.f32 %v6483_v40, 0.0  ;;  %8688 = vmatpush3.bf16.msra.mxu1 %v8687_v56 }
 0xb50   : > { %v12870_v61 = vmax.f32 %v6482_v30, 0.0  ;;  %v13512_v30 = vmov 0.0|0.0  }
 0xb51   : > { %v6556_v46 = vrot.slane %v12865_v4, 1  ;;  %v6526_v51 = vrot.slane %v12865_v4, 3  ;;  %v6534_v25 = vrot.slane %v12865_v4, 4  ;;  %v6540_v44 = vrot.slane %v12865_v4, 5  ;;  %8701 = vmatprep.subr.bf16.mxu1 %v13512_v30 }
 0xb52   : > { %v6533_v19 = vrot.slane %v12870_v61, 4  ;;  %v6555_v15 = vrot.slane %v12870_v61, 1  ;;  %v6525_v41 = vrot.slane %v12870_v61, 3  ;;  %v6539_v26 = vrot.slane %v12870_v61, 5 }
 0xb53   : > { %v6547_v21 = vrot.slane %v12870_v61, 7  ;;  %v6560_v8 = vsel %vm2649_vm3, %v6556_v46, 0.0  ;;  %v6564_v42 = vsel %vm6524_vm5, %v6526_v51, 0.0  ;;  %v6548_v6 = vrot.slane %v12865_v4, 7 }
 0xb54   : > { %v6557_v62 = vsel %vm2649_vm3, %v6555_v15, %v6556_v46  ;;  %v6527_v58 = vsel %vm6524_vm5, %v6525_v41, %v6526_v51  ;;  %v6544_v32 = vsel %vm6538_vm6, 0.0, %v6539_v26  ;;  %v6537_v34 = vsel %vm5176_vm13, 0.0, %v6533_v19 }
 0xb55   : > { %v6561_v1 = vmul.f32 %v7803_v11, %v6557_v62  ;;  %v6545_v57 = vmul.f32 %v7803_v11, %v6544_v32  ;;  %v6565_v20 = vmul.f32 %v7801_v60, %v6527_v58  ;;  %v6535_v52 = vsel %vm5176_vm13, %v6533_v19, %v6534_v25 }
 0xb56   : > { %v6552_v59 = vsel %vm2525_vm2, 0.0, %v6547_v21  ;;  %v6562_v16 = vmul.f32 %v7804_v36, %v6560_v8  ;;  %v6541_v53 = vsel %vm6538_vm6, %v6539_v26, %v6540_v44  ;;  %v6549_v38 = vsel %vm2525_vm2, %v6547_v21, %v6548_v6 }
 0xb57   : > { %v9483_v33 = vpack.i.bf16 %v6537_v34, %v6561_v1  ;;  %v9488_v31 = vpack.i.bf16 %v6545_v57, %v6565_v20  ;;  %v6553_v50 = vmul.f32 %v7801_v60, %v6552_v59  ;;  %v6571_v12 = vmul.f32 %v7803_v11, %v6541_v53 }
 0xb58   : > { %v9493_v37 = vpack.i.bf16 %v6535_v52, %v6562_v16  ;;  %v6546_v49 = vmul.f32 %v7804_v36, %v6541_v53  ;;  %v6566_v24 = vmul.f32 %v7802_v39, %v6564_v42  ;;  %v6570_v13 = vsel %vm6538_vm6, %v6540_v44, 0.0 }
 0xb59   : > { %9484 = vrot.lane.b32.xlu0 %v9483_v33, %s13171_s2  ;;  %9489 = vrot.lane.b32.xlu1 %v9488_v31, %s13170_s18  ;;  %v6572_v18 = vmul.f32 %v7804_v36, %v6570_v13  ;;  %v6530_v23 = vsel %vm6524_vm5, 0.0, %v6525_v41  ;;  %v9498_v55 = vpack.i.bf16 %v6553_v50, %v6535_v52  ;;  %v6554_v27 = vmul.f32 %v7802_v39, %v6549_v38 }
 0xb5a   : > { %8443 = vmatprep.mubr.msk.f32.mxu0 %vm3616_vm7, %v6571_v12  ;;  %v6531_v3 = vmul.f32 %v7801_v60, %v6530_v23  ;;  %v6532_v63 = vmul.f32 %v7802_v39, %v6527_v58  ;;  %v6568_v28 = vsel %vm5176_vm13, %v6534_v25, 0.0  ;;  %v9503_v43 = vpack.i.bf16 %v6546_v49, %v6566_v24 }
 0xb5b   : > { %8444 = vmatmul.mubr.msk.f32.vlgmr.msra.gmra.mrb[128].mxu0 %vm3616_vm7, %v6572_v18  ;;  %v9508_v40 = vpack.i.bf16 %v6554_v27, %v6568_v28  ;;  %vm6821_vm3 = vcmask 146432   ;;  %vm9771_vm13 = vmmov 0  }
 0xb5d   : > { %9499 = vrot.lane.b32.xlu0 %v9498_v55, %s13511_s7  ;;  %9494 = vrot.lane.b32.xlu1 %v9493_v37, %s13171_s2  ;;  %s13515_s2 = sld [smem:[#allocation30_spill]] }
 0xb61   : > { %9504 = vrot.lane.b32.xlu0 %v9503_v43, %s13170_s18  ;;  %9509 = vrot.lane.b32.xlu1 %v9508_v40, %s13511_s7  ;;  %s13514_s18 = smov %s13513_s11  ;;  %s13517_s11 = sld [smem:[#allocation33_spill]]  ;;  %v6981_v40 = vld [vmem:[%s13518_s4] sm:$0xff] }
 0xb62   : > { %v6801_v12 = vld [vmem:[%s13514_s18 + $0x10] sm:$0x3] }
 0xb63   : > { %v7807_v13 = vld [vmem:[%s13515_s2] ss:$0 sm:$0xff]  ;;  %s13520_s2 = sld [smem:[#allocation35_spill]] }
 0xbcb   : > { %v9485_v11 = vpop.permute.xlu0 %9484  ;;  %v9490_v60 = vpop.permute.xlu1 %9489 }
 0xbcc   : > { %v9487_v17 = vunpack.i.h.bf16 %v9485_v11  ;;  %v9486_v54 = vunpack.i.l.bf16 %v9485_v11  ;;  %v9492_v36 = vunpack.i.h.bf16 %v9490_v60  ;;  %v9491_v9 = vunpack.i.l.bf16 %v9490_v60  ;;  %v6982_v11 = vld [vmem:[%s13518_s4 + $0x8] sm:$0x1] }
 0xbcd   : > { %v8705_v60 = vpack.c.bf16 %v6982_v11, %v6981_v40  ;;  %v6998_v11 = vld [vmem:[%s13521_s1 + $0x68] sm:$0xff] }
 0xbce   : > { %v6619_v46 = vsel %vm3616_vm7, %v6531_v3, %v9487_v17  ;;  %v6625_v51 = vsel %vm3616_vm7, %v12870_v61, %v9486_v54 }
 0xbcf   : > { %v9500_v25 = vpop.permute.xlu0 %9499  ;;  %v9495_v44 = vpop.permute.xlu1 %9494  ;;  %v6621_v41 = vsel %vm3649_vm9, %v6619_v46, %v9492_v36  ;;  %v6627_v8 = vsel %vm3649_vm9, %v6625_v51, %v9491_v9  ;;  %v7814_v36 = vld [vmem:[%s13520_s2] ss:$0 sm:$0xff]  ;;  %s13524_s2 = smov 32  }
 0xbd0   : > { %v9502_v19 = vunpack.i.h.bf16 %v9500_v25  ;;  %v9501_v15 = vunpack.i.l.bf16 %v9500_v25  ;;  %v9497_v26 = vunpack.i.h.bf16 %v9495_v44  ;;  %v9496_v21 = vunpack.i.l.bf16 %v9495_v44  ;;  %v7017_v44 = vld [vmem:[%s13521_s1 + $0x100] sm:$0xff] }
 0xbd2   : > { %v6629_v39 = vsel %vm3682_vm10, %v6627_v8, %v9501_v15  ;;  %v6623_v42 = vsel %vm3682_vm10, %v6621_v41, %v9502_v19  ;;  %v6626_v1 = vsel %vm3616_vm7, %v12865_v4, %v9496_v21  ;;  %v6620_v57 = vsel %vm3616_vm7, %v6532_v63, %v9497_v26  ;;  %v6800_v4 = vld [vmem:[%s13514_s18 + $0x8] sm:$0xff]  ;;  %v7019_v15 = vld [vmem:[%s13521_s1 + $0x110] sm:$0xff]  ;;  %v7020_v26 = vld [vmem:[%s13521_s1 + $0x118] sm:$0xff] }
 0xbd3   : > { %v9505_v62 = vpop.permute.xlu0 %9504  ;;  %6701 = vmatprep.mubr.f32.mxu1 %v6629_v39  ;;  %v9510_v58 = vpop.permute.xlu1 %9509  ;;  %v8697_v7 = vpack.c.bf16 %v6800_v4, %v6799_v22  ;;  %v7018_v19 = vld [vmem:[%s13521_s1 + $0x108] sm:$0xff]  ;;  %v7001_v21 = vld [vmem:[%s13521_s1 + $0x80] sm:$0xff]  ;;  %v6991_v4 = vld [vmem:[%s13521_s1 + $0x30] sm:$0xff] }
 0xbd4   : > { %v9507_v32 = vunpack.i.h.bf16 %v9505_v62  ;;  %v9506_v6 = vunpack.i.l.bf16 %v9505_v62  ;;  %v9512_v61 = vunpack.i.h.bf16 %v9510_v58  ;;  %v9511_v34 = vunpack.i.l.bf16 %v9510_v58  ;;  %6702 = vmatmul.mubr.f32.vlgmr.msra.gmra.mrb[92].mxu1 %v6623_v42  ;;  %v7002_v8 = vld [vmem:[%s13521_s1 + $0x88] sm:$0xff]  ;;  %v6985_v42 = vld [vmem:[%s13521_s1] sm:$0xff]  ;;  %v7003_v58 = vld [vmem:[%s13521_s1 + $0x90] sm:$0xff] }
 0xbd5   : > { %8698 = vmatprep.subr.bf16.mxu0 %v8697_v7  ;;  %v8741_v41 = vpack.c.bf16 %v7018_v19, %v7017_v44  ;;  %v8708_v39 = vpack.c.bf16 %v7002_v8, %v7001_v21  ;;  %v6986_v62 = vld [vmem:[%s13521_s1 + $0x8] sm:$0xff] }
 0xbd6   : > { %v6628_v20 = vsel %vm3649_vm9, %v6626_v1, %v9506_v6  ;;  %v6622_v52 = vsel %vm3649_vm9, %v6620_v57, %v9507_v32  ;;  %8700 = vmatpush3.bf16.msra.mxu0 %v8697_v7  ;;  %v8744_v32 = vpack.c.bf16 %v7020_v26, %v7019_v15  ;;  %v8710_v6 = vpack.c.bf16 %v6986_v62, %v6985_v42  ;;  %v6988_v1 = vld [vmem:[%s13521_s1 + $0x18] sm:$0xff]  ;;  %v7009_v7 = vld [vmem:[%s13521_s1 + $0xc0] sm:$0xff] }
 0xbd7   : > { %v6630_v59 = vsel %vm3682_vm10, %v6628_v20, %v9511_v34  ;;  %v6624_v16 = vsel %vm3682_vm10, %v6622_v52, %v9512_v61  ;;  %8450 = vmatprep.subr.msk.mxu0 %vm6389_vm1, %v6801_v12  ;;  %v7004_v61 = vld [vmem:[%s13521_s1 + $0x98] sm:$0xff]  ;;  %v6987_v34 = vld [vmem:[%s13521_s1 + $0x10] sm:$0xff]  ;;  %v7005_v20 = vld [vmem:[%s13521_s1 + $0xa0] sm:$0xff] }
 0xbd8   : > { %6706 = vmatprep.mubr.f32.mxu1 %v6630_v59  ;;  %v8712_v57 = vpack.c.bf16 %v7004_v61, %v7003_v58  ;;  %v7006_v52 = vld [vmem:[%s13521_s1 + $0xa8] sm:$0xff]  ;;  %v8714_v59 = vpack.c.bf16 %v6988_v1, %v6987_v34 }
 0xbd9   : > { %6707 = vmatmul.mubr.f32.gmra.mrb[94].mxu1 %v6624_v16  ;;  %v8716_v16 = vpack.c.bf16 %v7006_v52, %v7005_v20 }
 0xbda   : > { %8451 = vmatpush3.msk.msra.mxu0 %vm6389_vm1, %v6801_v12  ;;  %8459 = vmatprep.mubr.msk.f32.mxu1 %vm9771_vm13, %v13278_v45 }
 0xbdb   : > { %8704 = vmatprep.subr.bf16.mxu0 %v13512_v30 }
 0xc2e   : > { %v8445_v53 = vpop.f32.mrb[128].mxu0 }
 0xc2f   : > { %v6778_v14 = vpop.f32.mrb[129].mxu0 }
 0xca7   : > { %v8126_v33 = vpop.f32.mrb[92].mxu1 }
 0xca8   : > { %v8127_v31 = vpop.f32.mrb[93].mxu1 }
 0xca9   : > { %v8128_v50 = vadd.f32 %v8127_v31, %v8126_v33  ;;  %v7007_v33 = vld [vmem:[%s13521_s1 + $0xb0] sm:$0xff]  ;;  %v7008_v31 = vld [vmem:[%s13521_s1 + $0xb8] sm:$0xff] }
 0xcaa   : > { %v8720_v22 = vpack.c.bf16 %v7008_v31, %v7007_v33 }
 0xcab   : > { %v6779_v29 = vadd.f32 %v8128_v50, %v6778_v14  ;;  %v6990_v14 = vld [vmem:[%s13521_s1 + $0x28] sm:$0xff] }
 0xcac   : > { %v8129_v38 = vpop.f32.mrb[94].mxu1 }
 0xcad   : > { %6789 = vrot.lane.b32.xlu0 %v6779_v29, %s9770_s3  ;;  %v8130_v37 = vpop.f32.mrb[95].mxu1  ;;  %v6992_v29 = vld [vmem:[%s13521_s1 + $0x38] sm:$0xff] }
 0xcae   : > { %v8131_v49 = vadd.f32 %v8130_v37, %v8129_v38  ;;  %v7010_v38 = vld [vmem:[%s13521_s1 + $0xc8] sm:$0xff]  ;;  %v8722_v12 = vpack.c.bf16 %v6992_v29, %v6991_v4 }
 0xcaf   : > { %v8724_v37 = vpack.c.bf16 %v7010_v38, %v7009_v7 }
 0xcb0   : > { %v6784_v24 = vadd.f32 %v8445_v53, %v8131_v49  ;;  %v6989_v53 = vld [vmem:[%s13521_s1 + $0x20] sm:$0xff] }
 0xcb1   : > { %v8718_v50 = vpack.c.bf16 %v6990_v14, %v6989_v53  ;;  %v6993_v49 = vld [vmem:[%s13521_s1 + $0x40] sm:$0xff] }
 0xcb2   : > { %6791 = vrot.lane.b32.xlu1 %v6784_v24, %s9770_s3  ;;  %s13519_s3 = sld [smem:[#allocation34_spill]]  ;;  %v6994_v24 = vld [vmem:[%s13521_s1 + $0x48] sm:$0xff] }
 0xcb8   : > { %v7813_v17 = vld [vmem:[%s13519_s3] ss:$0 sm:$0xff]  ;;  %s13523_s3 = sld [smem:[#allocation38_spill]] }
 0xd1f   : > { %v6790_v5 = vpop.permute.xlu0 %6789 }
 0xd20   : > { %v6795_v18 = vsel %vm6382_vm11, %v12827_v47, %v6790_v5  ;;  %v8726_v5 = vpack.c.bf16 %v6994_v24, %v6993_v49 }
 0xd21   : > { %v6809_v23 = vmul.f32 %v7807_v13, %v6795_v18  ;;  %v6995_v18 = vld [vmem:[%s13521_s1 + $0x50] sm:$0xff] }
 0xd23   : > { %v6817_v10 = vadd.f32 %v7808_v0, %v6809_v23  ;;  %v6996_v23 = vld [vmem:[%s13521_s1 + $0x58] sm:$0xff] }
 0xd24   : > { %v6792_v48 = vpop.permute.xlu1 %6791 }
 0xd25   : > { %v6819_v55 = vmax.f32 %v6817_v10, 0.0  ;;  %v6796_v27 = vsel %vm6382_vm11, %v12823_v2, %v6792_v48  ;;  %v6802_v2 = vld [vmem:[%s13517_s11] sm:$0xf]  ;;  %vm8706_vm11 = vmpackc.low %vm2525_vm2, %vm9768_vm14  ;;  %s13522_s11 = sld [smem:[#allocation37_spill]]  ;;  %v8730_v10 = vpack.c.bf16 %v6996_v23, %v6995_v18 }
 0xd26   : > { %v6810_v3 = vmul.f32 %v7807_v13, %v6796_v27  ;;  %v7012_v13 = vld [vmem:[%s13521_s1 + $0xd8] sm:$0xff]  ;;  %v7818_v27 = vld [vmem:[%s13523_s3] ss:$0 sm:$0xff]  ;;  %s1267_s3 = sand.u32 1, %s9708_s10  }
 0xd27   : > { %8452 = vmatprep.mubr.msk.f32.mxu0 %vm6821_vm3, %v6819_v55  ;;  %v7132_v55 = vand.u32 1, %v10289_v35  ;;  %v6999_v35 = vld [vmem:[%s13521_s1 + $0x70] sm:$0xff]  ;;  %s7460_s4 = scalar_lea.sflag [#allocation4], %s1267_s3 }
 0xd28   : > { %v6818_v63 = vadd.f32 %v7808_v0, %v6810_v3 }
 0xd29   : > { %vm7143_vm14 = vcmp.le.s32.totalorder %v7132_v55, 0  ;;  %vm7140_vm12 = vcmp.ge.s32.totalorder %v7132_v55, 1 }
 0xd2a   : > { %v6820_v56 = vmax.f32 %v6818_v63, 0.0  ;;  %v7819_v15 = vsel %vm7140_vm12, 1.0, %v13278_v45 }
 0xd2b   : > { %v7817_v48 = vld [vmem:[%s13522_s11] ss:$0 sm:$0xff]  ;;  %s13525_s11 = smov 64  }
 0xd2c   : > { %8453 = vmatmul.mubr.msk.f32.vlgmr.msra.gmra.mrb[130].mxu0 %vm6821_vm3, %v6820_v56 }
 0xd2d   : > { %8466 = vmatprep.mubr.msk.f32.mxu0 %vm9771_vm13, %v13278_v45  ;;  %8707 = vmatpush3.bf16.msk.msra.mxu0 %vm8706_vm11, %v8705_v60 }
 0xd2e   : > { %8740 = vmatprep.subr.bf16.mxu0 %v13512_v30 }
 0xdff   : > { %v8454_v47 = vpop.f32.mrb[130].mxu0 }
 0xe00   : > { %v6897_v28 = vpop.f32.mrb[131].mxu0 }
 0xe01   : > { %v8702_v43 = vpack.c.bf16 %v8454_v47, %v6897_v28  ;;  %v7013_v28 = vld [vmem:[%s13521_s1 + $0xe0] sm:$0xff] }
 0xe03   : > { %8703 = vmatpush3.bf16.msra.mxu1 %v8702_v43  ;;  %v7014_v43 = vld [vmem:[%s13521_s1 + $0xe8] sm:$0xff] }
 0xe04   : > { %8709 = vmatprep.subr.bf16.mxu1 %v8708_v39  ;;  %v8732_v40 = vpack.c.bf16 %v7014_v43, %v7013_v28  ;;  %v7823_v43 = vld [vmem:[#allocation5] ss:$0 sm:$0xff] }
 0xe06   : > { %8460 = vmatmul.mubr.msk.f32.vlgmr.msra.gmra.mrb[96].mxu1 %vm1456_vm0, %v6802_v2  ;;  %vm7036_vm0 = vcmask 72704   ;;  %v6997_v2 = vld [vmem:[%s13521_s1 + $0x60] sm:$0xff] }
 0xe07   : > { %8711 = vmatpush3.bf16.msra.mxu1 %v8710_v6 }
 0xe08   : > { %8713 = vmatprep.subr.bf16.mxu1 %v8712_v57 }
 0xe0b   : > { %8715 = vmatpush3.bf16.msra.mxu1 %v8714_v59 }
 0xe0c   : > { %8717 = vmatprep.subr.bf16.mxu1 %v8716_v16 }
 0xe0f   : > { %8719 = vmatpush3.bf16.msra.mxu1 %v8718_v50 }
 0xe10   : > { %8721 = vmatprep.subr.bf16.mxu1 %v8720_v22 }
 0xe13   : > { %8723 = vmatpush3.bf16.msra.mxu1 %v8722_v12 }
 0xe14   : > { %8725 = vmatprep.subr.bf16.mxu1 %v8724_v37 }
 0xe17   : > { %8727 = vmatpush3.bf16.msra.mxu1 %v8726_v5 }
 0xed9   : > { %v12950_v54 = vpop.f32.mrb[96].mxu1 }
 0xeda   : > { %v7027_v9 = vmul.f32 %v7813_v17, %v12950_v54  ;;  %v8461_v46 = vpop.f32.mrb[97].mxu1  ;;  %v8734_v17 = vpack.c.bf16 %v6998_v11, %v6997_v2 }
 0xedb   : > { %v7820_v46 = vsel %vm7143_vm14, 1.0, %v13278_v45 }
 0xedc   : > { %v7034_v51 = vadd.f32 %v7814_v36, %v7027_v9  ;;  %v7015_v36 = vld [vmem:[%s13521_s1 + $0xf0] sm:$0xff]  ;;  %v7016_v9 = vld [vmem:[%s13521_s1 + $0xf8] sm:$0xff] }
 0xede   : > { %v7035_v25 = vmax.f32 %v7034_v51, 0.0  ;;  %v8736_v51 = vpack.c.bf16 %v7016_v9, %v7015_v36 }
 0xee0   : > { %8467 = vmatmul.mubr.msk.f32.vlgmr.msra.gmra.mrb[132].mxu0 %vm7036_vm0, %v7035_v25  ;;  %v7000_v25 = vld [vmem:[%s13521_s1 + $0x78] sm:$0xff] }
 0xee1   : > { %8477 = vmatprep.mubr.msk.f32.mxu0 %vm9771_vm13, %v13278_v45  ;;  %8742 = vmatpush3.bf16.msra.mxu0 %v8741_v41  ;;  %v8738_v21 = vpack.c.bf16 %v7000_v25, %v6999_v35 }
 0xee2   : > { %8743 = vmatprep.subr.bf16.mxu0 %v13512_v30 }
 0xee5   : > { %8745 = vmatpush3.bf16.msra.mxu0 %v8744_v32 }
 0xee6   : > { %8746 = vmatprep.subr.bf16.mxu0 %v13512_v30  ;;  %v7011_v30 = vld [vmem:[%s13521_s1 + $0xd0] sm:$0xff] }
 0xee7   : > { %v8728_v0 = vpack.c.bf16 %v7012_v13, %v7011_v30 }
 0xee9   : > { %8729 = vmatprep.subr.bf16.mxu1 %v8728_v0 }
 0xeea   : > { %8731 = vmatpush3.bf16.msra.mxu1 %v8730_v10 }
 0xeeb   : > { %8733 = vmatprep.subr.bf16.mxu1 %v8732_v40 }
 0xeee   : > { %8735 = vmatpush3.bf16.msra.mxu1 %v8734_v17 }
 0xeef   : > { %8737 = vmatprep.subr.bf16.mxu1 %v8736_v51 }
 0xef2   : > { %8739 = vmatpush3.bf16.msra.mxu1 %v8738_v21 }
 0xfb3   : > { %v7109_v3 = vpop.f32.mrb[132].mxu0 }
 0xfb4   : > { %v7119_v63 = vmul.f32 %v7817_v48, %v7109_v3  ;;  %v8468_v56 = vpop.f32.mrb[133].mxu0  ;;  %v7352_v3 = vld [vmem:[%s9977_s20 + $0x8] sm:$0xff] }
 0xfb5   : > { %v7353_v56 = vld [vmem:[%s9977_s20 + $0x10] sm:$0x1] }
 0xfb6   : > { %v7126_v47 = vadd.f32 %v7818_v27, %v7119_v63  ;;  %v7351_v27 = vld [vmem:[%s9977_s20] sm:$0xff] }
 0xfb7   : > { %v8747_v63 = vpack.c.bf16 %v7352_v3, %v7351_v27 }
 0xfb8   : > { %v7127_v60 = vmax.f32 %v7126_v47, 0.0  ;;  %v7822_v47 = vld [vmem:[#allocation2] ss:$0 sm:$0xff] }
 0xfba   : > { %v7151_v44 = vrot.slane %v7127_v60, 6  ;;  %v7159_v19 = vrot.slane %v7127_v60, 1  ;;  %v7154_v41 = vrot.slane %v7127_v60, 7  ;;  %v7167_v26 = vrot.slane %v7127_v60, 3 }
 0xfbb   : > { %v7164_v6 = vrot.slane %v7127_v60, 2  ;;  %v7147_v16 = vrot.slane %v7127_v60, 5 }
 0xfbc   : > { %v7161_v8 = vsel %vm6538_vm6, %v7159_v19, 0.0  ;;  %v7156_v39 = vsel %vm2525_vm2, 0.0, %v7154_v41  ;;  %v7153_v32 = vsel %vm6389_vm1, 0.0, %v7151_v44  ;;  %v7169_v61 = vsel %vm2525_vm2, %v7167_v26, 0.0  ;;  %v7354_v44 = vld [vmem:[#allocation7] sm:$0x1] }
 0xfbd   : > { %v7162_v42 = vmul.f32 %v7820_v46, %v7161_v8  ;;  %v7157_v62 = vmul.f32 %v7820_v46, %v7156_v39  ;;  %v7163_v58 = vmul.f32 %v7819_v15, %v7161_v8  ;;  %v7158_v57 = vmul.f32 %v7819_v15, %v7156_v39 }
 0xfbe   : > { %v7170_v20 = vmul.f32 %v7820_v46, %v7169_v61  ;;  %v7166_v52 = vsel %vm6389_vm1, %v7164_v6, 0.0  ;;  %v7149_v53 = vsel %vm6538_vm6, 0.0, %v7147_v16 }
 0xfbf   : > { %v9513_v34 = vpack.i.bf16 %v7153_v32, %v7162_v42  ;;  %v9518_v1 = vpack.i.bf16 %v7157_v62, %v7163_v58  ;;  %v9523_v59 = vpack.i.bf16 %v7158_v57, %v7166_v52  ;;  %v7150_v22 = vmul.f32 %v7819_v15, %v7149_v53 }
 0xfc0   : > { %8478 = vmatmul.mubr.msk.f32.vlgmr.msra.gmra.mrb[134].mxu0 %vm3616_vm7, %v7170_v20 }
 0xfc1   : > { %9514 = vrot.lane.b32.xlu0 %v9513_v34, %s13524_s2  ;;  %9519 = vrot.lane.b32.xlu1 %v9518_v1, %s13525_s11  ;;  %s7826_s2 = sshll.u32 %s10010_s0, 4  ;;  %s1268_s11 = scalar_lea.vmem [#allocation8], %s1267_s3 }
 0xfc2   : > { %8486 = vmatprep.mubr.msk.f32.mxu0 %vm9771_vm13, %v13278_v45  ;;  %8748 = vmatpush3.bf16.msra.mxu0 %v8747_v63  ;;  %s13028_s1 = scalar_lea.hbm %s9987_s30, %s7826_s2  ;;  %s9773_s0 = smov [#allocation8]  }
 0xfc3   : > { %8484 = vmatprep.subr.mxu0 %v13278_v45  ;;  %s9650_s6 = sshll.u32 %s9773_s0, 4  ;;  %s9651_s6 = int_to_ptr.vmem [resolvable:$false] %s9650_s6 }
 0xfc4   : > { %s9652_s8 = scalar_lea.vmem %s9651_s6, 32 }
 0xfc5   : > { %9524 = vrot.lane.b32.xlu0 %v9523_v59, %s13511_s7  ;;  %s9772_s7 = smov 9  }
 0xfc6   : > { %8485 = vmatpush3.msk.msra.mxu0 %vm2525_vm2, %v7353_v56  ;;  %vm7380_vm2 = vcmask 138240  }
0x1033   : > { %v9515_v14 = vpop.permute.xlu0 %9514  ;;  %v9520_v33 = vpop.permute.xlu1 %9519 }
0x1034   : > { %v9517_v31 = vunpack.i.h.bf16 %v9515_v14  ;;  %v9516_v50 = vunpack.i.l.bf16 %v9515_v14  ;;  %v9522_v4 = vunpack.i.h.bf16 %v9520_v33  ;;  %v9521_v29 = vunpack.i.l.bf16 %v9520_v33 }
0x1036   : > { %v7195_v7 = vsel %vm3616_vm7, %v7150_v22, %v9517_v31  ;;  %v7198_v38 = vsel %vm3616_vm7, %v7127_v60, %v9516_v50  ;;  %vm7370_vm7 = vcmask 134144  }
0x1037   : > { %v9525_v12 = vpop.permute.xlu0 %9524  ;;  %v7199_v24 = vsel %vm3649_vm9, %v7198_v38, %v9521_v29  ;;  %v7196_v30 = vsel %vm3649_vm9, %v7195_v7, %v9522_v4  ;;  %vm7457_vm9 = vcmask 73728  }
0x1038   : > { %v9527_v37 = vunpack.i.h.bf16 %v9525_v12  ;;  %v9526_v49 = vunpack.i.l.bf16 %v9525_v12 }
0x103a   : > { %v7200_v13 = vsel %vm3682_vm10, %v7199_v24, %v9526_v49  ;;  %v7197_v5 = vsel %vm3682_vm10, %v7196_v30, %v9527_v37 }
0x103b   : > { %7268 = vmatprep.mubr.f32.mxu1 %v7200_v13 }
0x103c   : > { %7269 = vmatmul.mubr.f32.vlgmr.msra.gmra.mrb[98].mxu1 %v7197_v5 }
0x1093   : > { %v7340_v0 = vpop.f32.mrb[134].mxu0 }
0x1094   : > { %v8479_v18 = vpop.f32.mrb[135].mxu0 }
0x110f   : > { %v8181_v23 = vpop.f32.mrb[98].mxu1 }
0x1110   : > { %v8182_v10 = vpop.f32.mrb[99].mxu1 }
0x1111   : > { %v8183_v48 = vadd.f32 %v8182_v10, %v8181_v23 }
0x1113   : > { %v7341_v55 = vadd.f32 %v8183_v48, %v7340_v0 }
0x1115   : > { %7345 = vrot.lane.b32.xlu1 %v7341_v55, %s9772_s7  ;;  %s7472_s7 = sshll.u32 %s1268_s11, 4  ;;  %s13030_s7 = int_to_ptr.vmem [resolvable:$true] %s7472_s7 }
0x1116   : > { %s9646_s5 = scalar_lea.vmem %s13030_s7, 16  ;;  %p9653_p10 = scmp.lt.s32.totalorder %s13030_s7, %s9651_s6 }
0x1117   : > { %p9647_p4 = scmp.ne.s32.totalorder %s13030_s7, %s9646_s5  ;;  %p9654_p7 = scmp.lt.s32.totalorder %s9652_s8, %s9646_s5 }
0x1119   : > { %p9648_p6 = pnand %p9647_p4, %p13526_p5  ;;  %p9655_p8 = por %p9654_p7, %p9653_p10 }
0x111b   : > { %p9649_p9 = pneg %p9648_p6 }
0x111d   : > { %p9656_p11 = pnand %p9655_p8, %p9649_p9 }
0x1187   : > { %v7346_v28 = vpop.permute.xlu1 %7345 }
0x1188   : > { %v7348_v2 = vsel %vm7036_vm0, %v12950_v54, %v7346_v28 }
0x1189   : > { %v7361_v40 = vmul.f32 %v7822_v47, %v7348_v2 }
0x118b   : > { %v7368_v11 = vadd.f32 %v7823_v43, %v7361_v40 }
0x118d   : > { %v7369_v60 = vmax.f32 %v7368_v11, 0.0 }
0x118f   : > { %v7371_v17 = vsel %vm7370_vm7, %v7369_v60, 0.0 }
0x1190   : > { %v7372_v36 = vrot.slane %v7371_v17, 4 }
0x1192   : > { %v7373_v9 = vadd.f32 %v7372_v36, %v7371_v17 }
0x1194   : > { %v7374_v35 = vrot.slane %v7373_v9, 2 }
0x1196   : > { %v7375_v45 = vadd.f32 %v7374_v35, %v7373_v9 }
0x1198   : > { %v7376_v46 = vrot.slane %v7375_v45, 1 }
0x119a   : > { %v7377_v51 = vadd.f32 %v7376_v46, %v7375_v45 }
0x119c   : > { %v7379_v25 = vmul.f32 0.25, %v7377_v51 }
0x119e   : > { %8487 = vmatmul.mubr.msk.f32.vlgmr.msra.gmra.mrb[136].mxu0 %vm7380_vm2, %v7379_v25 }
0x1271   : > { %v7453_v54 = vpop.f32.mrb[136].mxu0 }
0x1272   : > { %v7454_v19 = vadd.f32 %v7453_v54, %v7354_v44  ;;  %v8488_v15 = vpop.f32.mrb[137].mxu0 }
0x1274   : > { %7458 = vst.msk [vmem:[%s1268_s11] sm:$0x1] %vm7457_vm9, %v7454_v19 }
0x1275   : > { %9659 = shalt.err (!%p9656_p11)
}
0x1276   : > { %s9660_s3 = scalar_lea.hbm %s13028_s1, 16  ;;  %s9664_s2 = scalar_lea.hbm %s9987_s30, 32 }
0x1277   : > { %p9661_p13 = scmp.ne.s32.totalorder %s13028_s1, %s9660_s3  ;;  %p9665_p2 = scmp.lt.u32.totalorder %s13028_s1, %s9987_s30 }
0x1278   : > { %p9666_p3 = scmp.lt.u32.totalorder %s9664_s2, %s9660_s3  ;;  %p9668_p4 = scmp.lt.u32.totalorder %s9660_s3, %s13028_s1 }
0x1279   : > { %p9662_p1 = pnand %p9661_p13, %p13526_p5 }
0x127a   : > { %p9667_p12 = por %p9666_p3, %p9665_p2 }
0x127b   : > { %p9663_p0 = pneg %p9662_p1 }
0x127c   : > { %p9669_p6 = por %p9668_p4, %p9667_p12 }
0x127e   : > { %p9670_p9 = pnand %p9669_p6, %p9663_p0 }
0x1280   : > { %9673 = shalt.err (!%p9670_p9)
}
0x1281   : > { %8793 = dma.vmem_to_hbm [thread:$0]  (%p13526_p5), %s13030_s7, 16, %s13028_s1, %s7460_s4  }
0x1282 PF: > { %s13527_s5 = sld [smem:[#allocation41_spill]]  ;;  %s13528_s8 = sld [smem:[#allocation45_spill]] }
0x1283   : > { %p8815_p10 = scmp.ge.s32.totalorder %s9716_s15, 2 }
0x1288   : > { %s7484_s6 = sand.u32 1, %s13527_s5   ;;  %p13529_p7 = scmp.ne.s32.totalorder %s13528_s8, 0 }
0x1289   : > { %s7485_s11 = scalar_lea.sflag [#allocation4], %s7484_s6 }
0x128a   : > { %p8806_p8 = pnand %p8815_p10, %p13529_p7 }
0x128c   : > { %9699 = dma.done.wait (!%p8806_p8), %s7485_s11, 16  }
0x128d   : > { %9701 = vsyncadd (!%p8806_p8), %s7485_s11, 4294967280  ;;  %s13530_s15 = sld [smem:[#allocation43_spill]]  ;;  %s13531_s0 = sld [smem:[#allocation42_spill]] }
0x128e   : > { %s13532_s11 = sld [smem:[#allocation44_spill]]  ;;  %s13533_s7 = smov %s9708_s10 }
0x1293   : > { %p95_p11 = scmp.ge.s32.totalorder %s13530_s15, 4   ;;  %s13534_s10 = smov %s13531_s0 }
0x1295   :  { %97 = sbr.rel (!%p95_p11) target bundleno = 81 (0x51), region = 273 }
0x129c   :  { %7489 = vsyncpa [#allocation3], 1 }
0x129d   :  { %7491 = vsyncpa [#allocation3 + $0x1], 1 }
0x129e   :  { %7492 = vsyncpa [#allocation6], 1 }
0x129f   :  { %7493 = vsyncpa [#allocation4], 1 }
0x12a0   :  { %7495 = vsyncpa [#allocation4 + $0x1], 1 }

</bundles_post_ra>
